<compile_context>
chip_gen: v6e
topology: v6e:2x2x1
jax: 0.10.0
libtpu: 0.0.40
codegen_flags: <defaults>
</compile_context>

<pallas_src>
import functools

import jax
import jax.numpy as jnp
from jax.experimental import pallas as pl
from jax.experimental.pallas import tpu as pltpu

EPS = 1e-5          # nn.BatchNorm2d default eps
NEG_SLOPE = 0.01    # nn.LeakyReLU default negative_slope
TM_TARGET = 1024    # M-tile size (multiple of 128); sweepable 512-2048


# ------------------------------ Pallas kernels ------------------------------ #
def _bn_lrelu(y, sum_ref, sq_ref, g_ref, b_ref, m_count):
    # Single-pass statistics (E[y^2] - mean^2) folded into one FMA: y*scale + shift.
    inv_m = 1.0 / m_count
    mean = sum_ref[...] * inv_m
    var = jnp.maximum(sq_ref[...] * inv_m - mean * mean, 0.0)
    scale = g_ref[...] * jax.lax.rsqrt(var + EPS)          # EUP rsqrt (free slot)
    shift = b_ref[...] - mean * scale
    yn = y * scale + shift
    return jnp.where(yn >= 0.0, yn, NEG_SLOPE * yn)


def _conv_bn_lrelu_kernel(x_ref, w_ref, g_ref, b_ref, o_ref,
                          stash_ref, sum_ref, sq_ref, *, m_count):
    phase = pl.program_id(1)
    tile = pl.program_id(2)
    tm = x_ref.shape[-1]
    off = pl.multiple_of(tile * tm, 128)

    @pl.when(jnp.logical_and(phase == 0, tile == 0))
    def _():
        sum_ref[...] = jnp.zeros_like(sum_ref)
        sq_ref[...] = jnp.zeros_like(sq_ref)

    @pl.when(phase == 0)   # pass 1: conv once, stash result, accumulate BN statistics
    def _():
        # conv as channel-major matmul: (Cout, K) @ (K, TM) -> (Cout, TM); bf16 in, f32 acc.
        y = jnp.dot(w_ref[...], x_ref[...], preferred_element_type=jnp.float32)
        stash_ref[:, pl.ds(off, tm)] = y
        sum_ref[...] += jnp.sum(y, axis=1, keepdims=True)
        sq_ref[...] += jnp.sum(y * y, axis=1, keepdims=True)

    @pl.when(phase == 1)   # pass 2: read stashed conv tile, apply BN + LeakyReLU
    def _():
        y = stash_ref[:, pl.ds(off, tm)]
        o_ref[...] = _bn_lrelu(y, sum_ref, sq_ref, g_ref, b_ref, m_count)


def _conv_bn_lrelu_linear_kernel(x_ref, w_ref, g_ref, b_ref, wf_ref, bf_ref,
                                 o_ref, stash_ref, sum_ref, sq_ref, *, m_count):
    # Same as above, plus a fused per-pixel Linear (Cout -> latent_dim) epilogue.
    phase = pl.program_id(1)
    tile = pl.program_id(2)
    tm = x_ref.shape[-1]
    off = pl.multiple_of(tile * tm, 128)

    @pl.when(jnp.logical_and(phase == 0, tile == 0))
    def _():
        sum_ref[...] = jnp.zeros_like(sum_ref)
        sq_ref[...] = jnp.zeros_like(sq_ref)

    @pl.when(phase == 0)
    def _():
        y = jnp.dot(w_ref[...], x_ref[...], preferred_element_type=jnp.float32)
        stash_ref[:, pl.ds(off, tm)] = y
        sum_ref[...] += jnp.sum(y, axis=1, keepdims=True)
        sq_ref[...] += jnp.sum(y * y, axis=1, keepdims=True)

    @pl.when(phase == 1)
    def _():
        y = stash_ref[:, pl.ds(off, tm)]
        act = _bn_lrelu(y, sum_ref, sq_ref, g_ref, b_ref, m_count)
        z = jnp.dot(wf_ref[...], act.astype(wf_ref.dtype),
                    preferred_element_type=jnp.float32) + bf_ref[...]
        o_ref[...] = z


# ------------------------------- layer glue --------------------------------- #
def _round_up(x, m):
    return (x + m - 1) // m * m


def _choose_tiles(M, target=TM_TARGET):
    Mp = _round_up(M, 128)
    if Mp <= target:
        return Mp, Mp
    return target, _round_up(M, target)


def _conv_bn_lrelu_impl(x, layer, stride, linear=None):
    """x: (G, Cin, H, W); each of the G items is an independent BN group (batch 1)."""
    w, _bias, gamma, beta = layer   # conv bias is cancelled by BN mean subtraction
    G, Cin, H, W = x.shape
    Cout = w.shape[0]
    Hout = (H + 2 - 3) // stride + 1
    Wout = (W + 2 - 3) // stride + 1
    M, K = Hout * Wout, 9 * Cin
    Kp = _round_up(K, 16)           # bf16 sublane-friendly contraction dim
    TM, Mp = _choose_tiles(M)
    num_tiles = Mp // TM

    # TODO(synk): fold this XLA-side im2col into an in-kernel 9-tap contraction axis;
    # the stride-2 shifted windows are not expressible via BlockSpec index_map alone
    # (would need manual strided DMA), so patches are still materialized here.
    xp = jnp.pad(x, ((0, 0), (0, 0), (1, 1), (1, 1)))
    cols = []
    for kh in range(3):
        for kw in range(3):
            sl = xp[:, :, kh: kh + (Hout - 1) * stride + 1: stride,
                          kw: kw + (Wout - 1) * stride + 1: stride]
            cols.append(sl.reshape(G, Cin, M))
    patches = jnp.concatenate(cols, axis=1)                       # (G, K, M)
    patches = jnp.pad(patches, ((0, 0), (0, Kp - K), (0, Mp - M))).astype(jnp.bfloat16)

    w_t = jnp.transpose(w, (0, 2, 3, 1)).reshape(Cout, K)          # (Cout, K) matches K order
    w_t = jnp.pad(w_t, ((0, 0), (0, Kp - K))).astype(jnp.bfloat16)
    gamma2 = gamma.reshape(Cout, 1).astype(jnp.float32)
    beta2 = beta.reshape(Cout, 1).astype(jnp.float32)

    def const_spec(shape):
        return pl.BlockSpec(shape, lambda g, p, i: (0,) * len(shape))

    # phase 0 walks patch tiles; phase 1 stays pinned on the last tile (zero re-fetches).
    def patch_map(g, p, i):
        return (g, 0, i * (1 - p) + p * (num_tiles - 1))

    # phase 0 pins the (unwritten) output block to tile 0 -> no wasted HBM writebacks;
    # phase 1 walks the tiles, writing each output block exactly once.
    def out_map(g, p, i):
        return (g, 0, i * p)

    in_specs = [pl.BlockSpec((None, Kp, TM), patch_map),
                const_spec((Cout, Kp)), const_spec((Cout, 1)), const_spec((Cout, 1))]
    args = [patches, w_t, gamma2, beta2]

    if linear is None:
        kernel = functools.partial(_conv_bn_lrelu_kernel, m_count=float(M))
        C_o = Cout
    else:
        wf, bf = linear                                            # wf: (Cout, latent_dim)
        C_o = wf.shape[1]
        in_specs += [const_spec((C_o, Cout)), const_spec((C_o, 1))]
        args += [jnp.transpose(wf).astype(jnp.bfloat16),
                 bf.reshape(C_o, 1).astype(jnp.float32)]
        kernel = functools.partial(_conv_bn_lrelu_linear_kernel, m_count=float(M))

    out = pl.pallas_call(
        kernel,
        out_shape=jax.ShapeDtypeStruct((G, C_o, Mp), jnp.float32),
        grid=(G, 2, num_tiles),
        in_specs=in_specs,
        out_specs=pl.BlockSpec((None, C_o, TM), out_map),
        scratch_shapes=[pltpu.VMEM((Cout, Mp), jnp.float32),       # stashed conv output
                        pltpu.VMEM((Cout, 1), jnp.float32),        # running sum
                        pltpu.VMEM((Cout, 1), jnp.float32)],       # running sum of squares
        compiler_params=pltpu.CompilerParams(
            dimension_semantics=("parallel", "arbitrary", "arbitrary"),
            vmem_limit_bytes=32 * 1024 * 1024),
    )(*args)
    return out[:, :, :M].reshape(G, C_o, Hout, Wout)


def conv_bn_lrelu(x, layer, stride):
    return _conv_bn_lrelu_impl(x, layer, stride, linear=None)


def conv_bn_lrelu_linear(x, layer, stride, final_w, final_b):
    return _conv_bn_lrelu_impl(x, layer, stride, linear=(final_w, final_b))


# -------------------------- XLA-side helper ops ------------------------------ #
def _interp_coords(out_size, in_size):
    scale = in_size / out_size
    src = (jnp.arange(out_size, dtype=jnp.float32) + 0.5) * scale - 0.5
    src = jnp.clip(src, 0.0, in_size - 1.0)
    i0 = jnp.floor(src).astype(jnp.int32)
    i1 = jnp.minimum(i0 + 1, in_size - 1)
    w1 = src - i0.astype(jnp.float32)
    return i0, i1, 1.0 - w1, w1


def bilinear_resize(x, out_hw):
    # F.interpolate(..., mode='bilinear', align_corners=False) on NCHW input.
    N, C, Hin, Win = x.shape
    Hout, Wout = out_hw
    y0, y1, wy0, wy1 = _interp_coords(Hout, Hin)
    x0, x1, wx0, wx1 = _interp_coords(Wout, Win)
    rows = (x[:, :, y0, :] * wy0[None, None, :, None]
            + x[:, :, y1, :] * wy1[None, None, :, None])
    return rows[:, :, :, x0] * wx0 + rows[:, :, :, x1] * wx1


def generate_ray_image(H, W, K, c2w):
    # Mirrors latent_inference.generate_ray_image (returns (6, H, W)).
    xs = jnp.arange(W, dtype=jnp.float32)
    ys = jnp.arange(H, dtype=jnp.float32)
    i, j = jnp.meshgrid(xs, ys, indexing="xy")              # (H, W) each
    dirs = jnp.stack([(i - K[0, 2]) / K[0, 0],
                      -(j - K[1, 2]) / K[1, 1],
                      -jnp.ones_like(i)], axis=-1)          # (H, W, 3)
    rays_d = jnp.sum(dirs[..., None, :] * c2w[:3, :3], axis=-1)
    rays_o = jnp.broadcast_to(c2w[:3, -1], rays_d.shape)
    rays_o = jnp.transpose(rays_o, (2, 0, 1))
    rays_d = jnp.transpose(rays_d, (2, 0, 1))
    return jnp.concatenate([rays_o, rays_d], axis=0)


# ------------------------------ parameters ----------------------------------- #
def _init_conv(key, cin, cout):
    k1, k2 = jax.random.split(key)
    w = jax.random.normal(k1, (cout, cin, 3, 3), jnp.float32) * 0.1
    b = jax.random.normal(k2, (cout,), jnp.float32) * 0.01   # unused (cancelled by BN)
    return (w, b, jnp.ones((cout,), jnp.float32), jnp.zeros((cout,), jnp.float32))


def init_params(key, in_channels, latent_dim):
    ks = jax.random.split(key, 12)
    mix_1 = [_init_conv(ks[0], in_channels, 16),
             _init_conv(ks[1], 16, 32),
             _init_conv(ks[2], 32, 32)]
    mix_2 = [_init_conv(ks[3], 96, 64),
             _init_conv(ks[4], 64, 64),
             _init_conv(ks[5], 64, 32)]
    mix_3 = [_init_conv(ks[6], 38, 32),
             _init_conv(ks[7], 32, 32),
             _init_conv(ks[8], 32, 16),
             _init_conv(ks[9], 16, 16)]
    final_w = jax.random.normal(ks[10], (16, latent_dim), jnp.float32) * 0.1
    final_b = jax.random.normal(ks[11], (latent_dim,), jnp.float32) * 0.01
    return dict(mix_1=mix_1, mix_2=mix_2, mix_3=mix_3,
                final_w=final_w, final_b=final_b)


# --------------------------------- forward ----------------------------------- #
def forward(params, imgs, camera, tv_camera, latent_dim):
    mean = jnp.array([0.485, 0.456, 0.406], jnp.float32).reshape(1, 1, 3, 1, 1)
    std = jnp.array([0.229, 0.224, 0.225], jnp.float32).reshape(1, 1, 3, 1, 1)
    imgs = jnp.squeeze((imgs - mean) / std)                 # (V, 3, H, W)
    V = imgs.shape[0]
    H, W = imgs.shape[-2:]

    rays = []
    for v in range(camera["intrinsics"].shape[1]):
        Kv = jnp.squeeze(camera["intrinsics"][:, v])
        c2w = jnp.squeeze(camera["extrinsics"][:, v])
        rays.append(generate_ray_image(H, W, Kv, c2w))
    input_ray_images = jnp.stack(rays, axis=0)              # (V, 6, H, W)

    x = jnp.concatenate([imgs, input_ray_images], axis=1)   # (V, 9, H, W)

    # encode_input: mix_1 runs per view with batch 1 (per-view BN stats); all V views
    # are batched into ONE pallas_call per layer via the leading group grid axis.
    h = x
    for layer, s in zip(params["mix_1"], (2, 1, 1)):
        h = conv_bn_lrelu(h, layer, s)                      # (V, 32, H/2, W/2)
    Vh, Ch, Hh, Wh = h.shape
    xg = h.reshape(1, Vh * Ch, Hh, Wh)                      # torch.cat(dim=1) of views

    lg = xg
    for layer, s in zip(params["mix_2"], (2, 2, 1)):
        lg = conv_bn_lrelu(lg, layer, s)                    # (1, 32, H/8, W/8)

    K_tv = jnp.squeeze(tv_camera["intrinsics"])
    c2w_tv = jnp.squeeze(tv_camera["extrinsics"])
    tv_ray = generate_ray_image(H, W, K_tv, c2w_tv)         # (6, H, W)

    lt = bilinear_resize(lg, (H, W))                        # (1, 32, H, W)
    lt = jnp.concatenate([lt, tv_ray[None]], axis=1)        # (1, 38, H, W)
    for layer, s in zip(params["mix_3"][:-1], (2, 2, 2)):
        lt = conv_bn_lrelu(lt, layer, s)
    # last mix_3 conv + BN + LeakyReLU + final 16->latent_dim Linear fused in one kernel
    lt = conv_bn_lrelu_linear(lt, params["mix_3"][-1], 1,
                              params["final_w"], params["final_b"])
    lt = bilinear_resize(lt, (64, 64))                      # (1, latent_dim, 64, 64)
    return lt, input_ray_images


# ---------------------------------- driver ------------------------------------ #
if __name__ == "__main__":
    key = jax.random.PRNGKey(0)
    kp, ki, ke, kt = jax.random.split(key, 4)

    in_channels, latent_dim = 9, 8     # 3 img channels + 6 ray channels
    V, H, W = 3, 16, 16                # 3 views required by mix_2 (96 = 3*32)

    params = init_params(kp, in_channels, latent_dim)
    imgs = jax.random.uniform(ki, (1, V, 3, H, W), jnp.float32)

    def make_K():
        return jnp.array([[20.0, 0.0, W / 2.0],
                          [0.0, 20.0, H / 2.0],
                          [0.0, 0.0, 1.0]], jnp.float32)

    camera = {
        "intrinsics": jnp.stack([make_K() for _ in range(V)], 0)[None],  # (1,V,3,3)
        "extrinsics": jax.random.normal(ke, (1, V, 3, 4), jnp.float32),  # (1,V,3,4)
    }
    tv_camera = {
        "intrinsics": make_K()[None],                                    # (1,3,3)
        "extrinsics": jax.random.normal(kt, (1, 3, 4), jnp.float32),     # (1,3,4)
    }

    fwd = jax.jit(functools.partial(forward, latent_dim=latent_dim))
    latents_tv, ray_imgs = fwd(params, imgs, camera, tv_camera)
    jax.block_until_ready((latents_tv, ray_imgs))

    assert latents_tv.shape == (1, latent_dim, 64, 64), latents_tv.shape
    assert ray_imgs.shape == (V, 6, H, W), ray_imgs.shape
    assert bool(jnp.all(jnp.isfinite(latents_tv)))
    print("KERNEL_OK")
</pallas_src>

<mosaic_0001>
module attributes {stable_mosaic.version = 11 : i64} {
  func.func @_conv_bn_lrelu_kernel(%arg0: i32, %arg1: i32, %arg2: i32, %arg3: memref<1x96x128xbf16, #tpu.memory_space<vmem>>, %arg4: memref<16x96xbf16, #tpu.memory_space<vmem>>, %arg5: memref<16x1xf32, #tpu.memory_space<vmem>>, %arg6: memref<16x1xf32, #tpu.memory_space<vmem>>, %arg7: memref<1x16x128xf32, #tpu.memory_space<vmem>>, %arg8: memref<16x128xf32, #tpu.memory_space<vmem>>, %arg9: memref<16x1xf32, #tpu.memory_space<vmem>>, %arg10: memref<16x1xf32, #tpu.memory_space<vmem>>) attributes {dimension_semantics = [#tpu.dimension_semantics<parallel>, #tpu.dimension_semantics<arbitrary>, #tpu.dimension_semantics<arbitrary>], iteration_bounds = array<i64: 3, 2, 1>, scalar_prefetch = 0 : i64, scratch_operands = 3 : i64, tpu.core_type = #tpu.core_type<tc>, window_params = [{transform_indices = @transform_0, window_bounds = array<i64: 1, 96, 128>}, {pipeline_mode = #tpu.pipeline_mode<synchronous>, transform_indices = @transform_1, window_bounds = array<i64: 16, 96>}, {pipeline_mode = #tpu.pipeline_mode<synchronous>, transform_indices = @transform_2, window_bounds = array<i64: 16, 1>}, {pipeline_mode = #tpu.pipeline_mode<synchronous>, transform_indices = @transform_3, window_bounds = array<i64: 16, 1>}, {transform_indices = @transform_4, window_bounds = array<i64: 1, 16, 128>}]} {
    %c128_i32 = arith.constant 128 : i32
    %0 = arith.muli %arg2, %c128_i32 : i32
    %1 = tpu.assume_multiple %0, 128 : i32
    %c0_i32 = arith.constant 0 : i32
    %2 = arith.cmpi eq, %arg1, %c0_i32 : i32
    %c0_i32_0 = arith.constant 0 : i32
    %3 = arith.cmpi eq, %arg2, %c0_i32_0 : i32
    %4 = arith.andi %2, %3 : i1
    %5 = arith.extui %4 : i1 to i32
    %c0_i32_1 = arith.constant 0 : i32
    %6 = arith.cmpi ne, %5, %c0_i32_1 : i32
    scf.if %6 {
      %cst = arith.constant 0.000000e+00 : f32
      %13 = vector.broadcast %cst : f32 to vector<16x1xf32>
      %c0 = arith.constant 0 : index
      %c0_5 = arith.constant 0 : index
      %14 = vector.load %arg9[%c0, %c0_5] : memref<16x1xf32, #tpu.memory_space<vmem>>, vector<16x1xf32>
      tpu.vector_store %arg9[%c0, %c0_5], %13 {strides = array<i32>} : memref<16x1xf32, #tpu.memory_space<vmem>>, vector<16x1xf32>,
      %cst_6 = arith.constant 0.000000e+00 : f32
      %15 = vector.broadcast %cst_6 : f32 to vector<16x1xf32>
      %c0_7 = arith.constant 0 : index
      %c0_8 = arith.constant 0 : index
      %16 = vector.load %arg10[%c0_7, %c0_8] : memref<16x1xf32, #tpu.memory_space<vmem>>, vector<16x1xf32>
      tpu.vector_store %arg10[%c0_7, %c0_8], %15 {strides = array<i32>} : memref<16x1xf32, #tpu.memory_space<vmem>>, vector<16x1xf32>,
    } else {
    }
    %c0_i32_2 = arith.constant 0 : i32
    %7 = arith.cmpi eq, %arg1, %c0_i32_2 : i32
    %8 = arith.extui %7 : i1 to i32
    %c0_i32_3 = arith.constant 0 : i32
    %9 = arith.cmpi ne, %8, %c0_i32_3 : i32
    scf.if %9 {
      %c0 = arith.constant 0 : index
      %c0_5 = arith.constant 0 : index
      %13 = vector.load %arg4[%c0, %c0_5] : memref<16x96xbf16, #tpu.memory_space<vmem>>, vector<16x96xbf16>
      %c0_6 = arith.constant 0 : index
      %c0_7 = arith.constant 0 : index
      %c0_8 = arith.constant 0 : index
      %14 = vector.load %arg3[%c0_6, %c0_7, %c0_8] : memref<1x96x128xbf16, #tpu.memory_space<vmem>>, vector<1x96x128xbf16>
      %15 = vector.shape_cast %14 : vector<1x96x128xbf16> to vector<96x128xbf16>
      %cst = arith.constant dense<0.000000e+00> : vector<16x128xf32>
      %16 = tpu.matmul %13, %15, %cst {dimension_numbers = #tpu.dot_dimension_numbers<[1], [0], [0], [1], [0, 0, 1, 1], [], []>} : vector<16x96xbf16>, vector<96x128xbf16>, vector<16x128xf32> -> vector<16x128xf32>
      %c0_9 = arith.constant 0 : index
      %17 = arith.index_cast %1 : i32 to index
      %18 = vector.load %arg8[%c0_9, %17] : memref<16x128xf32, #tpu.memory_space<vmem>>, vector<16x128xf32>
      tpu.vector_store %arg8[%c0_9, %17], %16 {strides = array<i32>} : memref<16x128xf32, #tpu.memory_space<vmem>>, vector<16x128xf32>,
      %c0_10 = arith.constant 0 : index
      %c0_11 = arith.constant 0 : index
      %19 = vector.load %arg9[%c0_10, %c0_11] : memref<16x1xf32, #tpu.memory_space<vmem>>, vector<16x1xf32>
      %cst_12 = arith.constant dense<0.000000e+00> : vector<16xf32>
      %20 = vector.multi_reduction <add>, %16, %cst_12 [1] : vector<16x128xf32> to vector<16xf32>
      %21 = vector.shape_cast %20 : vector<16xf32> to vector<16x1xf32>
      %22 = arith.addf %19, %21 : vector<16x1xf32>
      %c0_13 = arith.constant 0 : index
      %c0_14 = arith.constant 0 : index
      %23 = vector.load %arg9[%c0_13, %c0_14] : memref<16x1xf32, #tpu.memory_space<vmem>>, vector<16x1xf32>
      tpu.vector_store %arg9[%c0_13, %c0_14], %22 {strides = array<i32>} : memref<16x1xf32, #tpu.memory_space<vmem>>, vector<16x1xf32>,
      %c0_15 = arith.constant 0 : index
      %c0_16 = arith.constant 0 : index
      %24 = vector.load %arg10[%c0_15, %c0_16] : memref<16x1xf32, #tpu.memory_space<vmem>>, vector<16x1xf32>
      %25 = arith.mulf %16, %16 : vector<16x128xf32>
      %cst_17 = arith.constant dense<0.000000e+00> : vector<16xf32>
      %26 = vector.multi_reduction <add>, %25, %cst_17 [1] : vector<16x128xf32> to vector<16xf32>
      %27 = vector.shape_cast %26 : vector<16xf32> to vector<16x1xf32>
      %28 = arith.addf %24, %27 : vector<16x1xf32>
      %c0_18 = arith.constant 0 : index
      %c0_19 = arith.constant 0 : index
      %29 = vector.load %arg10[%c0_18, %c0_19] : memref<16x1xf32, #tpu.memory_space<vmem>>, vector<16x1xf32>
      tpu.vector_store %arg10[%c0_18, %c0_19], %28 {strides = array<i32>} : memref<16x1xf32, #tpu.memory_space<vmem>>, vector<16x1xf32>,
    } else {
    }
    %c1_i32 = arith.constant 1 : i32
    %10 = arith.cmpi eq, %arg1, %c1_i32 : i32
    %11 = arith.extui %10 : i1 to i32
    %c0_i32_4 = arith.constant 0 : i32
    %12 = arith.cmpi ne, %11, %c0_i32_4 : i32
    scf.if %12 {
      %c0 = arith.constant 0 : index
      %13 = arith.index_cast %1 : i32 to index
      %14 = vector.load %arg8[%c0, %13] : memref<16x128xf32, #tpu.memory_space<vmem>>, vector<16x128xf32>
      %c0_5 = arith.constant 0 : index
      %c0_6 = arith.constant 0 : index
      %15 = vector.load %arg9[%c0_5, %c0_6] : memref<16x1xf32, #tpu.memory_space<vmem>>, vector<16x1xf32>
      %cst = arith.constant 1.562500e-02 : f32
      %16 = vector.broadcast %cst : f32 to vector<16x1xf32>
      %17 = arith.mulf %15, %16 : vector<16x1xf32>
      %c0_7 = arith.constant 0 : index
      %c0_8 = arith.constant 0 : index
      %18 = vector.load %arg10[%c0_7, %c0_8] : memref<16x1xf32, #tpu.memory_space<vmem>>, vector<16x1xf32>
      %cst_9 = arith.constant 1.562500e-02 : f32
      %19 = vector.broadcast %cst_9 : f32 to vector<16x1xf32>
      %20 = arith.mulf %18, %19 : vector<16x1xf32>
      %21 = arith.mulf %17, %17 : vector<16x1xf32>
      %22 = arith.subf %20, %21 : vector<16x1xf32>
      %cst_10 = arith.constant 0.000000e+00 : f32
      %23 = vector.broadcast %cst_10 : f32 to vector<16x1xf32>
      %24 = arith.maximumf %22, %23 : vector<16x1xf32>
      %c0_11 = arith.constant 0 : index
      %c0_12 = arith.constant 0 : index
      %25 = vector.load %arg5[%c0_11, %c0_12] : memref<16x1xf32, #tpu.memory_space<vmem>>, vector<16x1xf32>
      %cst_13 = arith.constant 9.99999974E-6 : f32
      %26 = vector.broadcast %cst_13 : f32 to vector<16x1xf32>
      %27 = arith.addf %24, %26 : vector<16x1xf32>
      %28 = math.rsqrt %27 : vector<16x1xf32>
      %29 = arith.mulf %25, %28 : vector<16x1xf32>
      %c0_14 = arith.constant 0 : index
      %c0_15 = arith.constant 0 : index
      %30 = vector.load %arg6[%c0_14, %c0_15] : memref<16x1xf32, #tpu.memory_space<vmem>>, vector<16x1xf32>
      %31 = arith.mulf %17, %29 : vector<16x1xf32>
      %32 = arith.subf %30, %31 : vector<16x1xf32>
      %33 = vector.broadcast %29 : vector<16x1xf32> to vector<16x128xf32>
      %34 = arith.mulf %14, %33 : vector<16x128xf32>
      %35 = vector.broadcast %32 : vector<16x1xf32> to vector<16x128xf32>
      %36 = arith.addf %34, %35 : vector<16x128xf32>
      %cst_16 = arith.constant 0.000000e+00 : f32
      %37 = vector.broadcast %cst_16 : f32 to vector<16x128xf32>
      %38 = arith.cmpf oge, %36, %37 : vector<16x128xf32>
      %cst_17 = arith.constant 0.00999999977 : f32
      %39 = vector.broadcast %cst_17 : f32 to vector<16x128xf32>
      %40 = arith.mulf %39, %36 : vector<16x128xf32>
      %41 = arith.select %38, %36, %40 : vector<16x128xi1>, vector<16x128xf32>
      %c0_18 = arith.constant 0 : index
      %c0_19 = arith.constant 0 : index
      %c0_20 = arith.constant 0 : index
      %42 = vector.load %arg7[%c0_18, %c0_19, %c0_20] : memref<1x16x128xf32, #tpu.memory_space<vmem>>, vector<1x16x128xf32>
      %43 = vector.shape_cast %42 : vector<1x16x128xf32> to vector<16x128xf32>
      %44 = vector.shape_cast %41 : vector<16x128xf32> to vector<1x16x128xf32>
      tpu.vector_store %arg7[%c0_18, %c0_19, %c0_20], %44 {strides = array<i32>} : memref<1x16x128xf32, #tpu.memory_space<vmem>>, vector<1x16x128xf32>,
    } else {
    }
    return
  }
  func.func @transform_0(%arg0: i32, %arg1: i32, %arg2: i32) -> (i32, i32, i32) {
    %c1_i32 = arith.constant 1 : i32
    %0 = arith.subi %c1_i32, %arg1 : i32
    %1 = arith.muli %arg2, %0 : i32
    %c0_i32 = arith.constant 0 : i32
    %2 = arith.muli %arg1, %c0_i32 : i32
    %3 = arith.addi %1, %2 : i32
    %c0_i32_0 = arith.constant 0 : i32
    %c0_i32_1 = arith.constant 0 : i32
    return %arg0, %c0_i32_0, %3 : i32, i32, i32
  }
  func.func @transform_1(%arg0: i32, %arg1: i32, %arg2: i32) -> (i32, i32) {
    %c0_i32 = arith.constant 0 : i32
    %c0_i32_0 = arith.constant 0 : i32
    %c0_i32_1 = arith.constant 0 : i32
    return %c0_i32, %c0_i32_0 : i32, i32
  }
  func.func @transform_2(%arg0: i32, %arg1: i32, %arg2: i32) -> (i32, i32) {
    %c0_i32 = arith.constant 0 : i32
    %c0_i32_0 = arith.constant 0 : i32
    %c0_i32_1 = arith.constant 0 : i32
    return %c0_i32, %c0_i32_0 : i32, i32
  }
  func.func @transform_3(%arg0: i32, %arg1: i32, %arg2: i32) -> (i32, i32) {
    %c0_i32 = arith.constant 0 : i32
    %c0_i32_0 = arith.constant 0 : i32
    %c0_i32_1 = arith.constant 0 : i32
    return %c0_i32, %c0_i32_0 : i32, i32
  }
  func.func @transform_4(%arg0: i32, %arg1: i32, %arg2: i32) -> (i32, i32, i32) {
    %0 = arith.muli %arg2, %arg1 : i32
    %c0_i32 = arith.constant 0 : i32
    %c0_i32_0 = arith.constant 0 : i32
    return %arg0, %c0_i32, %0 : i32, i32, i32
  }
}

module attributes {stable_mosaic.version = 11 : i64} {
  func.func @_conv_bn_lrelu_kernel(%arg0: i32, %arg1: i32, %arg2: i32, %arg3: memref<1x144x128xbf16, #tpu.memory_space<vmem>>, %arg4: memref<32x144xbf16, #tpu.memory_space<vmem>>, %arg5: memref<32x1xf32, #tpu.memory_space<vmem>>, %arg6: memref<32x1xf32, #tpu.memory_space<vmem>>, %arg7: memref<1x32x128xf32, #tpu.memory_space<vmem>>, %arg8: memref<32x128xf32, #tpu.memory_space<vmem>>, %arg9: memref<32x1xf32, #tpu.memory_space<vmem>>, %arg10: memref<32x1xf32, #tpu.memory_space<vmem>>) attributes {dimension_semantics = [#tpu.dimension_semantics<parallel>, #tpu.dimension_semantics<arbitrary>, #tpu.dimension_semantics<arbitrary>], iteration_bounds = array<i64: 3, 2, 1>, scalar_prefetch = 0 : i64, scratch_operands = 3 : i64, tpu.core_type = #tpu.core_type<tc>, window_params = [{transform_indices = @transform_0, window_bounds = array<i64: 1, 144, 128>}, {pipeline_mode = #tpu.pipeline_mode<synchronous>, transform_indices = @transform_1, window_bounds = array<i64: 32, 144>}, {pipeline_mode = #tpu.pipeline_mode<synchronous>, transform_indices = @transform_2, window_bounds = array<i64: 32, 1>}, {pipeline_mode = #tpu.pipeline_mode<synchronous>, transform_indices = @transform_3, window_bounds = array<i64: 32, 1>}, {transform_indices = @transform_4, window_bounds = array<i64: 1, 32, 128>}]} {
    %c128_i32 = arith.constant 128 : i32
    %0 = arith.muli %arg2, %c128_i32 : i32
    %1 = tpu.assume_multiple %0, 128 : i32
    %c0_i32 = arith.constant 0 : i32
    %2 = arith.cmpi eq, %arg1, %c0_i32 : i32
    %c0_i32_0 = arith.constant 0 : i32
    %3 = arith.cmpi eq, %arg2, %c0_i32_0 : i32
    %4 = arith.andi %2, %3 : i1
    %5 = arith.extui %4 : i1 to i32
    %c0_i32_1 = arith.constant 0 : i32
    %6 = arith.cmpi ne, %5, %c0_i32_1 : i32
    scf.if %6 {
      %cst = arith.constant 0.000000e+00 : f32
      %13 = vector.broadcast %cst : f32 to vector<32x1xf32>
      %c0 = arith.constant 0 : index
      %c0_5 = arith.constant 0 : index
      %14 = vector.load %arg9[%c0, %c0_5] : memref<32x1xf32, #tpu.memory_space<vmem>>, vector<32x1xf32>
      tpu.vector_store %arg9[%c0, %c0_5], %13 {strides = array<i32>} : memref<32x1xf32, #tpu.memory_space<vmem>>, vector<32x1xf32>,
      %cst_6 = arith.constant 0.000000e+00 : f32
      %15 = vector.broadcast %cst_6 : f32 to vector<32x1xf32>
      %c0_7 = arith.constant 0 : index
      %c0_8 = arith.constant 0 : index
      %16 = vector.load %arg10[%c0_7, %c0_8] : memref<32x1xf32, #tpu.memory_space<vmem>>, vector<32x1xf32>
      tpu.vector_store %arg10[%c0_7, %c0_8], %15 {strides = array<i32>} : memref<32x1xf32, #tpu.memory_space<vmem>>, vector<32x1xf32>,
    } else {
    }
    %c0_i32_2 = arith.constant 0 : i32
    %7 = arith.cmpi eq, %arg1, %c0_i32_2 : i32
    %8 = arith.extui %7 : i1 to i32
    %c0_i32_3 = arith.constant 0 : i32
    %9 = arith.cmpi ne, %8, %c0_i32_3 : i32
    scf.if %9 {
      %c0 = arith.constant 0 : index
      %c0_5 = arith.constant 0 : index
      %13 = vector.load %arg4[%c0, %c0_5] : memref<32x144xbf16, #tpu.memory_space<vmem>>, vector<32x144xbf16>
      %c0_6 = arith.constant 0 : index
      %c0_7 = arith.constant 0 : index
      %c0_8 = arith.constant 0 : index
      %14 = vector.load %arg3[%c0_6, %c0_7, %c0_8] : memref<1x144x128xbf16, #tpu.memory_space<vmem>>, vector<1x144x128xbf16>
      %15 = vector.shape_cast %14 : vector<1x144x128xbf16> to vector<144x128xbf16>
      %cst = arith.constant dense<0.000000e+00> : vector<32x128xf32>
      %16 = tpu.matmul %13, %15, %cst {dimension_numbers = #tpu.dot_dimension_numbers<[1], [0], [0], [1], [0, 0, 1, 1], [], []>} : vector<32x144xbf16>, vector<144x128xbf16>, vector<32x128xf32> -> vector<32x128xf32>
      %c0_9 = arith.constant 0 : index
      %17 = arith.index_cast %1 : i32 to index
      %18 = vector.load %arg8[%c0_9, %17] : memref<32x128xf32, #tpu.memory_space<vmem>>, vector<32x128xf32>
      tpu.vector_store %arg8[%c0_9, %17], %16 {strides = array<i32>} : memref<32x128xf32, #tpu.memory_space<vmem>>, vector<32x128xf32>,
      %c0_10 = arith.constant 0 : index
      %c0_11 = arith.constant 0 : index
      %19 = vector.load %arg9[%c0_10, %c0_11] : memref<32x1xf32, #tpu.memory_space<vmem>>, vector<32x1xf32>
      %cst_12 = arith.constant dense<0.000000e+00> : vector<32xf32>
      %20 = vector.multi_reduction <add>, %16, %cst_12 [1] : vector<32x128xf32> to vector<32xf32>
      %21 = vector.shape_cast %20 : vector<32xf32> to vector<32x1xf32>
      %22 = arith.addf %19, %21 : vector<32x1xf32>
      %c0_13 = arith.constant 0 : index
      %c0_14 = arith.constant 0 : index
      %23 = vector.load %arg9[%c0_13, %c0_14] : memref<32x1xf32, #tpu.memory_space<vmem>>, vector<32x1xf32>
      tpu.vector_store %arg9[%c0_13, %c0_14], %22 {strides = array<i32>} : memref<32x1xf32, #tpu.memory_space<vmem>>, vector<32x1xf32>,
      %c0_15 = arith.constant 0 : index
      %c0_16 = arith.constant 0 : index
      %24 = vector.load %arg10[%c0_15, %c0_16] : memref<32x1xf32, #tpu.memory_space<vmem>>, vector<32x1xf32>
      %25 = arith.mulf %16, %16 : vector<32x128xf32>
      %cst_17 = arith.constant dense<0.000000e+00> : vector<32xf32>
      %26 = vector.multi_reduction <add>, %25, %cst_17 [1] : vector<32x128xf32> to vector<32xf32>
      %27 = vector.shape_cast %26 : vector<32xf32> to vector<32x1xf32>
      %28 = arith.addf %24, %27 : vector<32x1xf32>
      %c0_18 = arith.constant 0 : index
      %c0_19 = arith.constant 0 : index
      %29 = vector.load %arg10[%c0_18, %c0_19] : memref<32x1xf32, #tpu.memory_space<vmem>>, vector<32x1xf32>
      tpu.vector_store %arg10[%c0_18, %c0_19], %28 {strides = array<i32>} : memref<32x1xf32, #tpu.memory_space<vmem>>, vector<32x1xf32>,
    } else {
    }
    %c1_i32 = arith.constant 1 : i32
    %10 = arith.cmpi eq, %arg1, %c1_i32 : i32
    %11 = arith.extui %10 : i1 to i32
    %c0_i32_4 = arith.constant 0 : i32
    %12 = arith.cmpi ne, %11, %c0_i32_4 : i32
    scf.if %12 {
      %c0 = arith.constant 0 : index
      %13 = arith.index_cast %1 : i32 to index
      %14 = vector.load %arg8[%c0, %13] : memref<32x128xf32, #tpu.memory_space<vmem>>, vector<32x128xf32>
      %c0_5 = arith.constant 0 : index
      %c0_6 = arith.constant 0 : index
      %15 = vector.load %arg9[%c0_5, %c0_6] : memref<32x1xf32, #tpu.memory_space<vmem>>, vector<32x1xf32>
      %cst = arith.constant 1.562500e-02 : f32
      %16 = vector.broadcast %cst : f32 to vector<32x1xf32>
      %17 = arith.mulf %15, %16 : vector<32x1xf32>
      %c0_7 = arith.constant 0 : index
      %c0_8 = arith.constant 0 : index
      %18 = vector.load %arg10[%c0_7, %c0_8] : memref<32x1xf32, #tpu.memory_space<vmem>>, vector<32x1xf32>
      %cst_9 = arith.constant 1.562500e-02 : f32
      %19 = vector.broadcast %cst_9 : f32 to vector<32x1xf32>
      %20 = arith.mulf %18, %19 : vector<32x1xf32>
      %21 = arith.mulf %17, %17 : vector<32x1xf32>
      %22 = arith.subf %20, %21 : vector<32x1xf32>
      %cst_10 = arith.constant 0.000000e+00 : f32
      %23 = vector.broadcast %cst_10 : f32 to vector<32x1xf32>
      %24 = arith.maximumf %22, %23 : vector<32x1xf32>
      %c0_11 = arith.constant 0 : index
      %c0_12 = arith.constant 0 : index
      %25 = vector.load %arg5[%c0_11, %c0_12] : memref<32x1xf32, #tpu.memory_space<vmem>>, vector<32x1xf32>
      %cst_13 = arith.constant 9.99999974E-6 : f32
      %26 = vector.broadcast %cst_13 : f32 to vector<32x1xf32>
      %27 = arith.addf %24, %26 : vector<32x1xf32>
      %28 = math.rsqrt %27 : vector<32x1xf32>
      %29 = arith.mulf %25, %28 : vector<32x1xf32>
      %c0_14 = arith.constant 0 : index
      %c0_15 = arith.constant 0 : index
      %30 = vector.load %arg6[%c0_14, %c0_15] : memref<32x1xf32, #tpu.memory_space<vmem>>, vector<32x1xf32>
      %31 = arith.mulf %17, %29 : vector<32x1xf32>
      %32 = arith.subf %30, %31 : vector<32x1xf32>
      %33 = vector.broadcast %29 : vector<32x1xf32> to vector<32x128xf32>
      %34 = arith.mulf %14, %33 : vector<32x128xf32>
      %35 = vector.broadcast %32 : vector<32x1xf32> to vector<32x128xf32>
      %36 = arith.addf %34, %35 : vector<32x128xf32>
      %cst_16 = arith.constant 0.000000e+00 : f32
      %37 = vector.broadcast %cst_16 : f32 to vector<32x128xf32>
      %38 = arith.cmpf oge, %36, %37 : vector<32x128xf32>
      %cst_17 = arith.constant 0.00999999977 : f32
      %39 = vector.broadcast %cst_17 : f32 to vector<32x128xf32>
      %40 = arith.mulf %39, %36 : vector<32x128xf32>
      %41 = arith.select %38, %36, %40 : vector<32x128xi1>, vector<32x128xf32>
      %c0_18 = arith.constant 0 : index
      %c0_19 = arith.constant 0 : index
      %c0_20 = arith.constant 0 : index
      %42 = vector.load %arg7[%c0_18, %c0_19, %c0_20] : memref<1x32x128xf32, #tpu.memory_space<vmem>>, vector<1x32x128xf32>
      %43 = vector.shape_cast %42 : vector<1x32x128xf32> to vector<32x128xf32>
      %44 = vector.shape_cast %41 : vector<32x128xf32> to vector<1x32x128xf32>
      tpu.vector_store %arg7[%c0_18, %c0_19, %c0_20], %44 {strides = array<i32>} : memref<1x32x128xf32, #tpu.memory_space<vmem>>, vector<1x32x128xf32>,
    } else {
    }
    return
  }
  func.func @transform_0(%arg0: i32, %arg1: i32, %arg2: i32) -> (i32, i32, i32) {
    %c1_i32 = arith.constant 1 : i32
    %0 = arith.subi %c1_i32, %arg1 : i32
    %1 = arith.muli %arg2, %0 : i32
    %c0_i32 = arith.constant 0 : i32
    %2 = arith.muli %arg1, %c0_i32 : i32
    %3 = arith.addi %1, %2 : i32
    %c0_i32_0 = arith.constant 0 : i32
    %c0_i32_1 = arith.constant 0 : i32
    return %arg0, %c0_i32_0, %3 : i32, i32, i32
  }
  func.func @transform_1(%arg0: i32, %arg1: i32, %arg2: i32) -> (i32, i32) {
    %c0_i32 = arith.constant 0 : i32
    %c0_i32_0 = arith.constant 0 : i32
    %c0_i32_1 = arith.constant 0 : i32
    return %c0_i32, %c0_i32_0 : i32, i32
  }
  func.func @transform_2(%arg0: i32, %arg1: i32, %arg2: i32) -> (i32, i32) {
    %c0_i32 = arith.constant 0 : i32
    %c0_i32_0 = arith.constant 0 : i32
    %c0_i32_1 = arith.constant 0 : i32
    return %c0_i32, %c0_i32_0 : i32, i32
  }
  func.func @transform_3(%arg0: i32, %arg1: i32, %arg2: i32) -> (i32, i32) {
    %c0_i32 = arith.constant 0 : i32
    %c0_i32_0 = arith.constant 0 : i32
    %c0_i32_1 = arith.constant 0 : i32
    return %c0_i32, %c0_i32_0 : i32, i32
  }
  func.func @transform_4(%arg0: i32, %arg1: i32, %arg2: i32) -> (i32, i32, i32) {
    %0 = arith.muli %arg2, %arg1 : i32
    %c0_i32 = arith.constant 0 : i32
    %c0_i32_0 = arith.constant 0 : i32
    return %arg0, %c0_i32, %0 : i32, i32, i32
  }
}

module attributes {stable_mosaic.version = 11 : i64} {
  func.func @_conv_bn_lrelu_kernel(%arg0: i32, %arg1: i32, %arg2: i32, %arg3: memref<1x288x128xbf16, #tpu.memory_space<vmem>>, %arg4: memref<32x288xbf16, #tpu.memory_space<vmem>>, %arg5: memref<32x1xf32, #tpu.memory_space<vmem>>, %arg6: memref<32x1xf32, #tpu.memory_space<vmem>>, %arg7: memref<1x32x128xf32, #tpu.memory_space<vmem>>, %arg8: memref<32x128xf32, #tpu.memory_space<vmem>>, %arg9: memref<32x1xf32, #tpu.memory_space<vmem>>, %arg10: memref<32x1xf32, #tpu.memory_space<vmem>>) attributes {dimension_semantics = [#tpu.dimension_semantics<parallel>, #tpu.dimension_semantics<arbitrary>, #tpu.dimension_semantics<arbitrary>], iteration_bounds = array<i64: 3, 2, 1>, scalar_prefetch = 0 : i64, scratch_operands = 3 : i64, tpu.core_type = #tpu.core_type<tc>, window_params = [{transform_indices = @transform_0, window_bounds = array<i64: 1, 288, 128>}, {pipeline_mode = #tpu.pipeline_mode<synchronous>, transform_indices = @transform_1, window_bounds = array<i64: 32, 288>}, {pipeline_mode = #tpu.pipeline_mode<synchronous>, transform_indices = @transform_2, window_bounds = array<i64: 32, 1>}, {pipeline_mode = #tpu.pipeline_mode<synchronous>, transform_indices = @transform_3, window_bounds = array<i64: 32, 1>}, {transform_indices = @transform_4, window_bounds = array<i64: 1, 32, 128>}]} {
    %c128_i32 = arith.constant 128 : i32
    %0 = arith.muli %arg2, %c128_i32 : i32
    %1 = tpu.assume_multiple %0, 128 : i32
    %c0_i32 = arith.constant 0 : i32
    %2 = arith.cmpi eq, %arg1, %c0_i32 : i32
    %c0_i32_0 = arith.constant 0 : i32
    %3 = arith.cmpi eq, %arg2, %c0_i32_0 : i32
    %4 = arith.andi %2, %3 : i1
    %5 = arith.extui %4 : i1 to i32
    %c0_i32_1 = arith.constant 0 : i32
    %6 = arith.cmpi ne, %5, %c0_i32_1 : i32
    scf.if %6 {
      %cst = arith.constant 0.000000e+00 : f32
      %13 = vector.broadcast %cst : f32 to vector<32x1xf32>
      %c0 = arith.constant 0 : index
      %c0_5 = arith.constant 0 : index
      %14 = vector.load %arg9[%c0, %c0_5] : memref<32x1xf32, #tpu.memory_space<vmem>>, vector<32x1xf32>
      tpu.vector_store %arg9[%c0, %c0_5], %13 {strides = array<i32>} : memref<32x1xf32, #tpu.memory_space<vmem>>, vector<32x1xf32>,
      %cst_6 = arith.constant 0.000000e+00 : f32
      %15 = vector.broadcast %cst_6 : f32 to vector<32x1xf32>
      %c0_7 = arith.constant 0 : index
      %c0_8 = arith.constant 0 : index
      %16 = vector.load %arg10[%c0_7, %c0_8] : memref<32x1xf32, #tpu.memory_space<vmem>>, vector<32x1xf32>
      tpu.vector_store %arg10[%c0_7, %c0_8], %15 {strides = array<i32>} : memref<32x1xf32, #tpu.memory_space<vmem>>, vector<32x1xf32>,
    } else {
    }
    %c0_i32_2 = arith.constant 0 : i32
    %7 = arith.cmpi eq, %arg1, %c0_i32_2 : i32
    %8 = arith.extui %7 : i1 to i32
    %c0_i32_3 = arith.constant 0 : i32
    %9 = arith.cmpi ne, %8, %c0_i32_3 : i32
    scf.if %9 {
      %c0 = arith.constant 0 : index
      %c0_5 = arith.constant 0 : index
      %13 = vector.load %arg4[%c0, %c0_5] : memref<32x288xbf16, #tpu.memory_space<vmem>>, vector<32x288xbf16>
      %c0_6 = arith.constant 0 : index
      %c0_7 = arith.constant 0 : index
      %c0_8 = arith.constant 0 : index
      %14 = vector.load %arg3[%c0_6, %c0_7, %c0_8] : memref<1x288x128xbf16, #tpu.memory_space<vmem>>, vector<1x288x128xbf16>
      %15 = vector.shape_cast %14 : vector<1x288x128xbf16> to vector<288x128xbf16>
      %cst = arith.constant dense<0.000000e+00> : vector<32x128xf32>
      %16 = tpu.matmul %13, %15, %cst {dimension_numbers = #tpu.dot_dimension_numbers<[1], [0], [0], [1], [0, 0, 1, 1], [], []>} : vector<32x288xbf16>, vector<288x128xbf16>, vector<32x128xf32> -> vector<32x128xf32>
      %c0_9 = arith.constant 0 : index
      %17 = arith.index_cast %1 : i32 to index
      %18 = vector.load %arg8[%c0_9, %17] : memref<32x128xf32, #tpu.memory_space<vmem>>, vector<32x128xf32>
      tpu.vector_store %arg8[%c0_9, %17], %16 {strides = array<i32>} : memref<32x128xf32, #tpu.memory_space<vmem>>, vector<32x128xf32>,
      %c0_10 = arith.constant 0 : index
      %c0_11 = arith.constant 0 : index
      %19 = vector.load %arg9[%c0_10, %c0_11] : memref<32x1xf32, #tpu.memory_space<vmem>>, vector<32x1xf32>
      %cst_12 = arith.constant dense<0.000000e+00> : vector<32xf32>
      %20 = vector.multi_reduction <add>, %16, %cst_12 [1] : vector<32x128xf32> to vector<32xf32>
      %21 = vector.shape_cast %20 : vector<32xf32> to vector<32x1xf32>
      %22 = arith.addf %19, %21 : vector<32x1xf32>
      %c0_13 = arith.constant 0 : index
      %c0_14 = arith.constant 0 : index
      %23 = vector.load %arg9[%c0_13, %c0_14] : memref<32x1xf32, #tpu.memory_space<vmem>>, vector<32x1xf32>
      tpu.vector_store %arg9[%c0_13, %c0_14], %22 {strides = array<i32>} : memref<32x1xf32, #tpu.memory_space<vmem>>, vector<32x1xf32>,
      %c0_15 = arith.constant 0 : index
      %c0_16 = arith.constant 0 : index
      %24 = vector.load %arg10[%c0_15, %c0_16] : memref<32x1xf32, #tpu.memory_space<vmem>>, vector<32x1xf32>
      %25 = arith.mulf %16, %16 : vector<32x128xf32>
      %cst_17 = arith.constant dense<0.000000e+00> : vector<32xf32>
      %26 = vector.multi_reduction <add>, %25, %cst_17 [1] : vector<32x128xf32> to vector<32xf32>
      %27 = vector.shape_cast %26 : vector<32xf32> to vector<32x1xf32>
      %28 = arith.addf %24, %27 : vector<32x1xf32>
      %c0_18 = arith.constant 0 : index
      %c0_19 = arith.constant 0 : index
      %29 = vector.load %arg10[%c0_18, %c0_19] : memref<32x1xf32, #tpu.memory_space<vmem>>, vector<32x1xf32>
      tpu.vector_store %arg10[%c0_18, %c0_19], %28 {strides = array<i32>} : memref<32x1xf32, #tpu.memory_space<vmem>>, vector<32x1xf32>,
    } else {
    }
    %c1_i32 = arith.constant 1 : i32
    %10 = arith.cmpi eq, %arg1, %c1_i32 : i32
    %11 = arith.extui %10 : i1 to i32
    %c0_i32_4 = arith.constant 0 : i32
    %12 = arith.cmpi ne, %11, %c0_i32_4 : i32
    scf.if %12 {
      %c0 = arith.constant 0 : index
      %13 = arith.index_cast %1 : i32 to index
      %14 = vector.load %arg8[%c0, %13] : memref<32x128xf32, #tpu.memory_space<vmem>>, vector<32x128xf32>
      %c0_5 = arith.constant 0 : index
      %c0_6 = arith.constant 0 : index
      %15 = vector.load %arg9[%c0_5, %c0_6] : memref<32x1xf32, #tpu.memory_space<vmem>>, vector<32x1xf32>
      %cst = arith.constant 1.562500e-02 : f32
      %16 = vector.broadcast %cst : f32 to vector<32x1xf32>
      %17 = arith.mulf %15, %16 : vector<32x1xf32>
      %c0_7 = arith.constant 0 : index
      %c0_8 = arith.constant 0 : index
      %18 = vector.load %arg10[%c0_7, %c0_8] : memref<32x1xf32, #tpu.memory_space<vmem>>, vector<32x1xf32>
      %cst_9 = arith.constant 1.562500e-02 : f32
      %19 = vector.broadcast %cst_9 : f32 to vector<32x1xf32>
      %20 = arith.mulf %18, %19 : vector<32x1xf32>
      %21 = arith.mulf %17, %17 : vector<32x1xf32>
      %22 = arith.subf %20, %21 : vector<32x1xf32>
      %cst_10 = arith.constant 0.000000e+00 : f32
      %23 = vector.broadcast %cst_10 : f32 to vector<32x1xf32>
      %24 = arith.maximumf %22, %23 : vector<32x1xf32>
      %c0_11 = arith.constant 0 : index
      %c0_12 = arith.constant 0 : index
      %25 = vector.load %arg5[%c0_11, %c0_12] : memref<32x1xf32, #tpu.memory_space<vmem>>, vector<32x1xf32>
      %cst_13 = arith.constant 9.99999974E-6 : f32
      %26 = vector.broadcast %cst_13 : f32 to vector<32x1xf32>
      %27 = arith.addf %24, %26 : vector<32x1xf32>
      %28 = math.rsqrt %27 : vector<32x1xf32>
      %29 = arith.mulf %25, %28 : vector<32x1xf32>
      %c0_14 = arith.constant 0 : index
      %c0_15 = arith.constant 0 : index
      %30 = vector.load %arg6[%c0_14, %c0_15] : memref<32x1xf32, #tpu.memory_space<vmem>>, vector<32x1xf32>
      %31 = arith.mulf %17, %29 : vector<32x1xf32>
      %32 = arith.subf %30, %31 : vector<32x1xf32>
      %33 = vector.broadcast %29 : vector<32x1xf32> to vector<32x128xf32>
      %34 = arith.mulf %14, %33 : vector<32x128xf32>
      %35 = vector.broadcast %32 : vector<32x1xf32> to vector<32x128xf32>
      %36 = arith.addf %34, %35 : vector<32x128xf32>
      %cst_16 = arith.constant 0.000000e+00 : f32
      %37 = vector.broadcast %cst_16 : f32 to vector<32x128xf32>
      %38 = arith.cmpf oge, %36, %37 : vector<32x128xf32>
      %cst_17 = arith.constant 0.00999999977 : f32
      %39 = vector.broadcast %cst_17 : f32 to vector<32x128xf32>
      %40 = arith.mulf %39, %36 : vector<32x128xf32>
      %41 = arith.select %38, %36, %40 : vector<32x128xi1>, vector<32x128xf32>
      %c0_18 = arith.constant 0 : index
      %c0_19 = arith.constant 0 : index
      %c0_20 = arith.constant 0 : index
      %42 = vector.load %arg7[%c0_18, %c0_19, %c0_20] : memref<1x32x128xf32, #tpu.memory_space<vmem>>, vector<1x32x128xf32>
      %43 = vector.shape_cast %42 : vector<1x32x128xf32> to vector<32x128xf32>
      %44 = vector.shape_cast %41 : vector<32x128xf32> to vector<1x32x128xf32>
      tpu.vector_store %arg7[%c0_18, %c0_19, %c0_20], %44 {strides = array<i32>} : memref<1x32x128xf32, #tpu.memory_space<vmem>>, vector<1x32x128xf32>,
    } else {
    }
    return
  }
  func.func @transform_0(%arg0: i32, %arg1: i32, %arg2: i32) -> (i32, i32, i32) {
    %c1_i32 = arith.constant 1 : i32
    %0 = arith.subi %c1_i32, %arg1 : i32
    %1 = arith.muli %arg2, %0 : i32
    %c0_i32 = arith.constant 0 : i32
    %2 = arith.muli %arg1, %c0_i32 : i32
    %3 = arith.addi %1, %2 : i32
    %c0_i32_0 = arith.constant 0 : i32
    %c0_i32_1 = arith.constant 0 : i32
    return %arg0, %c0_i32_0, %3 : i32, i32, i32
  }
  func.func @transform_1(%arg0: i32, %arg1: i32, %arg2: i32) -> (i32, i32) {
    %c0_i32 = arith.constant 0 : i32
    %c0_i32_0 = arith.constant 0 : i32
    %c0_i32_1 = arith.constant 0 : i32
    return %c0_i32, %c0_i32_0 : i32, i32
  }
  func.func @transform_2(%arg0: i32, %arg1: i32, %arg2: i32) -> (i32, i32) {
    %c0_i32 = arith.constant 0 : i32
    %c0_i32_0 = arith.constant 0 : i32
    %c0_i32_1 = arith.constant 0 : i32
    return %c0_i32, %c0_i32_0 : i32, i32
  }
  func.func @transform_3(%arg0: i32, %arg1: i32, %arg2: i32) -> (i32, i32) {
    %c0_i32 = arith.constant 0 : i32
    %c0_i32_0 = arith.constant 0 : i32
    %c0_i32_1 = arith.constant 0 : i32
    return %c0_i32, %c0_i32_0 : i32, i32
  }
  func.func @transform_4(%arg0: i32, %arg1: i32, %arg2: i32) -> (i32, i32, i32) {
    %0 = arith.muli %arg2, %arg1 : i32
    %c0_i32 = arith.constant 0 : i32
    %c0_i32_0 = arith.constant 0 : i32
    return %arg0, %c0_i32, %0 : i32, i32, i32
  }
}

module attributes {stable_mosaic.version = 11 : i64} {
  func.func @_conv_bn_lrelu_kernel(%arg0: i32, %arg1: i32, %arg2: i32, %arg3: memref<1x864x128xbf16, #tpu.memory_space<vmem>>, %arg4: memref<64x864xbf16, #tpu.memory_space<vmem>>, %arg5: memref<64x1xf32, #tpu.memory_space<vmem>>, %arg6: memref<64x1xf32, #tpu.memory_space<vmem>>, %arg7: memref<1x64x128xf32, #tpu.memory_space<vmem>>, %arg8: memref<64x128xf32, #tpu.memory_space<vmem>>, %arg9: memref<64x1xf32, #tpu.memory_space<vmem>>, %arg10: memref<64x1xf32, #tpu.memory_space<vmem>>) attributes {dimension_semantics = [#tpu.dimension_semantics<parallel>, #tpu.dimension_semantics<arbitrary>, #tpu.dimension_semantics<arbitrary>], iteration_bounds = array<i64: 1, 2, 1>, scalar_prefetch = 0 : i64, scratch_operands = 3 : i64, tpu.core_type = #tpu.core_type<tc>, window_params = [{transform_indices = @transform_0, window_bounds = array<i64: 1, 864, 128>}, {pipeline_mode = #tpu.pipeline_mode<synchronous>, transform_indices = @transform_1, window_bounds = array<i64: 64, 864>}, {pipeline_mode = #tpu.pipeline_mode<synchronous>, transform_indices = @transform_2, window_bounds = array<i64: 64, 1>}, {pipeline_mode = #tpu.pipeline_mode<synchronous>, transform_indices = @transform_3, window_bounds = array<i64: 64, 1>}, {transform_indices = @transform_4, window_bounds = array<i64: 1, 64, 128>}]} {
    %c128_i32 = arith.constant 128 : i32
    %0 = arith.muli %arg2, %c128_i32 : i32
    %1 = tpu.assume_multiple %0, 128 : i32
    %c0_i32 = arith.constant 0 : i32
    %2 = arith.cmpi eq, %arg1, %c0_i32 : i32
    %c0_i32_0 = arith.constant 0 : i32
    %3 = arith.cmpi eq, %arg2, %c0_i32_0 : i32
    %4 = arith.andi %2, %3 : i1
    %5 = arith.extui %4 : i1 to i32
    %c0_i32_1 = arith.constant 0 : i32
    %6 = arith.cmpi ne, %5, %c0_i32_1 : i32
    scf.if %6 {
      %cst = arith.constant 0.000000e+00 : f32
      %13 = vector.broadcast %cst : f32 to vector<64x1xf32>
      %c0 = arith.constant 0 : index
      %c0_5 = arith.constant 0 : index
      %14 = vector.load %arg9[%c0, %c0_5] : memref<64x1xf32, #tpu.memory_space<vmem>>, vector<64x1xf32>
      tpu.vector_store %arg9[%c0, %c0_5], %13 {strides = array<i32>} : memref<64x1xf32, #tpu.memory_space<vmem>>, vector<64x1xf32>,
      %cst_6 = arith.constant 0.000000e+00 : f32
      %15 = vector.broadcast %cst_6 : f32 to vector<64x1xf32>
      %c0_7 = arith.constant 0 : index
      %c0_8 = arith.constant 0 : index
      %16 = vector.load %arg10[%c0_7, %c0_8] : memref<64x1xf32, #tpu.memory_space<vmem>>, vector<64x1xf32>
      tpu.vector_store %arg10[%c0_7, %c0_8], %15 {strides = array<i32>} : memref<64x1xf32, #tpu.memory_space<vmem>>, vector<64x1xf32>,
    } else {
    }
    %c0_i32_2 = arith.constant 0 : i32
    %7 = arith.cmpi eq, %arg1, %c0_i32_2 : i32
    %8 = arith.extui %7 : i1 to i32
    %c0_i32_3 = arith.constant 0 : i32
    %9 = arith.cmpi ne, %8, %c0_i32_3 : i32
    scf.if %9 {
      %c0 = arith.constant 0 : index
      %c0_5 = arith.constant 0 : index
      %13 = vector.load %arg4[%c0, %c0_5] : memref<64x864xbf16, #tpu.memory_space<vmem>>, vector<64x864xbf16>
      %c0_6 = arith.constant 0 : index
      %c0_7 = arith.constant 0 : index
      %c0_8 = arith.constant 0 : index
      %14 = vector.load %arg3[%c0_6, %c0_7, %c0_8] : memref<1x864x128xbf16, #tpu.memory_space<vmem>>, vector<1x864x128xbf16>
      %15 = vector.shape_cast %14 : vector<1x864x128xbf16> to vector<864x128xbf16>
      %cst = arith.constant dense<0.000000e+00> : vector<64x128xf32>
      %16 = tpu.matmul %13, %15, %cst {dimension_numbers = #tpu.dot_dimension_numbers<[1], [0], [0], [1], [0, 0, 1, 1], [], []>} : vector<64x864xbf16>, vector<864x128xbf16>, vector<64x128xf32> -> vector<64x128xf32>
      %c0_9 = arith.constant 0 : index
      %17 = arith.index_cast %1 : i32 to index
      %18 = vector.load %arg8[%c0_9, %17] : memref<64x128xf32, #tpu.memory_space<vmem>>, vector<64x128xf32>
      tpu.vector_store %arg8[%c0_9, %17], %16 {strides = array<i32>} : memref<64x128xf32, #tpu.memory_space<vmem>>, vector<64x128xf32>,
      %c0_10 = arith.constant 0 : index
      %c0_11 = arith.constant 0 : index
      %19 = vector.load %arg9[%c0_10, %c0_11] : memref<64x1xf32, #tpu.memory_space<vmem>>, vector<64x1xf32>
      %cst_12 = arith.constant dense<0.000000e+00> : vector<64xf32>
      %20 = vector.multi_reduction <add>, %16, %cst_12 [1] : vector<64x128xf32> to vector<64xf32>
      %21 = vector.shape_cast %20 : vector<64xf32> to vector<64x1xf32>
      %22 = arith.addf %19, %21 : vector<64x1xf32>
      %c0_13 = arith.constant 0 : index
      %c0_14 = arith.constant 0 : index
      %23 = vector.load %arg9[%c0_13, %c0_14] : memref<64x1xf32, #tpu.memory_space<vmem>>, vector<64x1xf32>
      tpu.vector_store %arg9[%c0_13, %c0_14], %22 {strides = array<i32>} : memref<64x1xf32, #tpu.memory_space<vmem>>, vector<64x1xf32>,
      %c0_15 = arith.constant 0 : index
      %c0_16 = arith.constant 0 : index
      %24 = vector.load %arg10[%c0_15, %c0_16] : memref<64x1xf32, #tpu.memory_space<vmem>>, vector<64x1xf32>
      %25 = arith.mulf %16, %16 : vector<64x128xf32>
      %cst_17 = arith.constant dense<0.000000e+00> : vector<64xf32>
      %26 = vector.multi_reduction <add>, %25, %cst_17 [1] : vector<64x128xf32> to vector<64xf32>
      %27 = vector.shape_cast %26 : vector<64xf32> to vector<64x1xf32>
      %28 = arith.addf %24, %27 : vector<64x1xf32>
      %c0_18 = arith.constant 0 : index
      %c0_19 = arith.constant 0 : index
      %29 = vector.load %arg10[%c0_18, %c0_19] : memref<64x1xf32, #tpu.memory_space<vmem>>, vector<64x1xf32>
      tpu.vector_store %arg10[%c0_18, %c0_19], %28 {strides = array<i32>} : memref<64x1xf32, #tpu.memory_space<vmem>>, vector<64x1xf32>,
    } else {
    }
    %c1_i32 = arith.constant 1 : i32
    %10 = arith.cmpi eq, %arg1, %c1_i32 : i32
    %11 = arith.extui %10 : i1 to i32
    %c0_i32_4 = arith.constant 0 : i32
    %12 = arith.cmpi ne, %11, %c0_i32_4 : i32
    scf.if %12 {
      %c0 = arith.constant 0 : index
      %13 = arith.index_cast %1 : i32 to index
      %14 = vector.load %arg8[%c0, %13] : memref<64x128xf32, #tpu.memory_space<vmem>>, vector<64x128xf32>
      %c0_5 = arith.constant 0 : index
      %c0_6 = arith.constant 0 : index
      %15 = vector.load %arg9[%c0_5, %c0_6] : memref<64x1xf32, #tpu.memory_space<vmem>>, vector<64x1xf32>
      %cst = arith.constant 6.250000e-02 : f32
      %16 = vector.broadcast %cst : f32 to vector<64x1xf32>
      %17 = arith.mulf %15, %16 : vector<64x1xf32>
      %c0_7 = arith.constant 0 : index
      %c0_8 = arith.constant 0 : index
      %18 = vector.load %arg10[%c0_7, %c0_8] : memref<64x1xf32, #tpu.memory_space<vmem>>, vector<64x1xf32>
      %cst_9 = arith.constant 6.250000e-02 : f32
      %19 = vector.broadcast %cst_9 : f32 to vector<64x1xf32>
      %20 = arith.mulf %18, %19 : vector<64x1xf32>
      %21 = arith.mulf %17, %17 : vector<64x1xf32>
      %22 = arith.subf %20, %21 : vector<64x1xf32>
      %cst_10 = arith.constant 0.000000e+00 : f32
      %23 = vector.broadcast %cst_10 : f32 to vector<64x1xf32>
      %24 = arith.maximumf %22, %23 : vector<64x1xf32>
      %c0_11 = arith.constant 0 : index
      %c0_12 = arith.constant 0 : index
      %25 = vector.load %arg5[%c0_11, %c0_12] : memref<64x1xf32, #tpu.memory_space<vmem>>, vector<64x1xf32>
      %cst_13 = arith.constant 9.99999974E-6 : f32
      %26 = vector.broadcast %cst_13 : f32 to vector<64x1xf32>
      %27 = arith.addf %24, %26 : vector<64x1xf32>
      %28 = math.rsqrt %27 : vector<64x1xf32>
      %29 = arith.mulf %25, %28 : vector<64x1xf32>
      %c0_14 = arith.constant 0 : index
      %c0_15 = arith.constant 0 : index
      %30 = vector.load %arg6[%c0_14, %c0_15] : memref<64x1xf32, #tpu.memory_space<vmem>>, vector<64x1xf32>
      %31 = arith.mulf %17, %29 : vector<64x1xf32>
      %32 = arith.subf %30, %31 : vector<64x1xf32>
      %33 = vector.broadcast %29 : vector<64x1xf32> to vector<64x128xf32>
      %34 = arith.mulf %14, %33 : vector<64x128xf32>
      %35 = vector.broadcast %32 : vector<64x1xf32> to vector<64x128xf32>
      %36 = arith.addf %34, %35 : vector<64x128xf32>
      %cst_16 = arith.constant 0.000000e+00 : f32
      %37 = vector.broadcast %cst_16 : f32 to vector<64x128xf32>
      %38 = arith.cmpf oge, %36, %37 : vector<64x128xf32>
      %cst_17 = arith.constant 0.00999999977 : f32
      %39 = vector.broadcast %cst_17 : f32 to vector<64x128xf32>
      %40 = arith.mulf %39, %36 : vector<64x128xf32>
      %41 = arith.select %38, %36, %40 : vector<64x128xi1>, vector<64x128xf32>
      %c0_18 = arith.constant 0 : index
      %c0_19 = arith.constant 0 : index
      %c0_20 = arith.constant 0 : index
      %42 = vector.load %arg7[%c0_18, %c0_19, %c0_20] : memref<1x64x128xf32, #tpu.memory_space<vmem>>, vector<1x64x128xf32>
      %43 = vector.shape_cast %42 : vector<1x64x128xf32> to vector<64x128xf32>
      %44 = vector.shape_cast %41 : vector<64x128xf32> to vector<1x64x128xf32>
      tpu.vector_store %arg7[%c0_18, %c0_19, %c0_20], %44 {strides = array<i32>} : memref<1x64x128xf32, #tpu.memory_space<vmem>>, vector<1x64x128xf32>,
    } else {
    }
    return
  }
  func.func @transform_0(%arg0: i32, %arg1: i32, %arg2: i32) -> (i32, i32, i32) {
    %c1_i32 = arith.constant 1 : i32
    %0 = arith.subi %c1_i32, %arg1 : i32
    %1 = arith.muli %arg2, %0 : i32
    %c0_i32 = arith.constant 0 : i32
    %2 = arith.muli %arg1, %c0_i32 : i32
    %3 = arith.addi %1, %2 : i32
    %c0_i32_0 = arith.constant 0 : i32
    %c0_i32_1 = arith.constant 0 : i32
    return %arg0, %c0_i32_0, %3 : i32, i32, i32
  }
  func.func @transform_1(%arg0: i32, %arg1: i32, %arg2: i32) -> (i32, i32) {
    %c0_i32 = arith.constant 0 : i32
    %c0_i32_0 = arith.constant 0 : i32
    %c0_i32_1 = arith.constant 0 : i32
    return %c0_i32, %c0_i32_0 : i32, i32
  }
  func.func @transform_2(%arg0: i32, %arg1: i32, %arg2: i32) -> (i32, i32) {
    %c0_i32 = arith.constant 0 : i32
    %c0_i32_0 = arith.constant 0 : i32
    %c0_i32_1 = arith.constant 0 : i32
    return %c0_i32, %c0_i32_0 : i32, i32
  }
  func.func @transform_3(%arg0: i32, %arg1: i32, %arg2: i32) -> (i32, i32) {
    %c0_i32 = arith.constant 0 : i32
    %c0_i32_0 = arith.constant 0 : i32
    %c0_i32_1 = arith.constant 0 : i32
    return %c0_i32, %c0_i32_0 : i32, i32
  }
  func.func @transform_4(%arg0: i32, %arg1: i32, %arg2: i32) -> (i32, i32, i32) {
    %0 = arith.muli %arg2, %arg1 : i32
    %c0_i32 = arith.constant 0 : i32
    %c0_i32_0 = arith.constant 0 : i32
    return %arg0, %c0_i32, %0 : i32, i32, i32
  }
}

module attributes {stable_mosaic.version = 11 : i64} {
  func.func @_conv_bn_lrelu_kernel(%arg0: i32, %arg1: i32, %arg2: i32, %arg3: memref<1x576x128xbf16, #tpu.memory_space<vmem>>, %arg4: memref<64x576xbf16, #tpu.memory_space<vmem>>, %arg5: memref<64x1xf32, #tpu.memory_space<vmem>>, %arg6: memref<64x1xf32, #tpu.memory_space<vmem>>, %arg7: memref<1x64x128xf32, #tpu.memory_space<vmem>>, %arg8: memref<64x128xf32, #tpu.memory_space<vmem>>, %arg9: memref<64x1xf32, #tpu.memory_space<vmem>>, %arg10: memref<64x1xf32, #tpu.memory_space<vmem>>) attributes {dimension_semantics = [#tpu.dimension_semantics<parallel>, #tpu.dimension_semantics<arbitrary>, #tpu.dimension_semantics<arbitrary>], iteration_bounds = array<i64: 1, 2, 1>, scalar_prefetch = 0 : i64, scratch_operands = 3 : i64, tpu.core_type = #tpu.core_type<tc>, window_params = [{transform_indices = @transform_0, window_bounds = array<i64: 1, 576, 128>}, {pipeline_mode = #tpu.pipeline_mode<synchronous>, transform_indices = @transform_1, window_bounds = array<i64: 64, 576>}, {pipeline_mode = #tpu.pipeline_mode<synchronous>, transform_indices = @transform_2, window_bounds = array<i64: 64, 1>}, {pipeline_mode = #tpu.pipeline_mode<synchronous>, transform_indices = @transform_3, window_bounds = array<i64: 64, 1>}, {transform_indices = @transform_4, window_bounds = array<i64: 1, 64, 128>}]} {
    %c128_i32 = arith.constant 128 : i32
    %0 = arith.muli %arg2, %c128_i32 : i32
    %1 = tpu.assume_multiple %0, 128 : i32
    %c0_i32 = arith.constant 0 : i32
    %2 = arith.cmpi eq, %arg1, %c0_i32 : i32
    %c0_i32_0 = arith.constant 0 : i32
    %3 = arith.cmpi eq, %arg2, %c0_i32_0 : i32
    %4 = arith.andi %2, %3 : i1
    %5 = arith.extui %4 : i1 to i32
    %c0_i32_1 = arith.constant 0 : i32
    %6 = arith.cmpi ne, %5, %c0_i32_1 : i32
    scf.if %6 {
      %cst = arith.constant 0.000000e+00 : f32
      %13 = vector.broadcast %cst : f32 to vector<64x1xf32>
      %c0 = arith.constant 0 : index
      %c0_5 = arith.constant 0 : index
      %14 = vector.load %arg9[%c0, %c0_5] : memref<64x1xf32, #tpu.memory_space<vmem>>, vector<64x1xf32>
      tpu.vector_store %arg9[%c0, %c0_5], %13 {strides = array<i32>} : memref<64x1xf32, #tpu.memory_space<vmem>>, vector<64x1xf32>,
      %cst_6 = arith.constant 0.000000e+00 : f32
      %15 = vector.broadcast %cst_6 : f32 to vector<64x1xf32>
      %c0_7 = arith.constant 0 : index
      %c0_8 = arith.constant 0 : index
      %16 = vector.load %arg10[%c0_7, %c0_8] : memref<64x1xf32, #tpu.memory_space<vmem>>, vector<64x1xf32>
      tpu.vector_store %arg10[%c0_7, %c0_8], %15 {strides = array<i32>} : memref<64x1xf32, #tpu.memory_space<vmem>>, vector<64x1xf32>,
    } else {
    }
    %c0_i32_2 = arith.constant 0 : i32
    %7 = arith.cmpi eq, %arg1, %c0_i32_2 : i32
    %8 = arith.extui %7 : i1 to i32
    %c0_i32_3 = arith.constant 0 : i32
    %9 = arith.cmpi ne, %8, %c0_i32_3 : i32
    scf.if %9 {
      %c0 = arith.constant 0 : index
      %c0_5 = arith.constant 0 : index
      %13 = vector.load %arg4[%c0, %c0_5] : memref<64x576xbf16, #tpu.memory_space<vmem>>, vector<64x576xbf16>
      %c0_6 = arith.constant 0 : index
      %c0_7 = arith.constant 0 : index
      %c0_8 = arith.constant 0 : index
      %14 = vector.load %arg3[%c0_6, %c0_7, %c0_8] : memref<1x576x128xbf16, #tpu.memory_space<vmem>>, vector<1x576x128xbf16>
      %15 = vector.shape_cast %14 : vector<1x576x128xbf16> to vector<576x128xbf16>
      %cst = arith.constant dense<0.000000e+00> : vector<64x128xf32>
      %16 = tpu.matmul %13, %15, %cst {dimension_numbers = #tpu.dot_dimension_numbers<[1], [0], [0], [1], [0, 0, 1, 1], [], []>} : vector<64x576xbf16>, vector<576x128xbf16>, vector<64x128xf32> -> vector<64x128xf32>
      %c0_9 = arith.constant 0 : index
      %17 = arith.index_cast %1 : i32 to index
      %18 = vector.load %arg8[%c0_9, %17] : memref<64x128xf32, #tpu.memory_space<vmem>>, vector<64x128xf32>
      tpu.vector_store %arg8[%c0_9, %17], %16 {strides = array<i32>} : memref<64x128xf32, #tpu.memory_space<vmem>>, vector<64x128xf32>,
      %c0_10 = arith.constant 0 : index
      %c0_11 = arith.constant 0 : index
      %19 = vector.load %arg9[%c0_10, %c0_11] : memref<64x1xf32, #tpu.memory_space<vmem>>, vector<64x1xf32>
      %cst_12 = arith.constant dense<0.000000e+00> : vector<64xf32>
      %20 = vector.multi_reduction <add>, %16, %cst_12 [1] : vector<64x128xf32> to vector<64xf32>
      %21 = vector.shape_cast %20 : vector<64xf32> to vector<64x1xf32>
      %22 = arith.addf %19, %21 : vector<64x1xf32>
      %c0_13 = arith.constant 0 : index
      %c0_14 = arith.constant 0 : index
      %23 = vector.load %arg9[%c0_13, %c0_14] : memref<64x1xf32, #tpu.memory_space<vmem>>, vector<64x1xf32>
      tpu.vector_store %arg9[%c0_13, %c0_14], %22 {strides = array<i32>} : memref<64x1xf32, #tpu.memory_space<vmem>>, vector<64x1xf32>,
      %c0_15 = arith.constant 0 : index
      %c0_16 = arith.constant 0 : index
      %24 = vector.load %arg10[%c0_15, %c0_16] : memref<64x1xf32, #tpu.memory_space<vmem>>, vector<64x1xf32>
      %25 = arith.mulf %16, %16 : vector<64x128xf32>
      %cst_17 = arith.constant dense<0.000000e+00> : vector<64xf32>
      %26 = vector.multi_reduction <add>, %25, %cst_17 [1] : vector<64x128xf32> to vector<64xf32>
      %27 = vector.shape_cast %26 : vector<64xf32> to vector<64x1xf32>
      %28 = arith.addf %24, %27 : vector<64x1xf32>
      %c0_18 = arith.constant 0 : index
      %c0_19 = arith.constant 0 : index
      %29 = vector.load %arg10[%c0_18, %c0_19] : memref<64x1xf32, #tpu.memory_space<vmem>>, vector<64x1xf32>
      tpu.vector_store %arg10[%c0_18, %c0_19], %28 {strides = array<i32>} : memref<64x1xf32, #tpu.memory_space<vmem>>, vector<64x1xf32>,
    } else {
    }
    %c1_i32 = arith.constant 1 : i32
    %10 = arith.cmpi eq, %arg1, %c1_i32 : i32
    %11 = arith.extui %10 : i1 to i32
    %c0_i32_4 = arith.constant 0 : i32
    %12 = arith.cmpi ne, %11, %c0_i32_4 : i32
    scf.if %12 {
      %c0 = arith.constant 0 : index
      %13 = arith.index_cast %1 : i32 to index
      %14 = vector.load %arg8[%c0, %13] : memref<64x128xf32, #tpu.memory_space<vmem>>, vector<64x128xf32>
      %c0_5 = arith.constant 0 : index
      %c0_6 = arith.constant 0 : index
      %15 = vector.load %arg9[%c0_5, %c0_6] : memref<64x1xf32, #tpu.memory_space<vmem>>, vector<64x1xf32>
      %cst = arith.constant 2.500000e-01 : f32
      %16 = vector.broadcast %cst : f32 to vector<64x1xf32>
      %17 = arith.mulf %15, %16 : vector<64x1xf32>
      %c0_7 = arith.constant 0 : index
      %c0_8 = arith.constant 0 : index
      %18 = vector.load %arg10[%c0_7, %c0_8] : memref<64x1xf32, #tpu.memory_space<vmem>>, vector<64x1xf32>
      %cst_9 = arith.constant 2.500000e-01 : f32
      %19 = vector.broadcast %cst_9 : f32 to vector<64x1xf32>
      %20 = arith.mulf %18, %19 : vector<64x1xf32>
      %21 = arith.mulf %17, %17 : vector<64x1xf32>
      %22 = arith.subf %20, %21 : vector<64x1xf32>
      %cst_10 = arith.constant 0.000000e+00 : f32
      %23 = vector.broadcast %cst_10 : f32 to vector<64x1xf32>
      %24 = arith.maximumf %22, %23 : vector<64x1xf32>
      %c0_11 = arith.constant 0 : index
      %c0_12 = arith.constant 0 : index
      %25 = vector.load %arg5[%c0_11, %c0_12] : memref<64x1xf32, #tpu.memory_space<vmem>>, vector<64x1xf32>
      %cst_13 = arith.constant 9.99999974E-6 : f32
      %26 = vector.broadcast %cst_13 : f32 to vector<64x1xf32>
      %27 = arith.addf %24, %26 : vector<64x1xf32>
      %28 = math.rsqrt %27 : vector<64x1xf32>
      %29 = arith.mulf %25, %28 : vector<64x1xf32>
      %c0_14 = arith.constant 0 : index
      %c0_15 = arith.constant 0 : index
      %30 = vector.load %arg6[%c0_14, %c0_15] : memref<64x1xf32, #tpu.memory_space<vmem>>, vector<64x1xf32>
      %31 = arith.mulf %17, %29 : vector<64x1xf32>
      %32 = arith.subf %30, %31 : vector<64x1xf32>
      %33 = vector.broadcast %29 : vector<64x1xf32> to vector<64x128xf32>
      %34 = arith.mulf %14, %33 : vector<64x128xf32>
      %35 = vector.broadcast %32 : vector<64x1xf32> to vector<64x128xf32>
      %36 = arith.addf %34, %35 : vector<64x128xf32>
      %cst_16 = arith.constant 0.000000e+00 : f32
      %37 = vector.broadcast %cst_16 : f32 to vector<64x128xf32>
      %38 = arith.cmpf oge, %36, %37 : vector<64x128xf32>
      %cst_17 = arith.constant 0.00999999977 : f32
      %39 = vector.broadcast %cst_17 : f32 to vector<64x128xf32>
      %40 = arith.mulf %39, %36 : vector<64x128xf32>
      %41 = arith.select %38, %36, %40 : vector<64x128xi1>, vector<64x128xf32>
      %c0_18 = arith.constant 0 : index
      %c0_19 = arith.constant 0 : index
      %c0_20 = arith.constant 0 : index
      %42 = vector.load %arg7[%c0_18, %c0_19, %c0_20] : memref<1x64x128xf32, #tpu.memory_space<vmem>>, vector<1x64x128xf32>
      %43 = vector.shape_cast %42 : vector<1x64x128xf32> to vector<64x128xf32>
      %44 = vector.shape_cast %41 : vector<64x128xf32> to vector<1x64x128xf32>
      tpu.vector_store %arg7[%c0_18, %c0_19, %c0_20], %44 {strides = array<i32>} : memref<1x64x128xf32, #tpu.memory_space<vmem>>, vector<1x64x128xf32>,
    } else {
    }
    return
  }
  func.func @transform_0(%arg0: i32, %arg1: i32, %arg2: i32) -> (i32, i32, i32) {
    %c1_i32 = arith.constant 1 : i32
    %0 = arith.subi %c1_i32, %arg1 : i32
    %1 = arith.muli %arg2, %0 : i32
    %c0_i32 = arith.constant 0 : i32
    %2 = arith.muli %arg1, %c0_i32 : i32
    %3 = arith.addi %1, %2 : i32
    %c0_i32_0 = arith.constant 0 : i32
    %c0_i32_1 = arith.constant 0 : i32
    return %arg0, %c0_i32_0, %3 : i32, i32, i32
  }
  func.func @transform_1(%arg0: i32, %arg1: i32, %arg2: i32) -> (i32, i32) {
    %c0_i32 = arith.constant 0 : i32
    %c0_i32_0 = arith.constant 0 : i32
    %c0_i32_1 = arith.constant 0 : i32
    return %c0_i32, %c0_i32_0 : i32, i32
  }
  func.func @transform_2(%arg0: i32, %arg1: i32, %arg2: i32) -> (i32, i32) {
    %c0_i32 = arith.constant 0 : i32
    %c0_i32_0 = arith.constant 0 : i32
    %c0_i32_1 = arith.constant 0 : i32
    return %c0_i32, %c0_i32_0 : i32, i32
  }
  func.func @transform_3(%arg0: i32, %arg1: i32, %arg2: i32) -> (i32, i32) {
    %c0_i32 = arith.constant 0 : i32
    %c0_i32_0 = arith.constant 0 : i32
    %c0_i32_1 = arith.constant 0 : i32
    return %c0_i32, %c0_i32_0 : i32, i32
  }
  func.func @transform_4(%arg0: i32, %arg1: i32, %arg2: i32) -> (i32, i32, i32) {
    %0 = arith.muli %arg2, %arg1 : i32
    %c0_i32 = arith.constant 0 : i32
    %c0_i32_0 = arith.constant 0 : i32
    return %arg0, %c0_i32, %0 : i32, i32, i32
  }
}

module attributes {stable_mosaic.version = 11 : i64} {
  func.func @_conv_bn_lrelu_kernel(%arg0: i32, %arg1: i32, %arg2: i32, %arg3: memref<1x576x128xbf16, #tpu.memory_space<vmem>>, %arg4: memref<32x576xbf16, #tpu.memory_space<vmem>>, %arg5: memref<32x1xf32, #tpu.memory_space<vmem>>, %arg6: memref<32x1xf32, #tpu.memory_space<vmem>>, %arg7: memref<1x32x128xf32, #tpu.memory_space<vmem>>, %arg8: memref<32x128xf32, #tpu.memory_space<vmem>>, %arg9: memref<32x1xf32, #tpu.memory_space<vmem>>, %arg10: memref<32x1xf32, #tpu.memory_space<vmem>>) attributes {dimension_semantics = [#tpu.dimension_semantics<parallel>, #tpu.dimension_semantics<arbitrary>, #tpu.dimension_semantics<arbitrary>], iteration_bounds = array<i64: 1, 2, 1>, scalar_prefetch = 0 : i64, scratch_operands = 3 : i64, tpu.core_type = #tpu.core_type<tc>, window_params = [{transform_indices = @transform_0, window_bounds = array<i64: 1, 576, 128>}, {pipeline_mode = #tpu.pipeline_mode<synchronous>, transform_indices = @transform_1, window_bounds = array<i64: 32, 576>}, {pipeline_mode = #tpu.pipeline_mode<synchronous>, transform_indices = @transform_2, window_bounds = array<i64: 32, 1>}, {pipeline_mode = #tpu.pipeline_mode<synchronous>, transform_indices = @transform_3, window_bounds = array<i64: 32, 1>}, {transform_indices = @transform_4, window_bounds = array<i64: 1, 32, 128>}]} {
    %c128_i32 = arith.constant 128 : i32
    %0 = arith.muli %arg2, %c128_i32 : i32
    %1 = tpu.assume_multiple %0, 128 : i32
    %c0_i32 = arith.constant 0 : i32
    %2 = arith.cmpi eq, %arg1, %c0_i32 : i32
    %c0_i32_0 = arith.constant 0 : i32
    %3 = arith.cmpi eq, %arg2, %c0_i32_0 : i32
    %4 = arith.andi %2, %3 : i1
    %5 = arith.extui %4 : i1 to i32
    %c0_i32_1 = arith.constant 0 : i32
    %6 = arith.cmpi ne, %5, %c0_i32_1 : i32
    scf.if %6 {
      %cst = arith.constant 0.000000e+00 : f32
      %13 = vector.broadcast %cst : f32 to vector<32x1xf32>
      %c0 = arith.constant 0 : index
      %c0_5 = arith.constant 0 : index
      %14 = vector.load %arg9[%c0, %c0_5] : memref<32x1xf32, #tpu.memory_space<vmem>>, vector<32x1xf32>
      tpu.vector_store %arg9[%c0, %c0_5], %13 {strides = array<i32>} : memref<32x1xf32, #tpu.memory_space<vmem>>, vector<32x1xf32>,
      %cst_6 = arith.constant 0.000000e+00 : f32
      %15 = vector.broadcast %cst_6 : f32 to vector<32x1xf32>
      %c0_7 = arith.constant 0 : index
      %c0_8 = arith.constant 0 : index
      %16 = vector.load %arg10[%c0_7, %c0_8] : memref<32x1xf32, #tpu.memory_space<vmem>>, vector<32x1xf32>
      tpu.vector_store %arg10[%c0_7, %c0_8], %15 {strides = array<i32>} : memref<32x1xf32, #tpu.memory_space<vmem>>, vector<32x1xf32>,
    } else {
    }
    %c0_i32_2 = arith.constant 0 : i32
    %7 = arith.cmpi eq, %arg1, %c0_i32_2 : i32
    %8 = arith.extui %7 : i1 to i32
    %c0_i32_3 = arith.constant 0 : i32
    %9 = arith.cmpi ne, %8, %c0_i32_3 : i32
    scf.if %9 {
      %c0 = arith.constant 0 : index
      %c0_5 = arith.constant 0 : index
      %13 = vector.load %arg4[%c0, %c0_5] : memref<32x576xbf16, #tpu.memory_space<vmem>>, vector<32x576xbf16>
      %c0_6 = arith.constant 0 : index
      %c0_7 = arith.constant 0 : index
      %c0_8 = arith.constant 0 : index
      %14 = vector.load %arg3[%c0_6, %c0_7, %c0_8] : memref<1x576x128xbf16, #tpu.memory_space<vmem>>, vector<1x576x128xbf16>
      %15 = vector.shape_cast %14 : vector<1x576x128xbf16> to vector<576x128xbf16>
      %cst = arith.constant dense<0.000000e+00> : vector<32x128xf32>
      %16 = tpu.matmul %13, %15, %cst {dimension_numbers = #tpu.dot_dimension_numbers<[1], [0], [0], [1], [0, 0, 1, 1], [], []>} : vector<32x576xbf16>, vector<576x128xbf16>, vector<32x128xf32> -> vector<32x128xf32>
      %c0_9 = arith.constant 0 : index
      %17 = arith.index_cast %1 : i32 to index
      %18 = vector.load %arg8[%c0_9, %17] : memref<32x128xf32, #tpu.memory_space<vmem>>, vector<32x128xf32>
      tpu.vector_store %arg8[%c0_9, %17], %16 {strides = array<i32>} : memref<32x128xf32, #tpu.memory_space<vmem>>, vector<32x128xf32>,
      %c0_10 = arith.constant 0 : index
      %c0_11 = arith.constant 0 : index
      %19 = vector.load %arg9[%c0_10, %c0_11] : memref<32x1xf32, #tpu.memory_space<vmem>>, vector<32x1xf32>
      %cst_12 = arith.constant dense<0.000000e+00> : vector<32xf32>
      %20 = vector.multi_reduction <add>, %16, %cst_12 [1] : vector<32x128xf32> to vector<32xf32>
      %21 = vector.shape_cast %20 : vector<32xf32> to vector<32x1xf32>
      %22 = arith.addf %19, %21 : vector<32x1xf32>
      %c0_13 = arith.constant 0 : index
      %c0_14 = arith.constant 0 : index
      %23 = vector.load %arg9[%c0_13, %c0_14] : memref<32x1xf32, #tpu.memory_space<vmem>>, vector<32x1xf32>
      tpu.vector_store %arg9[%c0_13, %c0_14], %22 {strides = array<i32>} : memref<32x1xf32, #tpu.memory_space<vmem>>, vector<32x1xf32>,
      %c0_15 = arith.constant 0 : index
      %c0_16 = arith.constant 0 : index
      %24 = vector.load %arg10[%c0_15, %c0_16] : memref<32x1xf32, #tpu.memory_space<vmem>>, vector<32x1xf32>
      %25 = arith.mulf %16, %16 : vector<32x128xf32>
      %cst_17 = arith.constant dense<0.000000e+00> : vector<32xf32>
      %26 = vector.multi_reduction <add>, %25, %cst_17 [1] : vector<32x128xf32> to vector<32xf32>
      %27 = vector.shape_cast %26 : vector<32xf32> to vector<32x1xf32>
      %28 = arith.addf %24, %27 : vector<32x1xf32>
      %c0_18 = arith.constant 0 : index
      %c0_19 = arith.constant 0 : index
      %29 = vector.load %arg10[%c0_18, %c0_19] : memref<32x1xf32, #tpu.memory_space<vmem>>, vector<32x1xf32>
      tpu.vector_store %arg10[%c0_18, %c0_19], %28 {strides = array<i32>} : memref<32x1xf32, #tpu.memory_space<vmem>>, vector<32x1xf32>,
    } else {
    }
    %c1_i32 = arith.constant 1 : i32
    %10 = arith.cmpi eq, %arg1, %c1_i32 : i32
    %11 = arith.extui %10 : i1 to i32
    %c0_i32_4 = arith.constant 0 : i32
    %12 = arith.cmpi ne, %11, %c0_i32_4 : i32
    scf.if %12 {
      %c0 = arith.constant 0 : index
      %13 = arith.index_cast %1 : i32 to index
      %14 = vector.load %arg8[%c0, %13] : memref<32x128xf32, #tpu.memory_space<vmem>>, vector<32x128xf32>
      %c0_5 = arith.constant 0 : index
      %c0_6 = arith.constant 0 : index
      %15 = vector.load %arg9[%c0_5, %c0_6] : memref<32x1xf32, #tpu.memory_space<vmem>>, vector<32x1xf32>
      %cst = arith.constant 2.500000e-01 : f32
      %16 = vector.broadcast %cst : f32 to vector<32x1xf32>
      %17 = arith.mulf %15, %16 : vector<32x1xf32>
      %c0_7 = arith.constant 0 : index
      %c0_8 = arith.constant 0 : index
      %18 = vector.load %arg10[%c0_7, %c0_8] : memref<32x1xf32, #tpu.memory_space<vmem>>, vector<32x1xf32>
      %cst_9 = arith.constant 2.500000e-01 : f32
      %19 = vector.broadcast %cst_9 : f32 to vector<32x1xf32>
      %20 = arith.mulf %18, %19 : vector<32x1xf32>
      %21 = arith.mulf %17, %17 : vector<32x1xf32>
      %22 = arith.subf %20, %21 : vector<32x1xf32>
      %cst_10 = arith.constant 0.000000e+00 : f32
      %23 = vector.broadcast %cst_10 : f32 to vector<32x1xf32>
      %24 = arith.maximumf %22, %23 : vector<32x1xf32>
      %c0_11 = arith.constant 0 : index
      %c0_12 = arith.constant 0 : index
      %25 = vector.load %arg5[%c0_11, %c0_12] : memref<32x1xf32, #tpu.memory_space<vmem>>, vector<32x1xf32>
      %cst_13 = arith.constant 9.99999974E-6 : f32
      %26 = vector.broadcast %cst_13 : f32 to vector<32x1xf32>
      %27 = arith.addf %24, %26 : vector<32x1xf32>
      %28 = math.rsqrt %27 : vector<32x1xf32>
      %29 = arith.mulf %25, %28 : vector<32x1xf32>
      %c0_14 = arith.constant 0 : index
      %c0_15 = arith.constant 0 : index
      %30 = vector.load %arg6[%c0_14, %c0_15] : memref<32x1xf32, #tpu.memory_space<vmem>>, vector<32x1xf32>
      %31 = arith.mulf %17, %29 : vector<32x1xf32>
      %32 = arith.subf %30, %31 : vector<32x1xf32>
      %33 = vector.broadcast %29 : vector<32x1xf32> to vector<32x128xf32>
      %34 = arith.mulf %14, %33 : vector<32x128xf32>
      %35 = vector.broadcast %32 : vector<32x1xf32> to vector<32x128xf32>
      %36 = arith.addf %34, %35 : vector<32x128xf32>
      %cst_16 = arith.constant 0.000000e+00 : f32
      %37 = vector.broadcast %cst_16 : f32 to vector<32x128xf32>
      %38 = arith.cmpf oge, %36, %37 : vector<32x128xf32>
      %cst_17 = arith.constant 0.00999999977 : f32
      %39 = vector.broadcast %cst_17 : f32 to vector<32x128xf32>
      %40 = arith.mulf %39, %36 : vector<32x128xf32>
      %41 = arith.select %38, %36, %40 : vector<32x128xi1>, vector<32x128xf32>
      %c0_18 = arith.constant 0 : index
      %c0_19 = arith.constant 0 : index
      %c0_20 = arith.constant 0 : index
      %42 = vector.load %arg7[%c0_18, %c0_19, %c0_20] : memref<1x32x128xf32, #tpu.memory_space<vmem>>, vector<1x32x128xf32>
      %43 = vector.shape_cast %42 : vector<1x32x128xf32> to vector<32x128xf32>
      %44 = vector.shape_cast %41 : vector<32x128xf32> to vector<1x32x128xf32>
      tpu.vector_store %arg7[%c0_18, %c0_19, %c0_20], %44 {strides = array<i32>} : memref<1x32x128xf32, #tpu.memory_space<vmem>>, vector<1x32x128xf32>,
    } else {
    }
    return
  }
  func.func @transform_0(%arg0: i32, %arg1: i32, %arg2: i32) -> (i32, i32, i32) {
    %c1_i32 = arith.constant 1 : i32
    %0 = arith.subi %c1_i32, %arg1 : i32
    %1 = arith.muli %arg2, %0 : i32
    %c0_i32 = arith.constant 0 : i32
    %2 = arith.muli %arg1, %c0_i32 : i32
    %3 = arith.addi %1, %2 : i32
    %c0_i32_0 = arith.constant 0 : i32
    %c0_i32_1 = arith.constant 0 : i32
    return %arg0, %c0_i32_0, %3 : i32, i32, i32
  }
  func.func @transform_1(%arg0: i32, %arg1: i32, %arg2: i32) -> (i32, i32) {
    %c0_i32 = arith.constant 0 : i32
    %c0_i32_0 = arith.constant 0 : i32
    %c0_i32_1 = arith.constant 0 : i32
    return %c0_i32, %c0_i32_0 : i32, i32
  }
  func.func @transform_2(%arg0: i32, %arg1: i32, %arg2: i32) -> (i32, i32) {
    %c0_i32 = arith.constant 0 : i32
    %c0_i32_0 = arith.constant 0 : i32
    %c0_i32_1 = arith.constant 0 : i32
    return %c0_i32, %c0_i32_0 : i32, i32
  }
  func.func @transform_3(%arg0: i32, %arg1: i32, %arg2: i32) -> (i32, i32) {
    %c0_i32 = arith.constant 0 : i32
    %c0_i32_0 = arith.constant 0 : i32
    %c0_i32_1 = arith.constant 0 : i32
    return %c0_i32, %c0_i32_0 : i32, i32
  }
  func.func @transform_4(%arg0: i32, %arg1: i32, %arg2: i32) -> (i32, i32, i32) {
    %0 = arith.muli %arg2, %arg1 : i32
    %c0_i32 = arith.constant 0 : i32
    %c0_i32_0 = arith.constant 0 : i32
    return %arg0, %c0_i32, %0 : i32, i32, i32
  }
}

module attributes {stable_mosaic.version = 11 : i64} {
  func.func @_conv_bn_lrelu_kernel(%arg0: i32, %arg1: i32, %arg2: i32, %arg3: memref<1x352x128xbf16, #tpu.memory_space<vmem>>, %arg4: memref<32x352xbf16, #tpu.memory_space<vmem>>, %arg5: memref<32x1xf32, #tpu.memory_space<vmem>>, %arg6: memref<32x1xf32, #tpu.memory_space<vmem>>, %arg7: memref<1x32x128xf32, #tpu.memory_space<vmem>>, %arg8: memref<32x128xf32, #tpu.memory_space<vmem>>, %arg9: memref<32x1xf32, #tpu.memory_space<vmem>>, %arg10: memref<32x1xf32, #tpu.memory_space<vmem>>) attributes {dimension_semantics = [#tpu.dimension_semantics<parallel>, #tpu.dimension_semantics<arbitrary>, #tpu.dimension_semantics<arbitrary>], iteration_bounds = array<i64: 1, 2, 1>, scalar_prefetch = 0 : i64, scratch_operands = 3 : i64, tpu.core_type = #tpu.core_type<tc>, window_params = [{transform_indices = @transform_0, window_bounds = array<i64: 1, 352, 128>}, {pipeline_mode = #tpu.pipeline_mode<synchronous>, transform_indices = @transform_1, window_bounds = array<i64: 32, 352>}, {pipeline_mode = #tpu.pipeline_mode<synchronous>, transform_indices = @transform_2, window_bounds = array<i64: 32, 1>}, {pipeline_mode = #tpu.pipeline_mode<synchronous>, transform_indices = @transform_3, window_bounds = array<i64: 32, 1>}, {transform_indices = @transform_4, window_bounds = array<i64: 1, 32, 128>}]} {
    %c128_i32 = arith.constant 128 : i32
    %0 = arith.muli %arg2, %c128_i32 : i32
    %1 = tpu.assume_multiple %0, 128 : i32
    %c0_i32 = arith.constant 0 : i32
    %2 = arith.cmpi eq, %arg1, %c0_i32 : i32
    %c0_i32_0 = arith.constant 0 : i32
    %3 = arith.cmpi eq, %arg2, %c0_i32_0 : i32
    %4 = arith.andi %2, %3 : i1
    %5 = arith.extui %4 : i1 to i32
    %c0_i32_1 = arith.constant 0 : i32
    %6 = arith.cmpi ne, %5, %c0_i32_1 : i32
    scf.if %6 {
      %cst = arith.constant 0.000000e+00 : f32
      %13 = vector.broadcast %cst : f32 to vector<32x1xf32>
      %c0 = arith.constant 0 : index
      %c0_5 = arith.constant 0 : index
      %14 = vector.load %arg9[%c0, %c0_5] : memref<32x1xf32, #tpu.memory_space<vmem>>, vector<32x1xf32>
      tpu.vector_store %arg9[%c0, %c0_5], %13 {strides = array<i32>} : memref<32x1xf32, #tpu.memory_space<vmem>>, vector<32x1xf32>,
      %cst_6 = arith.constant 0.000000e+00 : f32
      %15 = vector.broadcast %cst_6 : f32 to vector<32x1xf32>
      %c0_7 = arith.constant 0 : index
      %c0_8 = arith.constant 0 : index
      %16 = vector.load %arg10[%c0_7, %c0_8] : memref<32x1xf32, #tpu.memory_space<vmem>>, vector<32x1xf32>
      tpu.vector_store %arg10[%c0_7, %c0_8], %15 {strides = array<i32>} : memref<32x1xf32, #tpu.memory_space<vmem>>, vector<32x1xf32>,
    } else {
    }
    %c0_i32_2 = arith.constant 0 : i32
    %7 = arith.cmpi eq, %arg1, %c0_i32_2 : i32
    %8 = arith.extui %7 : i1 to i32
    %c0_i32_3 = arith.constant 0 : i32
    %9 = arith.cmpi ne, %8, %c0_i32_3 : i32
    scf.if %9 {
      %c0 = arith.constant 0 : index
      %c0_5 = arith.constant 0 : index
      %13 = vector.load %arg4[%c0, %c0_5] : memref<32x352xbf16, #tpu.memory_space<vmem>>, vector<32x352xbf16>
      %c0_6 = arith.constant 0 : index
      %c0_7 = arith.constant 0 : index
      %c0_8 = arith.constant 0 : index
      %14 = vector.load %arg3[%c0_6, %c0_7, %c0_8] : memref<1x352x128xbf16, #tpu.memory_space<vmem>>, vector<1x352x128xbf16>
      %15 = vector.shape_cast %14 : vector<1x352x128xbf16> to vector<352x128xbf16>
      %cst = arith.constant dense<0.000000e+00> : vector<32x128xf32>
      %16 = tpu.matmul %13, %15, %cst {dimension_numbers = #tpu.dot_dimension_numbers<[1], [0], [0], [1], [0, 0, 1, 1], [], []>} : vector<32x352xbf16>, vector<352x128xbf16>, vector<32x128xf32> -> vector<32x128xf32>
      %c0_9 = arith.constant 0 : index
      %17 = arith.index_cast %1 : i32 to index
      %18 = vector.load %arg8[%c0_9, %17] : memref<32x128xf32, #tpu.memory_space<vmem>>, vector<32x128xf32>
      tpu.vector_store %arg8[%c0_9, %17], %16 {strides = array<i32>} : memref<32x128xf32, #tpu.memory_space<vmem>>, vector<32x128xf32>,
      %c0_10 = arith.constant 0 : index
      %c0_11 = arith.constant 0 : index
      %19 = vector.load %arg9[%c0_10, %c0_11] : memref<32x1xf32, #tpu.memory_space<vmem>>, vector<32x1xf32>
      %cst_12 = arith.constant dense<0.000000e+00> : vector<32xf32>
      %20 = vector.multi_reduction <add>, %16, %cst_12 [1] : vector<32x128xf32> to vector<32xf32>
      %21 = vector.shape_cast %20 : vector<32xf32> to vector<32x1xf32>
      %22 = arith.addf %19, %21 : vector<32x1xf32>
      %c0_13 = arith.constant 0 : index
      %c0_14 = arith.constant 0 : index
      %23 = vector.load %arg9[%c0_13, %c0_14] : memref<32x1xf32, #tpu.memory_space<vmem>>, vector<32x1xf32>
      tpu.vector_store %arg9[%c0_13, %c0_14], %22 {strides = array<i32>} : memref<32x1xf32, #tpu.memory_space<vmem>>, vector<32x1xf32>,
      %c0_15 = arith.constant 0 : index
      %c0_16 = arith.constant 0 : index
      %24 = vector.load %arg10[%c0_15, %c0_16] : memref<32x1xf32, #tpu.memory_space<vmem>>, vector<32x1xf32>
      %25 = arith.mulf %16, %16 : vector<32x128xf32>
      %cst_17 = arith.constant dense<0.000000e+00> : vector<32xf32>
      %26 = vector.multi_reduction <add>, %25, %cst_17 [1] : vector<32x128xf32> to vector<32xf32>
      %27 = vector.shape_cast %26 : vector<32xf32> to vector<32x1xf32>
      %28 = arith.addf %24, %27 : vector<32x1xf32>
      %c0_18 = arith.constant 0 : index
      %c0_19 = arith.constant 0 : index
      %29 = vector.load %arg10[%c0_18, %c0_19] : memref<32x1xf32, #tpu.memory_space<vmem>>, vector<32x1xf32>
      tpu.vector_store %arg10[%c0_18, %c0_19], %28 {strides = array<i32>} : memref<32x1xf32, #tpu.memory_space<vmem>>, vector<32x1xf32>,
    } else {
    }
    %c1_i32 = arith.constant 1 : i32
    %10 = arith.cmpi eq, %arg1, %c1_i32 : i32
    %11 = arith.extui %10 : i1 to i32
    %c0_i32_4 = arith.constant 0 : i32
    %12 = arith.cmpi ne, %11, %c0_i32_4 : i32
    scf.if %12 {
      %c0 = arith.constant 0 : index
      %13 = arith.index_cast %1 : i32 to index
      %14 = vector.load %arg8[%c0, %13] : memref<32x128xf32, #tpu.memory_space<vmem>>, vector<32x128xf32>
      %c0_5 = arith.constant 0 : index
      %c0_6 = arith.constant 0 : index
      %15 = vector.load %arg9[%c0_5, %c0_6] : memref<32x1xf32, #tpu.memory_space<vmem>>, vector<32x1xf32>
      %cst = arith.constant 1.562500e-02 : f32
      %16 = vector.broadcast %cst : f32 to vector<32x1xf32>
      %17 = arith.mulf %15, %16 : vector<32x1xf32>
      %c0_7 = arith.constant 0 : index
      %c0_8 = arith.constant 0 : index
      %18 = vector.load %arg10[%c0_7, %c0_8] : memref<32x1xf32, #tpu.memory_space<vmem>>, vector<32x1xf32>
      %cst_9 = arith.constant 1.562500e-02 : f32
      %19 = vector.broadcast %cst_9 : f32 to vector<32x1xf32>
      %20 = arith.mulf %18, %19 : vector<32x1xf32>
      %21 = arith.mulf %17, %17 : vector<32x1xf32>
      %22 = arith.subf %20, %21 : vector<32x1xf32>
      %cst_10 = arith.constant 0.000000e+00 : f32
      %23 = vector.broadcast %cst_10 : f32 to vector<32x1xf32>
      %24 = arith.maximumf %22, %23 : vector<32x1xf32>
      %c0_11 = arith.constant 0 : index
      %c0_12 = arith.constant 0 : index
      %25 = vector.load %arg5[%c0_11, %c0_12] : memref<32x1xf32, #tpu.memory_space<vmem>>, vector<32x1xf32>
      %cst_13 = arith.constant 9.99999974E-6 : f32
      %26 = vector.broadcast %cst_13 : f32 to vector<32x1xf32>
      %27 = arith.addf %24, %26 : vector<32x1xf32>
      %28 = math.rsqrt %27 : vector<32x1xf32>
      %29 = arith.mulf %25, %28 : vector<32x1xf32>
      %c0_14 = arith.constant 0 : index
      %c0_15 = arith.constant 0 : index
      %30 = vector.load %arg6[%c0_14, %c0_15] : memref<32x1xf32, #tpu.memory_space<vmem>>, vector<32x1xf32>
      %31 = arith.mulf %17, %29 : vector<32x1xf32>
      %32 = arith.subf %30, %31 : vector<32x1xf32>
      %33 = vector.broadcast %29 : vector<32x1xf32> to vector<32x128xf32>
      %34 = arith.mulf %14, %33 : vector<32x128xf32>
      %35 = vector.broadcast %32 : vector<32x1xf32> to vector<32x128xf32>
      %36 = arith.addf %34, %35 : vector<32x128xf32>
      %cst_16 = arith.constant 0.000000e+00 : f32
      %37 = vector.broadcast %cst_16 : f32 to vector<32x128xf32>
      %38 = arith.cmpf oge, %36, %37 : vector<32x128xf32>
      %cst_17 = arith.constant 0.00999999977 : f32
      %39 = vector.broadcast %cst_17 : f32 to vector<32x128xf32>
      %40 = arith.mulf %39, %36 : vector<32x128xf32>
      %41 = arith.select %38, %36, %40 : vector<32x128xi1>, vector<32x128xf32>
      %c0_18 = arith.constant 0 : index
      %c0_19 = arith.constant 0 : index
      %c0_20 = arith.constant 0 : index
      %42 = vector.load %arg7[%c0_18, %c0_19, %c0_20] : memref<1x32x128xf32, #tpu.memory_space<vmem>>, vector<1x32x128xf32>
      %43 = vector.shape_cast %42 : vector<1x32x128xf32> to vector<32x128xf32>
      %44 = vector.shape_cast %41 : vector<32x128xf32> to vector<1x32x128xf32>
      tpu.vector_store %arg7[%c0_18, %c0_19, %c0_20], %44 {strides = array<i32>} : memref<1x32x128xf32, #tpu.memory_space<vmem>>, vector<1x32x128xf32>,
    } else {
    }
    return
  }
  func.func @transform_0(%arg0: i32, %arg1: i32, %arg2: i32) -> (i32, i32, i32) {
    %c1_i32 = arith.constant 1 : i32
    %0 = arith.subi %c1_i32, %arg1 : i32
    %1 = arith.muli %arg2, %0 : i32
    %c0_i32 = arith.constant 0 : i32
    %2 = arith.muli %arg1, %c0_i32 : i32
    %3 = arith.addi %1, %2 : i32
    %c0_i32_0 = arith.constant 0 : i32
    %c0_i32_1 = arith.constant 0 : i32
    return %arg0, %c0_i32_0, %3 : i32, i32, i32
  }
  func.func @transform_1(%arg0: i32, %arg1: i32, %arg2: i32) -> (i32, i32) {
    %c0_i32 = arith.constant 0 : i32
    %c0_i32_0 = arith.constant 0 : i32
    %c0_i32_1 = arith.constant 0 : i32
    return %c0_i32, %c0_i32_0 : i32, i32
  }
  func.func @transform_2(%arg0: i32, %arg1: i32, %arg2: i32) -> (i32, i32) {
    %c0_i32 = arith.constant 0 : i32
    %c0_i32_0 = arith.constant 0 : i32
    %c0_i32_1 = arith.constant 0 : i32
    return %c0_i32, %c0_i32_0 : i32, i32
  }
  func.func @transform_3(%arg0: i32, %arg1: i32, %arg2: i32) -> (i32, i32) {
    %c0_i32 = arith.constant 0 : i32
    %c0_i32_0 = arith.constant 0 : i32
    %c0_i32_1 = arith.constant 0 : i32
    return %c0_i32, %c0_i32_0 : i32, i32
  }
  func.func @transform_4(%arg0: i32, %arg1: i32, %arg2: i32) -> (i32, i32, i32) {
    %0 = arith.muli %arg2, %arg1 : i32
    %c0_i32 = arith.constant 0 : i32
    %c0_i32_0 = arith.constant 0 : i32
    return %arg0, %c0_i32, %0 : i32, i32, i32
  }
}

module attributes {stable_mosaic.version = 11 : i64} {
  func.func @_conv_bn_lrelu_kernel(%arg0: i32, %arg1: i32, %arg2: i32, %arg3: memref<1x288x128xbf16, #tpu.memory_space<vmem>>, %arg4: memref<32x288xbf16, #tpu.memory_space<vmem>>, %arg5: memref<32x1xf32, #tpu.memory_space<vmem>>, %arg6: memref<32x1xf32, #tpu.memory_space<vmem>>, %arg7: memref<1x32x128xf32, #tpu.memory_space<vmem>>, %arg8: memref<32x128xf32, #tpu.memory_space<vmem>>, %arg9: memref<32x1xf32, #tpu.memory_space<vmem>>, %arg10: memref<32x1xf32, #tpu.memory_space<vmem>>) attributes {dimension_semantics = [#tpu.dimension_semantics<parallel>, #tpu.dimension_semantics<arbitrary>, #tpu.dimension_semantics<arbitrary>], iteration_bounds = array<i64: 1, 2, 1>, scalar_prefetch = 0 : i64, scratch_operands = 3 : i64, tpu.core_type = #tpu.core_type<tc>, window_params = [{transform_indices = @transform_0, window_bounds = array<i64: 1, 288, 128>}, {pipeline_mode = #tpu.pipeline_mode<synchronous>, transform_indices = @transform_1, window_bounds = array<i64: 32, 288>}, {pipeline_mode = #tpu.pipeline_mode<synchronous>, transform_indices = @transform_2, window_bounds = array<i64: 32, 1>}, {pipeline_mode = #tpu.pipeline_mode<synchronous>, transform_indices = @transform_3, window_bounds = array<i64: 32, 1>}, {transform_indices = @transform_4, window_bounds = array<i64: 1, 32, 128>}]} {
    %c128_i32 = arith.constant 128 : i32
    %0 = arith.muli %arg2, %c128_i32 : i32
    %1 = tpu.assume_multiple %0, 128 : i32
    %c0_i32 = arith.constant 0 : i32
    %2 = arith.cmpi eq, %arg1, %c0_i32 : i32
    %c0_i32_0 = arith.constant 0 : i32
    %3 = arith.cmpi eq, %arg2, %c0_i32_0 : i32
    %4 = arith.andi %2, %3 : i1
    %5 = arith.extui %4 : i1 to i32
    %c0_i32_1 = arith.constant 0 : i32
    %6 = arith.cmpi ne, %5, %c0_i32_1 : i32
    scf.if %6 {
      %cst = arith.constant 0.000000e+00 : f32
      %13 = vector.broadcast %cst : f32 to vector<32x1xf32>
      %c0 = arith.constant 0 : index
      %c0_5 = arith.constant 0 : index
      %14 = vector.load %arg9[%c0, %c0_5] : memref<32x1xf32, #tpu.memory_space<vmem>>, vector<32x1xf32>
      tpu.vector_store %arg9[%c0, %c0_5], %13 {strides = array<i32>} : memref<32x1xf32, #tpu.memory_space<vmem>>, vector<32x1xf32>,
      %cst_6 = arith.constant 0.000000e+00 : f32
      %15 = vector.broadcast %cst_6 : f32 to vector<32x1xf32>
      %c0_7 = arith.constant 0 : index
      %c0_8 = arith.constant 0 : index
      %16 = vector.load %arg10[%c0_7, %c0_8] : memref<32x1xf32, #tpu.memory_space<vmem>>, vector<32x1xf32>
      tpu.vector_store %arg10[%c0_7, %c0_8], %15 {strides = array<i32>} : memref<32x1xf32, #tpu.memory_space<vmem>>, vector<32x1xf32>,
    } else {
    }
    %c0_i32_2 = arith.constant 0 : i32
    %7 = arith.cmpi eq, %arg1, %c0_i32_2 : i32
    %8 = arith.extui %7 : i1 to i32
    %c0_i32_3 = arith.constant 0 : i32
    %9 = arith.cmpi ne, %8, %c0_i32_3 : i32
    scf.if %9 {
      %c0 = arith.constant 0 : index
      %c0_5 = arith.constant 0 : index
      %13 = vector.load %arg4[%c0, %c0_5] : memref<32x288xbf16, #tpu.memory_space<vmem>>, vector<32x288xbf16>
      %c0_6 = arith.constant 0 : index
      %c0_7 = arith.constant 0 : index
      %c0_8 = arith.constant 0 : index
      %14 = vector.load %arg3[%c0_6, %c0_7, %c0_8] : memref<1x288x128xbf16, #tpu.memory_space<vmem>>, vector<1x288x128xbf16>
      %15 = vector.shape_cast %14 : vector<1x288x128xbf16> to vector<288x128xbf16>
      %cst = arith.constant dense<0.000000e+00> : vector<32x128xf32>
      %16 = tpu.matmul %13, %15, %cst {dimension_numbers = #tpu.dot_dimension_numbers<[1], [0], [0], [1], [0, 0, 1, 1], [], []>} : vector<32x288xbf16>, vector<288x128xbf16>, vector<32x128xf32> -> vector<32x128xf32>
      %c0_9 = arith.constant 0 : index
      %17 = arith.index_cast %1 : i32 to index
      %18 = vector.load %arg8[%c0_9, %17] : memref<32x128xf32, #tpu.memory_space<vmem>>, vector<32x128xf32>
      tpu.vector_store %arg8[%c0_9, %17], %16 {strides = array<i32>} : memref<32x128xf32, #tpu.memory_space<vmem>>, vector<32x128xf32>,
      %c0_10 = arith.constant 0 : index
      %c0_11 = arith.constant 0 : index
      %19 = vector.load %arg9[%c0_10, %c0_11] : memref<32x1xf32, #tpu.memory_space<vmem>>, vector<32x1xf32>
      %cst_12 = arith.constant dense<0.000000e+00> : vector<32xf32>
      %20 = vector.multi_reduction <add>, %16, %cst_12 [1] : vector<32x128xf32> to vector<32xf32>
      %21 = vector.shape_cast %20 : vector<32xf32> to vector<32x1xf32>
      %22 = arith.addf %19, %21 : vector<32x1xf32>
      %c0_13 = arith.constant 0 : index
      %c0_14 = arith.constant 0 : index
      %23 = vector.load %arg9[%c0_13, %c0_14] : memref<32x1xf32, #tpu.memory_space<vmem>>, vector<32x1xf32>
      tpu.vector_store %arg9[%c0_13, %c0_14], %22 {strides = array<i32>} : memref<32x1xf32, #tpu.memory_space<vmem>>, vector<32x1xf32>,
      %c0_15 = arith.constant 0 : index
      %c0_16 = arith.constant 0 : index
      %24 = vector.load %arg10[%c0_15, %c0_16] : memref<32x1xf32, #tpu.memory_space<vmem>>, vector<32x1xf32>
      %25 = arith.mulf %16, %16 : vector<32x128xf32>
      %cst_17 = arith.constant dense<0.000000e+00> : vector<32xf32>
      %26 = vector.multi_reduction <add>, %25, %cst_17 [1] : vector<32x128xf32> to vector<32xf32>
      %27 = vector.shape_cast %26 : vector<32xf32> to vector<32x1xf32>
      %28 = arith.addf %24, %27 : vector<32x1xf32>
      %c0_18 = arith.constant 0 : index
      %c0_19 = arith.constant 0 : index
      %29 = vector.load %arg10[%c0_18, %c0_19] : memref<32x1xf32, #tpu.memory_space<vmem>>, vector<32x1xf32>
      tpu.vector_store %arg10[%c0_18, %c0_19], %28 {strides = array<i32>} : memref<32x1xf32, #tpu.memory_space<vmem>>, vector<32x1xf32>,
    } else {
    }
    %c1_i32 = arith.constant 1 : i32
    %10 = arith.cmpi eq, %arg1, %c1_i32 : i32
    %11 = arith.extui %10 : i1 to i32
    %c0_i32_4 = arith.constant 0 : i32
    %12 = arith.cmpi ne, %11, %c0_i32_4 : i32
    scf.if %12 {
      %c0 = arith.constant 0 : index
      %13 = arith.index_cast %1 : i32 to index
      %14 = vector.load %arg8[%c0, %13] : memref<32x128xf32, #tpu.memory_space<vmem>>, vector<32x128xf32>
      %c0_5 = arith.constant 0 : index
      %c0_6 = arith.constant 0 : index
      %15 = vector.load %arg9[%c0_5, %c0_6] : memref<32x1xf32, #tpu.memory_space<vmem>>, vector<32x1xf32>
      %cst = arith.constant 6.250000e-02 : f32
      %16 = vector.broadcast %cst : f32 to vector<32x1xf32>
      %17 = arith.mulf %15, %16 : vector<32x1xf32>
      %c0_7 = arith.constant 0 : index
      %c0_8 = arith.constant 0 : index
      %18 = vector.load %arg10[%c0_7, %c0_8] : memref<32x1xf32, #tpu.memory_space<vmem>>, vector<32x1xf32>
      %cst_9 = arith.constant 6.250000e-02 : f32
      %19 = vector.broadcast %cst_9 : f32 to vector<32x1xf32>
      %20 = arith.mulf %18, %19 : vector<32x1xf32>
      %21 = arith.mulf %17, %17 : vector<32x1xf32>
      %22 = arith.subf %20, %21 : vector<32x1xf32>
      %cst_10 = arith.constant 0.000000e+00 : f32
      %23 = vector.broadcast %cst_10 : f32 to vector<32x1xf32>
      %24 = arith.maximumf %22, %23 : vector<32x1xf32>
      %c0_11 = arith.constant 0 : index
      %c0_12 = arith.constant 0 : index
      %25 = vector.load %arg5[%c0_11, %c0_12] : memref<32x1xf32, #tpu.memory_space<vmem>>, vector<32x1xf32>
      %cst_13 = arith.constant 9.99999974E-6 : f32
      %26 = vector.broadcast %cst_13 : f32 to vector<32x1xf32>
      %27 = arith.addf %24, %26 : vector<32x1xf32>
      %28 = math.rsqrt %27 : vector<32x1xf32>
      %29 = arith.mulf %25, %28 : vector<32x1xf32>
      %c0_14 = arith.constant 0 : index
      %c0_15 = arith.constant 0 : index
      %30 = vector.load %arg6[%c0_14, %c0_15] : memref<32x1xf32, #tpu.memory_space<vmem>>, vector<32x1xf32>
      %31 = arith.mulf %17, %29 : vector<32x1xf32>
      %32 = arith.subf %30, %31 : vector<32x1xf32>
      %33 = vector.broadcast %29 : vector<32x1xf32> to vector<32x128xf32>
      %34 = arith.mulf %14, %33 : vector<32x128xf32>
      %35 = vector.broadcast %32 : vector<32x1xf32> to vector<32x128xf32>
      %36 = arith.addf %34, %35 : vector<32x128xf32>
      %cst_16 = arith.constant 0.000000e+00 : f32
      %37 = vector.broadcast %cst_16 : f32 to vector<32x128xf32>
      %38 = arith.cmpf oge, %36, %37 : vector<32x128xf32>
      %cst_17 = arith.constant 0.00999999977 : f32
      %39 = vector.broadcast %cst_17 : f32 to vector<32x128xf32>
      %40 = arith.mulf %39, %36 : vector<32x128xf32>
      %41 = arith.select %38, %36, %40 : vector<32x128xi1>, vector<32x128xf32>
      %c0_18 = arith.constant 0 : index
      %c0_19 = arith.constant 0 : index
      %c0_20 = arith.constant 0 : index
      %42 = vector.load %arg7[%c0_18, %c0_19, %c0_20] : memref<1x32x128xf32, #tpu.memory_space<vmem>>, vector<1x32x128xf32>
      %43 = vector.shape_cast %42 : vector<1x32x128xf32> to vector<32x128xf32>
      %44 = vector.shape_cast %41 : vector<32x128xf32> to vector<1x32x128xf32>
      tpu.vector_store %arg7[%c0_18, %c0_19, %c0_20], %44 {strides = array<i32>} : memref<1x32x128xf32, #tpu.memory_space<vmem>>, vector<1x32x128xf32>,
    } else {
    }
    return
  }
  func.func @transform_0(%arg0: i32, %arg1: i32, %arg2: i32) -> (i32, i32, i32) {
    %c1_i32 = arith.constant 1 : i32
    %0 = arith.subi %c1_i32, %arg1 : i32
    %1 = arith.muli %arg2, %0 : i32
    %c0_i32 = arith.constant 0 : i32
    %2 = arith.muli %arg1, %c0_i32 : i32
    %3 = arith.addi %1, %2 : i32
    %c0_i32_0 = arith.constant 0 : i32
    %c0_i32_1 = arith.constant 0 : i32
    return %arg0, %c0_i32_0, %3 : i32, i32, i32
  }
  func.func @transform_1(%arg0: i32, %arg1: i32, %arg2: i32) -> (i32, i32) {
    %c0_i32 = arith.constant 0 : i32
    %c0_i32_0 = arith.constant 0 : i32
    %c0_i32_1 = arith.constant 0 : i32
    return %c0_i32, %c0_i32_0 : i32, i32
  }
  func.func @transform_2(%arg0: i32, %arg1: i32, %arg2: i32) -> (i32, i32) {
    %c0_i32 = arith.constant 0 : i32
    %c0_i32_0 = arith.constant 0 : i32
    %c0_i32_1 = arith.constant 0 : i32
    return %c0_i32, %c0_i32_0 : i32, i32
  }
  func.func @transform_3(%arg0: i32, %arg1: i32, %arg2: i32) -> (i32, i32) {
    %c0_i32 = arith.constant 0 : i32
    %c0_i32_0 = arith.constant 0 : i32
    %c0_i32_1 = arith.constant 0 : i32
    return %c0_i32, %c0_i32_0 : i32, i32
  }
  func.func @transform_4(%arg0: i32, %arg1: i32, %arg2: i32) -> (i32, i32, i32) {
    %0 = arith.muli %arg2, %arg1 : i32
    %c0_i32 = arith.constant 0 : i32
    %c0_i32_0 = arith.constant 0 : i32
    return %arg0, %c0_i32, %0 : i32, i32, i32
  }
}

module attributes {stable_mosaic.version = 11 : i64} {
  func.func @_conv_bn_lrelu_kernel(%arg0: i32, %arg1: i32, %arg2: i32, %arg3: memref<1x288x128xbf16, #tpu.memory_space<vmem>>, %arg4: memref<16x288xbf16, #tpu.memory_space<vmem>>, %arg5: memref<16x1xf32, #tpu.memory_space<vmem>>, %arg6: memref<16x1xf32, #tpu.memory_space<vmem>>, %arg7: memref<1x16x128xf32, #tpu.memory_space<vmem>>, %arg8: memref<16x128xf32, #tpu.memory_space<vmem>>, %arg9: memref<16x1xf32, #tpu.memory_space<vmem>>, %arg10: memref<16x1xf32, #tpu.memory_space<vmem>>) attributes {dimension_semantics = [#tpu.dimension_semantics<parallel>, #tpu.dimension_semantics<arbitrary>, #tpu.dimension_semantics<arbitrary>], iteration_bounds = array<i64: 1, 2, 1>, scalar_prefetch = 0 : i64, scratch_operands = 3 : i64, tpu.core_type = #tpu.core_type<tc>, window_params = [{transform_indices = @transform_0, window_bounds = array<i64: 1, 288, 128>}, {pipeline_mode = #tpu.pipeline_mode<synchronous>, transform_indices = @transform_1, window_bounds = array<i64: 16, 288>}, {pipeline_mode = #tpu.pipeline_mode<synchronous>, transform_indices = @transform_2, window_bounds = array<i64: 16, 1>}, {pipeline_mode = #tpu.pipeline_mode<synchronous>, transform_indices = @transform_3, window_bounds = array<i64: 16, 1>}, {transform_indices = @transform_4, window_bounds = array<i64: 1, 16, 128>}]} {
    %c128_i32 = arith.constant 128 : i32
    %0 = arith.muli %arg2, %c128_i32 : i32
    %1 = tpu.assume_multiple %0, 128 : i32
    %c0_i32 = arith.constant 0 : i32
    %2 = arith.cmpi eq, %arg1, %c0_i32 : i32
    %c0_i32_0 = arith.constant 0 : i32
    %3 = arith.cmpi eq, %arg2, %c0_i32_0 : i32
    %4 = arith.andi %2, %3 : i1
    %5 = arith.extui %4 : i1 to i32
    %c0_i32_1 = arith.constant 0 : i32
    %6 = arith.cmpi ne, %5, %c0_i32_1 : i32
    scf.if %6 {
      %cst = arith.constant 0.000000e+00 : f32
      %13 = vector.broadcast %cst : f32 to vector<16x1xf32>
      %c0 = arith.constant 0 : index
      %c0_5 = arith.constant 0 : index
      %14 = vector.load %arg9[%c0, %c0_5] : memref<16x1xf32, #tpu.memory_space<vmem>>, vector<16x1xf32>
      tpu.vector_store %arg9[%c0, %c0_5], %13 {strides = array<i32>} : memref<16x1xf32, #tpu.memory_space<vmem>>, vector<16x1xf32>,
      %cst_6 = arith.constant 0.000000e+00 : f32
      %15 = vector.broadcast %cst_6 : f32 to vector<16x1xf32>
      %c0_7 = arith.constant 0 : index
      %c0_8 = arith.constant 0 : index
      %16 = vector.load %arg10[%c0_7, %c0_8] : memref<16x1xf32, #tpu.memory_space<vmem>>, vector<16x1xf32>
      tpu.vector_store %arg10[%c0_7, %c0_8], %15 {strides = array<i32>} : memref<16x1xf32, #tpu.memory_space<vmem>>, vector<16x1xf32>,
    } else {
    }
    %c0_i32_2 = arith.constant 0 : i32
    %7 = arith.cmpi eq, %arg1, %c0_i32_2 : i32
    %8 = arith.extui %7 : i1 to i32
    %c0_i32_3 = arith.constant 0 : i32
    %9 = arith.cmpi ne, %8, %c0_i32_3 : i32
    scf.if %9 {
      %c0 = arith.constant 0 : index
      %c0_5 = arith.constant 0 : index
      %13 = vector.load %arg4[%c0, %c0_5] : memref<16x288xbf16, #tpu.memory_space<vmem>>, vector<16x288xbf16>
      %c0_6 = arith.constant 0 : index
      %c0_7 = arith.constant 0 : index
      %c0_8 = arith.constant 0 : index
      %14 = vector.load %arg3[%c0_6, %c0_7, %c0_8] : memref<1x288x128xbf16, #tpu.memory_space<vmem>>, vector<1x288x128xbf16>
      %15 = vector.shape_cast %14 : vector<1x288x128xbf16> to vector<288x128xbf16>
      %cst = arith.constant dense<0.000000e+00> : vector<16x128xf32>
      %16 = tpu.matmul %13, %15, %cst {dimension_numbers = #tpu.dot_dimension_numbers<[1], [0], [0], [1], [0, 0, 1, 1], [], []>} : vector<16x288xbf16>, vector<288x128xbf16>, vector<16x128xf32> -> vector<16x128xf32>
      %c0_9 = arith.constant 0 : index
      %17 = arith.index_cast %1 : i32 to index
      %18 = vector.load %arg8[%c0_9, %17] : memref<16x128xf32, #tpu.memory_space<vmem>>, vector<16x128xf32>
      tpu.vector_store %arg8[%c0_9, %17], %16 {strides = array<i32>} : memref<16x128xf32, #tpu.memory_space<vmem>>, vector<16x128xf32>,
      %c0_10 = arith.constant 0 : index
      %c0_11 = arith.constant 0 : index
      %19 = vector.load %arg9[%c0_10, %c0_11] : memref<16x1xf32, #tpu.memory_space<vmem>>, vector<16x1xf32>
      %cst_12 = arith.constant dense<0.000000e+00> : vector<16xf32>
      %20 = vector.multi_reduction <add>, %16, %cst_12 [1] : vector<16x128xf32> to vector<16xf32>
      %21 = vector.shape_cast %20 : vector<16xf32> to vector<16x1xf32>
      %22 = arith.addf %19, %21 : vector<16x1xf32>
      %c0_13 = arith.constant 0 : index
      %c0_14 = arith.constant 0 : index
      %23 = vector.load %arg9[%c0_13, %c0_14] : memref<16x1xf32, #tpu.memory_space<vmem>>, vector<16x1xf32>
      tpu.vector_store %arg9[%c0_13, %c0_14], %22 {strides = array<i32>} : memref<16x1xf32, #tpu.memory_space<vmem>>, vector<16x1xf32>,
      %c0_15 = arith.constant 0 : index
      %c0_16 = arith.constant 0 : index
      %24 = vector.load %arg10[%c0_15, %c0_16] : memref<16x1xf32, #tpu.memory_space<vmem>>, vector<16x1xf32>
      %25 = arith.mulf %16, %16 : vector<16x128xf32>
      %cst_17 = arith.constant dense<0.000000e+00> : vector<16xf32>
      %26 = vector.multi_reduction <add>, %25, %cst_17 [1] : vector<16x128xf32> to vector<16xf32>
      %27 = vector.shape_cast %26 : vector<16xf32> to vector<16x1xf32>
      %28 = arith.addf %24, %27 : vector<16x1xf32>
      %c0_18 = arith.constant 0 : index
      %c0_19 = arith.constant 0 : index
      %29 = vector.load %arg10[%c0_18, %c0_19] : memref<16x1xf32, #tpu.memory_space<vmem>>, vector<16x1xf32>
      tpu.vector_store %arg10[%c0_18, %c0_19], %28 {strides = array<i32>} : memref<16x1xf32, #tpu.memory_space<vmem>>, vector<16x1xf32>,
    } else {
    }
    %c1_i32 = arith.constant 1 : i32
    %10 = arith.cmpi eq, %arg1, %c1_i32 : i32
    %11 = arith.extui %10 : i1 to i32
    %c0_i32_4 = arith.constant 0 : i32
    %12 = arith.cmpi ne, %11, %c0_i32_4 : i32
    scf.if %12 {
      %c0 = arith.constant 0 : index
      %13 = arith.index_cast %1 : i32 to index
      %14 = vector.load %arg8[%c0, %13] : memref<16x128xf32, #tpu.memory_space<vmem>>, vector<16x128xf32>
      %c0_5 = arith.constant 0 : index
      %c0_6 = arith.constant 0 : index
      %15 = vector.load %arg9[%c0_5, %c0_6] : memref<16x1xf32, #tpu.memory_space<vmem>>, vector<16x1xf32>
      %cst = arith.constant 2.500000e-01 : f32
      %16 = vector.broadcast %cst : f32 to vector<16x1xf32>
      %17 = arith.mulf %15, %16 : vector<16x1xf32>
      %c0_7 = arith.constant 0 : index
      %c0_8 = arith.constant 0 : index
      %18 = vector.load %arg10[%c0_7, %c0_8] : memref<16x1xf32, #tpu.memory_space<vmem>>, vector<16x1xf32>
      %cst_9 = arith.constant 2.500000e-01 : f32
      %19 = vector.broadcast %cst_9 : f32 to vector<16x1xf32>
      %20 = arith.mulf %18, %19 : vector<16x1xf32>
      %21 = arith.mulf %17, %17 : vector<16x1xf32>
      %22 = arith.subf %20, %21 : vector<16x1xf32>
      %cst_10 = arith.constant 0.000000e+00 : f32
      %23 = vector.broadcast %cst_10 : f32 to vector<16x1xf32>
      %24 = arith.maximumf %22, %23 : vector<16x1xf32>
      %c0_11 = arith.constant 0 : index
      %c0_12 = arith.constant 0 : index
      %25 = vector.load %arg5[%c0_11, %c0_12] : memref<16x1xf32, #tpu.memory_space<vmem>>, vector<16x1xf32>
      %cst_13 = arith.constant 9.99999974E-6 : f32
      %26 = vector.broadcast %cst_13 : f32 to vector<16x1xf32>
      %27 = arith.addf %24, %26 : vector<16x1xf32>
      %28 = math.rsqrt %27 : vector<16x1xf32>
      %29 = arith.mulf %25, %28 : vector<16x1xf32>
      %c0_14 = arith.constant 0 : index
      %c0_15 = arith.constant 0 : index
      %30 = vector.load %arg6[%c0_14, %c0_15] : memref<16x1xf32, #tpu.memory_space<vmem>>, vector<16x1xf32>
      %31 = arith.mulf %17, %29 : vector<16x1xf32>
      %32 = arith.subf %30, %31 : vector<16x1xf32>
      %33 = vector.broadcast %29 : vector<16x1xf32> to vector<16x128xf32>
      %34 = arith.mulf %14, %33 : vector<16x128xf32>
      %35 = vector.broadcast %32 : vector<16x1xf32> to vector<16x128xf32>
      %36 = arith.addf %34, %35 : vector<16x128xf32>
      %cst_16 = arith.constant 0.000000e+00 : f32
      %37 = vector.broadcast %cst_16 : f32 to vector<16x128xf32>
      %38 = arith.cmpf oge, %36, %37 : vector<16x128xf32>
      %cst_17 = arith.constant 0.00999999977 : f32
      %39 = vector.broadcast %cst_17 : f32 to vector<16x128xf32>
      %40 = arith.mulf %39, %36 : vector<16x128xf32>
      %41 = arith.select %38, %36, %40 : vector<16x128xi1>, vector<16x128xf32>
      %c0_18 = arith.constant 0 : index
      %c0_19 = arith.constant 0 : index
      %c0_20 = arith.constant 0 : index
      %42 = vector.load %arg7[%c0_18, %c0_19, %c0_20] : memref<1x16x128xf32, #tpu.memory_space<vmem>>, vector<1x16x128xf32>
      %43 = vector.shape_cast %42 : vector<1x16x128xf32> to vector<16x128xf32>
      %44 = vector.shape_cast %41 : vector<16x128xf32> to vector<1x16x128xf32>
      tpu.vector_store %arg7[%c0_18, %c0_19, %c0_20], %44 {strides = array<i32>} : memref<1x16x128xf32, #tpu.memory_space<vmem>>, vector<1x16x128xf32>,
    } else {
    }
    return
  }
  func.func @transform_0(%arg0: i32, %arg1: i32, %arg2: i32) -> (i32, i32, i32) {
    %c1_i32 = arith.constant 1 : i32
    %0 = arith.subi %c1_i32, %arg1 : i32
    %1 = arith.muli %arg2, %0 : i32
    %c0_i32 = arith.constant 0 : i32
    %2 = arith.muli %arg1, %c0_i32 : i32
    %3 = arith.addi %1, %2 : i32
    %c0_i32_0 = arith.constant 0 : i32
    %c0_i32_1 = arith.constant 0 : i32
    return %arg0, %c0_i32_0, %3 : i32, i32, i32
  }
  func.func @transform_1(%arg0: i32, %arg1: i32, %arg2: i32) -> (i32, i32) {
    %c0_i32 = arith.constant 0 : i32
    %c0_i32_0 = arith.constant 0 : i32
    %c0_i32_1 = arith.constant 0 : i32
    return %c0_i32, %c0_i32_0 : i32, i32
  }
  func.func @transform_2(%arg0: i32, %arg1: i32, %arg2: i32) -> (i32, i32) {
    %c0_i32 = arith.constant 0 : i32
    %c0_i32_0 = arith.constant 0 : i32
    %c0_i32_1 = arith.constant 0 : i32
    return %c0_i32, %c0_i32_0 : i32, i32
  }
  func.func @transform_3(%arg0: i32, %arg1: i32, %arg2: i32) -> (i32, i32) {
    %c0_i32 = arith.constant 0 : i32
    %c0_i32_0 = arith.constant 0 : i32
    %c0_i32_1 = arith.constant 0 : i32
    return %c0_i32, %c0_i32_0 : i32, i32
  }
  func.func @transform_4(%arg0: i32, %arg1: i32, %arg2: i32) -> (i32, i32, i32) {
    %0 = arith.muli %arg2, %arg1 : i32
    %c0_i32 = arith.constant 0 : i32
    %c0_i32_0 = arith.constant 0 : i32
    return %arg0, %c0_i32, %0 : i32, i32, i32
  }
}

module attributes {stable_mosaic.version = 11 : i64} {
  func.func @_conv_bn_lrelu_linear_kernel(%arg0: i32, %arg1: i32, %arg2: i32, %arg3: memref<1x144x128xbf16, #tpu.memory_space<vmem>>, %arg4: memref<16x144xbf16, #tpu.memory_space<vmem>>, %arg5: memref<16x1xf32, #tpu.memory_space<vmem>>, %arg6: memref<16x1xf32, #tpu.memory_space<vmem>>, %arg7: memref<8x16xbf16, #tpu.memory_space<vmem>>, %arg8: memref<8x1xf32, #tpu.memory_space<vmem>>, %arg9: memref<1x8x128xf32, #tpu.memory_space<vmem>>, %arg10: memref<16x128xf32, #tpu.memory_space<vmem>>, %arg11: memref<16x1xf32, #tpu.memory_space<vmem>>, %arg12: memref<16x1xf32, #tpu.memory_space<vmem>>) attributes {dimension_semantics = [#tpu.dimension_semantics<parallel>, #tpu.dimension_semantics<arbitrary>, #tpu.dimension_semantics<arbitrary>], iteration_bounds = array<i64: 1, 2, 1>, scalar_prefetch = 0 : i64, scratch_operands = 3 : i64, tpu.core_type = #tpu.core_type<tc>, window_params = [{transform_indices = @transform_0, window_bounds = array<i64: 1, 144, 128>}, {pipeline_mode = #tpu.pipeline_mode<synchronous>, transform_indices = @transform_1, window_bounds = array<i64: 16, 144>}, {pipeline_mode = #tpu.pipeline_mode<synchronous>, transform_indices = @transform_2, window_bounds = array<i64: 16, 1>}, {pipeline_mode = #tpu.pipeline_mode<synchronous>, transform_indices = @transform_3, window_bounds = array<i64: 16, 1>}, {pipeline_mode = #tpu.pipeline_mode<synchronous>, transform_indices = @transform_4, window_bounds = array<i64: 8, 16>}, {pipeline_mode = #tpu.pipeline_mode<synchronous>, transform_indices = @transform_5, window_bounds = array<i64: 8, 1>}, {transform_indices = @transform_6, window_bounds = array<i64: 1, 8, 128>}]} {
    %c128_i32 = arith.constant 128 : i32
    %0 = arith.muli %arg2, %c128_i32 : i32
    %1 = tpu.assume_multiple %0, 128 : i32
    %c0_i32 = arith.constant 0 : i32
    %2 = arith.cmpi eq, %arg1, %c0_i32 : i32
    %c0_i32_0 = arith.constant 0 : i32
    %3 = arith.cmpi eq, %arg2, %c0_i32_0 : i32
    %4 = arith.andi %2, %3 : i1
    %5 = arith.extui %4 : i1 to i32
    %c0_i32_1 = arith.constant 0 : i32
    %6 = arith.cmpi ne, %5, %c0_i32_1 : i32
    scf.if %6 {
      %cst = arith.constant 0.000000e+00 : f32
      %13 = vector.broadcast %cst : f32 to vector<16x1xf32>
      %c0 = arith.constant 0 : index
      %c0_5 = arith.constant 0 : index
      %14 = vector.load %arg11[%c0, %c0_5] : memref<16x1xf32, #tpu.memory_space<vmem>>, vector<16x1xf32>
      tpu.vector_store %arg11[%c0, %c0_5], %13 {strides = array<i32>} : memref<16x1xf32, #tpu.memory_space<vmem>>, vector<16x1xf32>,
      %cst_6 = arith.constant 0.000000e+00 : f32
      %15 = vector.broadcast %cst_6 : f32 to vector<16x1xf32>
      %c0_7 = arith.constant 0 : index
      %c0_8 = arith.constant 0 : index
      %16 = vector.load %arg12[%c0_7, %c0_8] : memref<16x1xf32, #tpu.memory_space<vmem>>, vector<16x1xf32>
      tpu.vector_store %arg12[%c0_7, %c0_8], %15 {strides = array<i32>} : memref<16x1xf32, #tpu.memory_space<vmem>>, vector<16x1xf32>,
    } else {
    }
    %c0_i32_2 = arith.constant 0 : i32
    %7 = arith.cmpi eq, %arg1, %c0_i32_2 : i32
    %8 = arith.extui %7 : i1 to i32
    %c0_i32_3 = arith.constant 0 : i32
    %9 = arith.cmpi ne, %8, %c0_i32_3 : i32
    scf.if %9 {
      %c0 = arith.constant 0 : index
      %c0_5 = arith.constant 0 : index
      %13 = vector.load %arg4[%c0, %c0_5] : memref<16x144xbf16, #tpu.memory_space<vmem>>, vector<16x144xbf16>
      %c0_6 = arith.constant 0 : index
      %c0_7 = arith.constant 0 : index
      %c0_8 = arith.constant 0 : index
      %14 = vector.load %arg3[%c0_6, %c0_7, %c0_8] : memref<1x144x128xbf16, #tpu.memory_space<vmem>>, vector<1x144x128xbf16>
      %15 = vector.shape_cast %14 : vector<1x144x128xbf16> to vector<144x128xbf16>
      %cst = arith.constant dense<0.000000e+00> : vector<16x128xf32>
      %16 = tpu.matmul %13, %15, %cst {dimension_numbers = #tpu.dot_dimension_numbers<[1], [0], [0], [1], [0, 0, 1, 1], [], []>} : vector<16x144xbf16>, vector<144x128xbf16>, vector<16x128xf32> -> vector<16x128xf32>
      %c0_9 = arith.constant 0 : index
      %17 = arith.index_cast %1 : i32 to index
      %18 = vector.load %arg10[%c0_9, %17] : memref<16x128xf32, #tpu.memory_space<vmem>>, vector<16x128xf32>
      tpu.vector_store %arg10[%c0_9, %17], %16 {strides = array<i32>} : memref<16x128xf32, #tpu.memory_space<vmem>>, vector<16x128xf32>,
      %c0_10 = arith.constant 0 : index
      %c0_11 = arith.constant 0 : index
      %19 = vector.load %arg11[%c0_10, %c0_11] : memref<16x1xf32, #tpu.memory_space<vmem>>, vector<16x1xf32>
      %cst_12 = arith.constant dense<0.000000e+00> : vector<16xf32>
      %20 = vector.multi_reduction <add>, %16, %cst_12 [1] : vector<16x128xf32> to vector<16xf32>
      %21 = vector.shape_cast %20 : vector<16xf32> to vector<16x1xf32>
      %22 = arith.addf %19, %21 : vector<16x1xf32>
      %c0_13 = arith.constant 0 : index
      %c0_14 = arith.constant 0 : index
      %23 = vector.load %arg11[%c0_13, %c0_14] : memref<16x1xf32, #tpu.memory_space<vmem>>, vector<16x1xf32>
      tpu.vector_store %arg11[%c0_13, %c0_14], %22 {strides = array<i32>} : memref<16x1xf32, #tpu.memory_space<vmem>>, vector<16x1xf32>,
      %c0_15 = arith.constant 0 : index
      %c0_16 = arith.constant 0 : index
      %24 = vector.load %arg12[%c0_15, %c0_16] : memref<16x1xf32, #tpu.memory_space<vmem>>, vector<16x1xf32>
      %25 = arith.mulf %16, %16 : vector<16x128xf32>
      %cst_17 = arith.constant dense<0.000000e+00> : vector<16xf32>
      %26 = vector.multi_reduction <add>, %25, %cst_17 [1] : vector<16x128xf32> to vector<16xf32>
      %27 = vector.shape_cast %26 : vector<16xf32> to vector<16x1xf32>
      %28 = arith.addf %24, %27 : vector<16x1xf32>
      %c0_18 = arith.constant 0 : index
      %c0_19 = arith.constant 0 : index
      %29 = vector.load %arg12[%c0_18, %c0_19] : memref<16x1xf32, #tpu.memory_space<vmem>>, vector<16x1xf32>
      tpu.vector_store %arg12[%c0_18, %c0_19], %28 {strides = array<i32>} : memref<16x1xf32, #tpu.memory_space<vmem>>, vector<16x1xf32>,
    } else {
    }
    %c1_i32 = arith.constant 1 : i32
    %10 = arith.cmpi eq, %arg1, %c1_i32 : i32
    %11 = arith.extui %10 : i1 to i32
    %c0_i32_4 = arith.constant 0 : i32
    %12 = arith.cmpi ne, %11, %c0_i32_4 : i32
    scf.if %12 {
      %c0 = arith.constant 0 : index
      %13 = arith.index_cast %1 : i32 to index
      %14 = vector.load %arg10[%c0, %13] : memref<16x128xf32, #tpu.memory_space<vmem>>, vector<16x128xf32>
      %c0_5 = arith.constant 0 : index
      %c0_6 = arith.constant 0 : index
      %15 = vector.load %arg11[%c0_5, %c0_6] : memref<16x1xf32, #tpu.memory_space<vmem>>, vector<16x1xf32>
      %cst = arith.constant 2.500000e-01 : f32
      %16 = vector.broadcast %cst : f32 to vector<16x1xf32>
      %17 = arith.mulf %15, %16 : vector<16x1xf32>
      %c0_7 = arith.constant 0 : index
      %c0_8 = arith.constant 0 : index
      %18 = vector.load %arg12[%c0_7, %c0_8] : memref<16x1xf32, #tpu.memory_space<vmem>>, vector<16x1xf32>
      %cst_9 = arith.constant 2.500000e-01 : f32
      %19 = vector.broadcast %cst_9 : f32 to vector<16x1xf32>
      %20 = arith.mulf %18, %19 : vector<16x1xf32>
      %21 = arith.mulf %17, %17 : vector<16x1xf32>
      %22 = arith.subf %20, %21 : vector<16x1xf32>
      %cst_10 = arith.constant 0.000000e+00 : f32
      %23 = vector.broadcast %cst_10 : f32 to vector<16x1xf32>
      %24 = arith.maximumf %22, %23 : vector<16x1xf32>
      %c0_11 = arith.constant 0 : index
      %c0_12 = arith.constant 0 : index
      %25 = vector.load %arg5[%c0_11, %c0_12] : memref<16x1xf32, #tpu.memory_space<vmem>>, vector<16x1xf32>
      %cst_13 = arith.constant 9.99999974E-6 : f32
      %26 = vector.broadcast %cst_13 : f32 to vector<16x1xf32>
      %27 = arith.addf %24, %26 : vector<16x1xf32>
      %28 = math.rsqrt %27 : vector<16x1xf32>
      %29 = arith.mulf %25, %28 : vector<16x1xf32>
      %c0_14 = arith.constant 0 : index
      %c0_15 = arith.constant 0 : index
      %30 = vector.load %arg6[%c0_14, %c0_15] : memref<16x1xf32, #tpu.memory_space<vmem>>, vector<16x1xf32>
      %31 = arith.mulf %17, %29 : vector<16x1xf32>
      %32 = arith.subf %30, %31 : vector<16x1xf32>
      %33 = vector.broadcast %29 : vector<16x1xf32> to vector<16x128xf32>
      %34 = arith.mulf %14, %33 : vector<16x128xf32>
      %35 = vector.broadcast %32 : vector<16x1xf32> to vector<16x128xf32>
      %36 = arith.addf %34, %35 : vector<16x128xf32>
      %cst_16 = arith.constant 0.000000e+00 : f32
      %37 = vector.broadcast %cst_16 : f32 to vector<16x128xf32>
      %38 = arith.cmpf oge, %36, %37 : vector<16x128xf32>
      %cst_17 = arith.constant 0.00999999977 : f32
      %39 = vector.broadcast %cst_17 : f32 to vector<16x128xf32>
      %40 = arith.mulf %39, %36 : vector<16x128xf32>
      %41 = arith.select %38, %36, %40 : vector<16x128xi1>, vector<16x128xf32>
      %c0_18 = arith.constant 0 : index
      %c0_19 = arith.constant 0 : index
      %42 = vector.load %arg7[%c0_18, %c0_19] : memref<8x16xbf16, #tpu.memory_space<vmem>>, vector<8x16xbf16>
      %43 = arith.truncf %41 : vector<16x128xf32> to vector<16x128xbf16>
      %cst_20 = arith.constant dense<0.000000e+00> : vector<8x128xf32>
      %44 = tpu.matmul %42, %43, %cst_20 {dimension_numbers = #tpu.dot_dimension_numbers<[1], [0], [0], [1], [0, 0, 1, 1], [], []>} : vector<8x16xbf16>, vector<16x128xbf16>, vector<8x128xf32> -> vector<8x128xf32>
      %c0_21 = arith.constant 0 : index
      %c0_22 = arith.constant 0 : index
      %45 = vector.load %arg8[%c0_21, %c0_22] : memref<8x1xf32, #tpu.memory_space<vmem>>, vector<8x1xf32>
      %46 = vector.broadcast %45 : vector<8x1xf32> to vector<8x128xf32>
      %47 = arith.addf %44, %46 : vector<8x128xf32>
      %c0_23 = arith.constant 0 : index
      %c0_24 = arith.constant 0 : index
      %c0_25 = arith.constant 0 : index
      %48 = vector.load %arg9[%c0_23, %c0_24, %c0_25] : memref<1x8x128xf32, #tpu.memory_space<vmem>>, vector<1x8x128xf32>
      %49 = vector.shape_cast %48 : vector<1x8x128xf32> to vector<8x128xf32>
      %50 = vector.shape_cast %47 : vector<8x128xf32> to vector<1x8x128xf32>
      tpu.vector_store %arg9[%c0_23, %c0_24, %c0_25], %50 {strides = array<i32>} : memref<1x8x128xf32, #tpu.memory_space<vmem>>, vector<1x8x128xf32>,
    } else {
    }
    return
  }
  func.func @transform_0(%arg0: i32, %arg1: i32, %arg2: i32) -> (i32, i32, i32) {
    %c1_i32 = arith.constant 1 : i32
    %0 = arith.subi %c1_i32, %arg1 : i32
    %1 = arith.muli %arg2, %0 : i32
    %c0_i32 = arith.constant 0 : i32
    %2 = arith.muli %arg1, %c0_i32 : i32
    %3 = arith.addi %1, %2 : i32
    %c0_i32_0 = arith.constant 0 : i32
    %c0_i32_1 = arith.constant 0 : i32
    return %arg0, %c0_i32_0, %3 : i32, i32, i32
  }
  func.func @transform_1(%arg0: i32, %arg1: i32, %arg2: i32) -> (i32, i32) {
    %c0_i32 = arith.constant 0 : i32
    %c0_i32_0 = arith.constant 0 : i32
    %c0_i32_1 = arith.constant 0 : i32
    return %c0_i32, %c0_i32_0 : i32, i32
  }
  func.func @transform_2(%arg0: i32, %arg1: i32, %arg2: i32) -> (i32, i32) {
    %c0_i32 = arith.constant 0 : i32
    %c0_i32_0 = arith.constant 0 : i32
    %c0_i32_1 = arith.constant 0 : i32
    return %c0_i32, %c0_i32_0 : i32, i32
  }
  func.func @transform_3(%arg0: i32, %arg1: i32, %arg2: i32) -> (i32, i32) {
    %c0_i32 = arith.constant 0 : i32
    %c0_i32_0 = arith.constant 0 : i32
    %c0_i32_1 = arith.constant 0 : i32
    return %c0_i32, %c0_i32_0 : i32, i32
  }
  func.func @transform_4(%arg0: i32, %arg1: i32, %arg2: i32) -> (i32, i32) {
    %c0_i32 = arith.constant 0 : i32
    %c0_i32_0 = arith.constant 0 : i32
    %c0_i32_1 = arith.constant 0 : i32
    return %c0_i32, %c0_i32_0 : i32, i32
  }
  func.func @transform_5(%arg0: i32, %arg1: i32, %arg2: i32) -> (i32, i32) {
    %c0_i32 = arith.constant 0 : i32
    %c0_i32_0 = arith.constant 0 : i32
    %c0_i32_1 = arith.constant 0 : i32
    return %c0_i32, %c0_i32_0 : i32, i32
  }
  func.func @transform_6(%arg0: i32, %arg1: i32, %arg2: i32) -> (i32, i32, i32) {
    %0 = arith.muli %arg2, %arg1 : i32
    %c0_i32 = arith.constant 0 : i32
    %c0_i32_0 = arith.constant 0 : i32
    return %arg0, %c0_i32, %0 : i32, i32, i32
  }
}

</mosaic_0001>

<bundles_post_ra>
// kernel: forward.10
= control target key start
LH: loop header
LB: loop body
LE: loop exit
PB: predicated region body
PF: predicated region fallthrough
CT: control target
= control target key end

     0   :  { %s736_s15 = smov 0   ;;  %s738_s16 = smov 0   ;;  %s811_s0 = inlined_call_operand.vmem [shape: bf16[3,96,128], index: 0, kind: input, shape index: {}]   ;;  %s812_s1 = inlined_call_operand.vmem [shape: bf16[16,96], index: 1, kind: input, shape index: {}]   ;;  %s813_s2 = inlined_call_operand.vmem [shape: f32[16,1], index: 2, kind: input, shape index: {}]   ;;  %s814_s3 = inlined_call_operand.vmem [shape: f32[16,1], index: 3, kind: input, shape index: {}]   ;;  %s815_s4 = inlined_call_operand.vmem [shape: f32[3,16,128], index: 4, kind: output, shape index: {}]  }
   0x1   :  { %s740_s17 = smov 0   ;;  %s742_s18 = smov 0  }
   0x2   :  { %s744_s19 = smov 0  }
   0x3 LB: > { %s29_s20 = sadd.s32 1, %s697_s17  ;;  %s33_s21 = sadd.s32 1, %s701_s18  ;;  %s705_s19 = sphi %s744_s19, %s14_s19   ;;  %s701_s18 = sphi %s742_s18, %s819_s18   ;;  %s697_s17 = sphi %s740_s17, %s818_s17   ;;  %s693_s16 = sphi %s738_s16, %s817_s16   ;;  %s689_s15 = sphi %s736_s15, %s816_s15  }
   0x4   : > { %p31_p0 = scmp.ge.s32.totalorder %s29_s20, 2  ;;  %p567_p1 = scmp.ge.s32.totalorder %s705_s19, 1 }
   0x5   : > { %p198_p2 = scmp.lt.s32.totalorder %s705_s19, 7 }
   0x6   : > { %s821_s20 = smov (%p31_p0, %s29_s20), 0  ;;  %s823_s21 = smov (!%p31_p0, %s33_s21), %s701_s18 }
   0x7   : > { %p199_p3 = pnand %p567_p1, %p198_p2  ;;  %p35_p4 = scmp.ge.s32.totalorder %s823_s21, 3 }
   0x8   : > { %p235_p5 = scmp.lt.s32.totalorder (!%p199_p3), %s693_s16, 2  ;;  %p257_p6 = scmp.eq.s32.totalorder (!%p199_p3), %s689_s15, 0 }
   0x9   : > { %s825_s21 = smov (%p35_p4, %s823_s21), 0  ;;  %202 = sbr.rel (%p199_p3) target bundleno = 563 (0x233), region = 36 }
   0xe   : > { %s827_s16 = smov (!%p235_p5, %s693_s16), 2  ;;  %262 = sbr.rel (!%p257_p6) target bundleno = 19 (0x13), region = 40  ;;  %vm263_vm0 = vcmask (%p257_p6), 7168   ;;  %v707_v0 = vmov (%p257_p6), 0.0  }
   0xf   : > { %s609_s22 = smul.u32 48, %s827_s16  ;;  %s584_s23 = sshll.u32 %s827_s16, 4  ;;  %264 = vst.msk [vmem:[#allocation3] sm:$0xff] (%p257_p6), %vm263_vm0, %v707_v0  ;;  %265 = vst.msk [vmem:[#allocation3 + $0x8] sm:$0xff] (%p257_p6), %vm263_vm0, %v707_v0 }
  0x10   : > { %s772_s26 = scalar_lea.vmem %s815_s4, %s584_s23  ;;  %266 = vst.msk [vmem:[#allocation4] sm:$0xff] (%p257_p6), %vm263_vm0, %v707_v0  ;;  %267 = vst.msk [vmem:[#allocation4 + $0x8] sm:$0xff] (%p257_p6), %vm263_vm0, %v707_v0 }
  0x11   : > { %s242_s29 = scalar_lea.vmem %s811_s0, %s609_s22 }
  0x13 PF: > { %p572_p7 = scmp.ne.s32.totalorder %s689_s15, 0 }
  0x15   : > { %270 = sbr.rel (%p572_p7) target bundleno = 391 (0x187), region = 44 }
  0x1a   : > { %v654_v1 = vld [vmem:[%s242_s29 + $0x28] sm:$0xff]   ;;  %v708_v2 = vmov 0.0   ;;  %v655_v3 = vld [vmem:[%s242_s29 + $0x20] sm:$0xff]   ;;  %vm709_vm1 = vmmov 0   ;;  %v656_v4 = vld [vmem:[%s242_s29 + $0x18] sm:$0xff]   ;;  %vm326_vm2 = vcmask 785408  }
  0x1b   : > { %593 = vmatprep.subr.bf16.mxu0 %v708_v2  ;;  %605 = vmatprep.mubr.msk.bf16.mxu0 %vm709_vm1, %v708_v2  ;;  %v657_v5 = vld [vmem:[%s242_s29 + $0x10] sm:$0xff]   ;;  %v658_v6 = vld [vmem:[%s242_s29 + $0x8] sm:$0xff]   ;;  %v659_v7 = vld [vmem:[%s242_s29] sm:$0xff]   ;;  %vm384_vm3 = vcmask 7168  }
  0x1c   : > { %594 = vmatpush3.bf16.msra.mxu0 %v654_v1  ;;  %v660_v8 = vld [vmem:[%s812_s1] sm:$0xff]   ;;  %v376_v15 = vld [vmem:[#allocation3] sm:$0xff]  ;;  %v377_v20 = vld [vmem:[#allocation3 + $0x8] sm:$0xff] }
  0x1d   : > { %595 = vmatprep.subr.bf16.mxu0 %v708_v2  ;;  %v387_v17 = vld [vmem:[#allocation4] sm:$0xff]  ;;  %v388_v23 = vld [vmem:[#allocation4 + $0x8] sm:$0xff] }
  0x20   : > { %596 = vmatpush3.bf16.msra.mxu0 %v655_v3 }
  0x21   : > { %597 = vmatprep.subr.bf16.mxu0 %v708_v2 }
  0x24   : > { %598 = vmatpush3.bf16.msra.mxu0 %v656_v4 }
  0x25   : > { %599 = vmatprep.subr.bf16.mxu0 %v708_v2 }
  0x28   : > { %600 = vmatpush3.bf16.msra.mxu0 %v657_v5 }
  0x29   : > { %601 = vmatprep.subr.bf16.mxu0 %v708_v2 }
  0x2c   : > { %602 = vmatpush3.bf16.msra.mxu0 %v658_v6 }
  0x2d   : > { %603 = vmatprep.subr.bf16.mxu0 %v708_v2 }
  0x30   : > { %604 = vmatpush3.bf16.msra.mxu0 %v659_v7 }
  0x33   : > { %606 = vmatmul.mubr.msk.bf16.vlgmr.msra.gmra.mxu0 %vm326_vm2, %v660_v8 }
  0xf3   : > { %v364_v9 = vpop.f32.mrf.mxu0 }
  0xf4   : > { %374 = vst [vmem:[#allocation2] sm:$0xff] %v364_v9  ;;  %378 = vadd.xlane.f32.xlu0 %v364_v9  ;;  %v389_v10 = vmul.f32 %v364_v9, %v364_v9 }
  0xf5   : > { %v607_v11 = vpop.f32.mrf.mxu0 }
  0xf6   : > { %391 = vadd.xlane.f32.xlu1 %v389_v10 }
  0xf7   : > { %v367_v12 = vpop.f32.mrf.mxu0 }
  0xf8   : > { %375 = vst [vmem:[#allocation2 + $0x8] sm:$0xff] %v367_v12  ;;  %380 = vadd.xlane.f32.xlu0 %v367_v12  ;;  %v390_v13 = vmul.f32 %v367_v12, %v367_v12 }
  0xf9   : > { %v608_v14 = vpop.f32.mrf.mxu0 }
  0xfa   : > { %393 = vadd.xlane.f32.xlu1 %v390_v13 }
 0x17d   : > { %v379_v16 = vpop.xlane.xlu0 %378 }
 0x17e   : > { %v382_v18 = vadd.f32 %v379_v16, %v376_v15 }
 0x17f   : > { %v392_v19 = vpop.xlane.xlu1 %391 }
 0x180   : > { %385 = vst.msk [vmem:[#allocation3] sm:$0xff] %vm384_vm3, %v382_v18  ;;  %v395_v21 = vadd.f32 %v392_v19, %v387_v17 }
 0x181   : > { %v381_v22 = vpop.xlane.xlu0 %380 }
 0x182   : > { %397 = vst.msk [vmem:[#allocation4] sm:$0xff] %vm384_vm3, %v395_v21  ;;  %v383_v24 = vadd.f32 %v381_v22, %v377_v20 }
 0x183   : > { %v394_v25 = vpop.xlane.xlu1 %393 }
 0x184   : > { %386 = vst.msk [vmem:[#allocation3 + $0x8] sm:$0xff] %vm384_vm3, %v383_v24  ;;  %v396_v26 = vadd.f32 %v394_v25, %v388_v23 }
 0x186   : > { %398 = vst.msk [vmem:[#allocation4 + $0x8] sm:$0xff] %vm384_vm3, %v396_v26 }
 0x187 PF: > { %p581_p8 = scmp.ne.s32.totalorder %s689_s15, 1 }
 0x189   : > { %402 = sbr.rel (%p581_p8) target bundleno = 563 (0x233), region = 48 }
 0x18e   : > { %v408_v27 = vld [vmem:[#allocation3] sm:$0xff]  ;;  %v412_v28 = vld [vmem:[#allocation4] sm:$0xff]  ;;  %v710_v29 = vmov 0   ;;  %v409_v32 = vld [vmem:[#allocation3 + $0x8] sm:$0xff] }
 0x18f   : > { %661 = vset.pattern.permute.xlu0 %v710_v29  ;;  %v410_v30 = vmul.f32 0.015625, %v408_v27  ;;  %v414_v31 = vmul.f32 0.015625, %v412_v28  ;;  %662 = vset.pattern.permute.xlu1 %v710_v29  ;;  %v413_v33 = vld [vmem:[#allocation4 + $0x8] sm:$0xff]  ;;  %v411_v34 = vmul.f32 0.015625, %v409_v32  ;;  %v422_v44 = vld [vmem:[%s813_s2] sm:$0xff] }
 0x190   : > { %v415_v35 = vmul.f32 0.015625, %v413_v33  ;;  %v423_v45 = vld [vmem:[%s813_s2 + $0x8] sm:$0xff]  ;;  %v430_v50 = vld [vmem:[%s814_s3] sm:$0xff] }
 0x191   : > { %v416_v36 = vmul.f32 %v410_v30, %v410_v30  ;;  %v417_v37 = vmul.f32 %v411_v34, %v411_v34  ;;  %v431_v52 = vld [vmem:[%s814_s3 + $0x8] sm:$0xff]  ;;  %v406_v56 = vld [vmem:[#allocation2] sm:$0xff] }
 0x192   : > { %v407_v60 = vld [vmem:[#allocation2 + $0x8] sm:$0xff] }
 0x193   : > { %v418_v38 = vsub.f32 %v414_v31, %v416_v36  ;;  %v419_v39 = vsub.f32 %v415_v35, %v417_v37 }
 0x195   : > { %v420_v40 = vmax.f32 %v418_v38, 0.0  ;;  %v421_v41 = vmax.f32 %v419_v39, 0.0 }
 0x197   : > { %v424_v42 = vadd.f32 1e-05, %v420_v40  ;;  %v425_v43 = vadd.f32 1e-05, %v421_v41 }
 0x199   : > { %663 = vrsqrt.f32 %v424_v42 }
 0x19a   : > { %665 = vrsqrt.f32 %v425_v43 }
 0x1a6   : > { %v664_v46 = vpop.eup %663 }
 0x1a7   : > { %v666_v47 = vpop.eup %665  ;;  %v428_v48 = vmul.f32 %v664_v46, %v422_v44 }
 0x1a8   : > { %v429_v49 = vmul.f32 %v666_v47, %v423_v45 }
 0x1a9   : > { %438 = vperm.xlu0 %661, %v428_v48   ;;  %v432_v51 = vmul.f32 %v428_v48, %v410_v30 }
 0x1aa   : > { %v433_v53 = vmul.f32 %v429_v49, %v411_v34 }
 0x1ab   : > { %v434_v54 = vsub.f32 %v430_v50, %v432_v51 }
 0x1ac   : > { %v435_v55 = vsub.f32 %v431_v52, %v433_v53 }
 0x1ad   : > { %443 = vperm.xlu0 %661, %v429_v49   ;;  %450 = vperm.xlu1 %662, %v434_v54  }
 0x1b1   : > { %455 = vperm.xlu1 %662, %v435_v55  }
 0x224   : > { %v439_v57 = vpop.permute.xlu0 %438 }
 0x225   : > { %v446_v58 = vmul.f32 %v439_v57, %v406_v56 }
 0x228   : > { %v444_v59 = vpop.permute.xlu0 %443  ;;  %v451_v61 = vpop.permute.xlu1 %450 }
 0x229   : > { %v458_v62 = vadd.f32 %v451_v61, %v446_v58  ;;  %v447_v63 = vmul.f32 %v444_v59, %v407_v60 }
 0x22b   : > { %vm460_vm4 = vcmp.ge.f32.partialorder %v458_v62, 0.0  ;;  %v462_v0 = vmul.f32 0.01, %v458_v62 }
 0x22c   : > { %v456_v1 = vpop.permute.xlu1 %455 }
 0x22d   : > { %v464_v2 = vsel %vm460_vm4, %v458_v62, %v462_v0  ;;  %v459_v3 = vadd.f32 %v456_v1, %v447_v63 }
 0x22e   : > { %466 = vst [vmem:[%s772_s26] sm:$0xff] %v464_v2 }
 0x22f   : > { %vm461_vm5 = vcmp.ge.f32.partialorder %v459_v3, 0.0  ;;  %v463_v4 = vmul.f32 0.01, %v459_v3 }
 0x231   : > { %v465_v5 = vsel %vm461_vm5, %v459_v3, %v463_v4 }
 0x232   : > { %467 = vst [vmem:[%s772_s26 + $0x8] sm:$0xff] %v465_v5 }
 0x233 PF: > { %s14_s19 = sadd.s32 1, %s705_s19   ;;  %s816_s15 = smov %s697_s17 }
 0x234   : > { %p11_p9 = scmp.ge.s32.totalorder %s14_s19, 8   ;;  %s817_s16 = smov %s701_s18 }
 0x235   : > { %s818_s17 = smov %s821_s20  ;;  %s819_s18 = smov %s825_s21 }
 0x236   :  { %13 = sbr.rel (!%p11_p9) target bundleno = 3 (0x3), region = 80 }

// kernel: forward.11
= control target key start
LH: loop header
LB: loop body
LE: loop exit
PB: predicated region body
PF: predicated region fallthrough
CT: control target
= control target key end

     0   :  { %s888_s15 = smov 0   ;;  %s890_s16 = smov 0   ;;  %s1005_s0 = inlined_call_operand.vmem [shape: bf16[3,144,128], index: 0, kind: input, shape index: {}]   ;;  %s1006_s1 = inlined_call_operand.vmem [shape: bf16[32,144], index: 1, kind: input, shape index: {}]   ;;  %s1007_s2 = inlined_call_operand.vmem [shape: f32[32,1], index: 2, kind: input, shape index: {}]   ;;  %s1008_s3 = inlined_call_operand.vmem [shape: f32[32,1], index: 3, kind: input, shape index: {}]   ;;  %s1009_s4 = inlined_call_operand.vmem [shape: f32[3,32,128], index: 4, kind: output, shape index: {}]  }
   0x1   :  { %s892_s17 = smov 0   ;;  %s894_s18 = smov 0  }
   0x2   :  { %s896_s19 = smov 0  }
   0x3 LB: > { %s29_s20 = sadd.s32 1, %s850_s17  ;;  %s33_s21 = sadd.s32 1, %s854_s18  ;;  %s858_s19 = sphi %s896_s19, %s14_s19   ;;  %s854_s18 = sphi %s894_s18, %s1013_s18   ;;  %s850_s17 = sphi %s892_s17, %s1012_s17   ;;  %s846_s16 = sphi %s890_s16, %s1011_s16   ;;  %s842_s15 = sphi %s888_s15, %s1010_s15  }
   0x4   : > { %p31_p0 = scmp.ge.s32.totalorder %s29_s20, 2  ;;  %p707_p1 = scmp.ge.s32.totalorder %s858_s19, 1 }
   0x5   : > { %p198_p2 = scmp.lt.s32.totalorder %s858_s19, 7 }
   0x6   : > { %s1015_s20 = smov (%p31_p0, %s29_s20), 0  ;;  %s1017_s21 = smov (!%p31_p0, %s33_s21), %s854_s18 }
   0x7   : > { %p199_p3 = pnand %p707_p1, %p198_p2  ;;  %p35_p4 = scmp.ge.s32.totalorder %s1017_s21, 3 }
   0x8   : > { %p235_p5 = scmp.lt.s32.totalorder (!%p199_p3), %s846_s16, 2  ;;  %p257_p6 = scmp.eq.s32.totalorder (!%p199_p3), %s842_s15, 0 }
   0x9   : > { %s1019_s21 = smov (%p35_p4, %s1017_s21), 0  ;;  %202 = sbr.rel (%p199_p3) target bundleno = 586 (0x24a), region = 36 }
   0xe   : > { %s1021_s16 = smov (!%p235_p5, %s846_s16), 2  ;;  %262 = sbr.rel (!%p257_p6) target bundleno = 19 (0x13), region = 40  ;;  %vm263_vm0 = vcmask (%p257_p6), 7168   ;;  %v860_v0 = vmov (%p257_p6), 0.0  }
   0xf   : > { %s751_s22 = smul.u32 72, %s1021_s16  ;;  %s731_s23 = sshll.u32 %s1021_s16, 5  ;;  %264 = vst.msk [vmem:[#allocation3] sm:$0xff] (%p257_p6), %vm263_vm0, %v860_v0  ;;  %265 = vst.msk [vmem:[#allocation3 + $0x8] sm:$0xff] (%p257_p6), %vm263_vm0, %v860_v0 }
  0x10   : > { %s924_s26 = scalar_lea.vmem %s1009_s4, %s731_s23  ;;  %266 = vst.msk [vmem:[#allocation3 + $0x10] sm:$0xff] (%p257_p6), %vm263_vm0, %v860_v0  ;;  %267 = vst.msk [vmem:[#allocation3 + $0x18] sm:$0xff] (%p257_p6), %vm263_vm0, %v860_v0 }
  0x11   : > { %s929_s29 = scalar_lea.vmem %s1005_s0, %s751_s22  ;;  %268 = vst.msk [vmem:[#allocation4] sm:$0xff] (%p257_p6), %vm263_vm0, %v860_v0  ;;  %269 = vst.msk [vmem:[#allocation4 + $0x8] sm:$0xff] (%p257_p6), %vm263_vm0, %v860_v0 }
  0x12   : > { %270 = vst.msk [vmem:[#allocation4 + $0x10] sm:$0xff] (%p257_p6), %vm263_vm0, %v860_v0  ;;  %271 = vst.msk [vmem:[#allocation4 + $0x18] sm:$0xff] (%p257_p6), %vm263_vm0, %v860_v0 }
  0x13 PF: > { %p712_p7 = scmp.ne.s32.totalorder %s842_s15, 0 }
  0x15   : > { %274 = sbr.rel (%p712_p7) target bundleno = 409 (0x199), region = 44 }
  0x1a   : > { %v795_v1 = vld [vmem:[%s929_s29 + $0x38] sm:$0xff]   ;;  %v861_v2 = vmov 0   ;;  %v796_v3 = vld [vmem:[%s929_s29 + $0x30] sm:$0xff]   ;;  %v797_v4 = vld [vmem:[%s929_s29 + $0x28] sm:$0xff]   ;;  %vm369_vm1 = vcmask 130048   ;;  %vm448_vm2 = vcmask 7168  }
  0x1b   : > { %376 = vmatprep.subr.bf16.mxu0 %v861_v2  ;;  %733 = vmatprep.subr.bf16.mxu1 %v861_v2  ;;  %v798_v5 = vld [vmem:[%s929_s29 + $0x20] sm:$0xff]   ;;  %v809_v7 = vld [vmem:[%s1006_s1 + $0x14] ss:$8 sps:$4 sm:$0xff]   ;;  %v801_v10 = vld [vmem:[%s929_s29 + $0x8] sm:$0xff]  }
  0x1c   : > { %377 = vmatpush1.bf16.msra.mxu0 %v795_v1  ;;  %742 = vmatpush1.bf16.msra.mxu1 %v795_v1  ;;  %v806_v6 = vld [vmem:[%s1006_s1 + $0x4] ss:$8 sps:$4 sm:$0xff]   ;;  %v799_v8 = vld [vmem:[%s929_s29 + $0x18] sm:$0xff]   ;;  %v800_v9 = vld [vmem:[%s929_s29 + $0x10] sm:$0xff]  }
  0x1d   : > { %378 = vmatprep.subr.bf16.mxu0 %v861_v2  ;;  %734 = vmatprep.subr.bf16.mxu1 %v861_v2  ;;  %v802_v11 = vld [vmem:[%s929_s29] sm:$0xff]   ;;  %v807_v14 = vld [vmem:[%s1006_s1 + $0x10] ss:$8 sps:$4 sm:$0xff]   ;;  %v433_v39 = vld [vmem:[#allocation3 + $0x8] sm:$0xff] }
  0x1e   : > { %726 = vmatprep.mubr.msk.bf16.mxu0 %vm369_vm1, %v806_v6  ;;  %727 = vmatprep.mubr.msk.bf16.mxu1 %vm369_vm1, %v809_v7  ;;  %v803_v12 = vld [vmem:[%s929_s29 + $0x40] sm:$0xff]   ;;  %v434_v27 = vld [vmem:[#allocation3 + $0x10] sm:$0xff]  ;;  %v435_v33 = vld [vmem:[#allocation3 + $0x18] sm:$0xff] }
  0x1f   : > { %v804_v13 = vld [vmem:[%s1006_s1] ss:$8 sps:$4 sm:$0xff]   ;;  %v455_v45 = vld [vmem:[#allocation4 + $0x10] sm:$0xff]  ;;  %v456_v46 = vld [vmem:[#allocation4 + $0x18] sm:$0xff] }
  0x20   : > { %379 = vmatpush1.bf16.msra.mxu0 %v796_v3  ;;  %743 = vmatpush1.bf16.msra.mxu1 %v796_v3  ;;  %v432_v28 = vld [vmem:[#allocation3] sm:$0xff]  ;;  %v454_v40 = vld [vmem:[#allocation4 + $0x8] sm:$0xff] }
  0x21   : > { %380 = vmatprep.subr.bf16.mxu0 %v861_v2  ;;  %735 = vmatprep.subr.bf16.mxu1 %v861_v2  ;;  %v453_v34 = vld [vmem:[#allocation4] sm:$0xff] }
  0x24   : > { %381 = vmatpush1.bf16.msra.mxu0 %v797_v4  ;;  %744 = vmatpush1.bf16.msra.mxu1 %v797_v4 }
  0x25   : > { %382 = vmatprep.subr.bf16.mxu0 %v861_v2  ;;  %736 = vmatprep.subr.bf16.mxu1 %v861_v2 }
  0x28   : > { %383 = vmatpush1.bf16.msra.mxu0 %v798_v5  ;;  %745 = vmatpush1.bf16.msra.mxu1 %v798_v5 }
  0x29   : > { %384 = vmatprep.subr.bf16.mxu0 %v861_v2  ;;  %737 = vmatprep.subr.bf16.mxu1 %v861_v2 }
  0x2c   : > { %385 = vmatpush1.bf16.msra.mxu0 %v799_v8  ;;  %746 = vmatpush1.bf16.msra.mxu1 %v799_v8 }
  0x2d   : > { %386 = vmatprep.subr.bf16.mxu0 %v861_v2  ;;  %738 = vmatprep.subr.bf16.mxu1 %v861_v2 }
  0x30   : > { %387 = vmatpush1.bf16.msra.mxu0 %v800_v9  ;;  %747 = vmatpush1.bf16.msra.mxu1 %v800_v9 }
  0x31   : > { %388 = vmatprep.subr.bf16.mxu0 %v861_v2  ;;  %739 = vmatprep.subr.bf16.mxu1 %v861_v2 }
  0x34   : > { %389 = vmatpush1.bf16.msra.mxu0 %v801_v10  ;;  %748 = vmatpush1.bf16.msra.mxu1 %v801_v10 }
  0x35   : > { %390 = vmatprep.subr.bf16.mxu0 %v861_v2  ;;  %740 = vmatprep.subr.bf16.mxu1 %v861_v2 }
  0x38   : > { %391 = vmatpush1.bf16.msra.mxu0 %v802_v11  ;;  %749 = vmatpush1.bf16.msra.mxu1 %v802_v11 }
  0x39   : > { %406 = vmatprep.subr.bf16.mxu0 %v861_v2  ;;  %741 = vmatprep.subr.bf16.mxu1 %v861_v2 }
  0x3c   : > { %407 = vmatpush2.bf16.msra.mxu0 %v803_v12  ;;  %750 = vmatpush2.bf16.msra.mxu1 %v803_v12 }
  0x3f   : > { %409 = vmatmul.mubr.bf16.vlgmr.msra.gmra.mxu0 %v804_v13  ;;  %417 = vmatmul.mubr.bf16.vlgmr.msra.gmra.mxu1 %v807_v14 }
  0xff   : > { %v410_v15 = vpop.f32.mrf.mxu0  ;;  %v418_v16 = vpop.f32.mrf.mxu1 }
 0x100   : > { %428 = vst [vmem:[#allocation2 + $0x10] sm:$0xff] %v410_v15  ;;  %430 = vst [vmem:[#allocation2 + $0x18] sm:$0xff] %v418_v16  ;;  %440 = vadd.xlane.f32.xlu1 %v418_v16  ;;  %436 = vadd.xlane.f32.xlu0 %v410_v15  ;;  %v457_v19 = vmul.f32 %v410_v15, %v410_v15  ;;  %v459_v25 = vmul.f32 %v418_v16, %v418_v16 }
 0x101   : > { %v412_v17 = vpop.f32.mrf.mxu0  ;;  %v420_v18 = vpop.f32.mrf.mxu1 }
 0x103   : > { %v413_v20 = vpop.f32.mrf.mxu0  ;;  %v421_v21 = vpop.f32.mrf.mxu1 }
 0x104   : > { %429 = vst [vmem:[#allocation2] sm:$0xff] %v413_v20  ;;  %431 = vst [vmem:[#allocation2 + $0x8] sm:$0xff] %v421_v21  ;;  %442 = vadd.xlane.f32.xlu1 %v421_v21  ;;  %461 = vadd.xlane.f32.xlu0 %v457_v19  ;;  %v458_v24 = vmul.f32 %v413_v20, %v413_v20  ;;  %v460_v26 = vmul.f32 %v421_v21, %v421_v21 }
 0x105   : > { %v415_v22 = vpop.f32.mrf.mxu0  ;;  %v423_v23 = vpop.f32.mrf.mxu1 }
 0x108   : > { %438 = vadd.xlane.f32.xlu0 %v413_v20  ;;  %463 = vadd.xlane.f32.xlu1 %v458_v24 }
 0x10c   : > { %465 = vadd.xlane.f32.xlu0 %v459_v25  ;;  %467 = vadd.xlane.f32.xlu1 %v460_v26 }
 0x189   : > { %v441_v29 = vpop.xlane.xlu1 %440  ;;  %v437_v30 = vpop.xlane.xlu0 %436 }
 0x18a   : > { %v446_v31 = vadd.f32 %v441_v29, %v434_v27  ;;  %v444_v32 = vadd.f32 %v437_v30, %v432_v28 }
 0x18c   : > { %451 = vst.msk [vmem:[#allocation3 + $0x10] sm:$0xff] %vm448_vm2, %v446_v31  ;;  %449 = vst.msk [vmem:[#allocation3] sm:$0xff] %vm448_vm2, %v444_v32 }
 0x18d   : > { %v443_v35 = vpop.xlane.xlu1 %442  ;;  %v462_v36 = vpop.xlane.xlu0 %461 }
 0x18e   : > { %v447_v37 = vadd.f32 %v443_v35, %v435_v33  ;;  %v469_v38 = vadd.f32 %v462_v36, %v453_v34 }
 0x190   : > { %452 = vst.msk [vmem:[#allocation3 + $0x18] sm:$0xff] %vm448_vm2, %v447_v37  ;;  %473 = vst.msk [vmem:[#allocation4] sm:$0xff] %vm448_vm2, %v469_v38 }
 0x191   : > { %v439_v41 = vpop.xlane.xlu0 %438  ;;  %v464_v42 = vpop.xlane.xlu1 %463 }
 0x192   : > { %v445_v43 = vadd.f32 %v439_v41, %v433_v39  ;;  %v470_v44 = vadd.f32 %v464_v42, %v454_v40 }
 0x194   : > { %450 = vst.msk [vmem:[#allocation3 + $0x8] sm:$0xff] %vm448_vm2, %v445_v43  ;;  %474 = vst.msk [vmem:[#allocation4 + $0x8] sm:$0xff] %vm448_vm2, %v470_v44 }
 0x195   : > { %v466_v47 = vpop.xlane.xlu0 %465  ;;  %v468_v48 = vpop.xlane.xlu1 %467 }
 0x196   : > { %v471_v49 = vadd.f32 %v466_v47, %v455_v45  ;;  %v472_v50 = vadd.f32 %v468_v48, %v456_v46 }
 0x198   : > { %475 = vst.msk [vmem:[#allocation4 + $0x10] sm:$0xff] %vm448_vm2, %v471_v49  ;;  %476 = vst.msk [vmem:[#allocation4 + $0x18] sm:$0xff] %vm448_vm2, %v472_v50 }
 0x199 PF: > { %p728_p8 = scmp.ne.s32.totalorder %s842_s15, 1 }
 0x19b   : > { %480 = sbr.rel (%p728_p8) target bundleno = 586 (0x24a), region = 48 }
 0x1a0   : > { %v490_v51 = vld [vmem:[#allocation3 + $0x10] sm:$0xff]  ;;  %v862_v53 = vmov 0   ;;  %v488_v56 = vld [vmem:[#allocation3] sm:$0xff]  ;;  %v491_v60 = vld [vmem:[#allocation3 + $0x18] sm:$0xff] }
 0x1a1   : > { %v498_v52 = vld [vmem:[#allocation4 + $0x10] sm:$0xff]  ;;  %811 = vset.pattern.permute.xlu1 %v862_v53  ;;  %810 = vset.pattern.permute.xlu0 %v862_v53  ;;  %v494_v54 = vmul.f32 0.015625, %v490_v51  ;;  %v496_v57 = vld [vmem:[#allocation4] sm:$0xff]  ;;  %v492_v58 = vmul.f32 0.015625, %v488_v56  ;;  %v499_v61 = vld [vmem:[#allocation4 + $0x18] sm:$0xff]  ;;  %v495_v63 = vmul.f32 0.015625, %v491_v60 }
 0x1a2   : > { %v502_v55 = vmul.f32 0.015625, %v498_v52  ;;  %v500_v59 = vmul.f32 0.015625, %v496_v57  ;;  %v503_v0 = vmul.f32 0.015625, %v499_v61  ;;  %v489_v1 = vld [vmem:[#allocation3 + $0x8] sm:$0xff]  ;;  %v518_v20 = vld [vmem:[%s1007_s2 + $0x10] sm:$0xff]  ;;  %v516_v21 = vld [vmem:[%s1007_s2] sm:$0xff] }
 0x1a3   : > { %v506_v62 = vmul.f32 %v494_v54, %v494_v54  ;;  %v497_v2 = vld [vmem:[#allocation4 + $0x8] sm:$0xff]  ;;  %v504_v3 = vmul.f32 %v492_v58, %v492_v58  ;;  %v493_v4 = vmul.f32 0.015625, %v489_v1  ;;  %v507_v7 = vmul.f32 %v495_v63, %v495_v63  ;;  %v519_v23 = vld [vmem:[%s1007_s2 + $0x18] sm:$0xff]  ;;  %v532_v34 = vld [vmem:[%s1008_s3] sm:$0xff] }
 0x1a4   : > { %v501_v5 = vmul.f32 0.015625, %v497_v2  ;;  %v517_v26 = vld [vmem:[%s1007_s2 + $0x8] sm:$0xff]  ;;  %v535_v40 = vld [vmem:[%s1008_s3 + $0x18] sm:$0xff]  ;;  %v534_v41 = vld [vmem:[%s1008_s3 + $0x10] sm:$0xff] }
 0x1a5   : > { %v510_v6 = vsub.f32 %v502_v55, %v506_v62  ;;  %v508_v8 = vsub.f32 %v500_v59, %v504_v3  ;;  %v505_v9 = vmul.f32 %v493_v4, %v493_v4  ;;  %v511_v11 = vsub.f32 %v503_v0, %v507_v7  ;;  %v533_v33 = vld [vmem:[%s1008_s3 + $0x8] sm:$0xff]  ;;  %v485_v47 = vld [vmem:[#allocation2] sm:$0xff]  ;;  %v484_v48 = vld [vmem:[#allocation2 + $0x10] sm:$0xff] }
 0x1a6   : > { %v487_v52 = vld [vmem:[#allocation2 + $0x8] sm:$0xff] }
 0x1a7   : > { %v514_v10 = vmax.f32 %v510_v6, 0.0  ;;  %v512_v12 = vmax.f32 %v508_v8, 0.0  ;;  %v509_v13 = vsub.f32 %v501_v5, %v505_v9  ;;  %v515_v15 = vmax.f32 %v511_v11, 0.0 }
 0x1a9   : > { %v522_v14 = vadd.f32 1e-05, %v514_v10  ;;  %v520_v16 = vadd.f32 1e-05, %v512_v12  ;;  %v513_v17 = vmax.f32 %v509_v13, 0.0 }
 0x1aa   : > { %v523_v18 = vadd.f32 1e-05, %v515_v15 }
 0x1ab   : > { %812 = vrsqrt.f32 %v522_v14  ;;  %v521_v19 = vadd.f32 1e-05, %v513_v17 }
 0x1ac   : > { %814 = vrsqrt.f32 %v520_v16 }
 0x1ad   : > { %816 = vrsqrt.f32 %v523_v18 }
 0x1ae   : > { %818 = vrsqrt.f32 %v521_v19 }
 0x1b8   : > { %v813_v22 = vpop.eup %812 }
 0x1b9   : > { %v815_v24 = vpop.eup %814  ;;  %v530_v25 = vmul.f32 %v813_v22, %v518_v20 }
 0x1ba   : > { %v817_v27 = vpop.eup %816  ;;  %v528_v28 = vmul.f32 %v815_v24, %v516_v21 }
 0x1bb   : > { %v819_v29 = vpop.eup %818  ;;  %556 = vperm.xlu1 %811, %v530_v25   ;;  %v531_v30 = vmul.f32 %v817_v27, %v519_v23  ;;  %v538_v37 = vmul.f32 %v530_v25, %v494_v54  ;;  %v486_v54 = vld [vmem:[#allocation2 + $0x18] sm:$0xff] }
 0x1bc   : > { %546 = vperm.xlu0 %810, %v528_v28   ;;  %v536_v31 = vmul.f32 %v528_v28, %v492_v58  ;;  %v529_v32 = vmul.f32 %v819_v29, %v517_v26 }
 0x1bd   : > { %v539_v36 = vmul.f32 %v531_v30, %v495_v63  ;;  %v542_v43 = vsub.f32 %v534_v41, %v538_v37 }
 0x1be   : > { %v537_v35 = vmul.f32 %v529_v32, %v493_v4  ;;  %v540_v39 = vsub.f32 %v532_v34, %v536_v31 }
 0x1bf   : > { %561 = vperm.xlu1 %811, %v531_v30   ;;  %v543_v42 = vsub.f32 %v535_v40, %v539_v36 }
 0x1c0   : > { %551 = vperm.xlu0 %810, %v529_v32   ;;  %v541_v38 = vsub.f32 %v533_v33, %v537_v35 }
 0x1c3   : > { %575 = vperm.xlu1 %811, %v541_v38  }
 0x1c4   : > { %570 = vperm.xlu0 %810, %v540_v39  }
 0x1c7   : > { %585 = vperm.xlu1 %811, %v543_v42  }
 0x1c8   : > { %580 = vperm.xlu0 %810, %v542_v43  }
 0x236   : > { %v557_v44 = vpop.permute.xlu1 %556 }
 0x237   : > { %v547_v45 = vpop.permute.xlu0 %546  ;;  %v566_v60 = vmul.f32 %v557_v44, %v486_v54 }
 0x238   : > { %v564_v51 = vmul.f32 %v547_v45, %v484_v48 }
 0x23a   : > { %v562_v46 = vpop.permute.xlu1 %561 }
 0x23b   : > { %v552_v49 = vpop.permute.xlu0 %551  ;;  %v567_v58 = vmul.f32 %v562_v46, %v487_v52 }
 0x23c   : > { %v565_v50 = vmul.f32 %v552_v49, %v485_v47 }
 0x23e   : > { %v576_v53 = vpop.permute.xlu1 %575 }
 0x23f   : > { %v589_v55 = vadd.f32 %v576_v53, %v565_v50  ;;  %v571_v56 = vpop.permute.xlu0 %570 }
 0x240   : > { %v588_v57 = vadd.f32 %v571_v56, %v564_v51 }
 0x241   : > { %vm593_vm3 = vcmp.ge.f32.partialorder %v589_v55, 0.0  ;;  %v597_v59 = vmul.f32 0.01, %v589_v55 }
 0x242   : > { %vm592_vm4 = vcmp.ge.f32.partialorder %v588_v57, 0.0  ;;  %v596_v61 = vmul.f32 0.01, %v588_v57  ;;  %v586_v62 = vpop.permute.xlu1 %585 }
 0x243   : > { %v601_v63 = vsel %vm593_vm3, %v589_v55, %v597_v59  ;;  %v591_v0 = vadd.f32 %v586_v62, %v567_v58  ;;  %v581_v1 = vpop.permute.xlu0 %580 }
 0x244   : > { %605 = vst [vmem:[%s924_s26 + $0x8] sm:$0xff] %v601_v63  ;;  %v600_v2 = vsel %vm592_vm4, %v588_v57, %v596_v61  ;;  %v590_v3 = vadd.f32 %v581_v1, %v566_v60 }
 0x245   : > { %604 = vst [vmem:[%s924_s26] sm:$0xff] %v600_v2  ;;  %vm595_vm5 = vcmp.ge.f32.partialorder %v591_v0, 0.0  ;;  %v599_v4 = vmul.f32 0.01, %v591_v0 }
 0x246   : > { %vm594_vm6 = vcmp.ge.f32.partialorder %v590_v3, 0.0  ;;  %v598_v5 = vmul.f32 0.01, %v590_v3 }
 0x247   : > { %v603_v6 = vsel %vm595_vm5, %v591_v0, %v599_v4 }
 0x248   : > { %607 = vst [vmem:[%s924_s26 + $0x18] sm:$0xff] %v603_v6  ;;  %v602_v7 = vsel %vm594_vm6, %v590_v3, %v598_v5 }
 0x249   : > { %606 = vst [vmem:[%s924_s26 + $0x10] sm:$0xff] %v602_v7 }
 0x24a PF: > { %s14_s19 = sadd.s32 1, %s858_s19   ;;  %s1010_s15 = smov %s850_s17 }
 0x24b   : > { %p11_p9 = scmp.ge.s32.totalorder %s14_s19, 8   ;;  %s1011_s16 = smov %s854_s18 }
 0x24c   : > { %s1012_s17 = smov %s1015_s20  ;;  %s1013_s18 = smov %s1019_s21 }
 0x24d   :  { %13 = sbr.rel (!%p11_p9) target bundleno = 3 (0x3), region = 80 }

// kernel: forward.12
= control target key start
LH: loop header
LB: loop body
LE: loop exit
PB: predicated region body
PF: predicated region fallthrough
CT: control target
= control target key end

     0   :  { %s1067_s15 = smov 0   ;;  %s1069_s16 = smov 0   ;;  %s1199_s0 = inlined_call_operand.vmem [shape: bf16[3,288,128], index: 0, kind: input, shape index: {}]   ;;  %s1200_s1 = inlined_call_operand.vmem [shape: bf16[32,288], index: 1, kind: input, shape index: {}]   ;;  %s1201_s2 = inlined_call_operand.vmem [shape: f32[32,1], index: 2, kind: input, shape index: {}]   ;;  %s1202_s3 = inlined_call_operand.vmem [shape: f32[32,1], index: 3, kind: input, shape index: {}]   ;;  %s1203_s4 = inlined_call_operand.vmem [shape: f32[3,32,128], index: 4, kind: output, shape index: {}]  }
   0x1   :  { %s1071_s17 = smov 0   ;;  %s1073_s18 = smov 0  }
   0x2   :  { %s1075_s19 = smov 0  }
   0x3 LB: > { %s29_s20 = sadd.s32 1, %s1030_s17  ;;  %s33_s21 = sadd.s32 1, %s1034_s18  ;;  %s1038_s19 = sphi %s1075_s19, %s14_s19   ;;  %s1034_s18 = sphi %s1073_s18, %s1207_s18   ;;  %s1030_s17 = sphi %s1071_s17, %s1206_s17   ;;  %s1026_s16 = sphi %s1069_s16, %s1205_s16   ;;  %s1022_s15 = sphi %s1067_s15, %s1204_s15  }
   0x4   : > { %p31_p0 = scmp.ge.s32.totalorder %s29_s20, 2  ;;  %p844_p1 = scmp.ge.s32.totalorder %s1038_s19, 1 }
   0x5   : > { %p198_p2 = scmp.lt.s32.totalorder %s1038_s19, 7 }
   0x6   : > { %s1209_s20 = smov (%p31_p0, %s29_s20), 0  ;;  %s1211_s21 = smov (!%p31_p0, %s33_s21), %s1034_s18 }
   0x7   : > { %p199_p3 = pnand %p844_p1, %p198_p2  ;;  %p35_p4 = scmp.ge.s32.totalorder %s1211_s21, 3 }
   0x8   : > { %p235_p5 = scmp.lt.s32.totalorder (!%p199_p3), %s1026_s16, 2  ;;  %p257_p6 = scmp.eq.s32.totalorder (!%p199_p3), %s1022_s15, 0 }
   0x9   : > { %s1213_s21 = smov (%p35_p4, %s1211_s21), 0  ;;  %202 = sbr.rel (%p199_p3) target bundleno = 594 (0x252), region = 36 }
   0xe   : > { %s1215_s16 = smov (!%p235_p5, %s1026_s16), 2  ;;  %262 = sbr.rel (!%p257_p6) target bundleno = 19 (0x13), region = 40  ;;  %vm263_vm0 = vcmask (%p257_p6), 7168   ;;  %v1040_v0 = vmov (%p257_p6), 0.0  }
   0xf   : > { %s921_s22 = smul.u32 144, %s1215_s16  ;;  %s879_s23 = sshll.u32 %s1215_s16, 5  ;;  %264 = vst.msk [vmem:[#allocation3] sm:$0xff] (%p257_p6), %vm263_vm0, %v1040_v0  ;;  %265 = vst.msk [vmem:[#allocation3 + $0x8] sm:$0xff] (%p257_p6), %vm263_vm0, %v1040_v0 }
  0x10   : > { %s1103_s26 = scalar_lea.vmem %s1203_s4, %s879_s23  ;;  %266 = vst.msk [vmem:[#allocation3 + $0x10] sm:$0xff] (%p257_p6), %vm263_vm0, %v1040_v0  ;;  %267 = vst.msk [vmem:[#allocation3 + $0x18] sm:$0xff] (%p257_p6), %vm263_vm0, %v1040_v0 }
  0x11   : > { %s1108_s29 = scalar_lea.vmem %s1199_s0, %s921_s22  ;;  %268 = vst.msk [vmem:[#allocation4] sm:$0xff] (%p257_p6), %vm263_vm0, %v1040_v0  ;;  %269 = vst.msk [vmem:[#allocation4 + $0x8] sm:$0xff] (%p257_p6), %vm263_vm0, %v1040_v0 }
  0x12   : > { %270 = vst.msk [vmem:[#allocation4 + $0x10] sm:$0xff] (%p257_p6), %vm263_vm0, %v1040_v0  ;;  %271 = vst.msk [vmem:[#allocation4 + $0x18] sm:$0xff] (%p257_p6), %vm263_vm0, %v1040_v0 }
  0x13 PF: > { %p849_p7 = scmp.ne.s32.totalorder %s1022_s15, 0 }
  0x15   : > { %274 = sbr.rel (%p849_p7) target bundleno = 417 (0x1a1), region = 44 }
  0x1a   : > { %v964_v1 = vld [vmem:[%s1108_s29 + $0x78] sm:$0xff]   ;;  %v966_v3 = vld [vmem:[%s1108_s29 + $0x70] sm:$0xff]   ;;  %v968_v5 = vld [vmem:[%s1108_s29 + $0x68] sm:$0xff]   ;;  %vm457_vm1 = vcmask 261120   ;;  %vm585_vm2 = vcmask 7168  }
  0x1b   : > { %v965_v2 = vld [vmem:[%s1108_s29 + $0x38] sm:$0xff]   ;;  %881 = vmatprep.subr.bf16.mxu0 %v964_v1  ;;  %v967_v4 = vld [vmem:[%s1108_s29 + $0x30] sm:$0xff]   ;;  %v969_v6 = vld [vmem:[%s1108_s29 + $0x28] sm:$0xff]  }
  0x1c   : > { %882 = vmatpush3.bf16.msra.mxu0 %v965_v2  ;;  %v970_v7 = vld [vmem:[%s1108_s29 + $0x60] sm:$0xff]   ;;  %v975_v9 = vld [vmem:[%s1108_s29 + $0x88] sm:$0xff]   ;;  %v972_v10 = vld [vmem:[%s1108_s29 + $0x58] sm:$0xff]  }
  0x1d   : > { %883 = vmatprep.subr.bf16.mxu0 %v966_v3  ;;  %v971_v8 = vld [vmem:[%s1108_s29 + $0x20] sm:$0xff]   ;;  %v973_v11 = vld [vmem:[%s1108_s29 + $0x18] sm:$0xff]   ;;  %913 = vmatprep.subr.bf16.mxu1 %v975_v9  ;;  %v974_v13 = vld [vmem:[%s1108_s29 + $0x50] sm:$0xff]  }
  0x1e   : > { %914 = vmatpush3.bf16.msra.mxu1 %v975_v9  ;;  %v978_v12 = vld [vmem:[%s1108_s29 + $0x80] sm:$0xff]   ;;  %v980_v14 = vld [vmem:[%s1200_s1 + $0x8] ss:$12 sps:$4 sm:$0xff]   ;;  %v572_v2 = vld [vmem:[#allocation3 + $0x18] sm:$0xff] }
  0x1f   : > { %915 = vmatprep.subr.bf16.mxu1 %v978_v12  ;;  %917 = vmatprep.mubr.msk.bf16.mxu1 %vm457_vm1, %v980_v14  ;;  %v982_v15 = vld [vmem:[%s1200_s1 + $0x20] ss:$12 sps:$4 sm:$0xff]   ;;  %v976_v16 = vld [vmem:[%s1108_s29 + $0x10] sm:$0xff]   ;;  %v987_v23 = vld [vmem:[%s1200_s1 + $0x1c] ss:$12 sps:$4 sm:$0xff]  }
  0x20   : > { %884 = vmatpush3.bf16.msra.mxu0 %v967_v4  ;;  %v977_v17 = vld [vmem:[%s1108_s29 + $0x48] sm:$0xff]   ;;  %v986_v18 = vld [vmem:[%s1200_s1 + $0x4] ss:$12 sps:$4 sm:$0xff]  }
  0x21   : > { %885 = vmatprep.subr.bf16.mxu0 %v968_v5  ;;  %v979_v19 = vld [vmem:[%s1108_s29 + $0x8] sm:$0xff]   ;;  %496 = vmatprep.mubr.bf16.mxu0 %v986_v18  ;;  %v981_v20 = vld [vmem:[%s1108_s29 + $0x40] sm:$0xff]   ;;  %v571_v60 = vld [vmem:[#allocation3 + $0x10] sm:$0xff] }
  0x22   : > { %916 = vmatpush3.bf16.msra.mxu1 %v978_v12  ;;  %v983_v21 = vld [vmem:[%s1108_s29] sm:$0xff]   ;;  %v591_v54 = vld [vmem:[#allocation4 + $0x8] sm:$0xff]  ;;  %v592_v63 = vld [vmem:[#allocation4 + $0x10] sm:$0xff] }
  0x23   : > { %v984_v22 = vld [vmem:[%s1200_s1] ss:$12 sps:$4 sm:$0xff]   ;;  %v989_v24 = vld [vmem:[%s1200_s1 + $0x18] ss:$12 sps:$4 sm:$0xff]  }
  0x24   : > { %886 = vmatpush3.bf16.msra.mxu0 %v969_v6  ;;  %v569_v49 = vld [vmem:[#allocation3] sm:$0xff]  ;;  %v570_v57 = vld [vmem:[#allocation3 + $0x8] sm:$0xff]  ;;  %v593_v6 = vld [vmem:[#allocation4 + $0x18] sm:$0xff] }
  0x25   : > { %887 = vmatprep.subr.bf16.mxu0 %v970_v7  ;;  %918 = vmatmul.mubr.msk.bf16.vlgmr.msra.gmra.mxu1 %vm457_vm1, %v982_v15  ;;  %v590_v52 = vld [vmem:[#allocation4] sm:$0xff] }
  0x28   : > { %888 = vmatpush3.bf16.msra.mxu0 %v971_v8 }
  0x29   : > { %889 = vmatprep.subr.bf16.mxu0 %v972_v10 }
  0x2c   : > { %890 = vmatpush3.bf16.msra.mxu0 %v973_v11 }
  0x2d   : > { %891 = vmatprep.subr.bf16.mxu0 %v974_v13 }
  0x30   : > { %892 = vmatpush3.bf16.msra.mxu0 %v976_v16 }
  0x31   : > { %893 = vmatprep.subr.bf16.mxu0 %v977_v17 }
  0x34   : > { %894 = vmatpush3.bf16.msra.mxu0 %v979_v19 }
  0x35   : > { %895 = vmatprep.subr.bf16.mxu0 %v981_v20 }
  0x38   : > { %896 = vmatpush3.bf16.msra.mxu0 %v983_v21 }
  0x3b   : > { %497 = vmatmul.mubr.bf16.vlgmr.msra.gmra.mxu0 %v984_v22 }
  0x3c   : > { %504 = vmatprep.mubr.bf16.mxu0 %v987_v23 }
  0x43   : > { %505 = vmatmul.mubr.bf16.gmra.mxu0 %v989_v24 }
  0xe5   : > { %v919_v25 = vpop.f32.mrf.mxu1 }
  0xe7   : > { %v547_v26 = vpop.f32.mrf.mxu1 }
  0xe9   : > { %v920_v30 = vpop.f32.mrf.mxu1 }
  0xeb   : > { %v550_v35 = vpop.f32.mrf.mxu1 }
  0xfb   : > { %v897_v27 = vpop.f32.mrf.mxu0 }
  0xfd   : > { %v898_v28 = vpop.f32.mrf.mxu0 }
  0xfe   : > { %v899_v29 = vadd.f32 %v898_v28, %v897_v27 }
  0xff   : > { %v900_v31 = vpop.f32.mrf.mxu0 }
 0x100   : > { %v548_v32 = vadd.f32 %v899_v29, %v547_v26 }
 0x101   : > { %v901_v33 = vpop.f32.mrf.mxu0 }
 0x102   : > { %565 = vst [vmem:[#allocation2 + $0x10] sm:$0xff] %v548_v32  ;;  %v902_v34 = vadd.f32 %v901_v33, %v900_v31  ;;  %573 = vadd.xlane.f32.xlu0 %v548_v32  ;;  %v594_v38 = vmul.f32 %v548_v32, %v548_v32 }
 0x103   : > { %v903_v36 = vpop.f32.mrf.mxu0 }
 0x104   : > { %v551_v37 = vadd.f32 %v902_v34, %v550_v35 }
 0x105   : > { %v904_v39 = vpop.f32.mrf.mxu0 }
 0x106   : > { %566 = vst [vmem:[#allocation2] sm:$0xff] %v551_v37  ;;  %v905_v40 = vadd.f32 %v904_v39, %v903_v36  ;;  %598 = vadd.xlane.f32.xlu0 %v594_v38  ;;  %v595_v41 = vmul.f32 %v551_v37, %v551_v37 }
 0x107   : > { %v906_v42 = vpop.f32.mrf.mxu0 }
 0x108   : > { %v556_v43 = vadd.f32 %v919_v25, %v905_v40  ;;  %600 = vadd.xlane.f32.xlu1 %v595_v41 }
 0x109   : > { %v907_v44 = vpop.f32.mrf.mxu0 }
 0x10a   : > { %567 = vst [vmem:[#allocation2 + $0x18] sm:$0xff] %v556_v43  ;;  %v908_v45 = vadd.f32 %v907_v44, %v906_v42  ;;  %575 = vadd.xlane.f32.xlu0 %v551_v37  ;;  %v596_v47 = vmul.f32 %v556_v43, %v556_v43 }
 0x10c   : > { %v559_v46 = vadd.f32 %v920_v30, %v908_v45  ;;  %577 = vadd.xlane.f32.xlu1 %v556_v43 }
 0x10e   : > { %568 = vst [vmem:[#allocation2 + $0x8] sm:$0xff] %v559_v46  ;;  %602 = vadd.xlane.f32.xlu0 %v596_v47  ;;  %v597_v48 = vmul.f32 %v559_v46, %v559_v46 }
 0x110   : > { %579 = vadd.xlane.f32.xlu1 %v559_v46 }
 0x114   : > { %604 = vadd.xlane.f32.xlu1 %v597_v48 }
 0x18b   : > { %v574_v50 = vpop.xlane.xlu0 %573 }
 0x18c   : > { %v581_v51 = vadd.f32 %v574_v50, %v569_v49 }
 0x18e   : > { %586 = vst.msk [vmem:[#allocation3] sm:$0xff] %vm585_vm2, %v581_v51 }
 0x18f   : > { %v599_v53 = vpop.xlane.xlu0 %598 }
 0x190   : > { %v606_v55 = vadd.f32 %v599_v53, %v590_v52 }
 0x191   : > { %v601_v56 = vpop.xlane.xlu1 %600 }
 0x192   : > { %610 = vst.msk [vmem:[#allocation4] sm:$0xff] %vm585_vm2, %v606_v55  ;;  %v607_v58 = vadd.f32 %v601_v56, %v591_v54 }
 0x193   : > { %v576_v59 = vpop.xlane.xlu0 %575 }
 0x194   : > { %611 = vst.msk [vmem:[#allocation4 + $0x8] sm:$0xff] %vm585_vm2, %v607_v58  ;;  %v582_v61 = vadd.f32 %v576_v59, %v570_v57 }
 0x195   : > { %v578_v62 = vpop.xlane.xlu1 %577 }
 0x196   : > { %587 = vst.msk [vmem:[#allocation3 + $0x8] sm:$0xff] %vm585_vm2, %v582_v61  ;;  %v583_v0 = vadd.f32 %v578_v62, %v571_v60 }
 0x197   : > { %v603_v1 = vpop.xlane.xlu0 %602 }
 0x198   : > { %588 = vst.msk [vmem:[#allocation3 + $0x10] sm:$0xff] %vm585_vm2, %v583_v0  ;;  %v608_v3 = vadd.f32 %v603_v1, %v592_v63 }
 0x199   : > { %v580_v4 = vpop.xlane.xlu1 %579 }
 0x19a   : > { %612 = vst.msk [vmem:[#allocation4 + $0x10] sm:$0xff] %vm585_vm2, %v608_v3  ;;  %v584_v5 = vadd.f32 %v580_v4, %v572_v2 }
 0x19c   : > { %589 = vst.msk [vmem:[#allocation3 + $0x18] sm:$0xff] %vm585_vm2, %v584_v5 }
 0x19d   : > { %v605_v7 = vpop.xlane.xlu1 %604 }
 0x19e   : > { %v609_v8 = vadd.f32 %v605_v7, %v593_v6 }
 0x1a0   : > { %613 = vst.msk [vmem:[#allocation4 + $0x18] sm:$0xff] %vm585_vm2, %v609_v8 }
 0x1a1 PF: > { %p876_p8 = scmp.ne.s32.totalorder %s1022_s15, 1 }
 0x1a3   : > { %617 = sbr.rel (%p876_p8) target bundleno = 594 (0x252), region = 48 }
 0x1a8   : > { %v627_v9 = vld [vmem:[#allocation3 + $0x10] sm:$0xff]  ;;  %v1041_v11 = vmov 0   ;;  %v625_v14 = vld [vmem:[#allocation3] sm:$0xff]  ;;  %v628_v18 = vld [vmem:[#allocation3 + $0x18] sm:$0xff] }
 0x1a9   : > { %v635_v10 = vld [vmem:[#allocation4 + $0x10] sm:$0xff]  ;;  %991 = vset.pattern.permute.xlu1 %v1041_v11  ;;  %990 = vset.pattern.permute.xlu0 %v1041_v11  ;;  %v631_v12 = vmul.f32 0.015625, %v627_v9  ;;  %v633_v15 = vld [vmem:[#allocation4] sm:$0xff]  ;;  %v629_v16 = vmul.f32 0.015625, %v625_v14  ;;  %v636_v19 = vld [vmem:[#allocation4 + $0x18] sm:$0xff]  ;;  %v632_v21 = vmul.f32 0.015625, %v628_v18 }
 0x1aa   : > { %v639_v13 = vmul.f32 0.015625, %v635_v10  ;;  %v637_v17 = vmul.f32 0.015625, %v633_v15  ;;  %v640_v22 = vmul.f32 0.015625, %v636_v19  ;;  %v626_v23 = vld [vmem:[#allocation3 + $0x8] sm:$0xff]  ;;  %v655_v42 = vld [vmem:[%s1201_s2 + $0x10] sm:$0xff]  ;;  %v653_v43 = vld [vmem:[%s1201_s2] sm:$0xff] }
 0x1ab   : > { %v643_v20 = vmul.f32 %v631_v12, %v631_v12  ;;  %v634_v24 = vld [vmem:[#allocation4 + $0x8] sm:$0xff]  ;;  %v641_v25 = vmul.f32 %v629_v16, %v629_v16  ;;  %v630_v26 = vmul.f32 0.015625, %v626_v23  ;;  %v644_v29 = vmul.f32 %v632_v21, %v632_v21  ;;  %v656_v45 = vld [vmem:[%s1201_s2 + $0x18] sm:$0xff]  ;;  %v669_v56 = vld [vmem:[%s1202_s3] sm:$0xff] }
 0x1ac   : > { %v638_v27 = vmul.f32 0.015625, %v634_v24  ;;  %v654_v48 = vld [vmem:[%s1201_s2 + $0x8] sm:$0xff]  ;;  %v672_v62 = vld [vmem:[%s1202_s3 + $0x18] sm:$0xff]  ;;  %v671_v63 = vld [vmem:[%s1202_s3 + $0x10] sm:$0xff] }
 0x1ad   : > { %v647_v28 = vsub.f32 %v639_v13, %v643_v20  ;;  %v645_v30 = vsub.f32 %v637_v17, %v641_v25  ;;  %v642_v31 = vmul.f32 %v630_v26, %v630_v26  ;;  %v648_v33 = vsub.f32 %v640_v22, %v644_v29  ;;  %v670_v55 = vld [vmem:[%s1202_s3 + $0x8] sm:$0xff]  ;;  %v622_v5 = vld [vmem:[#allocation2] sm:$0xff]  ;;  %v621_v6 = vld [vmem:[#allocation2 + $0x10] sm:$0xff] }
 0x1ae   : > { %v624_v10 = vld [vmem:[#allocation2 + $0x8] sm:$0xff] }
 0x1af   : > { %v651_v32 = vmax.f32 %v647_v28, 0.0  ;;  %v649_v34 = vmax.f32 %v645_v30, 0.0  ;;  %v646_v35 = vsub.f32 %v638_v27, %v642_v31  ;;  %v652_v37 = vmax.f32 %v648_v33, 0.0 }
 0x1b1   : > { %v659_v36 = vadd.f32 1e-05, %v651_v32  ;;  %v657_v38 = vadd.f32 1e-05, %v649_v34  ;;  %v650_v39 = vmax.f32 %v646_v35, 0.0 }
 0x1b2   : > { %v660_v40 = vadd.f32 1e-05, %v652_v37 }
 0x1b3   : > { %992 = vrsqrt.f32 %v659_v36  ;;  %v658_v41 = vadd.f32 1e-05, %v650_v39 }
 0x1b4   : > { %994 = vrsqrt.f32 %v657_v38 }
 0x1b5   : > { %996 = vrsqrt.f32 %v660_v40 }
 0x1b6   : > { %998 = vrsqrt.f32 %v658_v41 }
 0x1c0   : > { %v993_v44 = vpop.eup %992 }
 0x1c1   : > { %v995_v46 = vpop.eup %994  ;;  %v667_v47 = vmul.f32 %v993_v44, %v655_v42 }
 0x1c2   : > { %v997_v49 = vpop.eup %996  ;;  %v665_v50 = vmul.f32 %v995_v46, %v653_v43 }
 0x1c3   : > { %v999_v51 = vpop.eup %998  ;;  %693 = vperm.xlu1 %991, %v667_v47   ;;  %v668_v52 = vmul.f32 %v997_v49, %v656_v45  ;;  %v675_v59 = vmul.f32 %v667_v47, %v631_v12  ;;  %v623_v12 = vld [vmem:[#allocation2 + $0x18] sm:$0xff] }
 0x1c4   : > { %683 = vperm.xlu0 %990, %v665_v50   ;;  %v673_v53 = vmul.f32 %v665_v50, %v629_v16  ;;  %v666_v54 = vmul.f32 %v999_v51, %v654_v48 }
 0x1c5   : > { %v676_v58 = vmul.f32 %v668_v52, %v632_v21  ;;  %v679_v1 = vsub.f32 %v671_v63, %v675_v59 }
 0x1c6   : > { %v674_v57 = vmul.f32 %v666_v54, %v630_v26  ;;  %v677_v61 = vsub.f32 %v669_v56, %v673_v53 }
 0x1c7   : > { %698 = vperm.xlu1 %991, %v668_v52   ;;  %v680_v0 = vsub.f32 %v672_v62, %v676_v58 }
 0x1c8   : > { %688 = vperm.xlu0 %990, %v666_v54   ;;  %v678_v60 = vsub.f32 %v670_v55, %v674_v57 }
 0x1cb   : > { %712 = vperm.xlu1 %991, %v678_v60  }
 0x1cc   : > { %707 = vperm.xlu0 %990, %v677_v61  }
 0x1cf   : > { %722 = vperm.xlu1 %991, %v680_v0  }
 0x1d0   : > { %717 = vperm.xlu0 %990, %v679_v1  }
 0x23e   : > { %v694_v2 = vpop.permute.xlu1 %693 }
 0x23f   : > { %v684_v3 = vpop.permute.xlu0 %683  ;;  %v703_v18 = vmul.f32 %v694_v2, %v623_v12 }
 0x240   : > { %v701_v9 = vmul.f32 %v684_v3, %v621_v6 }
 0x242   : > { %v699_v4 = vpop.permute.xlu1 %698 }
 0x243   : > { %v689_v7 = vpop.permute.xlu0 %688  ;;  %v704_v16 = vmul.f32 %v699_v4, %v624_v10 }
 0x244   : > { %v702_v8 = vmul.f32 %v689_v7, %v622_v5 }
 0x246   : > { %v713_v11 = vpop.permute.xlu1 %712 }
 0x247   : > { %v726_v13 = vadd.f32 %v713_v11, %v702_v8  ;;  %v708_v14 = vpop.permute.xlu0 %707 }
 0x248   : > { %v725_v15 = vadd.f32 %v708_v14, %v701_v9 }
 0x249   : > { %vm730_vm3 = vcmp.ge.f32.partialorder %v726_v13, 0.0  ;;  %v734_v17 = vmul.f32 0.01, %v726_v13 }
 0x24a   : > { %vm729_vm4 = vcmp.ge.f32.partialorder %v725_v15, 0.0  ;;  %v733_v19 = vmul.f32 0.01, %v725_v15  ;;  %v723_v20 = vpop.permute.xlu1 %722 }
 0x24b   : > { %v738_v21 = vsel %vm730_vm3, %v726_v13, %v734_v17  ;;  %v728_v22 = vadd.f32 %v723_v20, %v704_v16  ;;  %v718_v23 = vpop.permute.xlu0 %717 }
 0x24c   : > { %742 = vst [vmem:[%s1103_s26 + $0x8] sm:$0xff] %v738_v21  ;;  %v737_v24 = vsel %vm729_vm4, %v725_v15, %v733_v19  ;;  %v727_v25 = vadd.f32 %v718_v23, %v703_v18 }
 0x24d   : > { %741 = vst [vmem:[%s1103_s26] sm:$0xff] %v737_v24  ;;  %vm732_vm5 = vcmp.ge.f32.partialorder %v728_v22, 0.0  ;;  %v736_v26 = vmul.f32 0.01, %v728_v22 }
 0x24e   : > { %vm731_vm6 = vcmp.ge.f32.partialorder %v727_v25, 0.0  ;;  %v735_v27 = vmul.f32 0.01, %v727_v25 }
 0x24f   : > { %v740_v28 = vsel %vm732_vm5, %v728_v22, %v736_v26 }
 0x250   : > { %744 = vst [vmem:[%s1103_s26 + $0x18] sm:$0xff] %v740_v28  ;;  %v739_v29 = vsel %vm731_vm6, %v727_v25, %v735_v27 }
 0x251   : > { %743 = vst [vmem:[%s1103_s26 + $0x10] sm:$0xff] %v739_v29 }
 0x252 PF: > { %s14_s19 = sadd.s32 1, %s1038_s19   ;;  %s1204_s15 = smov %s1030_s17 }
 0x253   : > { %p11_p9 = scmp.ge.s32.totalorder %s14_s19, 8   ;;  %s1205_s16 = smov %s1034_s18 }
 0x254   : > { %s1206_s17 = smov %s1209_s20  ;;  %s1207_s18 = smov %s1213_s21 }
 0x255   :  { %13 = sbr.rel (!%p11_p9) target bundleno = 3 (0x3), region = 80 }

// kernel: forward.13
= control target key start
LH: loop header
LB: loop body
LE: loop exit
PB: predicated region body
PF: predicated region fallthrough
CT: control target
= control target key end

     0   :  { %s2046_s15 = smov 0   ;;  %s2048_s16 = smov 0   ;;  %s2499_s0 = inlined_call_operand.vmem [shape: bf16[1,864,128], index: 0, kind: input, shape index: {}]   ;;  %s2500_s1 = inlined_call_operand.vmem [shape: bf16[64,864], index: 1, kind: input, shape index: {}]   ;;  %s2501_s2 = inlined_call_operand.vmem [shape: f32[64,1], index: 2, kind: input, shape index: {}]   ;;  %s2502_s3 = inlined_call_operand.vmem [shape: f32[64,1], index: 3, kind: input, shape index: {}]   ;;  %s2503_s4 = inlined_call_operand.vmem [shape: f32[1,64,128], index: 4, kind: output, shape index: {}]  }
   0x1   :  { %s2050_s17 = smov 0  }
   0x2 LB: > { %s29_s18 = sadd.s32 1, %s2013_s16  ;;  %p1612_p0 = scmp.ge.s32.totalorder %s2017_s17, 1  ;;  %s2017_s17 = sphi %s2050_s17, %s14_s17   ;;  %s2013_s16 = sphi %s2048_s16, %s2505_s16   ;;  %s2009_s15 = sphi %s2046_s15, %s2504_s15  }
   0x3   : > { %p31_p1 = scmp.ge.s32.totalorder %s29_s18, 2  ;;  %p198_p2 = scmp.lt.s32.totalorder %s2017_s17, 3 }
   0x5   : > { %s2507_s18 = smov (%p31_p1, %s29_s18), 0  ;;  %p199_p3 = pnand %p1612_p0, %p198_p2 }
   0x6   : > { %p257_p4 = scmp.eq.s32.totalorder (!%p199_p3), %s2009_s15, 0 }
   0x7   : > { %202 = sbr.rel (%p199_p3) target bundleno = 663 (0x297), region = 36 }
   0xc   : > { %262 = sbr.rel (!%p257_p4) target bundleno = 21 (0x15), region = 40  ;;  %vm263_vm0 = vcmask (%p257_p4), 7168   ;;  %v2019_v0 = vmov (%p257_p4), 0.0  }
   0xd   : > { %264 = vst.msk [vmem:[#allocation3] sm:$0xff] (%p257_p4), %vm263_vm0, %v2019_v0  ;;  %265 = vst.msk [vmem:[#allocation3 + $0x8] sm:$0xff] (%p257_p4), %vm263_vm0, %v2019_v0 }
   0xe   : > { %266 = vst.msk [vmem:[#allocation3 + $0x10] sm:$0xff] (%p257_p4), %vm263_vm0, %v2019_v0  ;;  %267 = vst.msk [vmem:[#allocation3 + $0x18] sm:$0xff] (%p257_p4), %vm263_vm0, %v2019_v0 }
   0xf   : > { %268 = vst.msk [vmem:[#allocation3 + $0x20] sm:$0xff] (%p257_p4), %vm263_vm0, %v2019_v0  ;;  %269 = vst.msk [vmem:[#allocation3 + $0x28] sm:$0xff] (%p257_p4), %vm263_vm0, %v2019_v0 }
  0x10   : > { %270 = vst.msk [vmem:[#allocation3 + $0x30] sm:$0xff] (%p257_p4), %vm263_vm0, %v2019_v0  ;;  %271 = vst.msk [vmem:[#allocation3 + $0x38] sm:$0xff] (%p257_p4), %vm263_vm0, %v2019_v0 }
  0x11   : > { %272 = vst.msk [vmem:[#allocation4] sm:$0xff] %vm263_vm0, %v2019_v0  ;;  %273 = vst.msk [vmem:[#allocation4 + $0x8] sm:$0xff] %vm263_vm0, %v2019_v0 }
  0x12   : > { %274 = vst.msk [vmem:[#allocation4 + $0x10] sm:$0xff] %vm263_vm0, %v2019_v0  ;;  %275 = vst.msk [vmem:[#allocation4 + $0x18] sm:$0xff] %vm263_vm0, %v2019_v0 }
  0x13   : > { %276 = vst.msk [vmem:[#allocation4 + $0x20] sm:$0xff] %vm263_vm0, %v2019_v0  ;;  %277 = vst.msk [vmem:[#allocation4 + $0x28] sm:$0xff] %vm263_vm0, %v2019_v0 }
  0x14   : > { %278 = vst.msk [vmem:[#allocation4 + $0x30] sm:$0xff] %vm263_vm0, %v2019_v0  ;;  %279 = vst.msk [vmem:[#allocation4 + $0x38] sm:$0xff] %vm263_vm0, %v2019_v0 }
  0x15 PF: > { %p1614_p5 = scmp.ne.s32.totalorder %s2009_s15, 0 }
  0x17   : > { %282 = sbr.rel (%p1614_p5) target bundleno = 470 (0x1d6), region = 44 }
  0x1c   : > { %v1883_v1 = vld [vmem:[%s2499_s0 + $0x78] sm:$0xff]   ;;  %v1887_v5 = vld [vmem:[%s2499_s0 + $0x70] sm:$0xff]   ;;  %v1891_v9 = vld [vmem:[%s2499_s0 + $0x68] sm:$0xff]   ;;  %vm887_vm1 = vcmask 785408   ;;  %vm1203_vm2 = vcmask 7168  }
  0x1d   : > { %v1884_v2 = vld [vmem:[%s2499_s0 + $0xf8] sm:$0xff]   ;;  %1707 = vmatprep.subr.bf16.mxu0 %v1883_v1  ;;  %v1888_v6 = vld [vmem:[%s2499_s0 + $0xf0] sm:$0xff]   ;;  %v1892_v10 = vld [vmem:[%s2499_s0 + $0xe8] sm:$0xff]  }
  0x1e   : > { %v1885_v3 = vld [vmem:[%s2499_s0 + $0x38] sm:$0xff]   ;;  %1747 = vmatprep.subr.bf16.mxu1 %v1884_v2  ;;  %v1889_v7 = vld [vmem:[%s2499_s0 + $0x30] sm:$0xff]   ;;  %v1893_v11 = vld [vmem:[%s2499_s0 + $0x28] sm:$0xff]  }
  0x1f   : > { %v1886_v4 = vld [vmem:[%s2499_s0 + $0xb8] sm:$0xff]   ;;  %1708 = vmatpush3.bf16.msra.mxu0 %v1885_v3  ;;  %v1890_v8 = vld [vmem:[%s2499_s0 + $0xb0] sm:$0xff]   ;;  %v1894_v12 = vld [vmem:[%s2499_s0 + $0xa8] sm:$0xff]  }
  0x20   : > { %1748 = vmatpush3.bf16.msra.mxu1 %v1886_v4  ;;  %1709 = vmatprep.subr.bf16.mxu0 %v1887_v5  ;;  %v1895_v13 = vld [vmem:[%s2499_s0 + $0x60] sm:$0xff]   ;;  %v1899_v17 = vld [vmem:[%s2499_s0 + $0x58] sm:$0xff]   ;;  %v1903_v21 = vld [vmem:[%s2499_s0 + $0x50] sm:$0xff]  }
  0x21   : > { %1749 = vmatprep.subr.bf16.mxu1 %v1888_v6  ;;  %v1896_v14 = vld [vmem:[%s2499_s0 + $0xe0] sm:$0xff]   ;;  %v1900_v18 = vld [vmem:[%s2499_s0 + $0xd8] sm:$0xff]   ;;  %v1904_v22 = vld [vmem:[%s2499_s0 + $0xd0] sm:$0xff]  }
  0x22   : > { %v1897_v15 = vld [vmem:[%s2499_s0 + $0x20] sm:$0xff]   ;;  %v1901_v19 = vld [vmem:[%s2499_s0 + $0x18] sm:$0xff]   ;;  %v1905_v23 = vld [vmem:[%s2499_s0 + $0x10] sm:$0xff]  }
  0x23   : > { %1710 = vmatpush3.bf16.msra.mxu0 %v1889_v7  ;;  %v1898_v16 = vld [vmem:[%s2499_s0 + $0xa0] sm:$0xff]   ;;  %v1902_v20 = vld [vmem:[%s2499_s0 + $0x98] sm:$0xff]   ;;  %v1906_v24 = vld [vmem:[%s2499_s0 + $0x90] sm:$0xff]  }
  0x24   : > { %1750 = vmatpush3.bf16.msra.mxu1 %v1890_v8  ;;  %1711 = vmatprep.subr.bf16.mxu0 %v1891_v9  ;;  %v1907_v25 = vld [vmem:[%s2499_s0 + $0x48] sm:$0xff]   ;;  %v1911_v29 = vld [vmem:[%s2499_s0 + $0x40] sm:$0xff]   ;;  %v1921_v37 = vld [vmem:[%s2499_s0 + $0x178] sm:$0xff]  }
  0x25   : > { %1751 = vmatprep.subr.bf16.mxu1 %v1892_v10  ;;  %v1908_v26 = vld [vmem:[%s2499_s0 + $0xc8] sm:$0xff]   ;;  %v1912_v30 = vld [vmem:[%s2499_s0 + $0xc0] sm:$0xff]   ;;  %v1922_v38 = vld [vmem:[%s2499_s0 + $0x138] sm:$0xff]  }
  0x26   : > { %v1909_v27 = vld [vmem:[%s2499_s0 + $0x8] sm:$0xff]   ;;  %v1913_v31 = vld [vmem:[%s2499_s0] sm:$0xff]   ;;  %v1923_v39 = vld [vmem:[%s2499_s0 + $0x170] sm:$0xff]  }
  0x27   : > { %1712 = vmatpush3.bf16.msra.mxu0 %v1893_v11  ;;  %v1910_v28 = vld [vmem:[%s2499_s0 + $0x88] sm:$0xff]   ;;  %v1914_v32 = vld [vmem:[%s2499_s0 + $0x80] sm:$0xff]   ;;  %v1925_v41 = vld [vmem:[%s2499_s0 + $0x130] sm:$0xff]  }
  0x28   : > { %1752 = vmatpush3.bf16.msra.mxu1 %v1894_v12  ;;  %1713 = vmatprep.subr.bf16.mxu0 %v1895_v13  ;;  %v1915_v33 = vld [vmem:[%s2500_s1] ss:$28 sps:$4 sm:$0xff]   ;;  %v1918_v35 = vld [vmem:[%s2500_s1 + $0x8] ss:$28 sps:$4 sm:$0xff]   ;;  %v1930_v44 = vld [vmem:[%s2500_s1 + $0x38] ss:$28 sps:$4 sm:$0xff]  }
  0x29   : > { %1753 = vmatprep.subr.bf16.mxu1 %v1896_v14  ;;  %v1917_v34 = vld [vmem:[%s2500_s1 + $0x4] ss:$28 sps:$4 sm:$0xff]   ;;  %v1920_v36 = vld [vmem:[%s2500_s1 + $0xc] ss:$28 sps:$4 sm:$0xff]   ;;  %v1926_v42 = vld [vmem:[%s2500_s1 + $0x3c] ss:$28 sps:$4 sm:$0xff]  }
  0x2a   : > { %932 = vmatprep.mubr.bf16.mxu0 %v1917_v34  ;;  %997 = vmatprep.mubr.bf16.mxu1 %v1920_v36  ;;  %v1924_v40 = vld [vmem:[%s2499_s0 + $0x1a8] sm:$0xff]   ;;  %v1928_v43 = vld [vmem:[%s2500_s1 + $0x44] ss:$28 sps:$4 sm:$0xff]   ;;  %v1937_v51 = vld [vmem:[%s2500_s1 + $0x74] ss:$28 sps:$4 sm:$0xff]  }
  0x2b   : > { %1714 = vmatpush3.bf16.msra.mxu0 %v1897_v15  ;;  %v1931_v45 = vld [vmem:[%s2500_s1 + $0x40] ss:$28 sps:$4 sm:$0xff]   ;;  %v1932_v46 = vld [vmem:[%s2499_s0 + $0x168] sm:$0xff]   ;;  %v1943_v55 = vld [vmem:[%s2500_s1 + $0x78] ss:$28 sps:$4 sm:$0xff]  }
  0x2c   : > { %1754 = vmatpush3.bf16.msra.mxu1 %v1898_v16  ;;  %1715 = vmatprep.subr.bf16.mxu0 %v1899_v17  ;;  %v1933_v47 = vld [vmem:[%s2499_s0 + $0x128] sm:$0xff]   ;;  %v1934_v48 = vld [vmem:[%s2499_s0 + $0x1a0] sm:$0xff]   ;;  %v1939_v52 = vld [vmem:[%s2500_s1 + $0x7c] ss:$28 sps:$4 sm:$0xff]  }
  0x2d   : > { %1755 = vmatprep.subr.bf16.mxu1 %v1900_v18  ;;  %v1935_v49 = vld [vmem:[%s2499_s0 + $0x160] sm:$0xff]   ;;  %v1941_v53 = vld [vmem:[%s2499_s0 + $0x198] sm:$0xff]   ;;  %v1942_v54 = vld [vmem:[%s2500_s1 + $0x70] ss:$28 sps:$4 sm:$0xff]  }
  0x2e   : > { %v1936_v50 = vld [vmem:[%s2499_s0 + $0x120] sm:$0xff]   ;;  %v1944_v56 = vld [vmem:[%s2499_s0 + $0x158] sm:$0xff]   ;;  %v1946_v58 = vld [vmem:[%s2499_s0 + $0x150] sm:$0xff]  }
  0x2f   : > { %1716 = vmatpush3.bf16.msra.mxu0 %v1901_v19  ;;  %v1945_v57 = vld [vmem:[%s2499_s0 + $0x118] sm:$0xff]   ;;  %v1947_v59 = vld [vmem:[%s2499_s0 + $0x190] sm:$0xff]   ;;  %v1949_v61 = vld [vmem:[%s2500_s1 + $0xac] ss:$28 sps:$4 sm:$0xff]  }
  0x30   : > { %1756 = vmatpush3.bf16.msra.mxu1 %v1902_v20  ;;  %1717 = vmatprep.subr.bf16.mxu0 %v1903_v21  ;;  %v1948_v60 = vld [vmem:[%s2499_s0 + $0x110] sm:$0xff]   ;;  %v1953_v63 = vld [vmem:[%s2500_s1 + $0xa8] ss:$28 sps:$4 sm:$0xff]   ;;  %v1973_v14 = vld [vmem:[%s2500_s1 + $0xc0] ss:$28 sps:$4 sm:$0xff]  }
  0x31   : > { %1757 = vmatprep.subr.bf16.mxu1 %v1904_v22  ;;  %v1951_v62 = vld [vmem:[%s2500_s1 + $0xb4] ss:$28 sps:$4 sm:$0xff]   ;;  %v1955_v1 = vld [vmem:[%s2499_s0 + $0x148] sm:$0xff]   ;;  %v1958_v4 = vld [vmem:[%s2499_s0 + $0x140] sm:$0xff]  }
  0x32   : > { %v1954_v0 = vld [vmem:[%s2500_s1 + $0xb0] ss:$28 sps:$4 sm:$0xff]   ;;  %v1959_v5 = vld [vmem:[%s2499_s0 + $0x180] sm:$0xff]   ;;  %v1964_v9 = vld [vmem:[%s2500_s1 + $0x18] ss:$28 sps:$4 sm:$0xff]  }
  0x33   : > { %1718 = vmatpush3.bf16.msra.mxu0 %v1905_v23  ;;  %v1956_v2 = vld [vmem:[%s2499_s0 + $0x188] sm:$0xff]   ;;  %v1960_v6 = vld [vmem:[%s2499_s0 + $0x100] sm:$0xff]   ;;  %v1963_v8 = vld [vmem:[%s2500_s1 + $0x14] ss:$28 sps:$4 sm:$0xff]  }
  0x34   : > { %1758 = vmatpush3.bf16.msra.mxu1 %v1906_v24  ;;  %1719 = vmatprep.subr.bf16.mxu0 %v1907_v25  ;;  %v1957_v3 = vld [vmem:[%s2499_s0 + $0x108] sm:$0xff]   ;;  %v1969_v15 = vld [vmem:[%s2500_s1 + $0x84] ss:$28 sps:$4 sm:$0xff]   ;;  %v1974_v17 = vld [vmem:[%s2500_s1 + $0xbc] ss:$28 sps:$4 sm:$0xff]  }
  0x35   : > { %1759 = vmatprep.subr.bf16.mxu1 %v1908_v26  ;;  %v1961_v7 = vld [vmem:[%s2500_s1 + $0x10] ss:$28 sps:$4 sm:$0xff]   ;;  %v1972_v12 = vld [vmem:[%s2500_s1 + $0x88] ss:$28 sps:$4 sm:$0xff]   ;;  %v1971_v16 = vld [vmem:[%s2500_s1 + $0x80] ss:$28 sps:$4 sm:$0xff]  }
  0x36   : > { %v1965_v10 = vld [vmem:[%s2500_s1 + $0x50] ss:$28 sps:$4 sm:$0xff]   ;;  %v1968_v13 = vld [vmem:[%s2500_s1 + $0x48] ss:$28 sps:$4 sm:$0xff]   ;;  %v1976_v18 = vld [vmem:[%s2500_s1 + $0xb8] ss:$28 sps:$4 sm:$0xff]  }
  0x37   : > { %1720 = vmatpush3.bf16.msra.mxu0 %v1909_v27  ;;  %v1966_v11 = vld [vmem:[%s2500_s1 + $0x4c] ss:$28 sps:$4 sm:$0xff]  }
  0x38   : > { %1760 = vmatpush3.bf16.msra.mxu1 %v1910_v28  ;;  %1721 = vmatprep.subr.bf16.mxu0 %v1911_v29 }
  0x39   : > { %1761 = vmatprep.subr.bf16.mxu1 %v1912_v30 }
  0x3b   : > { %1722 = vmatpush3.bf16.msra.mxu0 %v1913_v31 }
  0x3c   : > { %1762 = vmatpush3.bf16.msra.mxu1 %v1914_v32  ;;  %1787 = vmatprep.subr.bf16.mxu0 %v1921_v37 }
  0x3d   : > { %1837 = vmatprep.subr.bf16.mxu1 %v1924_v40 }
  0x3e   : > { %933 = vmatmul.mubr.bf16.vlgmr.msra.gmra.mxu0 %v1915_v33 }
  0x3f   : > { %998 = vmatmul.mubr.bf16.vlgmr.msra.gmra.mxu1 %v1918_v35  ;;  %1788 = vmatpush3.bf16.msra.mxu0 %v1922_v38 }
  0x40   : > { %1789 = vmatprep.subr.bf16.mxu0 %v1923_v39  ;;  %1838 = vmatpush3.bf16.msra.mxu1 %v1924_v40 }
  0x41   : > { %940 = vmatprep.mubr.bf16.mxu0 %v1926_v42  ;;  %1005 = vmatprep.mubr.bf16.mxu1 %v1928_v43 }
  0x42   : > { %1839 = vmatprep.subr.bf16.mxu1 %v1934_v48 }
  0x43   : > { %1790 = vmatpush3.bf16.msra.mxu0 %v1925_v41 }
  0x44   : > { %1791 = vmatprep.subr.bf16.mxu0 %v1932_v46  ;;  %1840 = vmatpush3.bf16.msra.mxu1 %v1934_v48 }
  0x45   : > { %1841 = vmatprep.subr.bf16.mxu1 %v1941_v53 }
  0x46   : > { %941 = vmatmul.mubr.bf16.gmra.mxu0 %v1930_v44 }
  0x47   : > { %1006 = vmatmul.mubr.bf16.gmra.mxu1 %v1931_v45  ;;  %1792 = vmatpush3.bf16.msra.mxu0 %v1933_v47 }
  0x48   : > { %1793 = vmatprep.subr.bf16.mxu0 %v1935_v49  ;;  %948 = vmatprep.mubr.bf16.mxu0 %v1937_v51 }
  0x49   : > { %1013 = vmatprep.mubr.bf16.mxu1 %v1939_v52  ;;  %1842 = vmatpush3.bf16.msra.mxu1 %v1941_v53 }
  0x4a   : > { %1843 = vmatprep.subr.bf16.mxu1 %v1947_v59 }
  0x4b   : > { %1794 = vmatpush3.bf16.msra.mxu0 %v1936_v50 }
  0x4c   : > { %1795 = vmatprep.subr.bf16.mxu0 %v1944_v56 }
  0x4d   : > { %1844 = vmatpush3.bf16.msra.mxu1 %v1947_v59 }
  0x4e   : > { %949 = vmatmul.mubr.bf16.gmra.mxu0 %v1942_v54  ;;  %1845 = vmatprep.subr.bf16.mxu1 %v1956_v2 }
  0x4f   : > { %1014 = vmatmul.mubr.bf16.gmra.mxu1 %v1943_v55  ;;  %1796 = vmatpush3.bf16.msra.mxu0 %v1945_v57 }
  0x50   : > { %1797 = vmatprep.subr.bf16.mxu0 %v1946_v58  ;;  %956 = vmatprep.mubr.bf16.mxu0 %v1949_v61 }
  0x51   : > { %1021 = vmatprep.mubr.bf16.mxu1 %v1951_v62  ;;  %1846 = vmatpush3.bf16.msra.mxu1 %v1956_v2 }
  0x52   : > { %1847 = vmatprep.subr.bf16.mxu1 %v1959_v5 }
  0x53   : > { %1798 = vmatpush3.bf16.msra.mxu0 %v1948_v60 }
  0x54   : > { %1799 = vmatprep.subr.bf16.mxu0 %v1955_v1 }
  0x55   : > { %1848 = vmatpush3.bf16.msra.mxu1 %v1959_v5 }
  0x56   : > { %957 = vmatmul.mubr.bf16.gmra.mxu0 %v1953_v63 }
  0x57   : > { %1022 = vmatmul.mubr.bf16.gmra.mxu1 %v1954_v0  ;;  %1800 = vmatpush3.bf16.msra.mxu0 %v1957_v3 }
  0x58   : > { %1801 = vmatprep.subr.bf16.mxu0 %v1958_v4  ;;  %1062 = vmatprep.mubr.bf16.mxu0 %v1963_v8 }
  0x59   : > { %1849 = vmatprep.mubr.msk.bf16.mxu1 %vm887_vm1, %v1964_v9 }
  0x5b   : > { %1802 = vmatpush3.bf16.msra.mxu0 %v1960_v6 }
  0x5e   : > { %1063 = vmatmul.mubr.bf16.vlgmr.msra.gmra.mxu0 %v1961_v7 }
  0x5f   : > { %1850 = vmatmul.mubr.msk.bf16.vlgmr.msra.gmra.mxu1 %vm887_vm1, %v1965_v10  ;;  %1070 = vmatprep.mubr.bf16.mxu0 %v1966_v11 }
  0x60   : > { %1853 = vmatprep.mubr.msk.bf16.mxu1 %vm887_vm1, %v1972_v12 }
  0x66   : > { %1071 = vmatmul.mubr.bf16.gmra.mxu0 %v1968_v13 }
  0x67   : > { %1854 = vmatmul.mubr.msk.bf16.gmra.mxu1 %vm887_vm1, %v1973_v14  ;;  %1078 = vmatprep.mubr.bf16.mxu0 %v1969_v15 }
  0x6e   : > { %1079 = vmatmul.mubr.bf16.gmra.mxu0 %v1971_v16 }
  0x6f   : > { %1086 = vmatprep.mubr.bf16.mxu0 %v1974_v17 }
  0x76   : > { %1087 = vmatmul.mubr.bf16.gmra.mxu0 %v1976_v18 }
  0xfe   : > { %v1723_v19 = vpop.f32.mrf.mxu0 }
  0xff   : > { %v1763_v20 = vpop.f32.mrf.mxu1 }
 0x100   : > { %v1724_v21 = vpop.f32.mrf.mxu0 }
 0x101   : > { %v1764_v22 = vpop.f32.mrf.mxu1  ;;  %v1725_v51 = vadd.f32 %v1724_v21, %v1723_v19 }
 0x102   : > { %v1726_v23 = vpop.f32.mrf.mxu0  ;;  %v1765_v52 = vadd.f32 %v1764_v22, %v1763_v20 }
 0x103   : > { %v1766_v24 = vpop.f32.mrf.mxu1 }
 0x104   : > { %v1727_v25 = vpop.f32.mrf.mxu0  ;;  %v1000_v57 = vadd.f32 %v1765_v52, %v1725_v51 }
 0x105   : > { %v1767_v26 = vpop.f32.mrf.mxu1  ;;  %v1728_v58 = vadd.f32 %v1727_v25, %v1726_v23 }
 0x106   : > { %v1729_v27 = vpop.f32.mrf.mxu0  ;;  %v1768_v59 = vadd.f32 %v1767_v26, %v1766_v24 }
 0x107   : > { %v1769_v28 = vpop.f32.mrf.mxu1 }
 0x108   : > { %v1730_v29 = vpop.f32.mrf.mxu0  ;;  %v1003_v3 = vadd.f32 %v1768_v59, %v1728_v58 }
 0x109   : > { %v1770_v30 = vpop.f32.mrf.mxu1  ;;  %v1731_v63 = vadd.f32 %v1730_v29, %v1729_v27 }
 0x10a   : > { %v1732_v31 = vpop.f32.mrf.mxu0  ;;  %v1771_v0 = vadd.f32 %v1770_v30, %v1769_v28 }
 0x10b   : > { %v1772_v32 = vpop.f32.mrf.mxu1 }
 0x10c   : > { %v1733_v33 = vpop.f32.mrf.mxu0  ;;  %v1008_v8 = vadd.f32 %v1771_v0, %v1731_v63 }
 0x10d   : > { %v1773_v34 = vpop.f32.mrf.mxu1  ;;  %v1734_v9 = vadd.f32 %v1733_v33, %v1732_v31 }
 0x10e   : > { %v1735_v35 = vpop.f32.mrf.mxu0  ;;  %v1774_v12 = vadd.f32 %v1773_v34, %v1772_v32 }
 0x10f   : > { %v1775_v36 = vpop.f32.mrf.mxu1 }
 0x110   : > { %v1736_v37 = vpop.f32.mrf.mxu0  ;;  %v1011_v23 = vadd.f32 %v1774_v12, %v1734_v9 }
 0x111   : > { %v1776_v38 = vpop.f32.mrf.mxu1  ;;  %v1737_v19 = vadd.f32 %v1736_v37, %v1735_v35 }
 0x112   : > { %v1738_v39 = vpop.f32.mrf.mxu0  ;;  %v1777_v20 = vadd.f32 %v1776_v38, %v1775_v36 }
 0x113   : > { %v2334_v40 = vpop.f32.mrf.mxu1 }
 0x114   : > { %v1739_v41 = vpop.f32.mrf.mxu0  ;;  %v1016_v28 = vadd.f32 %v1777_v20, %v1737_v19  ;;  %v1174_v20 = vld [vmem:[#allocation3 + $0x18] sm:$0xff] }
 0x115   : > { %v1779_v42 = vpop.f32.mrf.mxu1  ;;  %v1740_v29 = vadd.f32 %v1739_v41, %v1738_v39 }
 0x116   : > { %v2336_v43 = vpop.f32.mrf.mxu0  ;;  %v1780_v32 = vadd.f32 %v1779_v42, %v2334_v40 }
 0x117   : > { %v2338_v44 = vpop.f32.mrf.mxu1 }
 0x118   : > { %v2340_v45 = vpop.f32.mrf.mxu0  ;;  %v1019_v41 = vadd.f32 %v1780_v32, %v1740_v29  ;;  %v1216_v29 = vld [vmem:[#allocation4 + $0x20] sm:$0xff]  ;;  %v1176_v32 = vld [vmem:[#allocation3 + $0x28] sm:$0xff] }
 0x119   : > { %v2342_v46 = vpop.f32.mrf.mxu1  ;;  %v1743_v38 = vadd.f32 %v2340_v45, %v2336_v43 }
 0x11a   : > { %v2344_v47 = vpop.f32.mrf.mxu0  ;;  %v1783_v51 = vadd.f32 %v2342_v46, %v2338_v44 }
 0x11b   : > { %v2346_v48 = vpop.f32.mrf.mxu1 }
 0x11c   : > { %v2348_v49 = vpop.f32.mrf.mxu0 }
 0x11d   : > { %v2350_v50 = vpop.f32.mrf.mxu1 }
 0x11e   : > { %v1803_v53 = vpop.f32.mrf.mxu0  ;;  %v1786_v44 = vadd.f32 %v2350_v50, %v2346_v48 }
 0x11f   : > { %v1851_v54 = vpop.f32.mrf.mxu1 }
 0x120   : > { %v1804_v55 = vpop.f32.mrf.mxu0 }
 0x121   : > { %v1129_v56 = vpop.f32.mrf.mxu1  ;;  %v1805_v60 = vadd.f32 %v1804_v55, %v1803_v53 }
 0x122   : > { %v1806_v61 = vpop.f32.mrf.mxu0 }
 0x123   : > { %v1065_v62 = vadd.f32 %v1805_v60, %v1000_v57  ;;  %v1852_v1 = vpop.f32.mrf.mxu1  ;;  %v1746_v57 = vadd.f32 %v2348_v49, %v2344_v47 }
 0x124   : > { %v1807_v2 = vpop.f32.mrf.mxu0 }
 0x125   : > { %v1130_v4 = vadd.f32 %v1129_v56, %v1065_v62  ;;  %v1808_v5 = vadd.f32 %v1807_v2, %v1806_v61  ;;  %v1132_v10 = vpop.f32.mrf.mxu1  ;;  %v1024_v56 = vadd.f32 %v1783_v51, %v1743_v38  ;;  %v1027_v63 = vadd.f32 %v1786_v44, %v1746_v57  ;;  %v1217_v38 = vld [vmem:[#allocation4 + $0x28] sm:$0xff] }
 0x126   : > { %v1809_v6 = vpop.f32.mrf.mxu0 }
 0x127   : > { %1163 = vst [vmem:[#allocation2 + $0x30] sm:$0xff] %v1130_v4  ;;  %v1068_v7 = vadd.f32 %v1808_v5, %v1003_v3  ;;  %1179 = vadd.xlane.f32.xlu0 %v1130_v4  ;;  %v1220_v15 = vmul.f32 %v1130_v4, %v1130_v4  ;;  %v1855_v22 = vpop.f32.mrf.mxu1  ;;  %v1171_v3 = vld [vmem:[#allocation3] sm:$0xff] }
 0x128   : > { %v1810_v11 = vpop.f32.mrf.mxu0 }
 0x129   : > { %v1133_v13 = vadd.f32 %v1132_v10, %v1068_v7  ;;  %v1811_v14 = vadd.f32 %v1810_v11, %v1809_v6  ;;  %v1145_v31 = vpop.f32.mrf.mxu1  ;;  %v1212_v6 = vld [vmem:[#allocation4] sm:$0xff]  ;;  %v1172_v11 = vld [vmem:[#allocation3 + $0x8] sm:$0xff] }
 0x12a   : > { %v1812_v16 = vpop.f32.mrf.mxu0 }
 0x12b   : > { %1164 = vst [vmem:[#allocation2] sm:$0xff] %v1133_v13  ;;  %v1073_v17 = vadd.f32 %v1811_v14, %v1008_v8  ;;  %1228 = vadd.xlane.f32.xlu0 %v1220_v15  ;;  %v1221_v18 = vmul.f32 %v1133_v13, %v1133_v13  ;;  %v1856_v52 = vpop.f32.mrf.mxu1  ;;  %v1213_v8 = vld [vmem:[#allocation4 + $0x8] sm:$0xff]  ;;  %v1173_v14 = vld [vmem:[#allocation3 + $0x10] sm:$0xff] }
 0x12c   : > { %v1813_v21 = vpop.f32.mrf.mxu0 }
 0x12d   : > { %v1814_v24 = vadd.f32 %v1813_v21, %v1812_v16  ;;  %1230 = vadd.xlane.f32.xlu1 %v1221_v18  ;;  %v1138_v25 = vadd.f32 %v1851_v54, %v1073_v17  ;;  %v1148_v58 = vpop.f32.mrf.mxu1  ;;  %v1214_v17 = vld [vmem:[#allocation4 + $0x10] sm:$0xff] }
 0x12e   : > { %v1815_v26 = vpop.f32.mrf.mxu0 }
 0x12f   : > { %v1076_v27 = vadd.f32 %v1814_v24, %v1011_v23  ;;  %1181 = vadd.xlane.f32.xlu0 %v1133_v13  ;;  %1165 = vst [vmem:[#allocation2 + $0x18] sm:$0xff] %v1138_v25  ;;  %v1222_v34 = vmul.f32 %v1138_v25, %v1138_v25  ;;  %v1175_v23 = vld [vmem:[#allocation3 + $0x20] sm:$0xff] }
 0x130   : > { %v1816_v30 = vpop.f32.mrf.mxu0 }
 0x131   : > { %v1817_v33 = vadd.f32 %v1816_v30, %v1815_v26  ;;  %1183 = vadd.xlane.f32.xlu1 %v1138_v25  ;;  %v1141_v35 = vadd.f32 %v1852_v1, %v1076_v27  ;;  %v1215_v26 = vld [vmem:[#allocation4 + $0x18] sm:$0xff] }
 0x132   : > { %v1818_v36 = vpop.f32.mrf.mxu0 }
 0x133   : > { %v1081_v37 = vadd.f32 %v1817_v33, %v1016_v28  ;;  %1232 = vadd.xlane.f32.xlu0 %v1222_v34  ;;  %1166 = vst [vmem:[#allocation2 + $0x10] sm:$0xff] %v1141_v35  ;;  %v1223_v55 = vmul.f32 %v1141_v35, %v1141_v35 }
 0x134   : > { %v1819_v39 = vpop.f32.mrf.mxu0 }
 0x135   : > { %v1146_v53 = vadd.f32 %v1145_v31, %v1081_v37  ;;  %v1820_v54 = vadd.f32 %v1819_v39, %v1818_v36  ;;  %1185 = vadd.xlane.f32.xlu1 %v1141_v35  ;;  %v1177_v35 = vld [vmem:[#allocation3 + $0x30] sm:$0xff] }
 0x136   : > { %v1821_v40 = vpop.f32.mrf.mxu0  ;;  %v1218_v39 = vld [vmem:[#allocation4 + $0x30] sm:$0xff] }
 0x137   : > { %1167 = vst [vmem:[#allocation2 + $0x8] sm:$0xff] %v1146_v53  ;;  %v1084_v42 = vadd.f32 %v1820_v54, %v1019_v41  ;;  %1187 = vadd.xlane.f32.xlu0 %v1146_v53  ;;  %v1224_v59 = vmul.f32 %v1146_v53, %v1146_v53  ;;  %v1178_v54 = vld [vmem:[#allocation3 + $0x38] sm:$0xff] }
 0x138   : > { %v1822_v43 = vpop.f32.mrf.mxu0 }
 0x139   : > { %v1149_v45 = vadd.f32 %v1148_v58, %v1084_v42  ;;  %v1823_v46 = vadd.f32 %v1822_v43, %v1821_v40  ;;  %1234 = vadd.xlane.f32.xlu1 %v1223_v55 }
 0x13a   : > { %v1824_v60 = vpop.f32.mrf.mxu0 }
 0x13b   : > { %1168 = vst [vmem:[#allocation2 + $0x20] sm:$0xff] %v1149_v45  ;;  %v1089_v61 = vadd.f32 %v1823_v46, %v1024_v56  ;;  %1236 = vadd.xlane.f32.xlu0 %v1224_v59  ;;  %v1225_v47 = vmul.f32 %v1149_v45, %v1149_v45  ;;  %v1219_v56 = vld [vmem:[#allocation4 + $0x38] sm:$0xff] }
 0x13c   : > { %v1825_v62 = vpop.f32.mrf.mxu0 }
 0x13d   : > { %v1826_v0 = vadd.f32 %v1825_v62, %v1824_v60  ;;  %1189 = vadd.xlane.f32.xlu1 %v1149_v45  ;;  %v1154_v1 = vadd.f32 %v1855_v22, %v1089_v61 }
 0x13f   : > { %v1092_v2 = vadd.f32 %v1826_v0, %v1027_v63  ;;  %1169 = vst [vmem:[#allocation2 + $0x28] sm:$0xff] %v1154_v1  ;;  %1191 = vadd.xlane.f32.xlu0 %v1154_v1  ;;  %v1226_v49 = vmul.f32 %v1154_v1, %v1154_v1 }
 0x141   : > { %1238 = vadd.xlane.f32.xlu1 %v1225_v47  ;;  %v1157_v48 = vadd.f32 %v1856_v52, %v1092_v2 }
 0x143   : > { %1240 = vadd.xlane.f32.xlu0 %v1226_v49  ;;  %1170 = vst [vmem:[#allocation2 + $0x38] sm:$0xff] %v1157_v48  ;;  %v1227_v50 = vmul.f32 %v1157_v48, %v1157_v48 }
 0x145   : > { %1193 = vadd.xlane.f32.xlu1 %v1157_v48 }
 0x149   : > { %1242 = vadd.xlane.f32.xlu1 %v1227_v50 }
 0x1b0   : > { %v1180_v4 = vpop.xlane.xlu0 %1179 }
 0x1b1   : > { %v1195_v5 = vadd.f32 %v1180_v4, %v1171_v3 }
 0x1b3   : > { %1204 = vst.msk [vmem:[#allocation3] sm:$0xff] %vm1203_vm2, %v1195_v5 }
 0x1b4   : > { %v1229_v7 = vpop.xlane.xlu0 %1228 }
 0x1b5   : > { %v1244_v9 = vadd.f32 %v1229_v7, %v1212_v6 }
 0x1b6   : > { %v1231_v10 = vpop.xlane.xlu1 %1230 }
 0x1b7   : > { %1252 = vst.msk [vmem:[#allocation4] sm:$0xff] %vm1203_vm2, %v1244_v9  ;;  %v1245_v12 = vadd.f32 %v1231_v10, %v1213_v8 }
 0x1b8   : > { %v1182_v13 = vpop.xlane.xlu0 %1181 }
 0x1b9   : > { %1253 = vst.msk [vmem:[#allocation4 + $0x8] sm:$0xff] %vm1203_vm2, %v1245_v12  ;;  %v1196_v15 = vadd.f32 %v1182_v13, %v1172_v11 }
 0x1ba   : > { %v1184_v16 = vpop.xlane.xlu1 %1183 }
 0x1bb   : > { %1205 = vst.msk [vmem:[#allocation3 + $0x8] sm:$0xff] %vm1203_vm2, %v1196_v15  ;;  %v1197_v18 = vadd.f32 %v1184_v16, %v1173_v14 }
 0x1bc   : > { %v1233_v19 = vpop.xlane.xlu0 %1232 }
 0x1bd   : > { %1206 = vst.msk [vmem:[#allocation3 + $0x10] sm:$0xff] %vm1203_vm2, %v1197_v18  ;;  %v1246_v21 = vadd.f32 %v1233_v19, %v1214_v17 }
 0x1be   : > { %v1186_v22 = vpop.xlane.xlu1 %1185 }
 0x1bf   : > { %1254 = vst.msk [vmem:[#allocation4 + $0x10] sm:$0xff] %vm1203_vm2, %v1246_v21  ;;  %v1198_v24 = vadd.f32 %v1186_v22, %v1174_v20 }
 0x1c0   : > { %v1188_v25 = vpop.xlane.xlu0 %1187 }
 0x1c1   : > { %1207 = vst.msk [vmem:[#allocation3 + $0x18] sm:$0xff] %vm1203_vm2, %v1198_v24  ;;  %v1199_v27 = vadd.f32 %v1188_v25, %v1175_v23 }
 0x1c2   : > { %v1235_v28 = vpop.xlane.xlu1 %1234 }
 0x1c3   : > { %1208 = vst.msk [vmem:[#allocation3 + $0x20] sm:$0xff] %vm1203_vm2, %v1199_v27  ;;  %v1247_v30 = vadd.f32 %v1235_v28, %v1215_v26 }
 0x1c4   : > { %v1237_v31 = vpop.xlane.xlu0 %1236 }
 0x1c5   : > { %1255 = vst.msk [vmem:[#allocation4 + $0x18] sm:$0xff] %vm1203_vm2, %v1247_v30  ;;  %v1248_v33 = vadd.f32 %v1237_v31, %v1216_v29 }
 0x1c6   : > { %v1190_v34 = vpop.xlane.xlu1 %1189 }
 0x1c7   : > { %1256 = vst.msk [vmem:[#allocation4 + $0x20] sm:$0xff] %vm1203_vm2, %v1248_v33  ;;  %v1200_v36 = vadd.f32 %v1190_v34, %v1176_v32 }
 0x1c8   : > { %v1192_v37 = vpop.xlane.xlu0 %1191 }
 0x1c9   : > { %1209 = vst.msk [vmem:[#allocation3 + $0x28] sm:$0xff] %vm1203_vm2, %v1200_v36  ;;  %v1201_v51 = vadd.f32 %v1192_v37, %v1177_v35 }
 0x1ca   : > { %v1239_v52 = vpop.xlane.xlu1 %1238 }
 0x1cb   : > { %1210 = vst.msk [vmem:[#allocation3 + $0x30] sm:$0xff] %vm1203_vm2, %v1201_v51  ;;  %v1249_v41 = vadd.f32 %v1239_v52, %v1217_v38 }
 0x1cc   : > { %v1241_v53 = vpop.xlane.xlu0 %1240 }
 0x1cd   : > { %1257 = vst.msk [vmem:[#allocation4 + $0x28] sm:$0xff] %vm1203_vm2, %v1249_v41  ;;  %v1250_v40 = vadd.f32 %v1241_v53, %v1218_v39 }
 0x1ce   : > { %v1194_v42 = vpop.xlane.xlu1 %1193 }
 0x1cf   : > { %1258 = vst.msk [vmem:[#allocation4 + $0x30] sm:$0xff] %vm1203_vm2, %v1250_v40  ;;  %v1202_v55 = vadd.f32 %v1194_v42, %v1178_v54 }
 0x1d1   : > { %1211 = vst.msk [vmem:[#allocation3 + $0x38] sm:$0xff] %vm1203_vm2, %v1202_v55 }
 0x1d2   : > { %v1243_v57 = vpop.xlane.xlu1 %1242 }
 0x1d3   : > { %v1251_v58 = vadd.f32 %v1243_v57, %v1219_v56 }
 0x1d5   : > { %1259 = vst.msk [vmem:[#allocation4 + $0x38] sm:$0xff] %vm1203_vm2, %v1251_v58 }
 0x1d6 PF: > { %p1701_p6 = scmp.ne.s32.totalorder %s2009_s15, 1 }
 0x1d8   : > { %1263 = sbr.rel (%p1701_p6) target bundleno = 663 (0x297), region = 48 }
 0x1dd   : > { %v1277_v43 = vld [vmem:[#allocation3 + $0x10] sm:$0xff]  ;;  %v2020_v45 = vmov 0   ;;  %v1275_v60 = vld [vmem:[#allocation3] sm:$0xff]  ;;  %v1278_v0 = vld [vmem:[#allocation3 + $0x18] sm:$0xff] }
 0x1de   : > { %v1293_v44 = vld [vmem:[#allocation4 + $0x10] sm:$0xff]  ;;  %1978 = vset.pattern.permute.xlu1 %v2020_v45  ;;  %1977 = vset.pattern.permute.xlu0 %v2020_v45  ;;  %v2378_v46 = vmul.f32 0.0625, %v1277_v43  ;;  %v1291_v61 = vld [vmem:[#allocation4] sm:$0xff]  ;;  %v2380_v62 = vmul.f32 0.0625, %v1275_v60  ;;  %v1294_v1 = vld [vmem:[#allocation4 + $0x18] sm:$0xff]  ;;  %v2384_v47 = vmul.f32 0.0625, %v1278_v0 }
 0x1df   : > { %v1301_v59 = vmul.f32 0.0625, %v1293_v44  ;;  %v1299_v63 = vmul.f32 0.0625, %v1291_v61  ;;  %v1302_v49 = vmul.f32 0.0625, %v1294_v1  ;;  %v1276_v48 = vld [vmem:[#allocation3 + $0x8] sm:$0xff]  ;;  %v1279_v12 = vld [vmem:[#allocation3 + $0x20] sm:$0xff]  ;;  %v1282_v18 = vld [vmem:[#allocation3 + $0x38] sm:$0xff] }
 0x1e0   : > { %v1309_v2 = vmul.f32 %v2378_v46, %v2378_v46  ;;  %v1292_v50 = vld [vmem:[#allocation4 + $0x8] sm:$0xff]  ;;  %v1307_v3 = vmul.f32 %v2380_v62, %v2380_v62  ;;  %v2388_v4 = vmul.f32 0.0625, %v1276_v48  ;;  %v1310_v9 = vmul.f32 %v2384_v47, %v2384_v47  ;;  %v1295_v13 = vld [vmem:[#allocation4 + $0x20] sm:$0xff]  ;;  %v1298_v19 = vld [vmem:[#allocation4 + $0x38] sm:$0xff] }
 0x1e1   : > { %v1300_v5 = vmul.f32 0.0625, %v1292_v50  ;;  %v1280_v6 = vld [vmem:[#allocation3 + $0x28] sm:$0xff]  ;;  %v2396_v16 = vmul.f32 0.0625, %v1279_v12  ;;  %v1303_v17 = vmul.f32 0.0625, %v1295_v13  ;;  %v2400_v23 = vmul.f32 0.0625, %v1282_v18  ;;  %v1281_v24 = vld [vmem:[#allocation3 + $0x30] sm:$0xff] }
 0x1e2   : > { %v1296_v7 = vld [vmem:[#allocation4 + $0x28] sm:$0xff]  ;;  %v1317_v8 = vsub.f32 %v1301_v59, %v1309_v2  ;;  %v2392_v10 = vmul.f32 0.0625, %v1280_v6  ;;  %v1315_v14 = vsub.f32 %v1299_v63, %v1307_v3  ;;  %v1308_v15 = vmul.f32 %v2388_v4, %v2388_v4  ;;  %v1297_v33 = vld [vmem:[#allocation4 + $0x30] sm:$0xff]  ;;  %v1331_v45 = vld [vmem:[%s2501_s2] sm:$0xff] }
 0x1e3   : > { %v1304_v11 = vmul.f32 0.0625, %v1296_v7  ;;  %v1318_v21 = vsub.f32 %v1302_v49, %v1310_v9  ;;  %v1311_v27 = vmul.f32 %v2396_v16, %v2396_v16  ;;  %v1306_v28 = vmul.f32 0.0625, %v1298_v19  ;;  %v1333_v44 = vld [vmem:[%s2501_s2 + $0x10] sm:$0xff]  ;;  %v1334_v60 = vld [vmem:[%s2501_s2 + $0x18] sm:$0xff]  ;;  %v1332_v0 = vld [vmem:[%s2501_s2 + $0x8] sm:$0xff] }
 0x1e4   : > { %v1325_v20 = vmax.f32 %v1317_v8, 0.0  ;;  %v1312_v22 = vmul.f32 %v2392_v10, %v2392_v10  ;;  %v1323_v25 = vmax.f32 %v1315_v14, 0.0  ;;  %v1316_v26 = vsub.f32 %v1300_v5, %v1308_v15  ;;  %v1336_v5 = vld [vmem:[%s2501_s2 + $0x28] sm:$0xff]  ;;  %v1335_v7 = vld [vmem:[%s2501_s2 + $0x20] sm:$0xff]  ;;  %v1338_v12 = vld [vmem:[%s2501_s2 + $0x38] sm:$0xff] }
 0x1e5   : > { %v1326_v30 = vmax.f32 %v1318_v21, 0.0  ;;  %v1314_v32 = vmul.f32 %v2400_v23, %v2400_v23  ;;  %v1319_v36 = vsub.f32 %v1303_v17, %v1311_v27  ;;  %v2406_v37 = vmul.f32 0.0625, %v1281_v24  ;;  %v1337_v13 = vld [vmem:[%s2501_s2 + $0x30] sm:$0xff]  ;;  %v1363_v21 = vld [vmem:[%s2502_s3] sm:$0xff] }
 0x1e6   : > { %v1341_v29 = vadd.f32 1e-05, %v1325_v20  ;;  %v1320_v31 = vsub.f32 %v1304_v11, %v1312_v22  ;;  %v1339_v34 = vadd.f32 1e-05, %v1323_v25  ;;  %v1324_v35 = vmax.f32 %v1316_v26, 0.0  ;;  %v1364_v20 = vld [vmem:[%s2502_s3 + $0x8] sm:$0xff] }
 0x1e7   : > { %v1342_v38 = vadd.f32 1e-05, %v1326_v30  ;;  %v1322_v52 = vsub.f32 %v1306_v28, %v1314_v32  ;;  %v1327_v41 = vmax.f32 %v1319_v36, 0.0  ;;  %v1305_v53 = vmul.f32 0.0625, %v1297_v33  ;;  %v1365_v26 = vld [vmem:[%s2502_s3 + $0x10] sm:$0xff]  ;;  %v1367_v30 = vld [vmem:[%s2502_s3 + $0x20] sm:$0xff] }
 0x1e8   : > { %1979 = vrsqrt.f32 %v1341_v29  ;;  %v1328_v51 = vmax.f32 %v1320_v31, 0.0  ;;  %v1340_v39 = vadd.f32 1e-05, %v1324_v35  ;;  %v1313_v42 = vmul.f32 %v2406_v37, %v2406_v37 }
 0x1e9   : > { %1981 = vrsqrt.f32 %v1339_v34  ;;  %v1330_v40 = vmax.f32 %v1322_v52, 0.0  ;;  %v1343_v55 = vadd.f32 1e-05, %v1327_v41 }
 0x1ea   : > { %1983 = vrsqrt.f32 %v1342_v38  ;;  %v1344_v54 = vadd.f32 1e-05, %v1328_v51  ;;  %v1321_v57 = vsub.f32 %v1305_v53, %v1313_v42  ;;  %v1268_v53 = vld [vmem:[#allocation2] sm:$0xff] }
 0x1eb   : > { %1985 = vrsqrt.f32 %v1340_v39  ;;  %v1346_v56 = vadd.f32 1e-05, %v1330_v40  ;;  %v1267_v40 = vld [vmem:[#allocation2 + $0x30] sm:$0xff] }
 0x1ec   : > { %1987 = vrsqrt.f32 %v1344_v54  ;;  %v1329_v58 = vmax.f32 %v1321_v57, 0.0 }
 0x1ed   : > { %1989 = vrsqrt.f32 %v1343_v55 }
 0x1ee   : > { %1991 = vrsqrt.f32 %v1346_v56  ;;  %v1345_v43 = vadd.f32 1e-05, %v1329_v58  ;;  %v1270_v56 = vld [vmem:[#allocation2 + $0x10] sm:$0xff]  ;;  %v1269_v58 = vld [vmem:[#allocation2 + $0x18] sm:$0xff] }
 0x1f0   : > { %1993 = vrsqrt.f32 %v1345_v43 }
 0x1f5   : > { %v1980_v59 = vpop.eup %1979 }
 0x1f6   : > { %v1982_v61 = vpop.eup %1981  ;;  %v1357_v63 = vmul.f32 %v1980_v59, %v1333_v44 }
 0x1f7   : > { %v1984_v1 = vpop.eup %1983  ;;  %v1355_v2 = vmul.f32 %v1982_v61, %v1331_v45 }
 0x1f8   : > { %v1986_v49 = vpop.eup %1985  ;;  %1399 = vperm.xlu1 %1978, %v1357_v63   ;;  %v1358_v48 = vmul.f32 %v1984_v1, %v1334_v60  ;;  %v1373_v25 = vmul.f32 %v1357_v63, %v2378_v46  ;;  %v1368_v46 = vld [vmem:[%s2502_s3 + $0x28] sm:$0xff]  ;;  %v1272_v63 = vld [vmem:[#allocation2 + $0x20] sm:$0xff] }
 0x1f9   : > { %v1988_v50 = vpop.eup %1987  ;;  %1389 = vperm.xlu0 %1977, %v1355_v2   ;;  %v1356_v3 = vmul.f32 %v1986_v49, %v1332_v0  ;;  %v1371_v18 = vmul.f32 %v1355_v2, %v2380_v62  ;;  %v1366_v62 = vld [vmem:[%s2502_s3 + $0x18] sm:$0xff]  ;;  %v1271_v2 = vld [vmem:[#allocation2 + $0x8] sm:$0xff] }
 0x1fa   : > { %v1990_v6 = vpop.eup %1989  ;;  %v1360_v8 = vmul.f32 %v1988_v50, %v1336_v5  ;;  %v1374_v24 = vmul.f32 %v1358_v48, %v2384_v47  ;;  %v1381_v29 = vsub.f32 %v1365_v26, %v1373_v25 }
 0x1fb   : > { %v1992_v9 = vpop.eup %1991  ;;  %v1359_v11 = vmul.f32 %v1990_v6, %v1335_v7  ;;  %v1372_v17 = vmul.f32 %v1356_v3, %v2388_v4  ;;  %v1379_v4 = vsub.f32 %v1363_v21, %v1371_v18 }
 0x1fc   : > { %1404 = vperm.xlu1 %1978, %v1358_v48   ;;  %v1362_v15 = vmul.f32 %v1992_v9, %v1338_v12  ;;  %v1382_v27 = vsub.f32 %v1366_v62, %v1374_v24  ;;  %v1376_v28 = vmul.f32 %v1360_v8, %v2392_v10  ;;  %v1370_v10 = vld [vmem:[%s2502_s3 + $0x38] sm:$0xff] }
 0x1fd   : > { %1394 = vperm.xlu0 %1977, %v1356_v3   ;;  %v1994_v14 = vpop.eup %1993  ;;  %v1380_v22 = vsub.f32 %v1364_v20, %v1372_v17  ;;  %v1375_v47 = vmul.f32 %v1359_v11, %v2396_v16  ;;  %v1369_v16 = vld [vmem:[%s2502_s3 + $0x30] sm:$0xff]  ;;  %v1274_v9 = vld [vmem:[#allocation2 + $0x38] sm:$0xff] }
 0x1fe   : > { %v1361_v19 = vmul.f32 %v1994_v14, %v1337_v13  ;;  %v1384_v31 = vsub.f32 %v1368_v46, %v1376_v28  ;;  %v1378_v32 = vmul.f32 %v1362_v15, %v2400_v23  ;;  %v1273_v13 = vld [vmem:[#allocation2 + $0x28] sm:$0xff] }
 0x1ff   : > { %v1383_v33 = vsub.f32 %v1367_v30, %v1375_v47 }
 0x200   : > { %1414 = vperm.xlu1 %1978, %v1360_v8   ;;  %v1377_v34 = vmul.f32 %v1361_v19, %v2406_v37  ;;  %v1386_v35 = vsub.f32 %v1370_v10, %v1378_v32 }
 0x201   : > { %1409 = vperm.xlu0 %1977, %v1359_v11  }
 0x202   : > { %v1385_v36 = vsub.f32 %v1369_v16, %v1377_v34 }
 0x204   : > { %1424 = vperm.xlu1 %1978, %v1362_v15  }
 0x205   : > { %1419 = vperm.xlu0 %1977, %v1361_v19  }
 0x208   : > { %1442 = vperm.xlu1 %1978, %v1380_v22  }
 0x209   : > { %1437 = vperm.xlu0 %1977, %v1379_v4  }
 0x20c   : > { %1452 = vperm.xlu1 %1978, %v1382_v27  }
 0x20d   : > { %1447 = vperm.xlu0 %1977, %v1381_v29  }
 0x210   : > { %1462 = vperm.xlu1 %1978, %v1384_v31  }
 0x211   : > { %1457 = vperm.xlu0 %1977, %v1383_v33  }
 0x214   : > { %1472 = vperm.xlu1 %1978, %v1386_v35  }
 0x215   : > { %1467 = vperm.xlu0 %1977, %v1385_v36  }
 0x273   : > { %v1400_v38 = vpop.permute.xlu1 %1399 }
 0x274   : > { %v1390_v23 = vpop.permute.xlu0 %1389  ;;  %v1429_v61 = vmul.f32 %v1400_v38, %v1269_v58 }
 0x275   : > { %v1427_v55 = vmul.f32 %v1390_v23, %v1267_v40 }
 0x277   : > { %v1405_v51 = vpop.permute.xlu1 %1404 }
 0x278   : > { %v1395_v52 = vpop.permute.xlu0 %1394  ;;  %v1430_v59 = vmul.f32 %v1405_v51, %v1270_v56 }
 0x279   : > { %v1428_v42 = vmul.f32 %v1395_v52, %v1268_v53 }
 0x27b   : > { %v1415_v39 = vpop.permute.xlu1 %1414 }
 0x27c   : > { %v1410_v41 = vpop.permute.xlu0 %1409  ;;  %v1432_v6 = vmul.f32 %v1415_v39, %v1272_v63 }
 0x27d   : > { %v1431_v8 = vmul.f32 %v1410_v41, %v1271_v2 }
 0x27f   : > { %v1425_v54 = vpop.permute.xlu1 %1424 }
 0x280   : > { %v1420_v37 = vpop.permute.xlu0 %1419  ;;  %v1434_v20 = vmul.f32 %v1425_v54, %v1274_v9 }
 0x281   : > { %v1433_v22 = vmul.f32 %v1420_v37, %v1273_v13 }
 0x283   : > { %v1443_v57 = vpop.permute.xlu1 %1442 }
 0x284   : > { %v1476_v43 = vadd.f32 %v1443_v57, %v1428_v42  ;;  %v1438_v44 = vpop.permute.xlu0 %1437 }
 0x285   : > { %v1475_v45 = vadd.f32 %v1438_v44, %v1427_v55 }
 0x286   : > { %vm1484_vm3 = vcmp.ge.f32.partialorder %v1476_v43, 0.0  ;;  %v1492_v60 = vmul.f32 0.01, %v1476_v43 }
 0x287   : > { %vm1483_vm4 = vcmp.ge.f32.partialorder %v1475_v45, 0.0  ;;  %v1491_v0 = vmul.f32 0.01, %v1475_v45  ;;  %v1453_v1 = vpop.permute.xlu1 %1452 }
 0x288   : > { %v1500_v49 = vsel %vm1484_vm3, %v1476_v43, %v1492_v60  ;;  %v1478_v48 = vadd.f32 %v1453_v1, %v1430_v59  ;;  %v1448_v50 = vpop.permute.xlu0 %1447 }
 0x289   : > { %1508 = vst [vmem:[%s2503_s4 + $0x8] sm:$0xff] %v1500_v49  ;;  %v1499_v3 = vsel %vm1483_vm4, %v1475_v45, %v1491_v0  ;;  %v1477_v5 = vadd.f32 %v1448_v50, %v1429_v61 }
 0x28a   : > { %1507 = vst [vmem:[%s2503_s4] sm:$0xff] %v1499_v3  ;;  %vm1486_vm5 = vcmp.ge.f32.partialorder %v1478_v48, 0.0  ;;  %v1494_v7 = vmul.f32 0.01, %v1478_v48 }
 0x28b   : > { %vm1485_vm6 = vcmp.ge.f32.partialorder %v1477_v5, 0.0  ;;  %v1493_v11 = vmul.f32 0.01, %v1477_v5  ;;  %v1463_v12 = vpop.permute.xlu1 %1462 }
 0x28c   : > { %v1502_v14 = vsel %vm1486_vm5, %v1478_v48, %v1494_v7  ;;  %v1480_v15 = vadd.f32 %v1463_v12, %v1432_v6  ;;  %v1458_v17 = vpop.permute.xlu0 %1457 }
 0x28d   : > { %1510 = vst [vmem:[%s2503_s4 + $0x18] sm:$0xff] %v1502_v14  ;;  %v1501_v18 = vsel %vm1485_vm6, %v1477_v5, %v1493_v11  ;;  %v1479_v19 = vadd.f32 %v1458_v17, %v1431_v8 }
 0x28e   : > { %1509 = vst [vmem:[%s2503_s4 + $0x10] sm:$0xff] %v1501_v18  ;;  %vm1488_vm7 = vcmp.ge.f32.partialorder %v1480_v15, 0.0  ;;  %v1496_v21 = vmul.f32 0.01, %v1480_v15 }
 0x28f   : > { %vm1487_vm8 = vcmp.ge.f32.partialorder %v1479_v19, 0.0  ;;  %v1495_v24 = vmul.f32 0.01, %v1479_v19  ;;  %v1473_v25 = vpop.permute.xlu1 %1472 }
 0x290   : > { %v1504_v4 = vsel %vm1488_vm7, %v1480_v15, %v1496_v21  ;;  %v1482_v62 = vadd.f32 %v1473_v25, %v1434_v20  ;;  %v1468_v26 = vpop.permute.xlu0 %1467 }
 0x291   : > { %1512 = vst [vmem:[%s2503_s4 + $0x28] sm:$0xff] %v1504_v4  ;;  %v1503_v27 = vsel %vm1487_vm8, %v1479_v19, %v1495_v24  ;;  %v1481_v28 = vadd.f32 %v1468_v26, %v1433_v22 }
 0x292   : > { %1511 = vst [vmem:[%s2503_s4 + $0x20] sm:$0xff] %v1503_v27  ;;  %vm1490_vm9 = vcmp.ge.f32.partialorder %v1482_v62, 0.0  ;;  %v1498_v29 = vmul.f32 0.01, %v1482_v62 }
 0x293   : > { %vm1489_vm10 = vcmp.ge.f32.partialorder %v1481_v28, 0.0  ;;  %v1497_v46 = vmul.f32 0.01, %v1481_v28 }
 0x294   : > { %v1506_v47 = vsel %vm1490_vm9, %v1482_v62, %v1498_v29 }
 0x295   : > { %1514 = vst [vmem:[%s2503_s4 + $0x38] sm:$0xff] %v1506_v47  ;;  %v1505_v30 = vsel %vm1489_vm10, %v1481_v28, %v1497_v46 }
 0x296   : > { %1513 = vst [vmem:[%s2503_s4 + $0x30] sm:$0xff] %v1505_v30 }
 0x297 PF: > { %s14_s17 = sadd.s32 1, %s2017_s17   ;;  %s2504_s15 = smov %s2013_s16 }
 0x298   : > { %p11_p7 = scmp.ge.s32.totalorder %s14_s17, 4   ;;  %s2505_s16 = smov %s2507_s18 }
 0x29a   :  { %13 = sbr.rel (!%p11_p7) target bundleno = 2 (0x2), region = 80 }

// kernel: forward.14
= control target key start
LH: loop header
LB: loop body
LE: loop exit
PB: predicated region body
PF: predicated region fallthrough
CT: control target
= control target key end

     0   :  { %s1695_s15 = smov 0   ;;  %s1697_s16 = smov 0   ;;  %s2039_s0 = inlined_call_operand.vmem [shape: bf16[1,576,128], index: 0, kind: input, shape index: {}]   ;;  %s2040_s1 = inlined_call_operand.vmem [shape: bf16[64,576], index: 1, kind: input, shape index: {}]   ;;  %s2041_s2 = inlined_call_operand.vmem [shape: f32[64,1], index: 2, kind: input, shape index: {}]   ;;  %s2042_s3 = inlined_call_operand.vmem [shape: f32[64,1], index: 3, kind: input, shape index: {}]   ;;  %s2043_s4 = inlined_call_operand.vmem [shape: f32[1,64,128], index: 4, kind: output, shape index: {}]  }
   0x1   :  { %s1699_s17 = smov 0  }
   0x2 LB: > { %s29_s18 = sadd.s32 1, %s1662_s16  ;;  %p1355_p0 = scmp.ge.s32.totalorder %s1666_s17, 1  ;;  %s1666_s17 = sphi %s1699_s17, %s14_s17   ;;  %s1662_s16 = sphi %s1697_s16, %s2045_s16   ;;  %s1658_s15 = sphi %s1695_s15, %s2044_s15  }
   0x3   : > { %p31_p1 = scmp.ge.s32.totalorder %s29_s18, 2  ;;  %p198_p2 = scmp.lt.s32.totalorder %s1666_s17, 3 }
   0x5   : > { %s2047_s18 = smov (%p31_p1, %s29_s18), 0  ;;  %p199_p3 = pnand %p1355_p0, %p198_p2 }
   0x6   : > { %p257_p4 = scmp.eq.s32.totalorder (!%p199_p3), %s1658_s15, 0 }
   0x7   : > { %202 = sbr.rel (%p199_p3) target bundleno = 652 (0x28c), region = 36 }
   0xc   : > { %262 = sbr.rel (!%p257_p4) target bundleno = 21 (0x15), region = 40  ;;  %vm263_vm0 = vcmask (%p257_p4), 7168   ;;  %v1668_v0 = vmov (%p257_p4), 0.0  }
   0xd   : > { %264 = vst.msk [vmem:[#allocation3] sm:$0xff] (%p257_p4), %vm263_vm0, %v1668_v0  ;;  %265 = vst.msk [vmem:[#allocation3 + $0x8] sm:$0xff] (%p257_p4), %vm263_vm0, %v1668_v0 }
   0xe   : > { %266 = vst.msk [vmem:[#allocation3 + $0x10] sm:$0xff] (%p257_p4), %vm263_vm0, %v1668_v0  ;;  %267 = vst.msk [vmem:[#allocation3 + $0x18] sm:$0xff] (%p257_p4), %vm263_vm0, %v1668_v0 }
   0xf   : > { %268 = vst.msk [vmem:[#allocation3 + $0x20] sm:$0xff] (%p257_p4), %vm263_vm0, %v1668_v0  ;;  %269 = vst.msk [vmem:[#allocation3 + $0x28] sm:$0xff] (%p257_p4), %vm263_vm0, %v1668_v0 }
  0x10   : > { %270 = vst.msk [vmem:[#allocation3 + $0x30] sm:$0xff] (%p257_p4), %vm263_vm0, %v1668_v0  ;;  %271 = vst.msk [vmem:[#allocation3 + $0x38] sm:$0xff] (%p257_p4), %vm263_vm0, %v1668_v0 }
  0x11   : > { %272 = vst.msk [vmem:[#allocation4] sm:$0xff] %vm263_vm0, %v1668_v0  ;;  %273 = vst.msk [vmem:[#allocation4 + $0x8] sm:$0xff] %vm263_vm0, %v1668_v0 }
  0x12   : > { %274 = vst.msk [vmem:[#allocation4 + $0x10] sm:$0xff] %vm263_vm0, %v1668_v0  ;;  %275 = vst.msk [vmem:[#allocation4 + $0x18] sm:$0xff] %vm263_vm0, %v1668_v0 }
  0x13   : > { %276 = vst.msk [vmem:[#allocation4 + $0x20] sm:$0xff] %vm263_vm0, %v1668_v0  ;;  %277 = vst.msk [vmem:[#allocation4 + $0x28] sm:$0xff] %vm263_vm0, %v1668_v0 }
  0x14   : > { %278 = vst.msk [vmem:[#allocation4 + $0x30] sm:$0xff] %vm263_vm0, %v1668_v0  ;;  %279 = vst.msk [vmem:[#allocation4 + $0x38] sm:$0xff] %vm263_vm0, %v1668_v0 }
  0x15 PF: > { %p1357_p5 = scmp.ne.s32.totalorder %s1658_s15, 0 }
  0x17   : > { %282 = sbr.rel (%p1357_p5) target bundleno = 459 (0x1cb), region = 44 }
  0x1c   : > { %v1562_v1 = vld [vmem:[%s2039_s0 + $0x78] sm:$0xff]   ;;  %v1566_v5 = vld [vmem:[%s2039_s0 + $0x70] sm:$0xff]   ;;  %v1570_v9 = vld [vmem:[%s2039_s0 + $0x68] sm:$0xff]   ;;  %vm695_vm1 = vcmask 523264   ;;  %vm946_vm2 = vcmask 7168  }
  0x1d   : > { %v1563_v2 = vld [vmem:[%s2039_s0 + $0xf8] sm:$0xff]   ;;  %1424 = vmatprep.subr.bf16.mxu0 %v1562_v1  ;;  %v1567_v6 = vld [vmem:[%s2039_s0 + $0xf0] sm:$0xff]   ;;  %v1571_v10 = vld [vmem:[%s2039_s0 + $0xe8] sm:$0xff]  }
  0x1e   : > { %v1564_v3 = vld [vmem:[%s2039_s0 + $0x38] sm:$0xff]   ;;  %1464 = vmatprep.subr.bf16.mxu1 %v1563_v2  ;;  %v1568_v7 = vld [vmem:[%s2039_s0 + $0x30] sm:$0xff]   ;;  %v1572_v11 = vld [vmem:[%s2039_s0 + $0x28] sm:$0xff]  }
  0x1f   : > { %v1565_v4 = vld [vmem:[%s2039_s0 + $0xb8] sm:$0xff]   ;;  %1425 = vmatpush3.bf16.msra.mxu0 %v1564_v3  ;;  %v1569_v8 = vld [vmem:[%s2039_s0 + $0xb0] sm:$0xff]   ;;  %v1573_v12 = vld [vmem:[%s2039_s0 + $0xa8] sm:$0xff]  }
  0x20   : > { %1465 = vmatpush3.bf16.msra.mxu1 %v1565_v4  ;;  %1426 = vmatprep.subr.bf16.mxu0 %v1566_v5  ;;  %v1574_v13 = vld [vmem:[%s2039_s0 + $0x60] sm:$0xff]   ;;  %v1578_v17 = vld [vmem:[%s2039_s0 + $0x58] sm:$0xff]   ;;  %v1582_v21 = vld [vmem:[%s2039_s0 + $0x50] sm:$0xff]  }
  0x21   : > { %1466 = vmatprep.subr.bf16.mxu1 %v1567_v6  ;;  %v1575_v14 = vld [vmem:[%s2039_s0 + $0xe0] sm:$0xff]   ;;  %v1579_v18 = vld [vmem:[%s2039_s0 + $0xd8] sm:$0xff]   ;;  %v1583_v22 = vld [vmem:[%s2039_s0 + $0xd0] sm:$0xff]  }
  0x22   : > { %v1576_v15 = vld [vmem:[%s2039_s0 + $0x20] sm:$0xff]   ;;  %v1580_v19 = vld [vmem:[%s2039_s0 + $0x18] sm:$0xff]   ;;  %v1584_v23 = vld [vmem:[%s2039_s0 + $0x10] sm:$0xff]  }
  0x23   : > { %1427 = vmatpush3.bf16.msra.mxu0 %v1568_v7  ;;  %v1577_v16 = vld [vmem:[%s2039_s0 + $0xa0] sm:$0xff]   ;;  %v1581_v20 = vld [vmem:[%s2039_s0 + $0x98] sm:$0xff]   ;;  %v1585_v24 = vld [vmem:[%s2039_s0 + $0x90] sm:$0xff]  }
  0x24   : > { %1467 = vmatpush3.bf16.msra.mxu1 %v1569_v8  ;;  %1428 = vmatprep.subr.bf16.mxu0 %v1570_v9  ;;  %v1586_v25 = vld [vmem:[%s2039_s0 + $0x48] sm:$0xff]   ;;  %v1590_v29 = vld [vmem:[%s2039_s0 + $0x40] sm:$0xff]   ;;  %v1600_v37 = vld [vmem:[%s2039_s0 + $0x118] sm:$0xff]  }
  0x25   : > { %1468 = vmatprep.subr.bf16.mxu1 %v1571_v10  ;;  %v1587_v26 = vld [vmem:[%s2039_s0 + $0xc8] sm:$0xff]   ;;  %v1591_v30 = vld [vmem:[%s2039_s0 + $0xc0] sm:$0xff]   ;;  %v1607_v40 = vld [vmem:[%s2039_s0 + $0x110] sm:$0xff]  }
  0x26   : > { %v1588_v27 = vld [vmem:[%s2039_s0 + $0x8] sm:$0xff]   ;;  %v1592_v31 = vld [vmem:[%s2039_s0] sm:$0xff]   ;;  %v1610_v44 = vld [vmem:[%s2040_s1 + $0x5c] ss:$20 sps:$4 sm:$0xff]  }
  0x27   : > { %1429 = vmatpush3.bf16.msra.mxu0 %v1572_v11  ;;  %v1589_v28 = vld [vmem:[%s2039_s0 + $0x88] sm:$0xff]   ;;  %v1593_v32 = vld [vmem:[%s2039_s0 + $0x80] sm:$0xff]   ;;  %v1615_v49 = vld [vmem:[%s2040_s1 + $0x7c] ss:$20 sps:$4 sm:$0xff]  }
  0x28   : > { %1469 = vmatpush3.bf16.msra.mxu1 %v1573_v12  ;;  %1430 = vmatprep.subr.bf16.mxu0 %v1574_v13  ;;  %v1594_v33 = vld [vmem:[%s2040_s1] ss:$20 sps:$4 sm:$0xff]   ;;  %v1596_v34 = vld [vmem:[%s2040_s1 + $0x4] ss:$20 sps:$4 sm:$0xff]   ;;  %v1597_v35 = vld [vmem:[%s2040_s1 + $0x8] ss:$20 sps:$4 sm:$0xff]  }
  0x29   : > { %1470 = vmatprep.subr.bf16.mxu1 %v1575_v14  ;;  %v1599_v36 = vld [vmem:[%s2040_s1 + $0xc] ss:$20 sps:$4 sm:$0xff]   ;;  %740 = vmatprep.mubr.bf16.mxu0 %v1596_v34  ;;  %v1603_v39 = vld [vmem:[%s2040_s1 + $0x34] ss:$20 sps:$4 sm:$0xff]   ;;  %v1606_v42 = vld [vmem:[%s2040_s1 + $0x30] ss:$20 sps:$4 sm:$0xff]  }
  0x2a   : > { %805 = vmatprep.mubr.bf16.mxu1 %v1599_v36  ;;  %v1601_v38 = vld [vmem:[%s2040_s1 + $0x2c] ss:$20 sps:$4 sm:$0xff]   ;;  %v1605_v41 = vld [vmem:[%s2040_s1 + $0x28] ss:$20 sps:$4 sm:$0xff]   ;;  %v1612_v47 = vld [vmem:[%s2040_s1 + $0x50] ss:$20 sps:$4 sm:$0xff]  }
  0x2b   : > { %1431 = vmatpush3.bf16.msra.mxu0 %v1576_v15  ;;  %v1608_v43 = vld [vmem:[%s2040_s1 + $0x54] ss:$20 sps:$4 sm:$0xff]   ;;  %v1621_v46 = vld [vmem:[%s2039_s0 + $0x100] sm:$0xff]   ;;  %v1613_v48 = vld [vmem:[%s2040_s1 + $0x58] ss:$20 sps:$4 sm:$0xff]  }
  0x2c   : > { %1471 = vmatpush3.bf16.msra.mxu1 %v1577_v16  ;;  %1432 = vmatprep.subr.bf16.mxu0 %v1578_v17  ;;  %v1614_v45 = vld [vmem:[%s2039_s0 + $0x108] sm:$0xff]   ;;  %v1617_v50 = vld [vmem:[%s2040_s1 + $0x84] ss:$20 sps:$4 sm:$0xff]   ;;  %v1620_v52 = vld [vmem:[%s2040_s1 + $0x80] ss:$20 sps:$4 sm:$0xff]  }
  0x2d   : > { %1472 = vmatprep.subr.bf16.mxu1 %v1579_v18  ;;  %v1619_v51 = vld [vmem:[%s2040_s1 + $0x78] ss:$20 sps:$4 sm:$0xff]   ;;  %v1622_v53 = vld [vmem:[%s2040_s1 + $0x10] ss:$20 sps:$4 sm:$0xff]   ;;  %v1623_v54 = vld [vmem:[%s2040_s1 + $0x60] ss:$20 sps:$4 sm:$0xff]  }
  0x2e   : > { %v1624_v55 = vld [vmem:[%s2040_s1 + $0x38] ss:$20 sps:$4 sm:$0xff]   ;;  %v1625_v56 = vld [vmem:[%s2040_s1 + $0x88] ss:$20 sps:$4 sm:$0xff]  }
  0x2f   : > { %1433 = vmatpush3.bf16.msra.mxu0 %v1580_v19 }
  0x30   : > { %1473 = vmatpush3.bf16.msra.mxu1 %v1581_v20  ;;  %1434 = vmatprep.subr.bf16.mxu0 %v1582_v21 }
  0x31   : > { %1474 = vmatprep.subr.bf16.mxu1 %v1583_v22 }
  0x33   : > { %1435 = vmatpush3.bf16.msra.mxu0 %v1584_v23 }
  0x34   : > { %1475 = vmatpush3.bf16.msra.mxu1 %v1585_v24  ;;  %1436 = vmatprep.subr.bf16.mxu0 %v1586_v25 }
  0x35   : > { %1476 = vmatprep.subr.bf16.mxu1 %v1587_v26 }
  0x37   : > { %1437 = vmatpush3.bf16.msra.mxu0 %v1588_v27 }
  0x38   : > { %1477 = vmatpush3.bf16.msra.mxu1 %v1589_v28  ;;  %1438 = vmatprep.subr.bf16.mxu0 %v1590_v29 }
  0x39   : > { %1478 = vmatprep.subr.bf16.mxu1 %v1591_v30 }
  0x3b   : > { %1439 = vmatpush3.bf16.msra.mxu0 %v1592_v31 }
  0x3c   : > { %1479 = vmatpush3.bf16.msra.mxu1 %v1593_v32  ;;  %1512 = vmatprep.subr.bf16.mxu0 %v1600_v37 }
  0x3d   : > { %1528 = vmatprep.subr.bf16.mxu1 %v1600_v37 }
  0x3e   : > { %741 = vmatmul.mubr.bf16.vlgmr.msra.gmra.mxu0 %v1594_v33 }
  0x3f   : > { %806 = vmatmul.mubr.bf16.vlgmr.msra.gmra.mxu1 %v1597_v35  ;;  %1513 = vmatpush3.bf16.msra.mxu0 %v1600_v37 }
  0x40   : > { %1532 = vmatpush3.bf16.msra.mxu1 %v1600_v37  ;;  %748 = vmatprep.mubr.bf16.mxu0 %v1601_v38 }
  0x41   : > { %813 = vmatprep.mubr.bf16.mxu1 %v1603_v39  ;;  %1514 = vmatprep.subr.bf16.mxu0 %v1607_v40 }
  0x42   : > { %1529 = vmatprep.subr.bf16.mxu1 %v1607_v40 }
  0x43   : > { %1515 = vmatpush3.bf16.msra.mxu0 %v1607_v40 }
  0x44   : > { %1533 = vmatpush3.bf16.msra.mxu1 %v1607_v40  ;;  %1516 = vmatprep.subr.bf16.mxu0 %v1614_v45 }
  0x45   : > { %1530 = vmatprep.subr.bf16.mxu1 %v1614_v45 }
  0x46   : > { %749 = vmatmul.mubr.bf16.gmra.mxu0 %v1605_v41 }
  0x47   : > { %814 = vmatmul.mubr.bf16.gmra.mxu1 %v1606_v42  ;;  %756 = vmatprep.mubr.bf16.mxu0 %v1608_v43 }
  0x48   : > { %821 = vmatprep.mubr.bf16.mxu1 %v1610_v44  ;;  %1517 = vmatpush3.bf16.msra.mxu0 %v1614_v45 }
  0x49   : > { %1534 = vmatpush3.bf16.msra.mxu1 %v1614_v45  ;;  %1518 = vmatprep.subr.bf16.mxu0 %v1621_v46 }
  0x4a   : > { %1531 = vmatprep.subr.bf16.mxu1 %v1621_v46 }
  0x4c   : > { %1519 = vmatpush3.bf16.msra.mxu0 %v1621_v46 }
  0x4d   : > { %1535 = vmatpush3.bf16.msra.mxu1 %v1621_v46 }
  0x4e   : > { %757 = vmatmul.mubr.bf16.gmra.mxu0 %v1612_v47 }
  0x4f   : > { %822 = vmatmul.mubr.bf16.gmra.mxu1 %v1613_v48  ;;  %764 = vmatprep.mubr.bf16.mxu0 %v1615_v49 }
  0x50   : > { %829 = vmatprep.mubr.bf16.mxu1 %v1617_v50 }
  0x56   : > { %765 = vmatmul.mubr.bf16.gmra.mxu0 %v1619_v51 }
  0x57   : > { %830 = vmatmul.mubr.bf16.gmra.mxu1 %v1620_v52  ;;  %1520 = vmatprep.mubr.msk.bf16.mxu0 %vm695_vm1, %v1622_v53 }
  0x58   : > { %1524 = vmatprep.mubr.msk.bf16.mxu1 %vm695_vm1, %v1623_v54 }
  0x5e   : > { %1521 = vmatmul.mubr.msk.bf16.vlgmr.msra.gmra.mxu0 %vm695_vm1, %v1624_v55 }
  0x5f   : > { %1525 = vmatmul.mubr.msk.bf16.vlgmr.msra.gmra.mxu1 %vm695_vm1, %v1625_v56 }
  0xfe   : > { %v1440_v57 = vpop.f32.mrf.mxu0 }
  0xff   : > { %v1480_v58 = vpop.f32.mrf.mxu1 }
 0x100   : > { %v1441_v59 = vpop.f32.mrf.mxu0 }
 0x101   : > { %v1481_v60 = vpop.f32.mrf.mxu1  ;;  %v1442_v26 = vadd.f32 %v1441_v59, %v1440_v57 }
 0x102   : > { %v1443_v61 = vpop.f32.mrf.mxu0  ;;  %v1482_v27 = vadd.f32 %v1481_v60, %v1480_v58 }
 0x103   : > { %v1483_v62 = vpop.f32.mrf.mxu1 }
 0x104   : > { %v1444_v63 = vpop.f32.mrf.mxu0  ;;  %v808_v44 = vadd.f32 %v1482_v27, %v1442_v26  ;;  %v919_v27 = vld [vmem:[#allocation3 + $0x28] sm:$0xff] }
 0x105   : > { %v1484_v0 = vpop.f32.mrf.mxu1  ;;  %v1445_v40 = vadd.f32 %v1444_v63, %v1443_v61 }
 0x106   : > { %v1446_v1 = vpop.f32.mrf.mxu0  ;;  %v1485_v41 = vadd.f32 %v1484_v0, %v1483_v62 }
 0x107   : > { %v1486_v2 = vpop.f32.mrf.mxu1 }
 0x108   : > { %v1447_v3 = vpop.f32.mrf.mxu0  ;;  %v811_v58 = vadd.f32 %v1485_v41, %v1445_v40  ;;  %v959_v40 = vld [vmem:[#allocation4 + $0x20] sm:$0xff] }
 0x109   : > { %v1487_v4 = vpop.f32.mrf.mxu1  ;;  %v1448_v20 = vadd.f32 %v1447_v3, %v1446_v1 }
 0x10a   : > { %v1449_v5 = vpop.f32.mrf.mxu0  ;;  %v1488_v21 = vadd.f32 %v1487_v4, %v1486_v2 }
 0x10b   : > { %v1489_v6 = vpop.f32.mrf.mxu1 }
 0x10c   : > { %v1450_v7 = vpop.f32.mrf.mxu0  ;;  %v816_v35 = vadd.f32 %v1488_v21, %v1448_v20  ;;  %v921_v21 = vld [vmem:[#allocation3 + $0x38] sm:$0xff] }
 0x10d   : > { %v1490_v8 = vpop.f32.mrf.mxu1  ;;  %v1451_v32 = vadd.f32 %v1450_v7, %v1449_v5 }
 0x10e   : > { %v1452_v9 = vpop.f32.mrf.mxu0  ;;  %v1491_v33 = vadd.f32 %v1490_v8, %v1489_v6 }
 0x10f   : > { %v1492_v10 = vpop.f32.mrf.mxu1 }
 0x110   : > { %v1453_v11 = vpop.f32.mrf.mxu0  ;;  %v819_v52 = vadd.f32 %v1491_v33, %v1451_v32  ;;  %v958_v33 = vld [vmem:[#allocation4 + $0x18] sm:$0xff] }
 0x111   : > { %v1493_v12 = vpop.f32.mrf.mxu1  ;;  %v1454_v29 = vadd.f32 %v1453_v11, %v1452_v9  ;;  %v916_v9 = vld [vmem:[#allocation3 + $0x10] sm:$0xff] }
 0x112   : > { %v1455_v13 = vpop.f32.mrf.mxu0  ;;  %v1494_v30 = vadd.f32 %v1493_v12, %v1492_v10  ;;  %v920_v10 = vld [vmem:[#allocation3 + $0x30] sm:$0xff] }
 0x113   : > { %v1495_v14 = vpop.f32.mrf.mxu1 }
 0x114   : > { %v1456_v15 = vpop.f32.mrf.mxu0  ;;  %v824_v49 = vadd.f32 %v1494_v30, %v1454_v29 }
 0x115   : > { %v1496_v16 = vpop.f32.mrf.mxu1  ;;  %v1457_v45 = vadd.f32 %v1456_v15, %v1455_v13  ;;  %v917_v15 = vld [vmem:[#allocation3 + $0x18] sm:$0xff] }
 0x116   : > { %v1458_v17 = vpop.f32.mrf.mxu0  ;;  %v1497_v46 = vadd.f32 %v1496_v16, %v1495_v14  ;;  %v914_v16 = vld [vmem:[#allocation3] sm:$0xff] }
 0x117   : > { %v1498_v18 = vpop.f32.mrf.mxu1 }
 0x118   : > { %v1459_v19 = vpop.f32.mrf.mxu0  ;;  %v827_v61 = vadd.f32 %v1497_v46, %v1457_v45  ;;  %v960_v45 = vld [vmem:[#allocation4 + $0x28] sm:$0xff] }
 0x119   : > { %v1499_v22 = vpop.f32.mrf.mxu1  ;;  %v1460_v23 = vadd.f32 %v1459_v19, %v1458_v17  ;;  %v915_v46 = vld [vmem:[#allocation3 + $0x8] sm:$0xff] }
 0x11a   : > { %v1500_v24 = vadd.f32 %v1499_v22, %v1498_v18  ;;  %v1461_v25 = vpop.f32.mrf.mxu0  ;;  %v918_v22 = vld [vmem:[#allocation3 + $0x20] sm:$0xff] }
 0x11b   : > { %v1501_v28 = vpop.f32.mrf.mxu1 }
 0x11c   : > { %v1462_v31 = vpop.f32.mrf.mxu0  ;;  %v832_v39 = vadd.f32 %v1500_v24, %v1460_v23 }
 0x11d   : > { %v1502_v34 = vpop.f32.mrf.mxu1  ;;  %v1463_v36 = vadd.f32 %v1462_v31, %v1461_v25 }
 0x11e   : > { %v1503_v37 = vadd.f32 %v1502_v34, %v1501_v28  ;;  %v1522_v38 = vpop.f32.mrf.mxu0  ;;  %v957_v28 = vld [vmem:[#allocation4 + $0x10] sm:$0xff]  ;;  %v955_v34 = vld [vmem:[#allocation4] sm:$0xff] }
 0x11f   : > { %v881_v42 = vadd.f32 %v1522_v38, %v816_v35  ;;  %v1526_v43 = vpop.f32.mrf.mxu1 }
 0x120   : > { %v897_v47 = vadd.f32 %v1526_v43, %v832_v39  ;;  %v872_v48 = vpop.f32.mrf.mxu0  ;;  %v835_v55 = vadd.f32 %v1503_v37, %v1463_v36  ;;  %v956_v39 = vld [vmem:[#allocation4 + $0x8] sm:$0xff] }
 0x121   : > { %908 = vst [vmem:[#allocation2 + $0x18] sm:$0xff] %v881_v42  ;;  %v873_v50 = vadd.f32 %v872_v48, %v808_v44  ;;  %v888_v51 = vpop.f32.mrf.mxu1  ;;  %926 = vadd.xlane.f32.xlu1 %v881_v42  ;;  %v965_v1 = vmul.f32 %v881_v42, %v881_v42 }
 0x122   : > { %912 = vst [vmem:[#allocation2 + $0x28] sm:$0xff] %v897_v47  ;;  %v889_v53 = vadd.f32 %v888_v51, %v824_v49  ;;  %934 = vadd.xlane.f32.xlu0 %v897_v47  ;;  %v1523_v54 = vpop.f32.mrf.mxu0  ;;  %v969_v8 = vmul.f32 %v897_v47, %v897_v47  ;;  %v962_v51 = vld [vmem:[#allocation4 + $0x38] sm:$0xff] }
 0x123   : > { %906 = vst [vmem:[#allocation2 + $0x30] sm:$0xff] %v873_v50  ;;  %v884_v56 = vadd.f32 %v1523_v54, %v819_v52  ;;  %v1527_v57 = vpop.f32.mrf.mxu1  ;;  %v963_v3 = vmul.f32 %v873_v50, %v873_v50  ;;  %v961_v52 = vld [vmem:[#allocation4 + $0x30] sm:$0xff] }
 0x124   : > { %910 = vst [vmem:[#allocation2 + $0x8] sm:$0xff] %v889_v53  ;;  %v900_v59 = vadd.f32 %v1527_v57, %v835_v55  ;;  %v875_v60 = vpop.f32.mrf.mxu0  ;;  %v967_v5 = vmul.f32 %v889_v53, %v889_v53 }
 0x125   : > { %909 = vst [vmem:[#allocation2 + $0x10] sm:$0xff] %v884_v56  ;;  %v876_v62 = vadd.f32 %v875_v60, %v811_v58  ;;  %v891_v63 = vpop.f32.mrf.mxu1  ;;  %928 = vadd.xlane.f32.xlu1 %v884_v56  ;;  %v966_v2 = vmul.f32 %v884_v56, %v884_v56 }
 0x126   : > { %913 = vst [vmem:[#allocation2 + $0x38] sm:$0xff] %v900_v59  ;;  %v892_v0 = vadd.f32 %v891_v63, %v827_v61  ;;  %922 = vadd.xlane.f32.xlu0 %v873_v50  ;;  %v970_v7 = vmul.f32 %v900_v59, %v900_v59 }
 0x127   : > { %907 = vst [vmem:[#allocation2] sm:$0xff] %v876_v62  ;;  %v964_v4 = vmul.f32 %v876_v62, %v876_v62 }
 0x128   : > { %911 = vst [vmem:[#allocation2 + $0x20] sm:$0xff] %v892_v0  ;;  %v968_v6 = vmul.f32 %v892_v0, %v892_v0 }
 0x129   : > { %936 = vadd.xlane.f32.xlu1 %v900_v59 }
 0x12a   : > { %930 = vadd.xlane.f32.xlu0 %v889_v53 }
 0x12d   : > { %932 = vadd.xlane.f32.xlu1 %v892_v0 }
 0x12e   : > { %975 = vadd.xlane.f32.xlu0 %v965_v1 }
 0x131   : > { %977 = vadd.xlane.f32.xlu1 %v966_v2 }
 0x132   : > { %971 = vadd.xlane.f32.xlu0 %v963_v3 }
 0x135   : > { %973 = vadd.xlane.f32.xlu1 %v964_v4 }
 0x136   : > { %979 = vadd.xlane.f32.xlu0 %v967_v5 }
 0x139   : > { %981 = vadd.xlane.f32.xlu1 %v968_v6 }
 0x13a   : > { %924 = vadd.xlane.f32.xlu0 %v876_v62 }
 0x13d   : > { %985 = vadd.xlane.f32.xlu1 %v970_v7 }
 0x13e   : > { %983 = vadd.xlane.f32.xlu0 %v969_v8 }
 0x1aa   : > { %v927_v11 = vpop.xlane.xlu1 %926 }
 0x1ab   : > { %v935_v12 = vpop.xlane.xlu0 %934  ;;  %v940_v13 = vadd.f32 %v927_v11, %v916_v9 }
 0x1ac   : > { %v944_v14 = vadd.f32 %v935_v12, %v920_v10 }
 0x1ad   : > { %949 = vst.msk [vmem:[#allocation3 + $0x10] sm:$0xff] %vm946_vm2, %v940_v13 }
 0x1ae   : > { %953 = vst.msk [vmem:[#allocation3 + $0x30] sm:$0xff] %vm946_vm2, %v944_v14  ;;  %v929_v17 = vpop.xlane.xlu1 %928 }
 0x1af   : > { %v941_v18 = vadd.f32 %v929_v17, %v917_v15  ;;  %v923_v19 = vpop.xlane.xlu0 %922 }
 0x1b0   : > { %v938_v20 = vadd.f32 %v923_v19, %v914_v16 }
 0x1b1   : > { %950 = vst.msk [vmem:[#allocation3 + $0x18] sm:$0xff] %vm946_vm2, %v941_v18 }
 0x1b2   : > { %947 = vst.msk [vmem:[#allocation3] sm:$0xff] %vm946_vm2, %v938_v20  ;;  %v937_v23 = vpop.xlane.xlu1 %936 }
 0x1b3   : > { %v945_v24 = vadd.f32 %v937_v23, %v921_v21  ;;  %v931_v25 = vpop.xlane.xlu0 %930 }
 0x1b4   : > { %v942_v26 = vadd.f32 %v931_v25, %v918_v22 }
 0x1b5   : > { %954 = vst.msk [vmem:[#allocation3 + $0x38] sm:$0xff] %vm946_vm2, %v945_v24 }
 0x1b6   : > { %951 = vst.msk [vmem:[#allocation3 + $0x20] sm:$0xff] %vm946_vm2, %v942_v26  ;;  %v933_v29 = vpop.xlane.xlu1 %932 }
 0x1b7   : > { %v943_v30 = vadd.f32 %v933_v29, %v919_v27  ;;  %v976_v31 = vpop.xlane.xlu0 %975 }
 0x1b8   : > { %v989_v32 = vadd.f32 %v976_v31, %v957_v28 }
 0x1b9   : > { %952 = vst.msk [vmem:[#allocation3 + $0x28] sm:$0xff] %vm946_vm2, %v943_v30 }
 0x1ba   : > { %997 = vst.msk [vmem:[#allocation4 + $0x10] sm:$0xff] %vm946_vm2, %v989_v32  ;;  %v978_v35 = vpop.xlane.xlu1 %977 }
 0x1bb   : > { %v990_v36 = vadd.f32 %v978_v35, %v958_v33  ;;  %v972_v37 = vpop.xlane.xlu0 %971 }
 0x1bc   : > { %v987_v38 = vadd.f32 %v972_v37, %v955_v34 }
 0x1bd   : > { %998 = vst.msk [vmem:[#allocation4 + $0x18] sm:$0xff] %vm946_vm2, %v990_v36 }
 0x1be   : > { %995 = vst.msk [vmem:[#allocation4] sm:$0xff] %vm946_vm2, %v987_v38  ;;  %v974_v41 = vpop.xlane.xlu1 %973 }
 0x1bf   : > { %v988_v42 = vadd.f32 %v974_v41, %v956_v39  ;;  %v980_v43 = vpop.xlane.xlu0 %979 }
 0x1c0   : > { %v991_v44 = vadd.f32 %v980_v43, %v959_v40 }
 0x1c1   : > { %996 = vst.msk [vmem:[#allocation4 + $0x8] sm:$0xff] %vm946_vm2, %v988_v42 }
 0x1c2   : > { %999 = vst.msk [vmem:[#allocation4 + $0x20] sm:$0xff] %vm946_vm2, %v991_v44  ;;  %v982_v47 = vpop.xlane.xlu1 %981 }
 0x1c3   : > { %v992_v48 = vadd.f32 %v982_v47, %v960_v45  ;;  %v925_v49 = vpop.xlane.xlu0 %924 }
 0x1c4   : > { %v939_v50 = vadd.f32 %v925_v49, %v915_v46 }
 0x1c5   : > { %1000 = vst.msk [vmem:[#allocation4 + $0x28] sm:$0xff] %vm946_vm2, %v992_v48 }
 0x1c6   : > { %948 = vst.msk [vmem:[#allocation3 + $0x8] sm:$0xff] %vm946_vm2, %v939_v50  ;;  %v986_v53 = vpop.xlane.xlu1 %985 }
 0x1c7   : > { %v994_v54 = vadd.f32 %v986_v53, %v962_v51  ;;  %v984_v55 = vpop.xlane.xlu0 %983 }
 0x1c8   : > { %v993_v56 = vadd.f32 %v984_v55, %v961_v52 }
 0x1c9   : > { %1002 = vst.msk [vmem:[#allocation4 + $0x38] sm:$0xff] %vm946_vm2, %v994_v54 }
 0x1ca   : > { %1001 = vst.msk [vmem:[#allocation4 + $0x30] sm:$0xff] %vm946_vm2, %v993_v56 }
 0x1cb PF: > { %p1418_p6 = scmp.ne.s32.totalorder %s1658_s15, 1 }
 0x1cd   : > { %1006 = sbr.rel (%p1418_p6) target bundleno = 652 (0x28c), region = 48 }
 0x1d2   : > { %v1020_v57 = vld [vmem:[#allocation3 + $0x10] sm:$0xff]  ;;  %v1669_v59 = vmov 0   ;;  %v1018_v62 = vld [vmem:[#allocation3] sm:$0xff]  ;;  %v1021_v2 = vld [vmem:[#allocation3 + $0x18] sm:$0xff] }
 0x1d3   : > { %v1036_v58 = vld [vmem:[#allocation4 + $0x10] sm:$0xff]  ;;  %1627 = vset.pattern.permute.xlu1 %v1669_v59  ;;  %1626 = vset.pattern.permute.xlu0 %v1669_v59  ;;  %v1918_v60 = vmul.f32 0.25, %v1020_v57  ;;  %v1034_v63 = vld [vmem:[#allocation4] sm:$0xff]  ;;  %v1920_v0 = vmul.f32 0.25, %v1018_v62  ;;  %v1037_v3 = vld [vmem:[#allocation4 + $0x18] sm:$0xff]  ;;  %v1924_v5 = vmul.f32 0.25, %v1021_v2 }
 0x1d4   : > { %v1044_v61 = vmul.f32 0.25, %v1036_v58  ;;  %v1042_v1 = vmul.f32 0.25, %v1034_v63  ;;  %v1045_v6 = vmul.f32 0.25, %v1037_v3  ;;  %v1019_v7 = vld [vmem:[#allocation3 + $0x8] sm:$0xff]  ;;  %v1022_v18 = vld [vmem:[#allocation3 + $0x20] sm:$0xff]  ;;  %v1025_v24 = vld [vmem:[#allocation3 + $0x38] sm:$0xff] }
 0x1d5   : > { %v1052_v4 = vmul.f32 %v1918_v60, %v1918_v60  ;;  %v1035_v8 = vld [vmem:[#allocation4 + $0x8] sm:$0xff]  ;;  %v1050_v9 = vmul.f32 %v1920_v0, %v1920_v0  ;;  %v1928_v10 = vmul.f32 0.25, %v1019_v7  ;;  %v1053_v15 = vmul.f32 %v1924_v5, %v1924_v5  ;;  %v1038_v19 = vld [vmem:[#allocation4 + $0x20] sm:$0xff]  ;;  %v1041_v25 = vld [vmem:[#allocation4 + $0x38] sm:$0xff] }
 0x1d6   : > { %v1043_v11 = vmul.f32 0.25, %v1035_v8  ;;  %v1023_v12 = vld [vmem:[#allocation3 + $0x28] sm:$0xff]  ;;  %v1936_v22 = vmul.f32 0.25, %v1022_v18  ;;  %v1046_v23 = vmul.f32 0.25, %v1038_v19  ;;  %v1940_v29 = vmul.f32 0.25, %v1025_v24  ;;  %v1024_v30 = vld [vmem:[#allocation3 + $0x30] sm:$0xff] }
 0x1d7   : > { %v1039_v13 = vld [vmem:[#allocation4 + $0x28] sm:$0xff]  ;;  %v1060_v14 = vsub.f32 %v1044_v61, %v1052_v4  ;;  %v1932_v16 = vmul.f32 0.25, %v1023_v12  ;;  %v1058_v20 = vsub.f32 %v1042_v1, %v1050_v9  ;;  %v1051_v21 = vmul.f32 %v1928_v10, %v1928_v10  ;;  %v1040_v39 = vld [vmem:[#allocation4 + $0x30] sm:$0xff]  ;;  %v1074_v59 = vld [vmem:[%s2041_s2] sm:$0xff] }
 0x1d8   : > { %v1047_v17 = vmul.f32 0.25, %v1039_v13  ;;  %v1061_v27 = vsub.f32 %v1045_v6, %v1053_v15  ;;  %v1054_v33 = vmul.f32 %v1936_v22, %v1936_v22  ;;  %v1049_v34 = vmul.f32 0.25, %v1041_v25  ;;  %v1076_v58 = vld [vmem:[%s2041_s2 + $0x10] sm:$0xff]  ;;  %v1077_v62 = vld [vmem:[%s2041_s2 + $0x18] sm:$0xff]  ;;  %v1075_v2 = vld [vmem:[%s2041_s2 + $0x8] sm:$0xff] }
 0x1d9   : > { %v1068_v26 = vmax.f32 %v1060_v14, 0.0  ;;  %v1055_v28 = vmul.f32 %v1932_v16, %v1932_v16  ;;  %v1066_v31 = vmax.f32 %v1058_v20, 0.0  ;;  %v1059_v32 = vsub.f32 %v1043_v11, %v1051_v21  ;;  %v1079_v11 = vld [vmem:[%s2041_s2 + $0x28] sm:$0xff]  ;;  %v1078_v13 = vld [vmem:[%s2041_s2 + $0x20] sm:$0xff]  ;;  %v1081_v18 = vld [vmem:[%s2041_s2 + $0x38] sm:$0xff] }
 0x1da   : > { %v1069_v36 = vmax.f32 %v1061_v27, 0.0  ;;  %v1057_v38 = vmul.f32 %v1940_v29, %v1940_v29  ;;  %v1062_v42 = vsub.f32 %v1046_v23, %v1054_v33  ;;  %v1946_v43 = vmul.f32 0.25, %v1024_v30  ;;  %v1080_v19 = vld [vmem:[%s2041_s2 + $0x30] sm:$0xff]  ;;  %v1106_v27 = vld [vmem:[%s2042_s3] sm:$0xff] }
 0x1db   : > { %v1084_v35 = vadd.f32 1e-05, %v1068_v26  ;;  %v1063_v37 = vsub.f32 %v1047_v17, %v1055_v28  ;;  %v1082_v40 = vadd.f32 1e-05, %v1066_v31  ;;  %v1067_v41 = vmax.f32 %v1059_v32, 0.0  ;;  %v1107_v26 = vld [vmem:[%s2042_s3 + $0x8] sm:$0xff] }
 0x1dc   : > { %v1085_v44 = vadd.f32 1e-05, %v1069_v36  ;;  %v1065_v46 = vsub.f32 %v1049_v34, %v1057_v38  ;;  %v1070_v48 = vmax.f32 %v1062_v42, 0.0  ;;  %v1048_v49 = vmul.f32 0.25, %v1040_v39  ;;  %v1108_v32 = vld [vmem:[%s2042_s3 + $0x10] sm:$0xff]  ;;  %v1110_v36 = vld [vmem:[%s2042_s3 + $0x20] sm:$0xff] }
 0x1dd   : > { %1628 = vrsqrt.f32 %v1084_v35  ;;  %v1071_v45 = vmax.f32 %v1063_v37, 0.0  ;;  %v1083_v47 = vadd.f32 1e-05, %v1067_v41  ;;  %v1056_v52 = vmul.f32 %v1946_v43, %v1946_v43 }
 0x1de   : > { %1630 = vrsqrt.f32 %v1082_v40  ;;  %v1073_v51 = vmax.f32 %v1065_v46, 0.0  ;;  %v1086_v53 = vadd.f32 1e-05, %v1070_v48 }
 0x1df   : > { %1632 = vrsqrt.f32 %v1085_v44  ;;  %v1087_v50 = vadd.f32 1e-05, %v1071_v45  ;;  %v1064_v55 = vsub.f32 %v1048_v49, %v1056_v52  ;;  %v1011_v49 = vld [vmem:[#allocation2] sm:$0xff] }
 0x1e0   : > { %1634 = vrsqrt.f32 %v1083_v47  ;;  %v1089_v54 = vadd.f32 1e-05, %v1073_v51  ;;  %v1010_v51 = vld [vmem:[#allocation2 + $0x30] sm:$0xff] }
 0x1e1   : > { %1636 = vrsqrt.f32 %v1087_v50  ;;  %v1072_v56 = vmax.f32 %v1064_v55, 0.0 }
 0x1e2   : > { %1638 = vrsqrt.f32 %v1086_v53 }
 0x1e3   : > { %1640 = vrsqrt.f32 %v1089_v54  ;;  %v1088_v57 = vadd.f32 1e-05, %v1072_v56  ;;  %v1013_v54 = vld [vmem:[#allocation2 + $0x10] sm:$0xff]  ;;  %v1012_v56 = vld [vmem:[#allocation2 + $0x18] sm:$0xff] }
 0x1e5   : > { %1642 = vrsqrt.f32 %v1088_v57 }
 0x1ea   : > { %v1629_v61 = vpop.eup %1628 }
 0x1eb   : > { %v1631_v63 = vpop.eup %1630  ;;  %v1100_v1 = vmul.f32 %v1629_v61, %v1076_v58 }
 0x1ec   : > { %v1633_v3 = vpop.eup %1632  ;;  %v1098_v4 = vmul.f32 %v1631_v63, %v1074_v59 }
 0x1ed   : > { %v1635_v6 = vpop.eup %1634  ;;  %1142 = vperm.xlu1 %1627, %v1100_v1   ;;  %v1101_v7 = vmul.f32 %v1633_v3, %v1077_v62  ;;  %v1116_v31 = vmul.f32 %v1100_v1, %v1918_v60  ;;  %v1111_v60 = vld [vmem:[%s2042_s3 + $0x28] sm:$0xff]  ;;  %v1015_v1 = vld [vmem:[#allocation2 + $0x20] sm:$0xff] }
 0x1ee   : > { %v1637_v8 = vpop.eup %1636  ;;  %1132 = vperm.xlu0 %1626, %v1098_v4   ;;  %v1099_v9 = vmul.f32 %v1635_v6, %v1075_v2  ;;  %v1114_v24 = vmul.f32 %v1098_v4, %v1920_v0  ;;  %v1109_v0 = vld [vmem:[%s2042_s3 + $0x18] sm:$0xff]  ;;  %v1014_v4 = vld [vmem:[#allocation2 + $0x8] sm:$0xff] }
 0x1ef   : > { %v1639_v12 = vpop.eup %1638  ;;  %v1103_v14 = vmul.f32 %v1637_v8, %v1079_v11  ;;  %v1117_v30 = vmul.f32 %v1101_v7, %v1924_v5  ;;  %v1124_v35 = vsub.f32 %v1108_v32, %v1116_v31 }
 0x1f0   : > { %v1641_v15 = vpop.eup %1640  ;;  %v1102_v17 = vmul.f32 %v1639_v12, %v1078_v13  ;;  %v1115_v23 = vmul.f32 %v1099_v9, %v1928_v10  ;;  %v1122_v10 = vsub.f32 %v1106_v27, %v1114_v24 }
 0x1f1   : > { %1147 = vperm.xlu1 %1627, %v1101_v7   ;;  %v1105_v21 = vmul.f32 %v1641_v15, %v1081_v18  ;;  %v1125_v33 = vsub.f32 %v1109_v0, %v1117_v30  ;;  %v1119_v34 = vmul.f32 %v1103_v14, %v1932_v16  ;;  %v1113_v16 = vld [vmem:[%s2042_s3 + $0x38] sm:$0xff] }
 0x1f2   : > { %1137 = vperm.xlu0 %1626, %v1099_v9   ;;  %v1643_v20 = vpop.eup %1642  ;;  %v1123_v28 = vsub.f32 %v1107_v26, %v1115_v23  ;;  %v1118_v5 = vmul.f32 %v1102_v17, %v1936_v22  ;;  %v1112_v22 = vld [vmem:[%s2042_s3 + $0x30] sm:$0xff]  ;;  %v1017_v15 = vld [vmem:[#allocation2 + $0x38] sm:$0xff] }
 0x1f3   : > { %v1104_v25 = vmul.f32 %v1643_v20, %v1080_v19  ;;  %v1127_v37 = vsub.f32 %v1111_v60, %v1119_v34  ;;  %v1121_v38 = vmul.f32 %v1105_v21, %v1940_v29  ;;  %v1016_v19 = vld [vmem:[#allocation2 + $0x28] sm:$0xff] }
 0x1f4   : > { %v1126_v39 = vsub.f32 %v1110_v36, %v1118_v5 }
 0x1f5   : > { %1157 = vperm.xlu1 %1627, %v1103_v14   ;;  %v1120_v40 = vmul.f32 %v1104_v25, %v1946_v43  ;;  %v1129_v41 = vsub.f32 %v1113_v16, %v1121_v38 }
 0x1f6   : > { %1152 = vperm.xlu0 %1626, %v1102_v17  }
 0x1f7   : > { %v1128_v42 = vsub.f32 %v1112_v22, %v1120_v40 }
 0x1f9   : > { %1167 = vperm.xlu1 %1627, %v1105_v21  }
 0x1fa   : > { %1162 = vperm.xlu0 %1626, %v1104_v25  }
 0x1fd   : > { %1185 = vperm.xlu1 %1627, %v1123_v28  }
 0x1fe   : > { %1180 = vperm.xlu0 %1626, %v1122_v10  }
 0x201   : > { %1195 = vperm.xlu1 %1627, %v1125_v33  }
 0x202   : > { %1190 = vperm.xlu0 %1626, %v1124_v35  }
 0x205   : > { %1205 = vperm.xlu1 %1627, %v1127_v37  }
 0x206   : > { %1200 = vperm.xlu0 %1626, %v1126_v39  }
 0x209   : > { %1215 = vperm.xlu1 %1627, %v1129_v41  }
 0x20a   : > { %1210 = vperm.xlu0 %1626, %v1128_v42  }
 0x268   : > { %v1143_v44 = vpop.permute.xlu1 %1142 }
 0x269   : > { %v1133_v29 = vpop.permute.xlu0 %1132  ;;  %v1172_v63 = vmul.f32 %v1143_v44, %v1012_v56 }
 0x26a   : > { %v1170_v53 = vmul.f32 %v1133_v29, %v1010_v51 }
 0x26c   : > { %v1148_v45 = vpop.permute.xlu1 %1147 }
 0x26d   : > { %v1138_v46 = vpop.permute.xlu0 %1137  ;;  %v1173_v61 = vmul.f32 %v1148_v45, %v1013_v54 }
 0x26e   : > { %v1171_v52 = vmul.f32 %v1138_v46, %v1011_v49 }
 0x270   : > { %v1158_v47 = vpop.permute.xlu1 %1157 }
 0x271   : > { %v1153_v48 = vpop.permute.xlu0 %1152  ;;  %v1175_v12 = vmul.f32 %v1158_v47, %v1015_v1 }
 0x272   : > { %v1174_v14 = vmul.f32 %v1153_v48, %v1014_v4 }
 0x274   : > { %v1168_v50 = vpop.permute.xlu1 %1167 }
 0x275   : > { %v1163_v43 = vpop.permute.xlu0 %1162  ;;  %v1177_v26 = vmul.f32 %v1168_v50, %v1017_v15 }
 0x276   : > { %v1176_v28 = vmul.f32 %v1163_v43, %v1016_v19 }
 0x278   : > { %v1186_v55 = vpop.permute.xlu1 %1185 }
 0x279   : > { %v1219_v57 = vadd.f32 %v1186_v55, %v1171_v52  ;;  %v1181_v58 = vpop.permute.xlu0 %1180 }
 0x27a   : > { %v1218_v59 = vadd.f32 %v1181_v58, %v1170_v53 }
 0x27b   : > { %vm1227_vm3 = vcmp.ge.f32.partialorder %v1219_v57, 0.0  ;;  %v1235_v62 = vmul.f32 0.01, %v1219_v57 }
 0x27c   : > { %vm1226_vm4 = vcmp.ge.f32.partialorder %v1218_v59, 0.0  ;;  %v1234_v2 = vmul.f32 0.01, %v1218_v59  ;;  %v1196_v3 = vpop.permute.xlu1 %1195 }
 0x27d   : > { %v1243_v6 = vsel %vm1227_vm3, %v1219_v57, %v1235_v62  ;;  %v1221_v7 = vadd.f32 %v1196_v3, %v1173_v61  ;;  %v1191_v8 = vpop.permute.xlu0 %1190 }
 0x27e   : > { %1251 = vst [vmem:[%s2043_s4 + $0x8] sm:$0xff] %v1243_v6  ;;  %v1242_v9 = vsel %vm1226_vm4, %v1218_v59, %v1234_v2  ;;  %v1220_v11 = vadd.f32 %v1191_v8, %v1172_v63 }
 0x27f   : > { %1250 = vst [vmem:[%s2043_s4] sm:$0xff] %v1242_v9  ;;  %vm1229_vm5 = vcmp.ge.f32.partialorder %v1221_v7, 0.0  ;;  %v1237_v13 = vmul.f32 0.01, %v1221_v7 }
 0x280   : > { %vm1228_vm6 = vcmp.ge.f32.partialorder %v1220_v11, 0.0  ;;  %v1236_v17 = vmul.f32 0.01, %v1220_v11  ;;  %v1206_v18 = vpop.permute.xlu1 %1205 }
 0x281   : > { %v1245_v20 = vsel %vm1229_vm5, %v1221_v7, %v1237_v13  ;;  %v1223_v21 = vadd.f32 %v1206_v18, %v1175_v12  ;;  %v1201_v23 = vpop.permute.xlu0 %1200 }
 0x282   : > { %1253 = vst [vmem:[%s2043_s4 + $0x18] sm:$0xff] %v1245_v20  ;;  %v1244_v24 = vsel %vm1228_vm6, %v1220_v11, %v1236_v17  ;;  %v1222_v25 = vadd.f32 %v1201_v23, %v1174_v14 }
 0x283   : > { %1252 = vst [vmem:[%s2043_s4 + $0x10] sm:$0xff] %v1244_v24  ;;  %vm1231_vm7 = vcmp.ge.f32.partialorder %v1223_v21, 0.0  ;;  %v1239_v27 = vmul.f32 0.01, %v1223_v21 }
 0x284   : > { %vm1230_vm8 = vcmp.ge.f32.partialorder %v1222_v25, 0.0  ;;  %v1238_v30 = vmul.f32 0.01, %v1222_v25  ;;  %v1216_v31 = vpop.permute.xlu1 %1215 }
 0x285   : > { %v1247_v10 = vsel %vm1231_vm7, %v1223_v21, %v1239_v27  ;;  %v1225_v0 = vadd.f32 %v1216_v31, %v1177_v26  ;;  %v1211_v32 = vpop.permute.xlu0 %1210 }
 0x286   : > { %1255 = vst [vmem:[%s2043_s4 + $0x28] sm:$0xff] %v1247_v10  ;;  %v1246_v33 = vsel %vm1230_vm8, %v1222_v25, %v1238_v30  ;;  %v1224_v34 = vadd.f32 %v1211_v32, %v1176_v28 }
 0x287   : > { %1254 = vst [vmem:[%s2043_s4 + $0x20] sm:$0xff] %v1246_v33  ;;  %vm1233_vm9 = vcmp.ge.f32.partialorder %v1225_v0, 0.0  ;;  %v1241_v35 = vmul.f32 0.01, %v1225_v0 }
 0x288   : > { %vm1232_vm10 = vcmp.ge.f32.partialorder %v1224_v34, 0.0  ;;  %v1240_v60 = vmul.f32 0.01, %v1224_v34 }
 0x289   : > { %v1249_v5 = vsel %vm1233_vm9, %v1225_v0, %v1241_v35 }
 0x28a   : > { %1257 = vst [vmem:[%s2043_s4 + $0x38] sm:$0xff] %v1249_v5  ;;  %v1248_v36 = vsel %vm1232_vm10, %v1224_v34, %v1240_v60 }
 0x28b   : > { %1256 = vst [vmem:[%s2043_s4 + $0x30] sm:$0xff] %v1248_v36 }
 0x28c PF: > { %s14_s17 = sadd.s32 1, %s1666_s17   ;;  %s2044_s15 = smov %s1662_s16 }
 0x28d   : > { %p11_p7 = scmp.ge.s32.totalorder %s14_s17, 4   ;;  %s2045_s16 = smov %s2047_s18 }
 0x28f   :  { %13 = sbr.rel (!%p11_p7) target bundleno = 2 (0x2), region = 80 }

// kernel: forward.15
= control target key start
LH: loop header
LB: loop body
LE: loop exit
PB: predicated region body
PF: predicated region fallthrough
CT: control target
= control target key end

     0   :  { %s1327_s15 = smov 0   ;;  %s1329_s16 = smov 0   ;;  %s1541_s0 = inlined_call_operand.vmem [shape: bf16[1,576,128], index: 0, kind: input, shape index: {}]   ;;  %s1542_s1 = inlined_call_operand.vmem [shape: bf16[32,576], index: 1, kind: input, shape index: {}]   ;;  %s1543_s2 = inlined_call_operand.vmem [shape: f32[32,1], index: 2, kind: input, shape index: {}]   ;;  %s1544_s3 = inlined_call_operand.vmem [shape: f32[32,1], index: 3, kind: input, shape index: {}]   ;;  %s1545_s4 = inlined_call_operand.vmem [shape: f32[1,32,128], index: 4, kind: output, shape index: {}]  }
   0x1   :  { %s1331_s17 = smov 0  }
   0x2 LB: > { %s29_s18 = sadd.s32 1, %s1294_s16  ;;  %p1059_p0 = scmp.ge.s32.totalorder %s1298_s17, 1  ;;  %s1298_s17 = sphi %s1331_s17, %s14_s17   ;;  %s1294_s16 = sphi %s1329_s16, %s1547_s16   ;;  %s1290_s15 = sphi %s1327_s15, %s1546_s15  }
   0x3   : > { %p31_p1 = scmp.ge.s32.totalorder %s29_s18, 2  ;;  %p198_p2 = scmp.lt.s32.totalorder %s1298_s17, 3 }
   0x5   : > { %s1549_s18 = smov (%p31_p1, %s29_s18), 0  ;;  %p199_p3 = pnand %p1059_p0, %p198_p2 }
   0x6   : > { %p257_p4 = scmp.eq.s32.totalorder (!%p199_p3), %s1290_s15, 0 }
   0x7   : > { %202 = sbr.rel (%p199_p3) target bundleno = 602 (0x25a), region = 36 }
   0xc   : > { %262 = sbr.rel (!%p257_p4) target bundleno = 17 (0x11), region = 40  ;;  %vm263_vm0 = vcmask (%p257_p4), 7168   ;;  %v1300_v0 = vmov (%p257_p4), 0.0  }
   0xd   : > { %264 = vst.msk [vmem:[#allocation3] sm:$0xff] (%p257_p4), %vm263_vm0, %v1300_v0  ;;  %265 = vst.msk [vmem:[#allocation3 + $0x8] sm:$0xff] (%p257_p4), %vm263_vm0, %v1300_v0 }
   0xe   : > { %266 = vst.msk [vmem:[#allocation3 + $0x10] sm:$0xff] (%p257_p4), %vm263_vm0, %v1300_v0  ;;  %267 = vst.msk [vmem:[#allocation3 + $0x18] sm:$0xff] (%p257_p4), %vm263_vm0, %v1300_v0 }
   0xf   : > { %268 = vst.msk [vmem:[#allocation4] sm:$0xff] (%p257_p4), %vm263_vm0, %v1300_v0  ;;  %269 = vst.msk [vmem:[#allocation4 + $0x8] sm:$0xff] (%p257_p4), %vm263_vm0, %v1300_v0 }
  0x10   : > { %270 = vst.msk [vmem:[#allocation4 + $0x10] sm:$0xff] (%p257_p4), %vm263_vm0, %v1300_v0  ;;  %271 = vst.msk [vmem:[#allocation4 + $0x18] sm:$0xff] (%p257_p4), %vm263_vm0, %v1300_v0 }
  0x11 PF: > { %p1061_p5 = scmp.ne.s32.totalorder %s1290_s15, 0 }
  0x13   : > { %274 = sbr.rel (%p1061_p5) target bundleno = 425 (0x1a9), region = 44 }
  0x18   : > { %v1216_v1 = vld [vmem:[%s1541_s0 + $0x78] sm:$0xff]   ;;  %v1220_v5 = vld [vmem:[%s1541_s0 + $0x70] sm:$0xff]   ;;  %v1224_v9 = vld [vmem:[%s1541_s0 + $0x68] sm:$0xff]   ;;  %vm625_vm1 = vcmask 523264   ;;  %vm802_vm2 = vcmask 7168  }
  0x19   : > { %v1217_v2 = vld [vmem:[%s1541_s0 + $0xf8] sm:$0xff]   ;;  %1116 = vmatprep.subr.bf16.mxu0 %v1216_v1  ;;  %v1221_v6 = vld [vmem:[%s1541_s0 + $0xf0] sm:$0xff]   ;;  %v1225_v10 = vld [vmem:[%s1541_s0 + $0xe8] sm:$0xff]  }
  0x1a   : > { %v1218_v3 = vld [vmem:[%s1541_s0 + $0x38] sm:$0xff]   ;;  %1144 = vmatprep.subr.bf16.mxu1 %v1217_v2  ;;  %v1222_v7 = vld [vmem:[%s1541_s0 + $0x30] sm:$0xff]   ;;  %v1226_v11 = vld [vmem:[%s1541_s0 + $0x28] sm:$0xff]  }
  0x1b   : > { %v1219_v4 = vld [vmem:[%s1541_s0 + $0xb8] sm:$0xff]   ;;  %1117 = vmatpush3.bf16.msra.mxu0 %v1218_v3  ;;  %v1223_v8 = vld [vmem:[%s1541_s0 + $0xb0] sm:$0xff]   ;;  %v1227_v12 = vld [vmem:[%s1541_s0 + $0xa8] sm:$0xff]  }
  0x1c   : > { %1145 = vmatpush3.bf16.msra.mxu1 %v1219_v4  ;;  %1118 = vmatprep.subr.bf16.mxu0 %v1220_v5  ;;  %v1228_v13 = vld [vmem:[%s1541_s0 + $0x60] sm:$0xff]   ;;  %v1232_v17 = vld [vmem:[%s1541_s0 + $0x58] sm:$0xff]   ;;  %v1236_v21 = vld [vmem:[%s1541_s0 + $0x50] sm:$0xff]  }
  0x1d   : > { %1146 = vmatprep.subr.bf16.mxu1 %v1221_v6  ;;  %v1229_v14 = vld [vmem:[%s1541_s0 + $0xe0] sm:$0xff]   ;;  %v1233_v18 = vld [vmem:[%s1541_s0 + $0xd8] sm:$0xff]   ;;  %v1237_v22 = vld [vmem:[%s1541_s0 + $0xd0] sm:$0xff]  }
  0x1e   : > { %v1230_v15 = vld [vmem:[%s1541_s0 + $0x20] sm:$0xff]   ;;  %v1234_v19 = vld [vmem:[%s1541_s0 + $0x18] sm:$0xff]   ;;  %v1238_v23 = vld [vmem:[%s1541_s0 + $0x10] sm:$0xff]  }
  0x1f   : > { %1119 = vmatpush3.bf16.msra.mxu0 %v1222_v7  ;;  %v1231_v16 = vld [vmem:[%s1541_s0 + $0xa0] sm:$0xff]   ;;  %v1235_v20 = vld [vmem:[%s1541_s0 + $0x98] sm:$0xff]   ;;  %v1239_v24 = vld [vmem:[%s1541_s0 + $0x90] sm:$0xff]  }
  0x20   : > { %1147 = vmatpush3.bf16.msra.mxu1 %v1223_v8  ;;  %1120 = vmatprep.subr.bf16.mxu0 %v1224_v9  ;;  %v1240_v25 = vld [vmem:[%s1541_s0 + $0x48] sm:$0xff]   ;;  %v1244_v29 = vld [vmem:[%s1541_s0 + $0x40] sm:$0xff]   ;;  %v1254_v37 = vld [vmem:[%s1541_s0 + $0x118] sm:$0xff]  }
  0x21   : > { %1148 = vmatprep.subr.bf16.mxu1 %v1225_v10  ;;  %v1241_v26 = vld [vmem:[%s1541_s0 + $0xc8] sm:$0xff]   ;;  %v1245_v30 = vld [vmem:[%s1541_s0 + $0xc0] sm:$0xff]   ;;  %v1255_v38 = vld [vmem:[%s1541_s0 + $0x110] sm:$0xff]  }
  0x22   : > { %v1242_v27 = vld [vmem:[%s1541_s0 + $0x8] sm:$0xff]   ;;  %v1246_v31 = vld [vmem:[%s1541_s0] sm:$0xff]  }
  0x23   : > { %1121 = vmatpush3.bf16.msra.mxu0 %v1226_v11  ;;  %v1243_v28 = vld [vmem:[%s1541_s0 + $0x88] sm:$0xff]   ;;  %v1247_v32 = vld [vmem:[%s1541_s0 + $0x80] sm:$0xff]  }
  0x24   : > { %1149 = vmatpush3.bf16.msra.mxu1 %v1227_v12  ;;  %1122 = vmatprep.subr.bf16.mxu0 %v1228_v13  ;;  %v1248_v33 = vld [vmem:[%s1542_s1] ss:$20 sps:$4 sm:$0xff]   ;;  %v1250_v34 = vld [vmem:[%s1542_s1 + $0x4] ss:$20 sps:$4 sm:$0xff]   ;;  %v1251_v35 = vld [vmem:[%s1542_s1 + $0x8] ss:$20 sps:$4 sm:$0xff]  }
  0x25   : > { %1150 = vmatprep.subr.bf16.mxu1 %v1229_v14  ;;  %v1253_v36 = vld [vmem:[%s1542_s1 + $0xc] ss:$20 sps:$4 sm:$0xff]   ;;  %664 = vmatprep.mubr.bf16.mxu0 %v1250_v34  ;;  %v1258_v40 = vld [vmem:[%s1542_s1 + $0x34] ss:$20 sps:$4 sm:$0xff]   ;;  %v1261_v43 = vld [vmem:[%s1542_s1 + $0x30] ss:$20 sps:$4 sm:$0xff]  }
  0x26   : > { %713 = vmatprep.mubr.bf16.mxu1 %v1253_v36  ;;  %v1256_v39 = vld [vmem:[%s1542_s1 + $0x2c] ss:$20 sps:$4 sm:$0xff]   ;;  %v1260_v41 = vld [vmem:[%s1542_s1 + $0x28] ss:$20 sps:$4 sm:$0xff]   ;;  %v1264_v44 = vld [vmem:[%s1542_s1 + $0x10] ss:$20 sps:$4 sm:$0xff]  }
  0x27   : > { %1123 = vmatpush3.bf16.msra.mxu0 %v1230_v15  ;;  %v1262_v42 = vld [vmem:[%s1541_s0 + $0x108] sm:$0xff]   ;;  %v1263_v45 = vld [vmem:[%s1541_s0 + $0x100] sm:$0xff]  }
  0x28   : > { %1151 = vmatpush3.bf16.msra.mxu1 %v1231_v16  ;;  %1124 = vmatprep.subr.bf16.mxu0 %v1232_v17  ;;  %v1265_v46 = vld [vmem:[%s1542_s1 + $0x38] ss:$20 sps:$4 sm:$0xff]  }
  0x29   : > { %1152 = vmatprep.subr.bf16.mxu1 %v1233_v18  ;;  %v808_v34 = vld [vmem:[#allocation4 + $0x8] sm:$0xff] }
  0x2b   : > { %1125 = vmatpush3.bf16.msra.mxu0 %v1234_v19 }
  0x2c   : > { %1153 = vmatpush3.bf16.msra.mxu1 %v1235_v20  ;;  %1126 = vmatprep.subr.bf16.mxu0 %v1236_v21 }
  0x2d   : > { %1154 = vmatprep.subr.bf16.mxu1 %v1237_v22 }
  0x2f   : > { %1127 = vmatpush3.bf16.msra.mxu0 %v1238_v23  ;;  %v788_v23 = vld [vmem:[#allocation3 + $0x10] sm:$0xff] }
  0x30   : > { %1155 = vmatpush3.bf16.msra.mxu1 %v1239_v24  ;;  %1128 = vmatprep.subr.bf16.mxu0 %v1240_v25  ;;  %v786_v25 = vld [vmem:[#allocation3] sm:$0xff] }
  0x31   : > { %1156 = vmatprep.subr.bf16.mxu1 %v1241_v26 }
  0x33   : > { %1129 = vmatpush3.bf16.msra.mxu0 %v1242_v27 }
  0x34   : > { %1157 = vmatpush3.bf16.msra.mxu1 %v1243_v28  ;;  %1130 = vmatprep.subr.bf16.mxu0 %v1244_v29  ;;  %v789_v28 = vld [vmem:[#allocation3 + $0x18] sm:$0xff] }
  0x35   : > { %1158 = vmatprep.subr.bf16.mxu1 %v1245_v30 }
  0x37   : > { %1131 = vmatpush3.bf16.msra.mxu0 %v1246_v31  ;;  %v807_v31 = vld [vmem:[#allocation4] sm:$0xff] }
  0x38   : > { %1159 = vmatpush3.bf16.msra.mxu1 %v1247_v32  ;;  %1178 = vmatprep.subr.bf16.mxu0 %v1254_v37 }
  0x3a   : > { %665 = vmatmul.mubr.bf16.vlgmr.msra.gmra.mxu0 %v1248_v33 }
  0x3b   : > { %714 = vmatmul.mubr.bf16.vlgmr.msra.gmra.mxu1 %v1251_v35  ;;  %1179 = vmatpush3.bf16.msra.mxu0 %v1254_v37  ;;  %v787_v37 = vld [vmem:[#allocation3 + $0x8] sm:$0xff] }
  0x3c   : > { %1180 = vmatprep.subr.bf16.mxu0 %v1255_v38  ;;  %672 = vmatprep.mubr.bf16.mxu0 %v1256_v39 }
  0x3d   : > { %721 = vmatprep.mubr.bf16.mxu1 %v1258_v40  ;;  %v810_v40 = vld [vmem:[#allocation4 + $0x18] sm:$0xff] }
  0x3f   : > { %1181 = vmatpush3.bf16.msra.mxu0 %v1255_v38 }
  0x40   : > { %1182 = vmatprep.subr.bf16.mxu0 %v1262_v42 }
  0x42   : > { %673 = vmatmul.mubr.bf16.gmra.mxu0 %v1260_v41 }
  0x43   : > { %722 = vmatmul.mubr.bf16.gmra.mxu1 %v1261_v43  ;;  %1186 = vmatprep.mubr.msk.bf16.mxu0 %vm625_vm1, %v1264_v44  ;;  %v809_v43 = vld [vmem:[#allocation4 + $0x10] sm:$0xff] }
  0x44   : > { %1183 = vmatpush3.bf16.msra.mxu0 %v1262_v42 }
  0x45   : > { %1184 = vmatprep.subr.bf16.mxu0 %v1263_v45 }
  0x48   : > { %1185 = vmatpush3.bf16.msra.mxu0 %v1263_v45 }
  0x4b   : > { %1187 = vmatmul.mubr.msk.bf16.vlgmr.msra.gmra.mxu0 %vm625_vm1, %v1265_v46 }
  0xfa   : > { %v1132_v47 = vpop.f32.mrf.mxu0 }
  0xfb   : > { %v1160_v48 = vpop.f32.mrf.mxu1 }
  0xfc   : > { %v1133_v49 = vpop.f32.mrf.mxu0 }
  0xfd   : > { %v1161_v50 = vpop.f32.mrf.mxu1  ;;  %v1134_v63 = vadd.f32 %v1133_v49, %v1132_v47 }
  0xfe   : > { %v1135_v51 = vpop.f32.mrf.mxu0  ;;  %v1162_v0 = vadd.f32 %v1161_v50, %v1160_v48 }
  0xff   : > { %v1163_v52 = vpop.f32.mrf.mxu1 }
 0x100   : > { %v1136_v53 = vpop.f32.mrf.mxu0  ;;  %v716_v10 = vadd.f32 %v1162_v0, %v1134_v63 }
 0x101   : > { %v1164_v54 = vpop.f32.mrf.mxu1  ;;  %v1137_v7 = vadd.f32 %v1136_v53, %v1135_v51 }
 0x102   : > { %v1138_v55 = vpop.f32.mrf.mxu0  ;;  %v1165_v8 = vadd.f32 %v1164_v54, %v1163_v52 }
 0x103   : > { %v1166_v56 = vpop.f32.mrf.mxu1 }
 0x104   : > { %v1139_v57 = vpop.f32.mrf.mxu0  ;;  %v719_v16 = vadd.f32 %v1165_v8, %v1137_v7 }
 0x105   : > { %v1167_v58 = vpop.f32.mrf.mxu1  ;;  %v1140_v59 = vadd.f32 %v1139_v57, %v1138_v55 }
 0x106   : > { %v1168_v60 = vadd.f32 %v1167_v58, %v1166_v56  ;;  %v1141_v61 = vpop.f32.mrf.mxu0 }
 0x107   : > { %v1169_v62 = vpop.f32.mrf.mxu1 }
 0x108   : > { %v1142_v1 = vpop.f32.mrf.mxu0  ;;  %v724_v5 = vadd.f32 %v1168_v60, %v1140_v59 }
 0x109   : > { %v1170_v2 = vpop.f32.mrf.mxu1  ;;  %v1143_v3 = vadd.f32 %v1142_v1, %v1141_v61 }
 0x10a   : > { %v1171_v4 = vadd.f32 %v1170_v2, %v1169_v62 }
 0x10b   : > { %v1188_v6 = vpop.f32.mrf.mxu0 }
 0x10c   : > { %v773_v9 = vadd.f32 %v1188_v6, %v724_v5  ;;  %v727_v13 = vadd.f32 %v1171_v4, %v1143_v3 }
 0x10d   : > { %v764_v11 = vpop.f32.mrf.mxu0 }
 0x10e   : > { %784 = vst [vmem:[#allocation2 + $0x18] sm:$0xff] %v773_v9  ;;  %v765_v12 = vadd.f32 %v764_v11, %v716_v10  ;;  %794 = vadd.xlane.f32.xlu1 %v773_v9  ;;  %v813_v22 = vmul.f32 %v773_v9, %v773_v9 }
 0x10f   : > { %v1189_v14 = vpop.f32.mrf.mxu0 }
 0x110   : > { %782 = vst [vmem:[#allocation2 + $0x10] sm:$0xff] %v765_v12  ;;  %v776_v15 = vadd.f32 %v1189_v14, %v727_v13  ;;  %790 = vadd.xlane.f32.xlu0 %v765_v12  ;;  %v811_v19 = vmul.f32 %v765_v12, %v765_v12 }
 0x111   : > { %v767_v17 = vpop.f32.mrf.mxu0 }
 0x112   : > { %785 = vst [vmem:[#allocation2 + $0x8] sm:$0xff] %v776_v15  ;;  %v768_v18 = vadd.f32 %v767_v17, %v719_v16  ;;  %796 = vadd.xlane.f32.xlu1 %v776_v15  ;;  %v814_v21 = vmul.f32 %v776_v15, %v776_v15 }
 0x114   : > { %783 = vst [vmem:[#allocation2] sm:$0xff] %v768_v18  ;;  %815 = vadd.xlane.f32.xlu0 %v811_v19  ;;  %v812_v20 = vmul.f32 %v768_v18, %v768_v18 }
 0x116   : > { %817 = vadd.xlane.f32.xlu1 %v812_v20 }
 0x118   : > { %792 = vadd.xlane.f32.xlu0 %v768_v18 }
 0x11a   : > { %821 = vadd.xlane.f32.xlu1 %v814_v21 }
 0x11c   : > { %819 = vadd.xlane.f32.xlu0 %v813_v22 }
 0x197   : > { %v795_v24 = vpop.xlane.xlu1 %794 }
 0x198   : > { %v800_v26 = vadd.f32 %v795_v24, %v788_v23 }
 0x199   : > { %v791_v27 = vpop.xlane.xlu0 %790 }
 0x19a   : > { %805 = vst.msk [vmem:[#allocation3 + $0x10] sm:$0xff] %vm802_vm2, %v800_v26  ;;  %v798_v29 = vadd.f32 %v791_v27, %v786_v25 }
 0x19b   : > { %v797_v30 = vpop.xlane.xlu1 %796 }
 0x19c   : > { %803 = vst.msk [vmem:[#allocation3] sm:$0xff] %vm802_vm2, %v798_v29  ;;  %v801_v32 = vadd.f32 %v797_v30, %v789_v28 }
 0x19d   : > { %v816_v33 = vpop.xlane.xlu0 %815 }
 0x19e   : > { %806 = vst.msk [vmem:[#allocation3 + $0x18] sm:$0xff] %vm802_vm2, %v801_v32  ;;  %v823_v35 = vadd.f32 %v816_v33, %v807_v31 }
 0x19f   : > { %v818_v36 = vpop.xlane.xlu1 %817 }
 0x1a0   : > { %827 = vst.msk [vmem:[#allocation4] sm:$0xff] %vm802_vm2, %v823_v35  ;;  %v824_v38 = vadd.f32 %v818_v36, %v808_v34 }
 0x1a1   : > { %v793_v39 = vpop.xlane.xlu0 %792 }
 0x1a2   : > { %828 = vst.msk [vmem:[#allocation4 + $0x8] sm:$0xff] %vm802_vm2, %v824_v38  ;;  %v799_v41 = vadd.f32 %v793_v39, %v787_v37 }
 0x1a3   : > { %v822_v42 = vpop.xlane.xlu1 %821 }
 0x1a4   : > { %804 = vst.msk [vmem:[#allocation3 + $0x8] sm:$0xff] %vm802_vm2, %v799_v41  ;;  %v826_v44 = vadd.f32 %v822_v42, %v810_v40 }
 0x1a5   : > { %v820_v45 = vpop.xlane.xlu0 %819 }
 0x1a6   : > { %830 = vst.msk [vmem:[#allocation4 + $0x18] sm:$0xff] %vm802_vm2, %v826_v44  ;;  %v825_v46 = vadd.f32 %v820_v45, %v809_v43 }
 0x1a8   : > { %829 = vst.msk [vmem:[#allocation4 + $0x10] sm:$0xff] %vm802_vm2, %v825_v46 }
 0x1a9 PF: > { %p1110_p6 = scmp.ne.s32.totalorder %s1290_s15, 1 }
 0x1ab   : > { %834 = sbr.rel (%p1110_p6) target bundleno = 602 (0x25a), region = 48 }
 0x1b0   : > { %v844_v47 = vld [vmem:[#allocation3 + $0x10] sm:$0xff]  ;;  %v1301_v49 = vmov 0   ;;  %v842_v52 = vld [vmem:[#allocation3] sm:$0xff]  ;;  %v845_v56 = vld [vmem:[#allocation3 + $0x18] sm:$0xff] }
 0x1b1   : > { %v852_v48 = vld [vmem:[#allocation4 + $0x10] sm:$0xff]  ;;  %1267 = vset.pattern.permute.xlu1 %v1301_v49  ;;  %1266 = vset.pattern.permute.xlu0 %v1301_v49  ;;  %v848_v50 = vmul.f32 0.25, %v844_v47  ;;  %v850_v53 = vld [vmem:[#allocation4] sm:$0xff]  ;;  %v846_v54 = vmul.f32 0.25, %v842_v52  ;;  %v853_v57 = vld [vmem:[#allocation4 + $0x18] sm:$0xff]  ;;  %v849_v59 = vmul.f32 0.25, %v845_v56 }
 0x1b2   : > { %v856_v51 = vmul.f32 0.25, %v852_v48  ;;  %v854_v55 = vmul.f32 0.25, %v850_v53  ;;  %v857_v60 = vmul.f32 0.25, %v853_v57  ;;  %v843_v61 = vld [vmem:[#allocation3 + $0x8] sm:$0xff]  ;;  %v872_v16 = vld [vmem:[%s1543_s2 + $0x10] sm:$0xff]  ;;  %v870_v17 = vld [vmem:[%s1543_s2] sm:$0xff] }
 0x1b3   : > { %v860_v58 = vmul.f32 %v848_v50, %v848_v50  ;;  %v851_v62 = vld [vmem:[#allocation4 + $0x8] sm:$0xff]  ;;  %v858_v63 = vmul.f32 %v846_v54, %v846_v54  ;;  %v847_v0 = vmul.f32 0.25, %v843_v61  ;;  %v861_v3 = vmul.f32 %v849_v59, %v849_v59  ;;  %v873_v19 = vld [vmem:[%s1543_s2 + $0x18] sm:$0xff]  ;;  %v886_v30 = vld [vmem:[%s1544_s3] sm:$0xff] }
 0x1b4   : > { %v855_v1 = vmul.f32 0.25, %v851_v62  ;;  %v871_v22 = vld [vmem:[%s1543_s2 + $0x8] sm:$0xff]  ;;  %v889_v36 = vld [vmem:[%s1544_s3 + $0x18] sm:$0xff]  ;;  %v888_v37 = vld [vmem:[%s1544_s3 + $0x10] sm:$0xff] }
 0x1b5   : > { %v864_v2 = vsub.f32 %v856_v51, %v860_v58  ;;  %v862_v4 = vsub.f32 %v854_v55, %v858_v63  ;;  %v859_v5 = vmul.f32 %v847_v0, %v847_v0  ;;  %v865_v7 = vsub.f32 %v857_v60, %v861_v3  ;;  %v887_v29 = vld [vmem:[%s1544_s3 + $0x8] sm:$0xff]  ;;  %v839_v43 = vld [vmem:[#allocation2] sm:$0xff]  ;;  %v838_v44 = vld [vmem:[#allocation2 + $0x10] sm:$0xff] }
 0x1b6   : > { %v841_v48 = vld [vmem:[#allocation2 + $0x8] sm:$0xff] }
 0x1b7   : > { %v868_v6 = vmax.f32 %v864_v2, 0.0  ;;  %v866_v8 = vmax.f32 %v862_v4, 0.0  ;;  %v863_v9 = vsub.f32 %v855_v1, %v859_v5  ;;  %v869_v11 = vmax.f32 %v865_v7, 0.0 }
 0x1b9   : > { %v876_v10 = vadd.f32 1e-05, %v868_v6  ;;  %v874_v12 = vadd.f32 1e-05, %v866_v8  ;;  %v867_v13 = vmax.f32 %v863_v9, 0.0 }
 0x1ba   : > { %v877_v14 = vadd.f32 1e-05, %v869_v11 }
 0x1bb   : > { %1268 = vrsqrt.f32 %v876_v10  ;;  %v875_v15 = vadd.f32 1e-05, %v867_v13 }
 0x1bc   : > { %1270 = vrsqrt.f32 %v874_v12 }
 0x1bd   : > { %1272 = vrsqrt.f32 %v877_v14 }
 0x1be   : > { %1274 = vrsqrt.f32 %v875_v15 }
 0x1c8   : > { %v1269_v18 = vpop.eup %1268 }
 0x1c9   : > { %v1271_v20 = vpop.eup %1270  ;;  %v884_v21 = vmul.f32 %v1269_v18, %v872_v16 }
 0x1ca   : > { %v1273_v23 = vpop.eup %1272  ;;  %v882_v24 = vmul.f32 %v1271_v20, %v870_v17 }
 0x1cb   : > { %v1275_v25 = vpop.eup %1274  ;;  %910 = vperm.xlu1 %1267, %v884_v21   ;;  %v885_v26 = vmul.f32 %v1273_v23, %v873_v19  ;;  %v892_v33 = vmul.f32 %v884_v21, %v848_v50  ;;  %v840_v50 = vld [vmem:[#allocation2 + $0x18] sm:$0xff] }
 0x1cc   : > { %900 = vperm.xlu0 %1266, %v882_v24   ;;  %v890_v27 = vmul.f32 %v882_v24, %v846_v54  ;;  %v883_v28 = vmul.f32 %v1275_v25, %v871_v22 }
 0x1cd   : > { %v893_v32 = vmul.f32 %v885_v26, %v849_v59  ;;  %v896_v39 = vsub.f32 %v888_v37, %v892_v33 }
 0x1ce   : > { %v891_v31 = vmul.f32 %v883_v28, %v847_v0  ;;  %v894_v35 = vsub.f32 %v886_v30, %v890_v27 }
 0x1cf   : > { %915 = vperm.xlu1 %1267, %v885_v26   ;;  %v897_v38 = vsub.f32 %v889_v36, %v893_v32 }
 0x1d0   : > { %905 = vperm.xlu0 %1266, %v883_v28   ;;  %v895_v34 = vsub.f32 %v887_v29, %v891_v31 }
 0x1d3   : > { %929 = vperm.xlu1 %1267, %v895_v34  }
 0x1d4   : > { %924 = vperm.xlu0 %1266, %v894_v35  }
 0x1d7   : > { %939 = vperm.xlu1 %1267, %v897_v38  }
 0x1d8   : > { %934 = vperm.xlu0 %1266, %v896_v39  }
 0x246   : > { %v911_v40 = vpop.permute.xlu1 %910 }
 0x247   : > { %v901_v41 = vpop.permute.xlu0 %900  ;;  %v920_v56 = vmul.f32 %v911_v40, %v840_v50 }
 0x248   : > { %v918_v47 = vmul.f32 %v901_v41, %v838_v44 }
 0x24a   : > { %v916_v42 = vpop.permute.xlu1 %915 }
 0x24b   : > { %v906_v45 = vpop.permute.xlu0 %905  ;;  %v921_v54 = vmul.f32 %v916_v42, %v841_v48 }
 0x24c   : > { %v919_v46 = vmul.f32 %v906_v45, %v839_v43 }
 0x24e   : > { %v930_v49 = vpop.permute.xlu1 %929 }
 0x24f   : > { %v943_v51 = vadd.f32 %v930_v49, %v919_v46  ;;  %v925_v52 = vpop.permute.xlu0 %924 }
 0x250   : > { %v942_v53 = vadd.f32 %v925_v52, %v918_v47 }
 0x251   : > { %vm947_vm3 = vcmp.ge.f32.partialorder %v943_v51, 0.0  ;;  %v951_v55 = vmul.f32 0.01, %v943_v51 }
 0x252   : > { %vm946_vm4 = vcmp.ge.f32.partialorder %v942_v53, 0.0  ;;  %v950_v57 = vmul.f32 0.01, %v942_v53  ;;  %v940_v58 = vpop.permute.xlu1 %939 }
 0x253   : > { %v955_v59 = vsel %vm947_vm3, %v943_v51, %v951_v55  ;;  %v945_v60 = vadd.f32 %v940_v58, %v921_v54  ;;  %v935_v61 = vpop.permute.xlu0 %934 }
 0x254   : > { %959 = vst [vmem:[%s1545_s4 + $0x8] sm:$0xff] %v955_v59  ;;  %v954_v62 = vsel %vm946_vm4, %v942_v53, %v950_v57  ;;  %v944_v63 = vadd.f32 %v935_v61, %v920_v56 }
 0x255   : > { %958 = vst [vmem:[%s1545_s4] sm:$0xff] %v954_v62  ;;  %vm949_vm5 = vcmp.ge.f32.partialorder %v945_v60, 0.0  ;;  %v953_v0 = vmul.f32 0.01, %v945_v60 }
 0x256   : > { %vm948_vm6 = vcmp.ge.f32.partialorder %v944_v63, 0.0  ;;  %v952_v1 = vmul.f32 0.01, %v944_v63 }
 0x257   : > { %v957_v2 = vsel %vm949_vm5, %v945_v60, %v953_v0 }
 0x258   : > { %961 = vst [vmem:[%s1545_s4 + $0x18] sm:$0xff] %v957_v2  ;;  %v956_v3 = vsel %vm948_vm6, %v944_v63, %v952_v1 }
 0x259   : > { %960 = vst [vmem:[%s1545_s4 + $0x10] sm:$0xff] %v956_v3 }
 0x25a PF: > { %s14_s17 = sadd.s32 1, %s1298_s17   ;;  %s1546_s15 = smov %s1294_s16 }
 0x25b   : > { %p11_p7 = scmp.ge.s32.totalorder %s14_s17, 4   ;;  %s1547_s16 = smov %s1549_s18 }
 0x25d   :  { %13 = sbr.rel (!%p11_p7) target bundleno = 2 (0x2), region = 80 }

// kernel: forward.16
= control target key start
LH: loop header
LB: loop body
LE: loop exit
PB: predicated region body
PF: predicated region fallthrough
CT: control target
= control target key end

     0   :  { %s1082_s15 = smov 0   ;;  %s1084_s16 = smov 0   ;;  %s1244_s0 = inlined_call_operand.vmem [shape: bf16[1,352,128], index: 0, kind: input, shape index: {}]   ;;  %s1245_s1 = inlined_call_operand.vmem [shape: bf16[32,352], index: 1, kind: input, shape index: {}]   ;;  %s1246_s2 = inlined_call_operand.vmem [shape: f32[32,1], index: 2, kind: input, shape index: {}]   ;;  %s1247_s3 = inlined_call_operand.vmem [shape: f32[32,1], index: 3, kind: input, shape index: {}]   ;;  %s1248_s4 = inlined_call_operand.vmem [shape: f32[1,32,128], index: 4, kind: output, shape index: {}]  }
   0x1   :  { %s1086_s17 = smov 0  }
   0x2 LB: > { %s29_s18 = sadd.s32 1, %s1049_s16  ;;  %p874_p0 = scmp.ge.s32.totalorder %s1053_s17, 1  ;;  %s1053_s17 = sphi %s1086_s17, %s14_s17   ;;  %s1049_s16 = sphi %s1084_s16, %s1250_s16   ;;  %s1045_s15 = sphi %s1082_s15, %s1249_s15  }
   0x3   : > { %p31_p1 = scmp.ge.s32.totalorder %s29_s18, 2  ;;  %p198_p2 = scmp.lt.s32.totalorder %s1053_s17, 3 }
   0x5   : > { %s1252_s18 = smov (%p31_p1, %s29_s18), 0  ;;  %p199_p3 = pnand %p874_p0, %p198_p2 }
   0x6   : > { %p257_p4 = scmp.eq.s32.totalorder (!%p199_p3), %s1045_s15, 0 }
   0x7   : > { %202 = sbr.rel (%p199_p3) target bundleno = 592 (0x250), region = 36 }
   0xc   : > { %262 = sbr.rel (!%p257_p4) target bundleno = 17 (0x11), region = 40  ;;  %vm263_vm0 = vcmask (%p257_p4), 7168   ;;  %v1055_v0 = vmov (%p257_p4), 0.0  }
   0xd   : > { %264 = vst.msk [vmem:[#allocation3] sm:$0xff] (%p257_p4), %vm263_vm0, %v1055_v0  ;;  %265 = vst.msk [vmem:[#allocation3 + $0x8] sm:$0xff] (%p257_p4), %vm263_vm0, %v1055_v0 }
   0xe   : > { %266 = vst.msk [vmem:[#allocation3 + $0x10] sm:$0xff] (%p257_p4), %vm263_vm0, %v1055_v0  ;;  %267 = vst.msk [vmem:[#allocation3 + $0x18] sm:$0xff] (%p257_p4), %vm263_vm0, %v1055_v0 }
   0xf   : > { %268 = vst.msk [vmem:[#allocation4] sm:$0xff] (%p257_p4), %vm263_vm0, %v1055_v0  ;;  %269 = vst.msk [vmem:[#allocation4 + $0x8] sm:$0xff] (%p257_p4), %vm263_vm0, %v1055_v0 }
  0x10   : > { %270 = vst.msk [vmem:[#allocation4 + $0x10] sm:$0xff] (%p257_p4), %vm263_vm0, %v1055_v0  ;;  %271 = vst.msk [vmem:[#allocation4 + $0x18] sm:$0xff] (%p257_p4), %vm263_vm0, %v1055_v0 }
  0x11 PF: > { %p876_p5 = scmp.ne.s32.totalorder %s1045_s15, 0 }
  0x13   : > { %274 = sbr.rel (%p876_p5) target bundleno = 415 (0x19f), region = 44 }
  0x18   : > { %v991_v1 = vld [vmem:[%s1244_s0 + $0x78] sm:$0xff]   ;;  %v993_v3 = vld [vmem:[%s1244_s0 + $0x70] sm:$0xff]   ;;  %v994_v4 = vld [vmem:[%s1244_s0 + $0xa8] sm:$0xff]   ;;  %vm489_vm1 = vcmask 785408   ;;  %vm617_vm2 = vcmask 7168  }
  0x19   : > { %v992_v2 = vld [vmem:[%s1244_s0 + $0x38] sm:$0xff]   ;;  %913 = vmatprep.subr.bf16.mxu0 %v991_v1  ;;  %v995_v5 = vld [vmem:[%s1244_s0 + $0x30] sm:$0xff]   ;;  %949 = vmatprep.subr.bf16.mxu1 %v994_v4  ;;  %v996_v6 = vld [vmem:[%s1244_s0 + $0x68] sm:$0xff]  }
  0x1a   : > { %914 = vmatpush3.bf16.msra.mxu0 %v992_v2  ;;  %950 = vmatpush3.bf16.msra.mxu1 %v994_v4  ;;  %v997_v7 = vld [vmem:[%s1244_s0 + $0xa0] sm:$0xff]   ;;  %v998_v8 = vld [vmem:[%s1244_s0 + $0x28] sm:$0xff]   ;;  %v1000_v10 = vld [vmem:[%s1244_s0 + $0x98] sm:$0xff]  }
  0x1b   : > { %915 = vmatprep.subr.bf16.mxu0 %v993_v3  ;;  %951 = vmatprep.subr.bf16.mxu1 %v997_v7  ;;  %v999_v9 = vld [vmem:[%s1244_s0 + $0x60] sm:$0xff]   ;;  %v1002_v12 = vld [vmem:[%s1244_s0 + $0x58] sm:$0xff]   ;;  %v1003_v13 = vld [vmem:[%s1244_s0 + $0x90] sm:$0xff]  }
  0x1c   : > { %v1001_v11 = vld [vmem:[%s1244_s0 + $0x20] sm:$0xff]   ;;  %v1004_v14 = vld [vmem:[%s1244_s0 + $0x18] sm:$0xff]   ;;  %v1006_v15 = vld [vmem:[%s1244_s0 + $0x88] sm:$0xff]  }
  0x1d   : > { %v1005_v16 = vld [vmem:[%s1244_s0 + $0x50] sm:$0xff]   ;;  %v1008_v18 = vld [vmem:[%s1244_s0 + $0x48] sm:$0xff]   ;;  %v1009_v19 = vld [vmem:[%s1244_s0 + $0x80] sm:$0xff]  }
  0x1e   : > { %916 = vmatpush3.bf16.msra.mxu0 %v995_v5  ;;  %952 = vmatpush3.bf16.msra.mxu1 %v997_v7  ;;  %v1007_v17 = vld [vmem:[%s1244_s0 + $0x10] sm:$0xff]   ;;  %v1010_v21 = vld [vmem:[%s1244_s0 + $0x8] sm:$0xff]   ;;  %v1012_v22 = vld [vmem:[%s1244_s0 + $0x40] sm:$0xff]  }
  0x1f   : > { %917 = vmatprep.subr.bf16.mxu0 %v996_v6  ;;  %953 = vmatprep.subr.bf16.mxu1 %v1000_v10  ;;  %v1011_v20 = vld [vmem:[%s1245_s1 + $0x8] ss:$12 sps:$4 sm:$0xff]   ;;  %v1013_v23 = vld [vmem:[%s1245_s1 + $0x20] ss:$12 sps:$4 sm:$0xff]   ;;  %v1017_v24 = vld [vmem:[%s1245_s1 + $0x4] ss:$12 sps:$4 sm:$0xff]  }
  0x20   : > { %961 = vmatprep.mubr.msk.bf16.mxu1 %vm489_vm1, %v1011_v20  ;;  %v1014_v25 = vld [vmem:[%s1244_s0] sm:$0xff]   ;;  %528 = vmatprep.mubr.bf16.mxu0 %v1017_v24  ;;  %v1018_v27 = vld [vmem:[%s1245_s1 + $0x1c] ss:$12 sps:$4 sm:$0xff]   ;;  %v603_v0 = vld [vmem:[#allocation3 + $0x10] sm:$0xff] }
  0x21   : > { %v1015_v26 = vld [vmem:[%s1245_s1] ss:$12 sps:$4 sm:$0xff]   ;;  %v1020_v28 = vld [vmem:[%s1245_s1 + $0x18] ss:$12 sps:$4 sm:$0xff]   ;;  %v624_v3 = vld [vmem:[#allocation4 + $0x10] sm:$0xff] }
  0x22   : > { %918 = vmatpush3.bf16.msra.mxu0 %v998_v8  ;;  %954 = vmatpush3.bf16.msra.mxu1 %v1000_v10  ;;  %v601_v53 = vld [vmem:[#allocation3] sm:$0xff]  ;;  %v623_v58 = vld [vmem:[#allocation4 + $0x8] sm:$0xff]  ;;  %v604_v6 = vld [vmem:[#allocation3 + $0x18] sm:$0xff] }
  0x23   : > { %919 = vmatprep.subr.bf16.mxu0 %v999_v9  ;;  %955 = vmatprep.subr.bf16.mxu1 %v1003_v13  ;;  %v622_v56 = vld [vmem:[#allocation4] sm:$0xff]  ;;  %v602_v61 = vld [vmem:[#allocation3 + $0x8] sm:$0xff]  ;;  %v625_v10 = vld [vmem:[#allocation4 + $0x18] sm:$0xff] }
  0x26   : > { %920 = vmatpush3.bf16.msra.mxu0 %v1001_v11  ;;  %956 = vmatpush3.bf16.msra.mxu1 %v1003_v13 }
  0x27   : > { %921 = vmatprep.subr.bf16.mxu0 %v1002_v12  ;;  %957 = vmatprep.subr.bf16.mxu1 %v1006_v15 }
  0x2a   : > { %922 = vmatpush3.bf16.msra.mxu0 %v1004_v14  ;;  %958 = vmatpush3.bf16.msra.mxu1 %v1006_v15 }
  0x2b   : > { %923 = vmatprep.subr.bf16.mxu0 %v1005_v16  ;;  %959 = vmatprep.subr.bf16.mxu1 %v1009_v19 }
  0x2e   : > { %924 = vmatpush3.bf16.msra.mxu0 %v1007_v17  ;;  %960 = vmatpush3.bf16.msra.mxu1 %v1009_v19 }
  0x2f   : > { %925 = vmatprep.subr.bf16.mxu0 %v1008_v18 }
  0x31   : > { %962 = vmatmul.mubr.msk.bf16.vlgmr.msra.gmra.mxu1 %vm489_vm1, %v1013_v23 }
  0x32   : > { %926 = vmatpush3.bf16.msra.mxu0 %v1010_v21 }
  0x33   : > { %927 = vmatprep.subr.bf16.mxu0 %v1012_v22 }
  0x36   : > { %928 = vmatpush3.bf16.msra.mxu0 %v1014_v25 }
  0x39   : > { %529 = vmatmul.mubr.bf16.vlgmr.msra.gmra.mxu0 %v1015_v26 }
  0x3a   : > { %536 = vmatprep.mubr.bf16.mxu0 %v1018_v27 }
  0x41   : > { %537 = vmatmul.mubr.bf16.gmra.mxu0 %v1020_v28 }
  0xf1   : > { %v963_v29 = vpop.f32.mrf.mxu1 }
  0xf3   : > { %v579_v30 = vpop.f32.mrf.mxu1 }
  0xf5   : > { %v964_v34 = vpop.f32.mrf.mxu1 }
  0xf7   : > { %v582_v39 = vpop.f32.mrf.mxu1 }
  0xf9   : > { %v929_v31 = vpop.f32.mrf.mxu0 }
  0xfb   : > { %v930_v32 = vpop.f32.mrf.mxu0 }
  0xfc   : > { %v931_v33 = vadd.f32 %v930_v32, %v929_v31 }
  0xfd   : > { %v932_v35 = vpop.f32.mrf.mxu0 }
  0xfe   : > { %v580_v36 = vadd.f32 %v931_v33, %v579_v30 }
  0xff   : > { %v933_v37 = vpop.f32.mrf.mxu0 }
 0x100   : > { %597 = vst [vmem:[#allocation2 + $0x10] sm:$0xff] %v580_v36  ;;  %v934_v38 = vadd.f32 %v933_v37, %v932_v35  ;;  %605 = vadd.xlane.f32.xlu0 %v580_v36  ;;  %v626_v42 = vmul.f32 %v580_v36, %v580_v36 }
 0x101   : > { %v935_v40 = vpop.f32.mrf.mxu0 }
 0x102   : > { %v583_v41 = vadd.f32 %v934_v38, %v582_v39 }
 0x103   : > { %v936_v43 = vpop.f32.mrf.mxu0 }
 0x104   : > { %598 = vst [vmem:[#allocation2] sm:$0xff] %v583_v41  ;;  %v937_v44 = vadd.f32 %v936_v43, %v935_v40  ;;  %630 = vadd.xlane.f32.xlu0 %v626_v42  ;;  %v627_v45 = vmul.f32 %v583_v41, %v583_v41 }
 0x105   : > { %v938_v46 = vpop.f32.mrf.mxu0 }
 0x106   : > { %v588_v47 = vadd.f32 %v963_v29, %v937_v44  ;;  %632 = vadd.xlane.f32.xlu1 %v627_v45 }
 0x107   : > { %v939_v48 = vpop.f32.mrf.mxu0 }
 0x108   : > { %599 = vst [vmem:[#allocation2 + $0x18] sm:$0xff] %v588_v47  ;;  %v940_v49 = vadd.f32 %v939_v48, %v938_v46  ;;  %607 = vadd.xlane.f32.xlu0 %v583_v41  ;;  %v628_v51 = vmul.f32 %v588_v47, %v588_v47 }
 0x10a   : > { %v591_v50 = vadd.f32 %v964_v34, %v940_v49  ;;  %609 = vadd.xlane.f32.xlu1 %v588_v47 }
 0x10c   : > { %600 = vst [vmem:[#allocation2 + $0x8] sm:$0xff] %v591_v50  ;;  %634 = vadd.xlane.f32.xlu0 %v628_v51  ;;  %v629_v52 = vmul.f32 %v591_v50, %v591_v50 }
 0x10e   : > { %611 = vadd.xlane.f32.xlu1 %v591_v50 }
 0x112   : > { %636 = vadd.xlane.f32.xlu1 %v629_v52 }
 0x189   : > { %v606_v54 = vpop.xlane.xlu0 %605 }
 0x18a   : > { %v613_v55 = vadd.f32 %v606_v54, %v601_v53 }
 0x18c   : > { %618 = vst.msk [vmem:[#allocation3] sm:$0xff] %vm617_vm2, %v613_v55 }
 0x18d   : > { %v631_v57 = vpop.xlane.xlu0 %630 }
 0x18e   : > { %v638_v59 = vadd.f32 %v631_v57, %v622_v56 }
 0x18f   : > { %v633_v60 = vpop.xlane.xlu1 %632 }
 0x190   : > { %642 = vst.msk [vmem:[#allocation4] sm:$0xff] %vm617_vm2, %v638_v59  ;;  %v639_v62 = vadd.f32 %v633_v60, %v623_v58 }
 0x191   : > { %v608_v63 = vpop.xlane.xlu0 %607 }
 0x192   : > { %643 = vst.msk [vmem:[#allocation4 + $0x8] sm:$0xff] %vm617_vm2, %v639_v62  ;;  %v614_v1 = vadd.f32 %v608_v63, %v602_v61 }
 0x193   : > { %v610_v2 = vpop.xlane.xlu1 %609 }
 0x194   : > { %619 = vst.msk [vmem:[#allocation3 + $0x8] sm:$0xff] %vm617_vm2, %v614_v1  ;;  %v615_v4 = vadd.f32 %v610_v2, %v603_v0 }
 0x195   : > { %v635_v5 = vpop.xlane.xlu0 %634 }
 0x196   : > { %620 = vst.msk [vmem:[#allocation3 + $0x10] sm:$0xff] %vm617_vm2, %v615_v4  ;;  %v640_v7 = vadd.f32 %v635_v5, %v624_v3 }
 0x197   : > { %v612_v8 = vpop.xlane.xlu1 %611 }
 0x198   : > { %644 = vst.msk [vmem:[#allocation4 + $0x10] sm:$0xff] %vm617_vm2, %v640_v7  ;;  %v616_v9 = vadd.f32 %v612_v8, %v604_v6 }
 0x19a   : > { %621 = vst.msk [vmem:[#allocation3 + $0x18] sm:$0xff] %vm617_vm2, %v616_v9 }
 0x19b   : > { %v637_v11 = vpop.xlane.xlu1 %636 }
 0x19c   : > { %v641_v12 = vadd.f32 %v637_v11, %v625_v10 }
 0x19e   : > { %645 = vst.msk [vmem:[#allocation4 + $0x18] sm:$0xff] %vm617_vm2, %v641_v12 }
 0x19f PF: > { %p907_p6 = scmp.ne.s32.totalorder %s1045_s15, 1 }
 0x1a1   : > { %649 = sbr.rel (%p907_p6) target bundleno = 592 (0x250), region = 48 }
 0x1a6   : > { %v659_v13 = vld [vmem:[#allocation3 + $0x10] sm:$0xff]  ;;  %v1056_v15 = vmov 0   ;;  %v657_v18 = vld [vmem:[#allocation3] sm:$0xff]  ;;  %v660_v22 = vld [vmem:[#allocation3 + $0x18] sm:$0xff] }
 0x1a7   : > { %v667_v14 = vld [vmem:[#allocation4 + $0x10] sm:$0xff]  ;;  %1022 = vset.pattern.permute.xlu1 %v1056_v15  ;;  %1021 = vset.pattern.permute.xlu0 %v1056_v15  ;;  %v663_v16 = vmul.f32 0.015625, %v659_v13  ;;  %v665_v19 = vld [vmem:[#allocation4] sm:$0xff]  ;;  %v661_v20 = vmul.f32 0.015625, %v657_v18  ;;  %v668_v23 = vld [vmem:[#allocation4 + $0x18] sm:$0xff]  ;;  %v664_v25 = vmul.f32 0.015625, %v660_v22 }
 0x1a8   : > { %v671_v17 = vmul.f32 0.015625, %v667_v14  ;;  %v669_v21 = vmul.f32 0.015625, %v665_v19  ;;  %v672_v26 = vmul.f32 0.015625, %v668_v23  ;;  %v658_v27 = vld [vmem:[#allocation3 + $0x8] sm:$0xff]  ;;  %v687_v46 = vld [vmem:[%s1246_s2 + $0x10] sm:$0xff]  ;;  %v685_v47 = vld [vmem:[%s1246_s2] sm:$0xff] }
 0x1a9   : > { %v675_v24 = vmul.f32 %v663_v16, %v663_v16  ;;  %v666_v28 = vld [vmem:[#allocation4 + $0x8] sm:$0xff]  ;;  %v673_v29 = vmul.f32 %v661_v20, %v661_v20  ;;  %v662_v30 = vmul.f32 0.015625, %v658_v27  ;;  %v676_v33 = vmul.f32 %v664_v25, %v664_v25  ;;  %v688_v49 = vld [vmem:[%s1246_s2 + $0x18] sm:$0xff]  ;;  %v701_v60 = vld [vmem:[%s1247_s3] sm:$0xff] }
 0x1aa   : > { %v670_v31 = vmul.f32 0.015625, %v666_v28  ;;  %v686_v52 = vld [vmem:[%s1246_s2 + $0x8] sm:$0xff]  ;;  %v704_v2 = vld [vmem:[%s1247_s3 + $0x18] sm:$0xff]  ;;  %v703_v3 = vld [vmem:[%s1247_s3 + $0x10] sm:$0xff] }
 0x1ab   : > { %v679_v32 = vsub.f32 %v671_v17, %v675_v24  ;;  %v677_v34 = vsub.f32 %v669_v21, %v673_v29  ;;  %v674_v35 = vmul.f32 %v662_v30, %v662_v30  ;;  %v680_v37 = vsub.f32 %v672_v26, %v676_v33  ;;  %v702_v59 = vld [vmem:[%s1247_s3 + $0x8] sm:$0xff]  ;;  %v654_v9 = vld [vmem:[#allocation2] sm:$0xff]  ;;  %v653_v10 = vld [vmem:[#allocation2 + $0x10] sm:$0xff] }
 0x1ac   : > { %v656_v14 = vld [vmem:[#allocation2 + $0x8] sm:$0xff] }
 0x1ad   : > { %v683_v36 = vmax.f32 %v679_v32, 0.0  ;;  %v681_v38 = vmax.f32 %v677_v34, 0.0  ;;  %v678_v39 = vsub.f32 %v670_v31, %v674_v35  ;;  %v684_v41 = vmax.f32 %v680_v37, 0.0 }
 0x1af   : > { %v691_v40 = vadd.f32 1e-05, %v683_v36  ;;  %v689_v42 = vadd.f32 1e-05, %v681_v38  ;;  %v682_v43 = vmax.f32 %v678_v39, 0.0 }
 0x1b0   : > { %v692_v44 = vadd.f32 1e-05, %v684_v41 }
 0x1b1   : > { %1023 = vrsqrt.f32 %v691_v40  ;;  %v690_v45 = vadd.f32 1e-05, %v682_v43 }
 0x1b2   : > { %1025 = vrsqrt.f32 %v689_v42 }
 0x1b3   : > { %1027 = vrsqrt.f32 %v692_v44 }
 0x1b4   : > { %1029 = vrsqrt.f32 %v690_v45 }
 0x1be   : > { %v1024_v48 = vpop.eup %1023 }
 0x1bf   : > { %v1026_v50 = vpop.eup %1025  ;;  %v699_v51 = vmul.f32 %v1024_v48, %v687_v46 }
 0x1c0   : > { %v1028_v53 = vpop.eup %1027  ;;  %v697_v54 = vmul.f32 %v1026_v50, %v685_v47 }
 0x1c1   : > { %v1030_v55 = vpop.eup %1029  ;;  %725 = vperm.xlu1 %1022, %v699_v51   ;;  %v700_v56 = vmul.f32 %v1028_v53, %v688_v49  ;;  %v707_v63 = vmul.f32 %v699_v51, %v663_v16  ;;  %v655_v16 = vld [vmem:[#allocation2 + $0x18] sm:$0xff] }
 0x1c2   : > { %715 = vperm.xlu0 %1021, %v697_v54   ;;  %v705_v57 = vmul.f32 %v697_v54, %v661_v20  ;;  %v698_v58 = vmul.f32 %v1030_v55, %v686_v52 }
 0x1c3   : > { %v708_v62 = vmul.f32 %v700_v56, %v664_v25  ;;  %v711_v5 = vsub.f32 %v703_v3, %v707_v63 }
 0x1c4   : > { %v706_v61 = vmul.f32 %v698_v58, %v662_v30  ;;  %v709_v1 = vsub.f32 %v701_v60, %v705_v57 }
 0x1c5   : > { %730 = vperm.xlu1 %1022, %v700_v56   ;;  %v712_v4 = vsub.f32 %v704_v2, %v708_v62 }
 0x1c6   : > { %720 = vperm.xlu0 %1021, %v698_v58   ;;  %v710_v0 = vsub.f32 %v702_v59, %v706_v61 }
 0x1c9   : > { %744 = vperm.xlu1 %1022, %v710_v0  }
 0x1ca   : > { %739 = vperm.xlu0 %1021, %v709_v1  }
 0x1cd   : > { %754 = vperm.xlu1 %1022, %v712_v4  }
 0x1ce   : > { %749 = vperm.xlu0 %1021, %v711_v5  }
 0x23c   : > { %v726_v6 = vpop.permute.xlu1 %725 }
 0x23d   : > { %v716_v7 = vpop.permute.xlu0 %715  ;;  %v735_v22 = vmul.f32 %v726_v6, %v655_v16 }
 0x23e   : > { %v733_v13 = vmul.f32 %v716_v7, %v653_v10 }
 0x240   : > { %v731_v8 = vpop.permute.xlu1 %730 }
 0x241   : > { %v721_v11 = vpop.permute.xlu0 %720  ;;  %v736_v20 = vmul.f32 %v731_v8, %v656_v14 }
 0x242   : > { %v734_v12 = vmul.f32 %v721_v11, %v654_v9 }
 0x244   : > { %v745_v15 = vpop.permute.xlu1 %744 }
 0x245   : > { %v758_v17 = vadd.f32 %v745_v15, %v734_v12  ;;  %v740_v18 = vpop.permute.xlu0 %739 }
 0x246   : > { %v757_v19 = vadd.f32 %v740_v18, %v733_v13 }
 0x247   : > { %vm762_vm3 = vcmp.ge.f32.partialorder %v758_v17, 0.0  ;;  %v766_v21 = vmul.f32 0.01, %v758_v17 }
 0x248   : > { %vm761_vm4 = vcmp.ge.f32.partialorder %v757_v19, 0.0  ;;  %v765_v23 = vmul.f32 0.01, %v757_v19  ;;  %v755_v24 = vpop.permute.xlu1 %754 }
 0x249   : > { %v770_v25 = vsel %vm762_vm3, %v758_v17, %v766_v21  ;;  %v760_v26 = vadd.f32 %v755_v24, %v736_v20  ;;  %v750_v27 = vpop.permute.xlu0 %749 }
 0x24a   : > { %774 = vst [vmem:[%s1248_s4 + $0x8] sm:$0xff] %v770_v25  ;;  %v769_v28 = vsel %vm761_vm4, %v757_v19, %v765_v23  ;;  %v759_v29 = vadd.f32 %v750_v27, %v735_v22 }
 0x24b   : > { %773 = vst [vmem:[%s1248_s4] sm:$0xff] %v769_v28  ;;  %vm764_vm5 = vcmp.ge.f32.partialorder %v760_v26, 0.0  ;;  %v768_v30 = vmul.f32 0.01, %v760_v26 }
 0x24c   : > { %vm763_vm6 = vcmp.ge.f32.partialorder %v759_v29, 0.0  ;;  %v767_v31 = vmul.f32 0.01, %v759_v29 }
 0x24d   : > { %v772_v32 = vsel %vm764_vm5, %v760_v26, %v768_v30 }
 0x24e   : > { %776 = vst [vmem:[%s1248_s4 + $0x18] sm:$0xff] %v772_v32  ;;  %v771_v33 = vsel %vm763_vm6, %v759_v29, %v767_v31 }
 0x24f   : > { %775 = vst [vmem:[%s1248_s4 + $0x10] sm:$0xff] %v771_v33 }
 0x250 PF: > { %s14_s17 = sadd.s32 1, %s1053_s17   ;;  %s1249_s15 = smov %s1049_s16 }
 0x251   : > { %p11_p7 = scmp.ge.s32.totalorder %s14_s17, 4   ;;  %s1250_s16 = smov %s1252_s18 }
 0x253   :  { %13 = sbr.rel (!%p11_p7) target bundleno = 2 (0x2), region = 80 }

// kernel: forward.17
= control target key start
LH: loop header
LB: loop body
LE: loop exit
PB: predicated region body
PF: predicated region fallthrough
CT: control target
= control target key end

     0   :  { %s1030_s15 = smov 0   ;;  %s1032_s16 = smov 0   ;;  %s1178_s0 = inlined_call_operand.vmem [shape: bf16[1,288,128], index: 0, kind: input, shape index: {}]   ;;  %s1179_s1 = inlined_call_operand.vmem [shape: bf16[32,288], index: 1, kind: input, shape index: {}]   ;;  %s1180_s2 = inlined_call_operand.vmem [shape: f32[32,1], index: 2, kind: input, shape index: {}]   ;;  %s1181_s3 = inlined_call_operand.vmem [shape: f32[32,1], index: 3, kind: input, shape index: {}]   ;;  %s1182_s4 = inlined_call_operand.vmem [shape: f32[1,32,128], index: 4, kind: output, shape index: {}]  }
   0x1   :  { %s1034_s17 = smov 0  }
   0x2 LB: > { %s29_s18 = sadd.s32 1, %s997_s16  ;;  %p842_p0 = scmp.ge.s32.totalorder %s1001_s17, 1  ;;  %s1001_s17 = sphi %s1034_s17, %s14_s17   ;;  %s997_s16 = sphi %s1032_s16, %s1184_s16   ;;  %s993_s15 = sphi %s1030_s15, %s1183_s15  }
   0x3   : > { %p31_p1 = scmp.ge.s32.totalorder %s29_s18, 2  ;;  %p198_p2 = scmp.lt.s32.totalorder %s1001_s17, 3 }
   0x5   : > { %s1186_s18 = smov (%p31_p1, %s29_s18), 0  ;;  %p199_p3 = pnand %p842_p0, %p198_p2 }
   0x6   : > { %p257_p4 = scmp.eq.s32.totalorder (!%p199_p3), %s993_s15, 0 }
   0x7   : > { %202 = sbr.rel (%p199_p3) target bundleno = 592 (0x250), region = 36 }
   0xc   : > { %262 = sbr.rel (!%p257_p4) target bundleno = 17 (0x11), region = 40  ;;  %vm263_vm0 = vcmask (%p257_p4), 7168   ;;  %v1003_v0 = vmov (%p257_p4), 0.0  }
   0xd   : > { %264 = vst.msk [vmem:[#allocation3] sm:$0xff] (%p257_p4), %vm263_vm0, %v1003_v0  ;;  %265 = vst.msk [vmem:[#allocation3 + $0x8] sm:$0xff] (%p257_p4), %vm263_vm0, %v1003_v0 }
   0xe   : > { %266 = vst.msk [vmem:[#allocation3 + $0x10] sm:$0xff] (%p257_p4), %vm263_vm0, %v1003_v0  ;;  %267 = vst.msk [vmem:[#allocation3 + $0x18] sm:$0xff] (%p257_p4), %vm263_vm0, %v1003_v0 }
   0xf   : > { %268 = vst.msk [vmem:[#allocation4] sm:$0xff] (%p257_p4), %vm263_vm0, %v1003_v0  ;;  %269 = vst.msk [vmem:[#allocation4 + $0x8] sm:$0xff] (%p257_p4), %vm263_vm0, %v1003_v0 }
  0x10   : > { %270 = vst.msk [vmem:[#allocation4 + $0x10] sm:$0xff] (%p257_p4), %vm263_vm0, %v1003_v0  ;;  %271 = vst.msk [vmem:[#allocation4 + $0x18] sm:$0xff] (%p257_p4), %vm263_vm0, %v1003_v0 }
  0x11 PF: > { %p844_p5 = scmp.ne.s32.totalorder %s993_s15, 0 }
  0x13   : > { %274 = sbr.rel (%p844_p5) target bundleno = 415 (0x19f), region = 44 }
  0x18   : > { %v943_v1 = vld [vmem:[%s1178_s0 + $0x78] sm:$0xff]   ;;  %v945_v3 = vld [vmem:[%s1178_s0 + $0x70] sm:$0xff]   ;;  %v947_v5 = vld [vmem:[%s1178_s0 + $0x68] sm:$0xff]   ;;  %vm457_vm1 = vcmask 261120   ;;  %vm585_vm2 = vcmask 7168  }
  0x19   : > { %v944_v2 = vld [vmem:[%s1178_s0 + $0x38] sm:$0xff]   ;;  %877 = vmatprep.subr.bf16.mxu0 %v943_v1  ;;  %v946_v4 = vld [vmem:[%s1178_s0 + $0x30] sm:$0xff]   ;;  %v948_v6 = vld [vmem:[%s1178_s0 + $0x28] sm:$0xff]  }
  0x1a   : > { %878 = vmatpush3.bf16.msra.mxu0 %v944_v2  ;;  %v949_v7 = vld [vmem:[%s1178_s0 + $0x60] sm:$0xff]   ;;  %v954_v9 = vld [vmem:[%s1178_s0 + $0x88] sm:$0xff]   ;;  %v951_v10 = vld [vmem:[%s1178_s0 + $0x58] sm:$0xff]  }
  0x1b   : > { %879 = vmatprep.subr.bf16.mxu0 %v945_v3  ;;  %v950_v8 = vld [vmem:[%s1178_s0 + $0x20] sm:$0xff]   ;;  %v952_v11 = vld [vmem:[%s1178_s0 + $0x18] sm:$0xff]   ;;  %909 = vmatprep.subr.bf16.mxu1 %v954_v9  ;;  %v953_v13 = vld [vmem:[%s1178_s0 + $0x50] sm:$0xff]  }
  0x1c   : > { %910 = vmatpush3.bf16.msra.mxu1 %v954_v9  ;;  %v957_v12 = vld [vmem:[%s1178_s0 + $0x80] sm:$0xff]   ;;  %v959_v14 = vld [vmem:[%s1179_s1 + $0x8] ss:$12 sps:$4 sm:$0xff]   ;;  %v572_v2 = vld [vmem:[#allocation3 + $0x18] sm:$0xff] }
  0x1d   : > { %911 = vmatprep.subr.bf16.mxu1 %v957_v12  ;;  %913 = vmatprep.mubr.msk.bf16.mxu1 %vm457_vm1, %v959_v14  ;;  %v961_v15 = vld [vmem:[%s1179_s1 + $0x20] ss:$12 sps:$4 sm:$0xff]   ;;  %v955_v16 = vld [vmem:[%s1178_s0 + $0x10] sm:$0xff]   ;;  %v966_v23 = vld [vmem:[%s1179_s1 + $0x1c] ss:$12 sps:$4 sm:$0xff]  }
  0x1e   : > { %880 = vmatpush3.bf16.msra.mxu0 %v946_v4  ;;  %v956_v17 = vld [vmem:[%s1178_s0 + $0x48] sm:$0xff]   ;;  %v965_v18 = vld [vmem:[%s1179_s1 + $0x4] ss:$12 sps:$4 sm:$0xff]  }
  0x1f   : > { %881 = vmatprep.subr.bf16.mxu0 %v947_v5  ;;  %v958_v19 = vld [vmem:[%s1178_s0 + $0x8] sm:$0xff]   ;;  %496 = vmatprep.mubr.bf16.mxu0 %v965_v18  ;;  %v960_v20 = vld [vmem:[%s1178_s0 + $0x40] sm:$0xff]   ;;  %v571_v60 = vld [vmem:[#allocation3 + $0x10] sm:$0xff] }
  0x20   : > { %912 = vmatpush3.bf16.msra.mxu1 %v957_v12  ;;  %v962_v21 = vld [vmem:[%s1178_s0] sm:$0xff]   ;;  %v591_v54 = vld [vmem:[#allocation4 + $0x8] sm:$0xff]  ;;  %v592_v63 = vld [vmem:[#allocation4 + $0x10] sm:$0xff] }
  0x21   : > { %v963_v22 = vld [vmem:[%s1179_s1] ss:$12 sps:$4 sm:$0xff]   ;;  %v968_v24 = vld [vmem:[%s1179_s1 + $0x18] ss:$12 sps:$4 sm:$0xff]  }
  0x22   : > { %882 = vmatpush3.bf16.msra.mxu0 %v948_v6  ;;  %v569_v49 = vld [vmem:[#allocation3] sm:$0xff]  ;;  %v570_v57 = vld [vmem:[#allocation3 + $0x8] sm:$0xff]  ;;  %v593_v6 = vld [vmem:[#allocation4 + $0x18] sm:$0xff] }
  0x23   : > { %883 = vmatprep.subr.bf16.mxu0 %v949_v7  ;;  %914 = vmatmul.mubr.msk.bf16.vlgmr.msra.gmra.mxu1 %vm457_vm1, %v961_v15  ;;  %v590_v52 = vld [vmem:[#allocation4] sm:$0xff] }
  0x26   : > { %884 = vmatpush3.bf16.msra.mxu0 %v950_v8 }
  0x27   : > { %885 = vmatprep.subr.bf16.mxu0 %v951_v10 }
  0x2a   : > { %886 = vmatpush3.bf16.msra.mxu0 %v952_v11 }
  0x2b   : > { %887 = vmatprep.subr.bf16.mxu0 %v953_v13 }
  0x2e   : > { %888 = vmatpush3.bf16.msra.mxu0 %v955_v16 }
  0x2f   : > { %889 = vmatprep.subr.bf16.mxu0 %v956_v17 }
  0x32   : > { %890 = vmatpush3.bf16.msra.mxu0 %v958_v19 }
  0x33   : > { %891 = vmatprep.subr.bf16.mxu0 %v960_v20 }
  0x36   : > { %892 = vmatpush3.bf16.msra.mxu0 %v962_v21 }
  0x39   : > { %497 = vmatmul.mubr.bf16.vlgmr.msra.gmra.mxu0 %v963_v22 }
  0x3a   : > { %504 = vmatprep.mubr.bf16.mxu0 %v966_v23 }
  0x41   : > { %505 = vmatmul.mubr.bf16.gmra.mxu0 %v968_v24 }
  0xe3   : > { %v915_v25 = vpop.f32.mrf.mxu1 }
  0xe5   : > { %v547_v26 = vpop.f32.mrf.mxu1 }
  0xe7   : > { %v916_v30 = vpop.f32.mrf.mxu1 }
  0xe9   : > { %v550_v35 = vpop.f32.mrf.mxu1 }
  0xf9   : > { %v893_v27 = vpop.f32.mrf.mxu0 }
  0xfb   : > { %v894_v28 = vpop.f32.mrf.mxu0 }
  0xfc   : > { %v895_v29 = vadd.f32 %v894_v28, %v893_v27 }
  0xfd   : > { %v896_v31 = vpop.f32.mrf.mxu0 }
  0xfe   : > { %v548_v32 = vadd.f32 %v895_v29, %v547_v26 }
  0xff   : > { %v897_v33 = vpop.f32.mrf.mxu0 }
 0x100   : > { %565 = vst [vmem:[#allocation2 + $0x10] sm:$0xff] %v548_v32  ;;  %v898_v34 = vadd.f32 %v897_v33, %v896_v31  ;;  %573 = vadd.xlane.f32.xlu0 %v548_v32  ;;  %v594_v38 = vmul.f32 %v548_v32, %v548_v32 }
 0x101   : > { %v899_v36 = vpop.f32.mrf.mxu0 }
 0x102   : > { %v551_v37 = vadd.f32 %v898_v34, %v550_v35 }
 0x103   : > { %v900_v39 = vpop.f32.mrf.mxu0 }
 0x104   : > { %566 = vst [vmem:[#allocation2] sm:$0xff] %v551_v37  ;;  %v901_v40 = vadd.f32 %v900_v39, %v899_v36  ;;  %598 = vadd.xlane.f32.xlu0 %v594_v38  ;;  %v595_v41 = vmul.f32 %v551_v37, %v551_v37 }
 0x105   : > { %v902_v42 = vpop.f32.mrf.mxu0 }
 0x106   : > { %v556_v43 = vadd.f32 %v915_v25, %v901_v40  ;;  %600 = vadd.xlane.f32.xlu1 %v595_v41 }
 0x107   : > { %v903_v44 = vpop.f32.mrf.mxu0 }
 0x108   : > { %567 = vst [vmem:[#allocation2 + $0x18] sm:$0xff] %v556_v43  ;;  %v904_v45 = vadd.f32 %v903_v44, %v902_v42  ;;  %575 = vadd.xlane.f32.xlu0 %v551_v37  ;;  %v596_v47 = vmul.f32 %v556_v43, %v556_v43 }
 0x10a   : > { %v559_v46 = vadd.f32 %v916_v30, %v904_v45  ;;  %577 = vadd.xlane.f32.xlu1 %v556_v43 }
 0x10c   : > { %568 = vst [vmem:[#allocation2 + $0x8] sm:$0xff] %v559_v46  ;;  %602 = vadd.xlane.f32.xlu0 %v596_v47  ;;  %v597_v48 = vmul.f32 %v559_v46, %v559_v46 }
 0x10e   : > { %579 = vadd.xlane.f32.xlu1 %v559_v46 }
 0x112   : > { %604 = vadd.xlane.f32.xlu1 %v597_v48 }
 0x189   : > { %v574_v50 = vpop.xlane.xlu0 %573 }
 0x18a   : > { %v581_v51 = vadd.f32 %v574_v50, %v569_v49 }
 0x18c   : > { %586 = vst.msk [vmem:[#allocation3] sm:$0xff] %vm585_vm2, %v581_v51 }
 0x18d   : > { %v599_v53 = vpop.xlane.xlu0 %598 }
 0x18e   : > { %v606_v55 = vadd.f32 %v599_v53, %v590_v52 }
 0x18f   : > { %v601_v56 = vpop.xlane.xlu1 %600 }
 0x190   : > { %610 = vst.msk [vmem:[#allocation4] sm:$0xff] %vm585_vm2, %v606_v55  ;;  %v607_v58 = vadd.f32 %v601_v56, %v591_v54 }
 0x191   : > { %v576_v59 = vpop.xlane.xlu0 %575 }
 0x192   : > { %611 = vst.msk [vmem:[#allocation4 + $0x8] sm:$0xff] %vm585_vm2, %v607_v58  ;;  %v582_v61 = vadd.f32 %v576_v59, %v570_v57 }
 0x193   : > { %v578_v62 = vpop.xlane.xlu1 %577 }
 0x194   : > { %587 = vst.msk [vmem:[#allocation3 + $0x8] sm:$0xff] %vm585_vm2, %v582_v61  ;;  %v583_v0 = vadd.f32 %v578_v62, %v571_v60 }
 0x195   : > { %v603_v1 = vpop.xlane.xlu0 %602 }
 0x196   : > { %588 = vst.msk [vmem:[#allocation3 + $0x10] sm:$0xff] %vm585_vm2, %v583_v0  ;;  %v608_v3 = vadd.f32 %v603_v1, %v592_v63 }
 0x197   : > { %v580_v4 = vpop.xlane.xlu1 %579 }
 0x198   : > { %612 = vst.msk [vmem:[#allocation4 + $0x10] sm:$0xff] %vm585_vm2, %v608_v3  ;;  %v584_v5 = vadd.f32 %v580_v4, %v572_v2 }
 0x19a   : > { %589 = vst.msk [vmem:[#allocation3 + $0x18] sm:$0xff] %vm585_vm2, %v584_v5 }
 0x19b   : > { %v605_v7 = vpop.xlane.xlu1 %604 }
 0x19c   : > { %v609_v8 = vadd.f32 %v605_v7, %v593_v6 }
 0x19e   : > { %613 = vst.msk [vmem:[#allocation4 + $0x18] sm:$0xff] %vm585_vm2, %v609_v8 }
 0x19f PF: > { %p871_p6 = scmp.ne.s32.totalorder %s993_s15, 1 }
 0x1a1   : > { %617 = sbr.rel (%p871_p6) target bundleno = 592 (0x250), region = 48 }
 0x1a6   : > { %v627_v9 = vld [vmem:[#allocation3 + $0x10] sm:$0xff]  ;;  %v1004_v11 = vmov 0   ;;  %v625_v14 = vld [vmem:[#allocation3] sm:$0xff]  ;;  %v628_v18 = vld [vmem:[#allocation3 + $0x18] sm:$0xff] }
 0x1a7   : > { %v635_v10 = vld [vmem:[#allocation4 + $0x10] sm:$0xff]  ;;  %970 = vset.pattern.permute.xlu1 %v1004_v11  ;;  %969 = vset.pattern.permute.xlu0 %v1004_v11  ;;  %v631_v12 = vmul.f32 0.0625, %v627_v9  ;;  %v633_v15 = vld [vmem:[#allocation4] sm:$0xff]  ;;  %v629_v16 = vmul.f32 0.0625, %v625_v14  ;;  %v636_v19 = vld [vmem:[#allocation4 + $0x18] sm:$0xff]  ;;  %v632_v21 = vmul.f32 0.0625, %v628_v18 }
 0x1a8   : > { %v639_v13 = vmul.f32 0.0625, %v635_v10  ;;  %v637_v17 = vmul.f32 0.0625, %v633_v15  ;;  %v640_v22 = vmul.f32 0.0625, %v636_v19  ;;  %v626_v23 = vld [vmem:[#allocation3 + $0x8] sm:$0xff]  ;;  %v655_v42 = vld [vmem:[%s1180_s2 + $0x10] sm:$0xff]  ;;  %v653_v43 = vld [vmem:[%s1180_s2] sm:$0xff] }
 0x1a9   : > { %v643_v20 = vmul.f32 %v631_v12, %v631_v12  ;;  %v634_v24 = vld [vmem:[#allocation4 + $0x8] sm:$0xff]  ;;  %v641_v25 = vmul.f32 %v629_v16, %v629_v16  ;;  %v630_v26 = vmul.f32 0.0625, %v626_v23  ;;  %v644_v29 = vmul.f32 %v632_v21, %v632_v21  ;;  %v656_v45 = vld [vmem:[%s1180_s2 + $0x18] sm:$0xff]  ;;  %v669_v56 = vld [vmem:[%s1181_s3] sm:$0xff] }
 0x1aa   : > { %v638_v27 = vmul.f32 0.0625, %v634_v24  ;;  %v654_v48 = vld [vmem:[%s1180_s2 + $0x8] sm:$0xff]  ;;  %v672_v62 = vld [vmem:[%s1181_s3 + $0x18] sm:$0xff]  ;;  %v671_v63 = vld [vmem:[%s1181_s3 + $0x10] sm:$0xff] }
 0x1ab   : > { %v647_v28 = vsub.f32 %v639_v13, %v643_v20  ;;  %v645_v30 = vsub.f32 %v637_v17, %v641_v25  ;;  %v642_v31 = vmul.f32 %v630_v26, %v630_v26  ;;  %v648_v33 = vsub.f32 %v640_v22, %v644_v29  ;;  %v670_v55 = vld [vmem:[%s1181_s3 + $0x8] sm:$0xff]  ;;  %v622_v5 = vld [vmem:[#allocation2] sm:$0xff]  ;;  %v621_v6 = vld [vmem:[#allocation2 + $0x10] sm:$0xff] }
 0x1ac   : > { %v624_v10 = vld [vmem:[#allocation2 + $0x8] sm:$0xff] }
 0x1ad   : > { %v651_v32 = vmax.f32 %v647_v28, 0.0  ;;  %v649_v34 = vmax.f32 %v645_v30, 0.0  ;;  %v646_v35 = vsub.f32 %v638_v27, %v642_v31  ;;  %v652_v37 = vmax.f32 %v648_v33, 0.0 }
 0x1af   : > { %v659_v36 = vadd.f32 1e-05, %v651_v32  ;;  %v657_v38 = vadd.f32 1e-05, %v649_v34  ;;  %v650_v39 = vmax.f32 %v646_v35, 0.0 }
 0x1b0   : > { %v660_v40 = vadd.f32 1e-05, %v652_v37 }
 0x1b1   : > { %971 = vrsqrt.f32 %v659_v36  ;;  %v658_v41 = vadd.f32 1e-05, %v650_v39 }
 0x1b2   : > { %973 = vrsqrt.f32 %v657_v38 }
 0x1b3   : > { %975 = vrsqrt.f32 %v660_v40 }
 0x1b4   : > { %977 = vrsqrt.f32 %v658_v41 }
 0x1be   : > { %v972_v44 = vpop.eup %971 }
 0x1bf   : > { %v974_v46 = vpop.eup %973  ;;  %v667_v47 = vmul.f32 %v972_v44, %v655_v42 }
 0x1c0   : > { %v976_v49 = vpop.eup %975  ;;  %v665_v50 = vmul.f32 %v974_v46, %v653_v43 }
 0x1c1   : > { %v978_v51 = vpop.eup %977  ;;  %693 = vperm.xlu1 %970, %v667_v47   ;;  %v668_v52 = vmul.f32 %v976_v49, %v656_v45  ;;  %v675_v59 = vmul.f32 %v667_v47, %v631_v12  ;;  %v623_v12 = vld [vmem:[#allocation2 + $0x18] sm:$0xff] }
 0x1c2   : > { %683 = vperm.xlu0 %969, %v665_v50   ;;  %v673_v53 = vmul.f32 %v665_v50, %v629_v16  ;;  %v666_v54 = vmul.f32 %v978_v51, %v654_v48 }
 0x1c3   : > { %v676_v58 = vmul.f32 %v668_v52, %v632_v21  ;;  %v679_v1 = vsub.f32 %v671_v63, %v675_v59 }
 0x1c4   : > { %v674_v57 = vmul.f32 %v666_v54, %v630_v26  ;;  %v677_v61 = vsub.f32 %v669_v56, %v673_v53 }
 0x1c5   : > { %698 = vperm.xlu1 %970, %v668_v52   ;;  %v680_v0 = vsub.f32 %v672_v62, %v676_v58 }
 0x1c6   : > { %688 = vperm.xlu0 %969, %v666_v54   ;;  %v678_v60 = vsub.f32 %v670_v55, %v674_v57 }
 0x1c9   : > { %712 = vperm.xlu1 %970, %v678_v60  }
 0x1ca   : > { %707 = vperm.xlu0 %969, %v677_v61  }
 0x1cd   : > { %722 = vperm.xlu1 %970, %v680_v0  }
 0x1ce   : > { %717 = vperm.xlu0 %969, %v679_v1  }
 0x23c   : > { %v694_v2 = vpop.permute.xlu1 %693 }
 0x23d   : > { %v684_v3 = vpop.permute.xlu0 %683  ;;  %v703_v18 = vmul.f32 %v694_v2, %v623_v12 }
 0x23e   : > { %v701_v9 = vmul.f32 %v684_v3, %v621_v6 }
 0x240   : > { %v699_v4 = vpop.permute.xlu1 %698 }
 0x241   : > { %v689_v7 = vpop.permute.xlu0 %688  ;;  %v704_v16 = vmul.f32 %v699_v4, %v624_v10 }
 0x242   : > { %v702_v8 = vmul.f32 %v689_v7, %v622_v5 }
 0x244   : > { %v713_v11 = vpop.permute.xlu1 %712 }
 0x245   : > { %v726_v13 = vadd.f32 %v713_v11, %v702_v8  ;;  %v708_v14 = vpop.permute.xlu0 %707 }
 0x246   : > { %v725_v15 = vadd.f32 %v708_v14, %v701_v9 }
 0x247   : > { %vm730_vm3 = vcmp.ge.f32.partialorder %v726_v13, 0.0  ;;  %v734_v17 = vmul.f32 0.01, %v726_v13 }
 0x248   : > { %vm729_vm4 = vcmp.ge.f32.partialorder %v725_v15, 0.0  ;;  %v733_v19 = vmul.f32 0.01, %v725_v15  ;;  %v723_v20 = vpop.permute.xlu1 %722 }
 0x249   : > { %v738_v21 = vsel %vm730_vm3, %v726_v13, %v734_v17  ;;  %v728_v22 = vadd.f32 %v723_v20, %v704_v16  ;;  %v718_v23 = vpop.permute.xlu0 %717 }
 0x24a   : > { %742 = vst [vmem:[%s1182_s4 + $0x8] sm:$0xff] %v738_v21  ;;  %v737_v24 = vsel %vm729_vm4, %v725_v15, %v733_v19  ;;  %v727_v25 = vadd.f32 %v718_v23, %v703_v18 }
 0x24b   : > { %741 = vst [vmem:[%s1182_s4] sm:$0xff] %v737_v24  ;;  %vm732_vm5 = vcmp.ge.f32.partialorder %v728_v22, 0.0  ;;  %v736_v26 = vmul.f32 0.01, %v728_v22 }
 0x24c   : > { %vm731_vm6 = vcmp.ge.f32.partialorder %v727_v25, 0.0  ;;  %v735_v27 = vmul.f32 0.01, %v727_v25 }
 0x24d   : > { %v740_v28 = vsel %vm732_vm5, %v728_v22, %v736_v26 }
 0x24e   : > { %744 = vst [vmem:[%s1182_s4 + $0x18] sm:$0xff] %v740_v28  ;;  %v739_v29 = vsel %vm731_vm6, %v727_v25, %v735_v27 }
 0x24f   : > { %743 = vst [vmem:[%s1182_s4 + $0x10] sm:$0xff] %v739_v29 }
 0x250 PF: > { %s14_s17 = sadd.s32 1, %s1001_s17   ;;  %s1183_s15 = smov %s997_s16 }
 0x251   : > { %p11_p7 = scmp.ge.s32.totalorder %s14_s17, 4   ;;  %s1184_s16 = smov %s1186_s18 }
 0x253   :  { %13 = sbr.rel (!%p11_p7) target bundleno = 2 (0x2), region = 80 }

// kernel: forward.18
= control target key start
LH: loop header
LB: loop body
LE: loop exit
PB: predicated region body
PF: predicated region fallthrough
CT: control target
= control target key end

     0   :  { %s887_s15 = smov 0   ;;  %s889_s16 = smov 0   ;;  %s1000_s0 = inlined_call_operand.vmem [shape: bf16[1,288,128], index: 0, kind: input, shape index: {}]   ;;  %s1001_s1 = inlined_call_operand.vmem [shape: bf16[16,288], index: 1, kind: input, shape index: {}]   ;;  %s1002_s2 = inlined_call_operand.vmem [shape: f32[16,1], index: 2, kind: input, shape index: {}]   ;;  %s1003_s3 = inlined_call_operand.vmem [shape: f32[16,1], index: 3, kind: input, shape index: {}]   ;;  %s1004_s4 = inlined_call_operand.vmem [shape: f32[1,16,128], index: 4, kind: output, shape index: {}]  }
   0x1   :  { %s891_s17 = smov 0  }
   0x2 LB: > { %s29_s18 = sadd.s32 1, %s852_s16  ;;  %p714_p0 = scmp.ge.s32.totalorder %s856_s17, 1  ;;  %s856_s17 = sphi %s891_s17, %s14_s17   ;;  %s852_s16 = sphi %s889_s16, %s1006_s16   ;;  %s848_s15 = sphi %s887_s15, %s1005_s15  }
   0x3   : > { %p31_p1 = scmp.ge.s32.totalorder %s29_s18, 2  ;;  %p198_p2 = scmp.lt.s32.totalorder %s856_s17, 3 }
   0x5   : > { %s1008_s18 = smov (%p31_p1, %s29_s18), 0  ;;  %p199_p3 = pnand %p714_p0, %p198_p2 }
   0x6   : > { %p257_p4 = scmp.eq.s32.totalorder (!%p199_p3), %s848_s15, 0 }
   0x7   : > { %202 = sbr.rel (%p199_p3) target bundleno = 575 (0x23f), region = 36 }
   0xc   : > { %262 = sbr.rel (!%p257_p4) target bundleno = 17 (0x11), region = 40  ;;  %vm263_vm0 = vcmask (%p257_p4), 7168   ;;  %v858_v0 = vmov (%p257_p4), 0.0  }
   0xd   : > { %264 = vst.msk [vmem:[#allocation3] sm:$0xff] (%p257_p4), %vm263_vm0, %v858_v0  ;;  %265 = vst.msk [vmem:[#allocation3 + $0x8] sm:$0xff] (%p257_p4), %vm263_vm0, %v858_v0 }
   0xe   : > { %266 = vst.msk [vmem:[#allocation4] sm:$0xff] (%p257_p4), %vm263_vm0, %v858_v0  ;;  %267 = vst.msk [vmem:[#allocation4 + $0x8] sm:$0xff] (%p257_p4), %vm263_vm0, %v858_v0 }
  0x11 PF: > { %p716_p5 = scmp.ne.s32.totalorder %s848_s15, 0 }
  0x13   : > { %270 = sbr.rel (%p716_p5) target bundleno = 403 (0x193), region = 44 }
  0x18   : > { %v806_v1 = vld [vmem:[%s1000_s0 + $0x78] sm:$0xff]   ;;  %v859_v3 = vmov 0.0   ;;  %v808_v4 = vld [vmem:[%s1000_s0 + $0x70] sm:$0xff]   ;;  %vm860_vm1 = vmmov 0   ;;  %v810_v6 = vld [vmem:[%s1000_s0 + $0x68] sm:$0xff]   ;;  %vm434_vm2 = vcmask 261120  }
  0x19   : > { %v807_v2 = vld [vmem:[%s1000_s0 + $0x38] sm:$0xff]   ;;  %770 = vmatprep.subr.bf16.mxu1 %v859_v3  ;;  %745 = vmatprep.subr.bf16.mxu0 %v806_v1  ;;  %v809_v5 = vld [vmem:[%s1000_s0 + $0x30] sm:$0xff]   ;;  %v811_v7 = vld [vmem:[%s1000_s0 + $0x28] sm:$0xff]   ;;  %vm533_vm3 = vcmask 7168  }
  0x1a   : > { %774 = vmatprep.mubr.msk.bf16.mxu1 %vm860_vm1, %v859_v3  ;;  %746 = vmatpush3.bf16.msra.mxu0 %v807_v2  ;;  %v812_v8 = vld [vmem:[%s1000_s0 + $0x60] sm:$0xff]   ;;  %v814_v10 = vld [vmem:[%s1000_s0 + $0x58] sm:$0xff]   ;;  %v818_v11 = vld [vmem:[%s1000_s0 + $0x88] sm:$0xff]  }
  0x1b   : > { %747 = vmatprep.subr.bf16.mxu0 %v808_v4  ;;  %v813_v9 = vld [vmem:[%s1000_s0 + $0x20] sm:$0xff]   ;;  %v815_v12 = vld [vmem:[%s1000_s0 + $0x18] sm:$0xff]   ;;  %771 = vmatpush3.bf16.msra.mxu1 %v818_v11  ;;  %v816_v14 = vld [vmem:[%s1000_s0 + $0x50] sm:$0xff]  }
  0x1c   : > { %772 = vmatprep.subr.bf16.mxu1 %v859_v3  ;;  %v821_v13 = vld [vmem:[%s1000_s0 + $0x80] sm:$0xff]   ;;  %v824_v15 = vld [vmem:[%s1001_s1 + $0x8] ss:$12 sps:$4 sm:$0xff]   ;;  %v526_v42 = vld [vmem:[#allocation3 + $0x8] sm:$0xff] }
  0x1d   : > { %v817_v16 = vld [vmem:[%s1000_s0 + $0x10] sm:$0xff]   ;;  %v819_v17 = vld [vmem:[%s1000_s0 + $0x48] sm:$0xff]   ;;  %v822_v20 = vld [vmem:[%s1000_s0 + $0x40] sm:$0xff]  }
  0x1e   : > { %748 = vmatpush3.bf16.msra.mxu0 %v809_v5  ;;  %v827_v18 = vld [vmem:[%s1001_s1 + $0x4] ss:$12 sps:$4 sm:$0xff]   ;;  %v820_v19 = vld [vmem:[%s1000_s0 + $0x8] sm:$0xff]  }
  0x1f   : > { %749 = vmatprep.subr.bf16.mxu0 %v810_v6  ;;  %773 = vmatpush3.bf16.msra.mxu1 %v821_v13  ;;  %v823_v21 = vld [vmem:[%s1000_s0] sm:$0xff]   ;;  %v525_v37 = vld [vmem:[#allocation3] sm:$0xff]  ;;  %v537_v45 = vld [vmem:[#allocation4 + $0x8] sm:$0xff] }
  0x20   : > { %470 = vmatprep.mubr.bf16.mxu0 %v827_v18  ;;  %v825_v22 = vld [vmem:[%s1001_s1] ss:$12 sps:$4 sm:$0xff]  }
  0x21   : > { %v536_v39 = vld [vmem:[#allocation4] sm:$0xff] }
  0x22   : > { %750 = vmatpush3.bf16.msra.mxu0 %v811_v7  ;;  %775 = vmatmul.mubr.msk.bf16.vlgmr.msra.gmra.mxu1 %vm434_vm2, %v824_v15 }
  0x23   : > { %751 = vmatprep.subr.bf16.mxu0 %v812_v8 }
  0x26   : > { %752 = vmatpush3.bf16.msra.mxu0 %v813_v9 }
  0x27   : > { %753 = vmatprep.subr.bf16.mxu0 %v814_v10 }
  0x2a   : > { %754 = vmatpush3.bf16.msra.mxu0 %v815_v12 }
  0x2b   : > { %755 = vmatprep.subr.bf16.mxu0 %v816_v14 }
  0x2e   : > { %756 = vmatpush3.bf16.msra.mxu0 %v817_v16 }
  0x2f   : > { %757 = vmatprep.subr.bf16.mxu0 %v819_v17 }
  0x32   : > { %758 = vmatpush3.bf16.msra.mxu0 %v820_v19 }
  0x33   : > { %759 = vmatprep.subr.bf16.mxu0 %v822_v20 }
  0x36   : > { %760 = vmatpush3.bf16.msra.mxu0 %v823_v21 }
  0x39   : > { %471 = vmatmul.mubr.bf16.vlgmr.msra.gmra.mxu0 %v825_v22 }
  0xe2   : > { %v513_v23 = vpop.f32.mrf.mxu1 }
  0xe4   : > { %v776_v24 = vpop.f32.mrf.mxu1 }
  0xe6   : > { %v516_v25 = vpop.f32.mrf.mxu1 }
  0xe8   : > { %v777_v26 = vpop.f32.mrf.mxu1 }
  0xf9   : > { %v761_v27 = vpop.f32.mrf.mxu0 }
  0xfb   : > { %v762_v28 = vpop.f32.mrf.mxu0 }
  0xfc   : > { %v763_v29 = vadd.f32 %v762_v28, %v761_v27 }
  0xfd   : > { %v764_v30 = vpop.f32.mrf.mxu0 }
  0xfe   : > { %v514_v31 = vadd.f32 %v763_v29, %v513_v23 }
  0xff   : > { %v765_v32 = vpop.f32.mrf.mxu0 }
 0x100   : > { %523 = vst [vmem:[#allocation2] sm:$0xff] %v514_v31  ;;  %v766_v33 = vadd.f32 %v765_v32, %v764_v30  ;;  %527 = vadd.xlane.f32.xlu0 %v514_v31  ;;  %v538_v34 = vmul.f32 %v514_v31, %v514_v31 }
 0x102   : > { %v517_v35 = vadd.f32 %v766_v33, %v516_v25  ;;  %540 = vadd.xlane.f32.xlu1 %v538_v34 }
 0x104   : > { %524 = vst [vmem:[#allocation2 + $0x8] sm:$0xff] %v517_v35  ;;  %529 = vadd.xlane.f32.xlu0 %v517_v35  ;;  %v539_v36 = vmul.f32 %v517_v35, %v517_v35 }
 0x106   : > { %542 = vadd.xlane.f32.xlu1 %v539_v36 }
 0x189   : > { %v528_v38 = vpop.xlane.xlu0 %527 }
 0x18a   : > { %v531_v40 = vadd.f32 %v528_v38, %v525_v37 }
 0x18b   : > { %v541_v41 = vpop.xlane.xlu1 %540 }
 0x18c   : > { %534 = vst.msk [vmem:[#allocation3] sm:$0xff] %vm533_vm3, %v531_v40  ;;  %v544_v43 = vadd.f32 %v541_v41, %v536_v39 }
 0x18d   : > { %v530_v44 = vpop.xlane.xlu0 %529 }
 0x18e   : > { %546 = vst.msk [vmem:[#allocation4] sm:$0xff] %vm533_vm3, %v544_v43  ;;  %v532_v46 = vadd.f32 %v530_v44, %v526_v42 }
 0x18f   : > { %v543_v47 = vpop.xlane.xlu1 %542 }
 0x190   : > { %535 = vst.msk [vmem:[#allocation3 + $0x8] sm:$0xff] %vm533_vm3, %v532_v46  ;;  %v545_v48 = vadd.f32 %v543_v47, %v537_v45 }
 0x192   : > { %547 = vst.msk [vmem:[#allocation4 + $0x8] sm:$0xff] %vm533_vm3, %v545_v48 }
 0x193 PF: > { %p739_p6 = scmp.ne.s32.totalorder %s848_s15, 1 }
 0x195   : > { %551 = sbr.rel (%p739_p6) target bundleno = 575 (0x23f), region = 48 }
 0x19a   : > { %v557_v49 = vld [vmem:[#allocation3] sm:$0xff]  ;;  %v561_v50 = vld [vmem:[#allocation4] sm:$0xff]  ;;  %v861_v51 = vmov 0   ;;  %v558_v54 = vld [vmem:[#allocation3 + $0x8] sm:$0xff] }
 0x19b   : > { %828 = vset.pattern.permute.xlu0 %v861_v51  ;;  %v559_v52 = vmul.f32 0.25, %v557_v49  ;;  %v563_v53 = vmul.f32 0.25, %v561_v50  ;;  %829 = vset.pattern.permute.xlu1 %v861_v51  ;;  %v562_v55 = vld [vmem:[#allocation4 + $0x8] sm:$0xff]  ;;  %v560_v56 = vmul.f32 0.25, %v558_v54  ;;  %v571_v2 = vld [vmem:[%s1002_s2] sm:$0xff] }
 0x19c   : > { %v564_v57 = vmul.f32 0.25, %v562_v55  ;;  %v572_v3 = vld [vmem:[%s1002_s2 + $0x8] sm:$0xff]  ;;  %v579_v8 = vld [vmem:[%s1003_s3] sm:$0xff] }
 0x19d   : > { %v565_v58 = vmul.f32 %v559_v52, %v559_v52  ;;  %v566_v59 = vmul.f32 %v560_v56, %v560_v56  ;;  %v580_v10 = vld [vmem:[%s1003_s3 + $0x8] sm:$0xff]  ;;  %v555_v14 = vld [vmem:[#allocation2] sm:$0xff] }
 0x19e   : > { %v556_v18 = vld [vmem:[#allocation2 + $0x8] sm:$0xff] }
 0x19f   : > { %v567_v60 = vsub.f32 %v563_v53, %v565_v58  ;;  %v568_v61 = vsub.f32 %v564_v57, %v566_v59 }
 0x1a1   : > { %v569_v62 = vmax.f32 %v567_v60, 0.0  ;;  %v570_v63 = vmax.f32 %v568_v61, 0.0 }
 0x1a3   : > { %v573_v0 = vadd.f32 1e-05, %v569_v62  ;;  %v574_v1 = vadd.f32 1e-05, %v570_v63 }
 0x1a5   : > { %830 = vrsqrt.f32 %v573_v0 }
 0x1a6   : > { %832 = vrsqrt.f32 %v574_v1 }
 0x1b2   : > { %v831_v4 = vpop.eup %830 }
 0x1b3   : > { %v833_v5 = vpop.eup %832  ;;  %v577_v6 = vmul.f32 %v831_v4, %v571_v2 }
 0x1b4   : > { %v578_v7 = vmul.f32 %v833_v5, %v572_v3 }
 0x1b5   : > { %587 = vperm.xlu0 %828, %v577_v6   ;;  %v581_v9 = vmul.f32 %v577_v6, %v559_v52 }
 0x1b6   : > { %v582_v11 = vmul.f32 %v578_v7, %v560_v56 }
 0x1b7   : > { %v583_v12 = vsub.f32 %v579_v8, %v581_v9 }
 0x1b8   : > { %v584_v13 = vsub.f32 %v580_v10, %v582_v11 }
 0x1b9   : > { %592 = vperm.xlu0 %828, %v578_v7   ;;  %599 = vperm.xlu1 %829, %v583_v12  }
 0x1bd   : > { %604 = vperm.xlu1 %829, %v584_v13  }
 0x230   : > { %v588_v15 = vpop.permute.xlu0 %587 }
 0x231   : > { %v595_v16 = vmul.f32 %v588_v15, %v555_v14 }
 0x234   : > { %v593_v17 = vpop.permute.xlu0 %592  ;;  %v600_v19 = vpop.permute.xlu1 %599 }
 0x235   : > { %v607_v20 = vadd.f32 %v600_v19, %v595_v16  ;;  %v596_v21 = vmul.f32 %v593_v17, %v556_v18 }
 0x237   : > { %vm609_vm4 = vcmp.ge.f32.partialorder %v607_v20, 0.0  ;;  %v611_v22 = vmul.f32 0.01, %v607_v20 }
 0x238   : > { %v605_v23 = vpop.permute.xlu1 %604 }
 0x239   : > { %v613_v24 = vsel %vm609_vm4, %v607_v20, %v611_v22  ;;  %v608_v25 = vadd.f32 %v605_v23, %v596_v21 }
 0x23a   : > { %615 = vst [vmem:[%s1004_s4] sm:$0xff] %v613_v24 }
 0x23b   : > { %vm610_vm5 = vcmp.ge.f32.partialorder %v608_v25, 0.0  ;;  %v612_v26 = vmul.f32 0.01, %v608_v25 }
 0x23d   : > { %v614_v27 = vsel %vm610_vm5, %v608_v25, %v612_v26 }
 0x23e   : > { %616 = vst [vmem:[%s1004_s4 + $0x8] sm:$0xff] %v614_v27 }
 0x23f PF: > { %s14_s17 = sadd.s32 1, %s856_s17   ;;  %s1005_s15 = smov %s852_s16 }
 0x240   : > { %p11_p7 = scmp.ge.s32.totalorder %s14_s17, 4   ;;  %s1006_s16 = smov %s1008_s18 }
 0x242   :  { %13 = sbr.rel (!%p11_p7) target bundleno = 2 (0x2), region = 80 }

// kernel: forward.19
= control target key start
LH: loop header
LB: loop body
LE: loop exit
PB: predicated region body
PF: predicated region fallthrough
CT: control target
= control target key end

     0   :  { %s831_s21 = smov 0   ;;  %s833_s22 = smov 0   ;;  %s917_s0 = inlined_call_operand.vmem [shape: bf16[1,144,128], index: 0, kind: input, shape index: {}]   ;;  %s918_s1 = inlined_call_operand.vmem [shape: bf16[16,144], index: 1, kind: input, shape index: {}]   ;;  %s919_s2 = inlined_call_operand.vmem [shape: f32[16,1], index: 2, kind: input, shape index: {}]   ;;  %s920_s3 = inlined_call_operand.vmem [shape: f32[16,1], index: 3, kind: input, shape index: {}]   ;;  %s921_s4 = inlined_call_operand.vmem [shape: bf16[8,16], index: 4, kind: input, shape index: {}]   ;;  %s922_s5 = inlined_call_operand.vmem [shape: f32[8,1], index: 5, kind: input, shape index: {}]   ;;  %s923_s6 = inlined_call_operand.vmem [shape: f32[1,8,128], index: 6, kind: output, shape index: {}]  }
   0x1   :  { %s835_s23 = smov 0  }
   0x2 LB: > { %s31_s24 = sadd.s32 1, %s785_s22  ;;  %p690_p0 = scmp.ge.s32.totalorder %s789_s23, 1  ;;  %s789_s23 = sphi %s835_s23, %s16_s23   ;;  %s785_s22 = sphi %s833_s22, %s925_s22   ;;  %s781_s21 = sphi %s831_s21, %s924_s21  }
   0x3   : > { %p33_p1 = scmp.ge.s32.totalorder %s31_s24, 2  ;;  %p248_p2 = scmp.lt.s32.totalorder %s789_s23, 3 }
   0x5   : > { %s927_s24 = smov (%p33_p1, %s31_s24), 0  ;;  %p249_p3 = pnand %p690_p0, %p248_p2 }
   0x6   : > { %p309_p4 = scmp.eq.s32.totalorder (!%p249_p3), %s781_s21, 0 }
   0x7   : > { %252 = sbr.rel (%p249_p3) target bundleno = 776 (0x308), region = 44 }
   0xc   : > { %314 = sbr.rel (!%p309_p4) target bundleno = 17 (0x11), region = 48  ;;  %vm315_vm0 = vcmask (%p309_p4), 7168   ;;  %v791_v0 = vmov (%p309_p4), 0.0  }
   0xd   : > { %316 = vst.msk [vmem:[#allocation3] sm:$0xff] (%p309_p4), %vm315_vm0, %v791_v0  ;;  %317 = vst.msk [vmem:[#allocation3 + $0x8] sm:$0xff] (%p309_p4), %vm315_vm0, %v791_v0 }
   0xe   : > { %318 = vst.msk [vmem:[#allocation4] sm:$0xff] (%p309_p4), %vm315_vm0, %v791_v0  ;;  %319 = vst.msk [vmem:[#allocation4 + $0x8] sm:$0xff] (%p309_p4), %vm315_vm0, %v791_v0 }
  0x11 PF: > { %p692_p5 = scmp.ne.s32.totalorder %s781_s21, 0 }
  0x13   : > { %322 = sbr.rel (%p692_p5) target bundleno = 401 (0x191), region = 52 }
  0x18   : > { %v749_v1 = vld [vmem:[%s917_s0 + $0x38] sm:$0xff]   ;;  %v792_v2 = vmov 0   ;;  %v750_v3 = vld [vmem:[%s917_s0 + $0x30] sm:$0xff]   ;;  %v751_v4 = vld [vmem:[%s917_s0 + $0x28] sm:$0xff]   ;;  %vm406_vm1 = vcmask 130048   ;;  %vm464_vm2 = vcmask 7168  }
  0x19   : > { %410 = vmatprep.subr.bf16.mxu0 %v792_v2  ;;  %v752_v5 = vld [vmem:[%s917_s0 + $0x20] sm:$0xff]   ;;  %v753_v7 = vld [vmem:[%s917_s0 + $0x18] sm:$0xff]   ;;  %v754_v8 = vld [vmem:[%s917_s0 + $0x10] sm:$0xff]  }
  0x1a   : > { %411 = vmatpush1.bf16.msra.mxu0 %v749_v1  ;;  %v760_v6 = vld [vmem:[%s918_s1 + $0x4] ss:$8 sps:$4 sm:$0xff]   ;;  %v758_v12 = vld [vmem:[%s918_s1] ss:$8 sps:$4 sm:$0xff]   ;;  %v456_v19 = vld [vmem:[#allocation3] sm:$0xff] }
  0x1b   : > { %412 = vmatprep.subr.bf16.mxu0 %v792_v2  ;;  %704 = vmatprep.mubr.msk.bf16.mxu0 %vm406_vm1, %v760_v6  ;;  %v755_v9 = vld [vmem:[%s917_s0 + $0x8] sm:$0xff]   ;;  %v756_v10 = vld [vmem:[%s917_s0] sm:$0xff]   ;;  %v457_v24 = vld [vmem:[#allocation3 + $0x8] sm:$0xff] }
  0x1c   : > { %v757_v11 = vld [vmem:[%s917_s0 + $0x40] sm:$0xff]   ;;  %v468_v27 = vld [vmem:[#allocation4 + $0x8] sm:$0xff] }
  0x1d   : > { %v467_v21 = vld [vmem:[#allocation4] sm:$0xff] }
  0x1e   : > { %413 = vmatpush1.bf16.msra.mxu0 %v750_v3 }
  0x1f   : > { %414 = vmatprep.subr.bf16.mxu0 %v792_v2 }
  0x22   : > { %415 = vmatpush1.bf16.msra.mxu0 %v751_v4 }
  0x23   : > { %416 = vmatprep.subr.bf16.mxu0 %v792_v2 }
  0x26   : > { %417 = vmatpush1.bf16.msra.mxu0 %v752_v5 }
  0x27   : > { %418 = vmatprep.subr.bf16.mxu0 %v792_v2 }
  0x2a   : > { %419 = vmatpush1.bf16.msra.mxu0 %v753_v7 }
  0x2b   : > { %420 = vmatprep.subr.bf16.mxu0 %v792_v2 }
  0x2e   : > { %421 = vmatpush1.bf16.msra.mxu0 %v754_v8 }
  0x2f   : > { %422 = vmatprep.subr.bf16.mxu0 %v792_v2 }
  0x32   : > { %423 = vmatpush1.bf16.msra.mxu0 %v755_v9 }
  0x33   : > { %424 = vmatprep.subr.bf16.mxu0 %v792_v2 }
  0x36   : > { %425 = vmatpush1.bf16.msra.mxu0 %v756_v10 }
  0x37   : > { %440 = vmatprep.subr.bf16.mxu0 %v792_v2 }
  0x3a   : > { %441 = vmatpush2.bf16.msra.mxu0 %v757_v11 }
  0x3d   : > { %443 = vmatmul.mubr.bf16.vlgmr.msra.gmra.mxu0 %v758_v12 }
  0xfd   : > { %v444_v13 = vpop.f32.mrf.mxu0 }
  0xfe   : > { %454 = vst [vmem:[#allocation2] sm:$0xff] %v444_v13  ;;  %458 = vadd.xlane.f32.xlu0 %v444_v13  ;;  %v469_v14 = vmul.f32 %v444_v13, %v444_v13 }
  0xff   : > { %v446_v15 = vpop.f32.mrf.mxu0 }
 0x100   : > { %471 = vadd.xlane.f32.xlu1 %v469_v14 }
 0x101   : > { %v447_v16 = vpop.f32.mrf.mxu0 }
 0x102   : > { %455 = vst [vmem:[#allocation2 + $0x8] sm:$0xff] %v447_v16  ;;  %460 = vadd.xlane.f32.xlu0 %v447_v16  ;;  %v470_v17 = vmul.f32 %v447_v16, %v447_v16 }
 0x103   : > { %v449_v18 = vpop.f32.mrf.mxu0 }
 0x104   : > { %473 = vadd.xlane.f32.xlu1 %v470_v17 }
 0x187   : > { %v459_v20 = vpop.xlane.xlu0 %458 }
 0x188   : > { %v462_v22 = vadd.f32 %v459_v20, %v456_v19 }
 0x189   : > { %v472_v23 = vpop.xlane.xlu1 %471 }
 0x18a   : > { %465 = vst.msk [vmem:[#allocation3] sm:$0xff] %vm464_vm2, %v462_v22  ;;  %v475_v25 = vadd.f32 %v472_v23, %v467_v21 }
 0x18b   : > { %v461_v26 = vpop.xlane.xlu0 %460 }
 0x18c   : > { %477 = vst.msk [vmem:[#allocation4] sm:$0xff] %vm464_vm2, %v475_v25  ;;  %v463_v28 = vadd.f32 %v461_v26, %v457_v24 }
 0x18d   : > { %v474_v29 = vpop.xlane.xlu1 %473 }
 0x18e   : > { %466 = vst.msk [vmem:[#allocation3 + $0x8] sm:$0xff] %vm464_vm2, %v463_v28  ;;  %v476_v30 = vadd.f32 %v474_v29, %v468_v27 }
 0x190   : > { %478 = vst.msk [vmem:[#allocation4 + $0x8] sm:$0xff] %vm464_vm2, %v476_v30 }
 0x191 PF: > { %p705_p6 = scmp.ne.s32.totalorder %s781_s21, 1 }
 0x193   : > { %482 = sbr.rel (%p705_p6) target bundleno = 776 (0x308), region = 56 }
 0x198   : > { %v488_v31 = vld [vmem:[#allocation3] sm:$0xff]  ;;  %v492_v32 = vld [vmem:[#allocation4] sm:$0xff]  ;;  %v793_v33 = vmov 0   ;;  %v489_v36 = vld [vmem:[#allocation3 + $0x8] sm:$0xff]  ;;  %v794_v61 = vmov 0.0   ;;  %vm795_vm3 = vmmov 0  }
 0x199   : > { %761 = vset.pattern.permute.xlu0 %v793_v33  ;;  %v490_v34 = vmul.f32 0.25, %v488_v31  ;;  %v494_v35 = vmul.f32 0.25, %v492_v32  ;;  %762 = vset.pattern.permute.xlu1 %v793_v33  ;;  %v493_v37 = vld [vmem:[#allocation4 + $0x8] sm:$0xff]  ;;  %v491_v38 = vmul.f32 0.25, %v489_v36  ;;  %v502_v48 = vld [vmem:[%s919_s2] sm:$0xff]  ;;  %vm554_vm6 = vcmask 130048  }
 0x19a   : > { %v495_v39 = vmul.f32 0.25, %v493_v37  ;;  %v503_v49 = vld [vmem:[%s919_s2 + $0x8] sm:$0xff]  ;;  %v510_v54 = vld [vmem:[%s920_s3] sm:$0xff]  ;;  %714 = vmatprep.subr.bf16.mxu0 %v794_v61  ;;  %716 = vmatprep.mubr.msk.bf16.mxu0 %vm795_vm3, %v794_v61 }
 0x19b   : > { %v496_v40 = vmul.f32 %v490_v34, %v490_v34  ;;  %v497_v41 = vmul.f32 %v491_v38, %v491_v38  ;;  %v511_v56 = vld [vmem:[%s920_s3 + $0x8] sm:$0xff]  ;;  %v548_v60 = vld [vmem:[%s922_s5] sm:$0xff] }
 0x19c   : > { %v486_v62 = vld [vmem:[#allocation2] sm:$0xff]  ;;  %v487_v2 = vld [vmem:[#allocation2 + $0x8] sm:$0xff] }
 0x19d   : > { %v498_v42 = vsub.f32 %v494_v35, %v496_v40  ;;  %v499_v43 = vsub.f32 %v495_v39, %v497_v41  ;;  %v546_v13 = vld [vmem:[%s921_s4] sm:$0xf] }
 0x19f   : > { %v500_v44 = vmax.f32 %v498_v42, 0.0  ;;  %v501_v45 = vmax.f32 %v499_v43, 0.0 }
 0x1a1   : > { %v504_v46 = vadd.f32 1e-05, %v500_v44  ;;  %v505_v47 = vadd.f32 1e-05, %v501_v45 }
 0x1a3   : > { %763 = vrsqrt.f32 %v504_v46 }
 0x1a4   : > { %765 = vrsqrt.f32 %v505_v47 }
 0x1b0   : > { %v764_v50 = vpop.eup %763 }
 0x1b1   : > { %v766_v51 = vpop.eup %765  ;;  %v508_v52 = vmul.f32 %v764_v50, %v502_v48 }
 0x1b2   : > { %v509_v53 = vmul.f32 %v766_v51, %v503_v49 }
 0x1b3   : > { %518 = vperm.xlu0 %761, %v508_v52   ;;  %v512_v55 = vmul.f32 %v508_v52, %v490_v34 }
 0x1b4   : > { %v513_v57 = vmul.f32 %v509_v53, %v491_v38 }
 0x1b5   : > { %v514_v58 = vsub.f32 %v510_v54, %v512_v55 }
 0x1b6   : > { %v515_v59 = vsub.f32 %v511_v56, %v513_v57 }
 0x1b7   : > { %523 = vperm.xlu0 %761, %v509_v53   ;;  %530 = vperm.xlu1 %762, %v514_v58  }
 0x1bb   : > { %551 = vperm.xlu0 %761, %v548_v60   ;;  %535 = vperm.xlu1 %762, %v515_v59  }
 0x22e   : > { %v519_v63 = vpop.permute.xlu0 %518 }
 0x22f   : > { %v526_v0 = vmul.f32 %v519_v63, %v486_v62 }
 0x232   : > { %v524_v1 = vpop.permute.xlu0 %523  ;;  %v531_v3 = vpop.permute.xlu1 %530 }
 0x233   : > { %v538_v4 = vadd.f32 %v531_v3, %v526_v0  ;;  %v527_v5 = vmul.f32 %v524_v1, %v487_v2 }
 0x235   : > { %v542_v7 = vmul.f32 0.01, %v538_v4  ;;  %vm540_vm4 = vcmp.ge.f32.partialorder %v538_v4, 0.0 }
 0x236   : > { %v536_v6 = vpop.permute.xlu1 %535  ;;  %v552_v14 = vpop.permute.xlu0 %551 }
 0x237   : > { %v539_v8 = vadd.f32 %v536_v6, %v527_v5  ;;  %v544_v10 = vsel %vm540_vm4, %v538_v4, %v542_v7 }
 0x239   : > { %v543_v9 = vmul.f32 0.01, %v539_v8  ;;  %vm541_vm5 = vcmp.ge.f32.partialorder %v539_v8, 0.0 }
 0x23b   : > { %v545_v11 = vsel %vm541_vm5, %v539_v8, %v543_v9 }
 0x23c   : > { %v547_v12 = vpack.c.bf16 %v545_v11, %v544_v10 }
 0x23e   : > { %715 = vmatpush3.bf16.msra.mxu0 %v547_v12 }
 0x241   : > { %717 = vmatmul.mubr.msk.bf16.vlgmr.msra.gmra.mxu0 %vm554_vm6, %v546_v13 }
 0x301   : > { %v592_v15 = vpop.f32.mrf.mxu0 }
 0x302   : > { %v593_v16 = vadd.f32 %v592_v15, %v552_v14 }
 0x303   : > { %v718_v17 = vpop.f32.mrf.mxu0 }
 0x304   : > { %598 = vst [vmem:[%s923_s6] sm:$0xff] %v593_v16 }
 0x305   : > { %v595_v18 = vpop.f32.mrf.mxu0 }
 0x307   : > { %v719_v19 = vpop.f32.mrf.mxu0 }
 0x308 PF: > { %s16_s23 = sadd.s32 1, %s789_s23   ;;  %s924_s21 = smov %s785_s22 }
 0x309   : > { %p13_p7 = scmp.ge.s32.totalorder %s16_s23, 4   ;;  %s925_s22 = smov %s927_s24 }
 0x30b   :  { %15 = sbr.rel (!%p13_p7) target bundleno = 2 (0x2), region = 88 }

</bundles_post_ra>
